<compile_context>
chip_gen: v5e
topology: v5e:2x2
jax: 0.10.0
libtpu: 0.0.40
codegen_flags: <defaults>
</compile_context>

<pallas_src>
import math
from functools import partial

import jax
import jax.numpy as jnp
from jax.experimental import pallas as pl
from jax.experimental.pallas import tpu as pltpu

_LANE = 128


def _rnd128(c):
    return ((c + _LANE - 1) // _LANE) * _LANE


# ---------------------------------------------------------------------------
# Host-side parameter preparation: fold BN, fuse + 128-pad the 1x1 convs,
# pad KxK conv channels, split fc2 rows per branch, cast weights to bf16.
# ---------------------------------------------------------------------------
def _prepare_params(params, mm_dtype, eps=1e-3):
    def fold(p):  # bn(conv(x)) == x (*) W' + b'   (inference running stats)
        scale = p["gamma"] * jax.lax.rsqrt(p["var"] + eps)
        return p["w"] * scale, (p["b"] - p["mean"]) * scale + p["beta"]

    fc1_w = params["fc1_w"]
    D = fc1_w.shape[1]
    w1a, b1a = fold(params["branch1"])      # (1,1,D,ch1x1)
    w2a, b2a = fold(params["branch2_0"])    # (1,1,D,ch3x3red)
    w3a, b3a = fold(params["branch3_0"])    # (1,1,D,ch5x5red)
    w2b, b2b = fold(params["branch2_1"])    # (3,3,ch3x3red,ch3x3)
    w3b, b3b = fold(params["branch3_1"])    # (5,5,ch5x5red,ch5x5)

    ch1x1, ch3x3red, ch5x5red = w1a.shape[-1], w2a.shape[-1], w3a.shape[-1]
    ch3x3, ch5x5 = w2b.shape[-1], w3b.shape[-1]
    g1, g2r, g3r = _rnd128(ch1x1), _rnd128(ch3x3red), _rnd128(ch5x5red)
    g2, g3 = _rnd128(ch3x3), _rnd128(ch5x5)

    pad_cols = lambda w, n: jnp.pad(w, ((0, 0), (0, n - w.shape[1])))
    pad_rows = lambda w, n: jnp.pad(w, ((0, n - w.shape[0]), (0, 0)))
    pad_vec = lambda v, n: jnp.pad(v, (0, n - v.shape[0]))

    # fused 1x1 convs, lane-aligned group boundaries  g1 | g2r | g3r
    w1x1 = jnp.concatenate([pad_cols(w1a.reshape(D, ch1x1), g1),
                            pad_cols(w2a.reshape(D, ch3x3red), g2r),
                            pad_cols(w3a.reshape(D, ch5x5red), g3r)], axis=1)
    b1x1 = jnp.concatenate([pad_vec(b1a, g1), pad_vec(b2a, g2r),
                            pad_vec(b3a, g3r)])

    # KxK convs: pad Cin/Cout to 128 multiples, flatten taps to leading dim
    def prep_conv(w, b, k, gin, gout):
        w = jnp.pad(w, ((0, 0), (0, 0),
                        (0, gin - w.shape[2]), (0, gout - w.shape[3])))
        return w.reshape(k * k, gin, gout), pad_vec(b, gout)

    w3c, b3c = prep_conv(w2b, b2b, 3, g2r, g2)
    w5c, b5c = prep_conv(w3b, b3b, 5, g3r, g3)

    # fc2 row-splits per branch channel group (so the kernel never slices
    # channels of the concat buffer -- there is no concat buffer at all)
    fc2_w = params["fc2_w"]
    fc2_w1 = pad_rows(fc2_w[0:ch1x1], g1)
    fc2_w2 = pad_rows(fc2_w[ch1x1:ch1x1 + ch3x3], g2)
    fc2_w3 = pad_rows(fc2_w[ch1x1 + ch3x3:], g3)

    wt = lambda a: a.astype(mm_dtype)
    f32 = lambda a: a.astype(jnp.float32)
    prep = dict(
        fc1_w=wt(fc1_w), fc1_b=f32(params["fc1_b"]).reshape(1, -1),
        w1x1=wt(w1x1), b1x1=f32(b1x1).reshape(1, -1),
        w3=wt(w3c), b3=f32(b3c).reshape(1, -1),
        w5=wt(w5c), b5=f32(b5c).reshape(1, -1),
        fc2_w=wt(fc2_w), fc2_w1=wt(fc2_w1), fc2_w2=wt(fc2_w2),
        fc2_w3=wt(fc2_w3), fc2_b=f32(params["fc2_b"]).reshape(1, -1),
    )
    dims = dict(g1=g1, g2r=g2r, g2=g2, g3r=g3r, g3=g3,
                ch1x1=ch1x1, ch3x3=ch3x3, ch5x5=ch5x5)
    return prep, dims


# ---------------------------------------------------------------------------
# The fused kernel (one grid step == one batch element).
# ---------------------------------------------------------------------------
def _make_kernel(P, Hc, Wc, g1, g2r, g3r, mm_dtype):
    HW = Hc * Wc

    def cast(a):
        return a.astype(mm_dtype)

    def mm(a, b):   # bf16 (or f32) MXU inputs, always f32 accumulation
        return jnp.dot(cast(a), b, preferred_element_type=jnp.float32)

    def shift_rows(a, s):
        """b[i, :] = a[i + s, :] for 0 <= i+s < n, else 0.  s is static."""
        n, c = a.shape
        if s == 0:
            return a
        if abs(s) >= n:
            return jnp.zeros_like(a)
        z = jnp.zeros((abs(s), c), a.dtype)
        if s > 0:
            return jnp.concatenate([a[s:, :], z], axis=0)
        return jnp.concatenate([z, a[:n + s, :]], axis=0)

    def conv_branch(src, w_ref, b_ref, k, w_iota):
        """KxK conv (pad k//2) on row-major (HW, Cred) tokens, accumulated as
        a Python value across the statically unrolled taps (no acc scratch)."""
        p = k // 2
        acc = None
        for kh in range(k):
            for kw in range(k):
                dh, dw = kh - p, kw - p
                v = shift_rows(src, dh * Wc + dw)
                if dw != 0:
                    # column-validity mask: 0 <= w + dw < Wc (row validity is
                    # already handled by the zero fill of the shift)
                    m = (w_iota >= -dw) & (w_iota < Wc - dw)
                    v = jnp.where(m, v, jnp.zeros_like(v))
                term = jnp.dot(v, w_ref[kh * k + kw],
                               preferred_element_type=jnp.float32)
                acc = term if acc is None else acc + term
        return jnp.maximum(acc + b_ref[...], 0.0)

    def kernel(x_ref, fc1w_ref, fc1b_ref, w1x1_ref, b1x1_ref,
               w3_ref, b3_ref, w5_ref, b5_ref,
               fc2w_ref, fc2w1_ref, fc2w2_ref, fc2w3_ref, fc2b_ref, o_ref):
        w_iota = jax.lax.broadcasted_iota(jnp.int32, (HW, 1), 0) % Wc

        xall = x_ref[0]                                            # (P, fc_in)

        # ---- D_fc1 + ReLU: tiny cls matvec + 0-based spatial slab ----------
        x0c = jnp.maximum(mm(xall[0:1, :], fc1w_ref[...]) + fc1b_ref[...], 0.0)
        xs = jnp.maximum(mm(xall[1:P, :], fc1w_ref[...]) + fc1b_ref[...], 0.0)
        xsb = cast(xs)                                             # (HW, D)

        # ---- fused, 128-padded 1x1 convs (BN folded) + ReLU -----------------
        r = jnp.maximum(jnp.dot(xsb, w1x1_ref[...],
                                preferred_element_type=jnp.float32)
                        + b1x1_ref[...], 0.0)
        rb = cast(r)
        b1v = rb[:, 0:g1]                         # branch1 output  (lane-aligned)
        r2 = rb[:, g1:g1 + g2r]                   # branch2 reduce
        r3 = rb[:, g1 + g2r:g1 + g2r + g3r]       # branch3 reduce

        # ---- 3x3 / 5x5 convs (BN folded) + ReLU ------------------------------
        b2v = cast(conv_branch(r2, w3_ref, b3_ref, 3, w_iota))
        b3v = cast(conv_branch(r3, w5_ref, b5_ref, 5, w_iota))

        # ---- D_fc2, decomposed per channel group; residual folded via xs@W2 -
        out_sp = (jnp.dot(xsb, fc2w_ref[...], preferred_element_type=jnp.float32)
                  + jnp.dot(b1v, fc2w1_ref[...], preferred_element_type=jnp.float32)
                  + jnp.dot(b2v, fc2w2_ref[...], preferred_element_type=jnp.float32)
                  + jnp.dot(b3v, fc2w3_ref[...], preferred_element_type=jnp.float32)
                  + fc2b_ref[...])
        # cls row of the original: cat([clstoken, ...]) + x0  ->  2 * x0[0]
        out_cls = mm(2.0 * x0c, fc2w_ref[...]) + fc2b_ref[...]

        o_ref[0:1, 0:1, :] = out_cls[None]
        o_ref[0:1, 1:P, :] = out_sp[None]

    return kernel


# ---------------------------------------------------------------------------
# Wrapper: one pallas_call over grid=(B,)
# ---------------------------------------------------------------------------
@partial(jax.jit, static_argnames=("skip_connect", "buffered_weights",
                                   "matmul_dtype"))
def mul_conv_adapter(x, params, skip_connect=False, buffered_weights=True,
                     matmul_dtype=jnp.bfloat16):
    B, P, fc_in = x.shape
    D = params["fc1_w"].shape[1]
    Hc = Wc = int(math.sqrt(P - 1))
    assert Hc * Wc + 1 == P, "P must be (side*side + 1)"
    ch1x1 = params["branch1"]["w"].shape[-1]
    ch3x3 = params["branch2_1"]["w"].shape[-1]
    ch5x5 = params["branch3_1"]["w"].shape[-1]
    assert ch1x1 + ch3x3 + ch5x5 == D

    prep, dims = _prepare_params(params, matmul_dtype)
    g1, g2r, g2 = dims["g1"], dims["g2r"], dims["g2"]
    g3r, g3 = dims["g3r"], dims["g3"]
    C1p = g1 + g2r + g3r
    HW = Hc * Wc

    kernel = _make_kernel(P, Hc, Wc, g1, g2r, g3r, matmul_dtype)

    # Constant-index weight/bias operands: request single buffering (they are
    # re-used every grid step, so double buffering just wastes VMEM).
    def wspec(shape):
        imap = {2: (lambda b: (0, 0)), 3: (lambda b: (0, 0, 0))}[len(shape)]
        if buffered_weights:
            try:
                return pl.BlockSpec(shape, imap, pipeline_mode=pl.Buffered(1))
            except Exception:  # older jax without pipeline_mode / Buffered(1)
                pass
        return pl.BlockSpec(shape, imap)

    in_specs = [
        pl.BlockSpec((1, P, fc_in), lambda b: (b, 0, 0)),        # x
        wspec((fc_in, D)), wspec((1, D)),                        # fc1
        wspec((D, C1p)), wspec((1, C1p)),                        # fused 1x1
        wspec((9, g2r, g2)), wspec((1, g2)),                     # 3x3
        wspec((25, g3r, g3)), wspec((1, g3)),                    # 5x5
        wspec((D, fc_in)),                                       # fc2 (full)
        wspec((g1, fc_in)), wspec((g2, fc_in)), wspec((g3, fc_in)),  # fc2 splits
        wspec((1, fc_in)),                                       # fc2 bias
    ]

    # Explicit scoped-VMEM budget (review: v5e default 16 MiB is too small at
    # real DINO shapes; v7x per-core budget is tight).  Rough static estimate.
    wi = jnp.dtype(matmul_dtype).itemsize
    weight_bytes = (fc_in * D + D * C1p + 9 * g2r * g2 + 25 * g3r * g3
                    + (D + g1 + g2 + g3) * fc_in) * wi
    bias_bytes = (D + C1p + g2 + g3 + fc_in) * 4
    io_bytes = 2 * (2 * P * fc_in * 4)                 # double-buffered x / out
    tmp_bytes = HW * (6 * D + 6 * C1p + 4 * fc_in + 10 * max(g2r, g3r)) + (2 << 20)
    vmem_limit = int(min(100 << 20,
                         max(32 << 20,
                             2 * (weight_bytes + bias_bytes) + io_bytes + tmp_bytes)))

    out = pl.pallas_call(
        kernel,
        out_shape=jax.ShapeDtypeStruct((B, P, fc_in), jnp.float32),
        grid_spec=pltpu.PrefetchScalarGridSpec(
            num_scalar_prefetch=0,
            grid=(B,),
            in_specs=in_specs,
            out_specs=pl.BlockSpec((1, P, fc_in), lambda b: (b, 0, 0)),
        ),
        compiler_params=pltpu.CompilerParams(
            dimension_semantics=("parallel",),     # megacore split (needs B>=2)
            vmem_limit_bytes=vmem_limit),
    )(x, prep["fc1_w"], prep["fc1_b"], prep["w1x1"], prep["b1x1"],
      prep["w3"], prep["b3"], prep["w5"], prep["b5"],
      prep["fc2_w"], prep["fc2_w1"], prep["fc2_w2"], prep["fc2_w3"],
      prep["fc2_b"])

    if skip_connect:
        out = out + x
    return out


def _run_with_fallback(x, params, **kw):
    """Run the kernel; if this JAX build rejects Buffered(1), retry without."""
    try:
        return jax.block_until_ready(mul_conv_adapter(x, params, **kw))
    except Exception:
        return jax.block_until_ready(
            mul_conv_adapter(x, params, buffered_weights=False, **kw))


# ---------------------------------------------------------------------------
# Deterministic synthetic parameter init (raw convs + BN stats, like PyTorch)
# ---------------------------------------------------------------------------
def _conv_params(key, kh, kw, cin, cout):
    k1, k2, k3, k4, k5, k6 = jax.random.split(key, 6)
    return dict(
        w=0.1 * jax.random.normal(k1, (kh, kw, cin, cout), jnp.float32),
        b=0.1 * jax.random.normal(k2, (cout,), jnp.float32),
        gamma=1.0 + 0.1 * jax.random.normal(k3, (cout,), jnp.float32),
        beta=0.1 * jax.random.normal(k4, (cout,), jnp.float32),
        mean=0.1 * jax.random.normal(k5, (cout,), jnp.float32),
        var=0.9 + 0.1 * jnp.abs(jax.random.normal(k6, (cout,), jnp.float32)),
    )


def init_params(key, fc_in, D, ch1x1, ch3x3red, ch3x3, ch5x5red, ch5x5):
    assert ch1x1 + ch3x3 + ch5x5 == D
    ks = jax.random.split(key, 9)
    return dict(
        fc1_w=0.1 * jax.random.normal(ks[0], (fc_in, D), jnp.float32),
        fc1_b=0.1 * jax.random.normal(ks[1], (D,), jnp.float32),
        fc2_w=0.1 * jax.random.normal(ks[2], (D, fc_in), jnp.float32),
        fc2_b=0.1 * jax.random.normal(ks[3], (fc_in,), jnp.float32),
        branch1=_conv_params(ks[4], 1, 1, D, ch1x1),
        branch2_0=_conv_params(ks[5], 1, 1, D, ch3x3red),
        branch2_1=_conv_params(ks[6], 3, 3, ch3x3red, ch3x3),
        branch3_0=_conv_params(ks[7], 1, 1, D, ch5x5red),
        branch3_1=_conv_params(ks[8], 5, 5, ch5x5red, ch5x5),
    )


# ---------------------------------------------------------------------------
# Pure-JAX reference (mirrors the PyTorch forward, unfolded BN) for checking.
# ---------------------------------------------------------------------------
def _reference(x, params):
    def bcr(xn, p, pad):
        y = jax.lax.conv_general_dilated(
            xn, p["w"], window_strides=(1, 1),
            padding=((pad, pad), (pad, pad)),
            dimension_numbers=("NHWC", "HWIO", "NHWC"))
        y = y + p["b"]
        y = (y - p["mean"]) * jax.lax.rsqrt(p["var"] + 1e-3) * p["gamma"] + p["beta"]
        return jnp.maximum(y, 0.0)

    B, P, fc_in = x.shape
    D = params["fc1_w"].shape[1]
    Hc = Wc = int(math.sqrt(P - 1))
    x0 = jnp.maximum(x @ params["fc1_w"] + params["fc1_b"], 0.0)
    xs = x0[:, 1:, :].reshape(B, Hc, Wc, D)
    b1 = bcr(xs, params["branch1"], 0)
    b2 = bcr(bcr(xs, params["branch2_0"], 0), params["branch2_1"], 1)
    b3 = bcr(bcr(xs, params["branch3_0"], 0), params["branch3_1"], 2)
    sp = jnp.concatenate([b1, b2, b3], axis=-1).reshape(B, Hc * Wc, D)
    y = jnp.concatenate([x0[:, 0:1, :], sp], axis=1) + x0
    return y @ params["fc2_w"] + params["fc2_b"]


if __name__ == "__main__":
    key = jax.random.PRNGKey(0)
    kx, kp = jax.random.split(key)

    # small shapes consistent with the module: P = side*side + 1
    B, side, fc_in, D = 2, 8, 32, 16
    P = side * side + 1
    ch1x1, ch3x3red, ch3x3, ch5x5red, ch5x5 = 4, 8, 8, 4, 4

    x = jax.random.normal(kx, (B, P, fc_in), jnp.float32)
    params = init_params(kp, fc_in, D, ch1x1, ch3x3red, ch3x3, ch5x5red, ch5x5)

    ref = _reference(x, params)

    # 1) algorithmic exactness of the restructured kernel (f32 MXU inputs)
    out_f32 = _run_with_fallback(x, params, matmul_dtype=jnp.float32)
    err_f32 = float(jnp.max(jnp.abs(out_f32 - ref)))
    assert err_f32 < 1e-3, f"f32 kernel mismatch: max abs err = {err_f32}"

    # 2) default fast path (bf16 MXU inputs, f32 accumulation) -- perf review
    out = _run_with_fallback(x, params)
    assert out.shape == (B, P, fc_in) and out.dtype == jnp.float32
    err = float(jnp.max(jnp.abs(out - ref)))
    assert err < 5e-2, f"bf16 kernel mismatch: max abs err = {err}"

    print("KERNEL_OK")
</pallas_src>

<mosaic_0001>
module attributes {stable_mosaic.version = 11 : i64} {
  func.func @kernel(%arg0: i32, %arg1: memref<1x65x32xf32, #tpu.memory_space<vmem>>, %arg2: memref<32x16xf32, #tpu.memory_space<vmem>>, %arg3: memref<1x16xf32, #tpu.memory_space<vmem>>, %arg4: memref<16x384xf32, #tpu.memory_space<vmem>>, %arg5: memref<1x384xf32, #tpu.memory_space<vmem>>, %arg6: memref<9x128x128xf32, #tpu.memory_space<vmem>>, %arg7: memref<1x128xf32, #tpu.memory_space<vmem>>, %arg8: memref<25x128x128xf32, #tpu.memory_space<vmem>>, %arg9: memref<1x128xf32, #tpu.memory_space<vmem>>, %arg10: memref<16x32xf32, #tpu.memory_space<vmem>>, %arg11: memref<128x32xf32, #tpu.memory_space<vmem>>, %arg12: memref<128x32xf32, #tpu.memory_space<vmem>>, %arg13: memref<128x32xf32, #tpu.memory_space<vmem>>, %arg14: memref<1x32xf32, #tpu.memory_space<vmem>>, %arg15: memref<1x65x32xf32, #tpu.memory_space<vmem>>) attributes {dimension_semantics = [#tpu.dimension_semantics<parallel>], iteration_bounds = array<i64: 2>, scalar_prefetch = 0 : i64, scratch_operands = 0 : i64, tpu.core_type = #tpu.core_type<tc>, window_params = [{transform_indices = @transform_0, window_bounds = array<i64: 1, 65, 32>}, {pipeline_mode = #tpu.pipeline_mode<synchronous>, transform_indices = @transform_1, window_bounds = array<i64: 32, 16>}, {pipeline_mode = #tpu.pipeline_mode<synchronous>, transform_indices = @transform_2, window_bounds = array<i64: 1, 16>}, {pipeline_mode = #tpu.pipeline_mode<synchronous>, transform_indices = @transform_3, window_bounds = array<i64: 16, 384>}, {pipeline_mode = #tpu.pipeline_mode<synchronous>, transform_indices = @transform_4, window_bounds = array<i64: 1, 384>}, {pipeline_mode = #tpu.pipeline_mode<synchronous>, transform_indices = @transform_5, window_bounds = array<i64: 9, 128, 128>}, {pipeline_mode = #tpu.pipeline_mode<synchronous>, transform_indices = @transform_6, window_bounds = array<i64: 1, 128>}, {pipeline_mode = #tpu.pipeline_mode<synchronous>, transform_indices = @transform_7, window_bounds = array<i64: 25, 128, 128>}, {pipeline_mode = #tpu.pipeline_mode<synchronous>, transform_indices = @transform_8, window_bounds = array<i64: 1, 128>}, {pipeline_mode = #tpu.pipeline_mode<synchronous>, transform_indices = @transform_9, window_bounds = array<i64: 16, 32>}, {pipeline_mode = #tpu.pipeline_mode<synchronous>, transform_indices = @transform_10, window_bounds = array<i64: 128, 32>}, {pipeline_mode = #tpu.pipeline_mode<synchronous>, transform_indices = @transform_11, window_bounds = array<i64: 128, 32>}, {pipeline_mode = #tpu.pipeline_mode<synchronous>, transform_indices = @transform_12, window_bounds = array<i64: 128, 32>}, {pipeline_mode = #tpu.pipeline_mode<synchronous>, transform_indices = @transform_13, window_bounds = array<i64: 1, 32>}, {transform_indices = @transform_14, window_bounds = array<i64: 1, 65, 32>}]} {
    %0 = tpu.iota {dimensions = array<i32: 0>} : vector<64x1xi32>
    %c8_i32 = arith.constant 8 : i32
    %c0_i32 = arith.constant 0 : i32
    %1 = arith.cmpi eq, %c8_i32, %c0_i32 : i32
    %c1_i32 = arith.constant 1 : i32
    %2 = arith.select %1, %c1_i32, %c8_i32 : i32
    %3 = vector.broadcast %2 : i32 to vector<64x1xi32>
    %4 = arith.remsi %0, %3 : vector<64x1xi32>
    %c0_i32_0 = arith.constant 0 : i32
    %5 = vector.broadcast %c0_i32_0 : i32 to vector<64x1xi32>
    %6 = arith.cmpi ne, %4, %5 : vector<64x1xi32>
    %c0_i32_1 = arith.constant 0 : i32
    %7 = vector.broadcast %c0_i32_1 : i32 to vector<64x1xi32>
    %8 = arith.cmpi slt, %4, %7 : vector<64x1xi32>
    %c0_i32_2 = arith.constant 0 : i32
    %9 = arith.cmpi slt, %2, %c0_i32_2 : i32
    %10 = vector.broadcast %9 : i1 to vector<64x1xi1>
    %11 = vector.broadcast %10 : vector<64x1xi1> to vector<64x1xi1>
    %12 = arith.xori %8, %11 : vector<64x1xi1>
    %13 = arith.andi %12, %6 : vector<64x1xi1>
    %14 = vector.broadcast %2 : i32 to vector<64x1xi32>
    %15 = arith.addi %4, %14 : vector<64x1xi32>
    %16 = arith.select %13, %15, %4 : vector<64x1xi1>, vector<64x1xi32>
    %c0 = arith.constant 0 : index
    %c0_3 = arith.constant 0 : index
    %c0_4 = arith.constant 0 : index
    %17 = vector.load %arg1[%c0, %c0_3, %c0_4] : memref<1x65x32xf32, #tpu.memory_space<vmem>>, vector<1x65x32xf32>
    %18 = vector.shape_cast %17 : vector<1x65x32xf32> to vector<65x32xf32>
    %19 = vector.extract_strided_slice %18 {offsets = [0, 0], sizes = [1, 32], strides = [1, 1]} : vector<65x32xf32> to vector<1x32xf32>
    %c0_5 = arith.constant 0 : index
    %c0_6 = arith.constant 0 : index
    %20 = vector.load %arg2[%c0_5, %c0_6] : memref<32x16xf32, #tpu.memory_space<vmem>>, vector<32x16xf32>
    %cst = arith.constant dense<0.000000e+00> : vector<1x16xf32>
    %21 = tpu.matmul %19, %20, %cst {dimension_numbers = #tpu.dot_dimension_numbers<[1], [0], [0], [1], [0, 0, 1, 1], [], []>} : vector<1x32xf32>, vector<32x16xf32>, vector<1x16xf32> -> vector<1x16xf32>
    %c0_7 = arith.constant 0 : index
    %c0_8 = arith.constant 0 : index
    %22 = vector.load %arg3[%c0_7, %c0_8] : memref<1x16xf32, #tpu.memory_space<vmem>>, vector<1x16xf32>
    %23 = arith.addf %21, %22 : vector<1x16xf32>
    %cst_9 = arith.constant 0.000000e+00 : f32
    %24 = vector.broadcast %cst_9 : f32 to vector<1x16xf32>
    %25 = arith.maximumf %23, %24 : vector<1x16xf32>
    %26 = vector.extract_strided_slice %18 {offsets = [1, 0], sizes = [64, 32], strides = [1, 1]} : vector<65x32xf32> to vector<64x32xf32>
    %c0_10 = arith.constant 0 : index
    %c0_11 = arith.constant 0 : index
    %27 = vector.load %arg2[%c0_10, %c0_11] : memref<32x16xf32, #tpu.memory_space<vmem>>, vector<32x16xf32>
    %cst_12 = arith.constant dense<0.000000e+00> : vector<64x16xf32>
    %28 = tpu.matmul %26, %27, %cst_12 {dimension_numbers = #tpu.dot_dimension_numbers<[1], [0], [0], [1], [0, 0, 1, 1], [], []>} : vector<64x32xf32>, vector<32x16xf32>, vector<64x16xf32> -> vector<64x16xf32>
    %c0_13 = arith.constant 0 : index
    %c0_14 = arith.constant 0 : index
    %29 = vector.load %arg3[%c0_13, %c0_14] : memref<1x16xf32, #tpu.memory_space<vmem>>, vector<1x16xf32>
    %30 = vector.broadcast %29 : vector<1x16xf32> to vector<64x16xf32>
    %31 = arith.addf %28, %30 : vector<64x16xf32>
    %cst_15 = arith.constant 0.000000e+00 : f32
    %32 = vector.broadcast %cst_15 : f32 to vector<64x16xf32>
    %33 = arith.maximumf %31, %32 : vector<64x16xf32>
    %c0_16 = arith.constant 0 : index
    %c0_17 = arith.constant 0 : index
    %34 = vector.load %arg4[%c0_16, %c0_17] : memref<16x384xf32, #tpu.memory_space<vmem>>, vector<16x384xf32>
    %cst_18 = arith.constant dense<0.000000e+00> : vector<64x384xf32>
    %35 = tpu.matmul %33, %34, %cst_18 {dimension_numbers = #tpu.dot_dimension_numbers<[1], [0], [0], [1], [0, 0, 1, 1], [], []>} : vector<64x16xf32>, vector<16x384xf32>, vector<64x384xf32> -> vector<64x384xf32>
    %c0_19 = arith.constant 0 : index
    %c0_20 = arith.constant 0 : index
    %36 = vector.load %arg5[%c0_19, %c0_20] : memref<1x384xf32, #tpu.memory_space<vmem>>, vector<1x384xf32>
    %37 = vector.broadcast %36 : vector<1x384xf32> to vector<64x384xf32>
    %38 = arith.addf %35, %37 : vector<64x384xf32>
    %cst_21 = arith.constant 0.000000e+00 : f32
    %39 = vector.broadcast %cst_21 : f32 to vector<64x384xf32>
    %40 = arith.maximumf %38, %39 : vector<64x384xf32>
    %41 = vector.extract_strided_slice %40 {offsets = [0, 0], sizes = [64, 128], strides = [1, 1]} : vector<64x384xf32> to vector<64x128xf32>
    %42 = vector.extract_strided_slice %40 {offsets = [0, 128], sizes = [64, 128], strides = [1, 1]} : vector<64x384xf32> to vector<64x128xf32>
    %43 = vector.extract_strided_slice %40 {offsets = [0, 256], sizes = [64, 128], strides = [1, 1]} : vector<64x384xf32> to vector<64x128xf32>
    %cst_22 = arith.constant 0.000000e+00 : f32
    %44 = vector.broadcast %cst_22 : f32 to vector<9x128xf32>
    %45 = vector.extract_strided_slice %42 {offsets = [0, 0], sizes = [55, 128], strides = [1, 1]} : vector<64x128xf32> to vector<55x128xf32>
    %46 = tpu.concatenate %44, %45 in 0 : vector<9x128xf32>, vector<55x128xf32> -> vector<64x128xf32>
    %c1_i32_23 = arith.constant 1 : i32
    %47 = vector.broadcast %c1_i32_23 : i32 to vector<64x1xi32>
    %48 = arith.cmpi sge, %16, %47 : vector<64x1xi32>
    %c9_i32 = arith.constant 9 : i32
    %49 = vector.broadcast %c9_i32 : i32 to vector<64x1xi32>
    %50 = arith.cmpi slt, %16, %49 : vector<64x1xi32>
    %51 = arith.andi %48, %50 : vector<64x1xi1>
    %cst_24 = arith.constant 0.000000e+00 : f32
    %52 = vector.broadcast %cst_24 : f32 to vector<64x128xf32>
    %53 = vector.shape_cast %51 : vector<64x1xi1> to vector<64x1xi1>
    %54 = vector.broadcast %53 : vector<64x1xi1> to vector<64x128xi1>
    %55 = arith.select %54, %46, %52 : vector<64x128xi1>, vector<64x128xf32>
    %c0_25 = arith.constant 0 : index
    %c0_26 = arith.constant 0 : index
    %c0_27 = arith.constant 0 : index
    %56 = vector.load %arg6[%c0_25, %c0_26, %c0_27] : memref<9x128x128xf32, #tpu.memory_space<vmem>>, vector<1x128x128xf32>
    %57 = vector.shape_cast %56 : vector<1x128x128xf32> to vector<128x128xf32>
    %cst_28 = arith.constant dense<0.000000e+00> : vector<64x128xf32>
    %58 = tpu.matmul %55, %57, %cst_28 {dimension_numbers = #tpu.dot_dimension_numbers<[1], [0], [0], [1], [0, 0, 1, 1], [], []>} : vector<64x128xf32>, vector<128x128xf32>, vector<64x128xf32> -> vector<64x128xf32>
    %cst_29 = arith.constant 0.000000e+00 : f32
    %59 = vector.broadcast %cst_29 : f32 to vector<8x128xf32>
    %60 = vector.extract_strided_slice %42 {offsets = [0, 0], sizes = [56, 128], strides = [1, 1]} : vector<64x128xf32> to vector<56x128xf32>
    %61 = tpu.concatenate %59, %60 in 0 : vector<8x128xf32>, vector<56x128xf32> -> vector<64x128xf32>
    %c1 = arith.constant 1 : index
    %c0_30 = arith.constant 0 : index
    %c0_31 = arith.constant 0 : index
    %62 = vector.load %arg6[%c1, %c0_30, %c0_31] : memref<9x128x128xf32, #tpu.memory_space<vmem>>, vector<1x128x128xf32>
    %63 = vector.shape_cast %62 : vector<1x128x128xf32> to vector<128x128xf32>
    %cst_32 = arith.constant dense<0.000000e+00> : vector<64x128xf32>
    %64 = tpu.matmul %61, %63, %cst_32 {dimension_numbers = #tpu.dot_dimension_numbers<[1], [0], [0], [1], [0, 0, 1, 1], [], []>} : vector<64x128xf32>, vector<128x128xf32>, vector<64x128xf32> -> vector<64x128xf32>
    %65 = arith.addf %58, %64 : vector<64x128xf32>
    %cst_33 = arith.constant 0.000000e+00 : f32
    %66 = vector.broadcast %cst_33 : f32 to vector<7x128xf32>
    %67 = vector.extract_strided_slice %42 {offsets = [0, 0], sizes = [57, 128], strides = [1, 1]} : vector<64x128xf32> to vector<57x128xf32>
    %68 = tpu.concatenate %66, %67 in 0 : vector<7x128xf32>, vector<57x128xf32> -> vector<64x128xf32>
    %c-1_i32 = arith.constant -1 : i32
    %69 = vector.broadcast %c-1_i32 : i32 to vector<64x1xi32>
    %70 = arith.cmpi sge, %16, %69 : vector<64x1xi32>
    %c7_i32 = arith.constant 7 : i32
    %71 = vector.broadcast %c7_i32 : i32 to vector<64x1xi32>
    %72 = arith.cmpi slt, %16, %71 : vector<64x1xi32>
    %73 = arith.andi %70, %72 : vector<64x1xi1>
    %cst_34 = arith.constant 0.000000e+00 : f32
    %74 = vector.broadcast %cst_34 : f32 to vector<64x128xf32>
    %75 = vector.shape_cast %73 : vector<64x1xi1> to vector<64x1xi1>
    %76 = vector.broadcast %75 : vector<64x1xi1> to vector<64x128xi1>
    %77 = arith.select %76, %68, %74 : vector<64x128xi1>, vector<64x128xf32>
    %c2 = arith.constant 2 : index
    %c0_35 = arith.constant 0 : index
    %c0_36 = arith.constant 0 : index
    %78 = vector.load %arg6[%c2, %c0_35, %c0_36] : memref<9x128x128xf32, #tpu.memory_space<vmem>>, vector<1x128x128xf32>
    %79 = vector.shape_cast %78 : vector<1x128x128xf32> to vector<128x128xf32>
    %cst_37 = arith.constant dense<0.000000e+00> : vector<64x128xf32>
    %80 = tpu.matmul %77, %79, %cst_37 {dimension_numbers = #tpu.dot_dimension_numbers<[1], [0], [0], [1], [0, 0, 1, 1], [], []>} : vector<64x128xf32>, vector<128x128xf32>, vector<64x128xf32> -> vector<64x128xf32>
    %81 = arith.addf %65, %80 : vector<64x128xf32>
    %cst_38 = arith.constant 0.000000e+00 : f32
    %82 = vector.broadcast %cst_38 : f32 to vector<1x128xf32>
    %83 = vector.extract_strided_slice %42 {offsets = [0, 0], sizes = [63, 128], strides = [1, 1]} : vector<64x128xf32> to vector<63x128xf32>
    %84 = tpu.concatenate %82, %83 in 0 : vector<1x128xf32>, vector<63x128xf32> -> vector<64x128xf32>
    %c1_i32_39 = arith.constant 1 : i32
    %85 = vector.broadcast %c1_i32_39 : i32 to vector<64x1xi32>
    %86 = arith.cmpi sge, %16, %85 : vector<64x1xi32>
    %c9_i32_40 = arith.constant 9 : i32
    %87 = vector.broadcast %c9_i32_40 : i32 to vector<64x1xi32>
    %88 = arith.cmpi slt, %16, %87 : vector<64x1xi32>
    %89 = arith.andi %86, %88 : vector<64x1xi1>
    %cst_41 = arith.constant 0.000000e+00 : f32
    %90 = vector.broadcast %cst_41 : f32 to vector<64x128xf32>
    %91 = vector.shape_cast %89 : vector<64x1xi1> to vector<64x1xi1>
    %92 = vector.broadcast %91 : vector<64x1xi1> to vector<64x128xi1>
    %93 = arith.select %92, %84, %90 : vector<64x128xi1>, vector<64x128xf32>
    %c3 = arith.constant 3 : index
    %c0_42 = arith.constant 0 : index
    %c0_43 = arith.constant 0 : index
    %94 = vector.load %arg6[%c3, %c0_42, %c0_43] : memref<9x128x128xf32, #tpu.memory_space<vmem>>, vector<1x128x128xf32>
    %95 = vector.shape_cast %94 : vector<1x128x128xf32> to vector<128x128xf32>
    %cst_44 = arith.constant dense<0.000000e+00> : vector<64x128xf32>
    %96 = tpu.matmul %93, %95, %cst_44 {dimension_numbers = #tpu.dot_dimension_numbers<[1], [0], [0], [1], [0, 0, 1, 1], [], []>} : vector<64x128xf32>, vector<128x128xf32>, vector<64x128xf32> -> vector<64x128xf32>
    %97 = arith.addf %81, %96 : vector<64x128xf32>
    %c4 = arith.constant 4 : index
    %c0_45 = arith.constant 0 : index
    %c0_46 = arith.constant 0 : index
    %98 = vector.load %arg6[%c4, %c0_45, %c0_46] : memref<9x128x128xf32, #tpu.memory_space<vmem>>, vector<1x128x128xf32>
    %99 = vector.shape_cast %98 : vector<1x128x128xf32> to vector<128x128xf32>
    %cst_47 = arith.constant dense<0.000000e+00> : vector<64x128xf32>
    %100 = tpu.matmul %42, %99, %cst_47 {dimension_numbers = #tpu.dot_dimension_numbers<[1], [0], [0], [1], [0, 0, 1, 1], [], []>} : vector<64x128xf32>, vector<128x128xf32>, vector<64x128xf32> -> vector<64x128xf32>
    %101 = arith.addf %97, %100 : vector<64x128xf32>
    %cst_48 = arith.constant 0.000000e+00 : f32
    %102 = vector.broadcast %cst_48 : f32 to vector<1x128xf32>
    %103 = vector.extract_strided_slice %42 {offsets = [1, 0], sizes = [63, 128], strides = [1, 1]} : vector<64x128xf32> to vector<63x128xf32>
    %104 = tpu.concatenate %103, %102 in 0 : vector<63x128xf32>, vector<1x128xf32> -> vector<64x128xf32>
    %c-1_i32_49 = arith.constant -1 : i32
    %105 = vector.broadcast %c-1_i32_49 : i32 to vector<64x1xi32>
    %106 = arith.cmpi sge, %16, %105 : vector<64x1xi32>
    %c7_i32_50 = arith.constant 7 : i32
    %107 = vector.broadcast %c7_i32_50 : i32 to vector<64x1xi32>
    %108 = arith.cmpi slt, %16, %107 : vector<64x1xi32>
    %109 = arith.andi %106, %108 : vector<64x1xi1>
    %cst_51 = arith.constant 0.000000e+00 : f32
    %110 = vector.broadcast %cst_51 : f32 to vector<64x128xf32>
    %111 = vector.shape_cast %109 : vector<64x1xi1> to vector<64x1xi1>
    %112 = vector.broadcast %111 : vector<64x1xi1> to vector<64x128xi1>
    %113 = arith.select %112, %104, %110 : vector<64x128xi1>, vector<64x128xf32>
    %c5 = arith.constant 5 : index
    %c0_52 = arith.constant 0 : index
    %c0_53 = arith.constant 0 : index
    %114 = vector.load %arg6[%c5, %c0_52, %c0_53] : memref<9x128x128xf32, #tpu.memory_space<vmem>>, vector<1x128x128xf32>
    %115 = vector.shape_cast %114 : vector<1x128x128xf32> to vector<128x128xf32>
    %cst_54 = arith.constant dense<0.000000e+00> : vector<64x128xf32>
    %116 = tpu.matmul %113, %115, %cst_54 {dimension_numbers = #tpu.dot_dimension_numbers<[1], [0], [0], [1], [0, 0, 1, 1], [], []>} : vector<64x128xf32>, vector<128x128xf32>, vector<64x128xf32> -> vector<64x128xf32>
    %117 = arith.addf %101, %116 : vector<64x128xf32>
    %cst_55 = arith.constant 0.000000e+00 : f32
    %118 = vector.broadcast %cst_55 : f32 to vector<7x128xf32>
    %119 = vector.extract_strided_slice %42 {offsets = [7, 0], sizes = [57, 128], strides = [1, 1]} : vector<64x128xf32> to vector<57x128xf32>
    %120 = tpu.concatenate %119, %118 in 0 : vector<57x128xf32>, vector<7x128xf32> -> vector<64x128xf32>
    %c1_i32_56 = arith.constant 1 : i32
    %121 = vector.broadcast %c1_i32_56 : i32 to vector<64x1xi32>
    %122 = arith.cmpi sge, %16, %121 : vector<64x1xi32>
    %c9_i32_57 = arith.constant 9 : i32
    %123 = vector.broadcast %c9_i32_57 : i32 to vector<64x1xi32>
    %124 = arith.cmpi slt, %16, %123 : vector<64x1xi32>
    %125 = arith.andi %122, %124 : vector<64x1xi1>
    %cst_58 = arith.constant 0.000000e+00 : f32
    %126 = vector.broadcast %cst_58 : f32 to vector<64x128xf32>
    %127 = vector.shape_cast %125 : vector<64x1xi1> to vector<64x1xi1>
    %128 = vector.broadcast %127 : vector<64x1xi1> to vector<64x128xi1>
    %129 = arith.select %128, %120, %126 : vector<64x128xi1>, vector<64x128xf32>
    %c6 = arith.constant 6 : index
    %c0_59 = arith.constant 0 : index
    %c0_60 = arith.constant 0 : index
    %130 = vector.load %arg6[%c6, %c0_59, %c0_60] : memref<9x128x128xf32, #tpu.memory_space<vmem>>, vector<1x128x128xf32>
    %131 = vector.shape_cast %130 : vector<1x128x128xf32> to vector<128x128xf32>
    %cst_61 = arith.constant dense<0.000000e+00> : vector<64x128xf32>
    %132 = tpu.matmul %129, %131, %cst_61 {dimension_numbers = #tpu.dot_dimension_numbers<[1], [0], [0], [1], [0, 0, 1, 1], [], []>} : vector<64x128xf32>, vector<128x128xf32>, vector<64x128xf32> -> vector<64x128xf32>
    %133 = arith.addf %117, %132 : vector<64x128xf32>
    %cst_62 = arith.constant 0.000000e+00 : f32
    %134 = vector.broadcast %cst_62 : f32 to vector<8x128xf32>
    %135 = vector.extract_strided_slice %42 {offsets = [8, 0], sizes = [56, 128], strides = [1, 1]} : vector<64x128xf32> to vector<56x128xf32>
    %136 = tpu.concatenate %135, %134 in 0 : vector<56x128xf32>, vector<8x128xf32> -> vector<64x128xf32>
    %c7 = arith.constant 7 : index
    %c0_63 = arith.constant 0 : index
    %c0_64 = arith.constant 0 : index
    %137 = vector.load %arg6[%c7, %c0_63, %c0_64] : memref<9x128x128xf32, #tpu.memory_space<vmem>>, vector<1x128x128xf32>
    %138 = vector.shape_cast %137 : vector<1x128x128xf32> to vector<128x128xf32>
    %cst_65 = arith.constant dense<0.000000e+00> : vector<64x128xf32>
    %139 = tpu.matmul %136, %138, %cst_65 {dimension_numbers = #tpu.dot_dimension_numbers<[1], [0], [0], [1], [0, 0, 1, 1], [], []>} : vector<64x128xf32>, vector<128x128xf32>, vector<64x128xf32> -> vector<64x128xf32>
    %140 = arith.addf %133, %139 : vector<64x128xf32>
    %cst_66 = arith.constant 0.000000e+00 : f32
    %141 = vector.broadcast %cst_66 : f32 to vector<9x128xf32>
    %142 = vector.extract_strided_slice %42 {offsets = [9, 0], sizes = [55, 128], strides = [1, 1]} : vector<64x128xf32> to vector<55x128xf32>
    %143 = tpu.concatenate %142, %141 in 0 : vector<55x128xf32>, vector<9x128xf32> -> vector<64x128xf32>
    %c-1_i32_67 = arith.constant -1 : i32
    %144 = vector.broadcast %c-1_i32_67 : i32 to vector<64x1xi32>
    %145 = arith.cmpi sge, %16, %144 : vector<64x1xi32>
    %c7_i32_68 = arith.constant 7 : i32
    %146 = vector.broadcast %c7_i32_68 : i32 to vector<64x1xi32>
    %147 = arith.cmpi slt, %16, %146 : vector<64x1xi32>
    %148 = arith.andi %145, %147 : vector<64x1xi1>
    %cst_69 = arith.constant 0.000000e+00 : f32
    %149 = vector.broadcast %cst_69 : f32 to vector<64x128xf32>
    %150 = vector.shape_cast %148 : vector<64x1xi1> to vector<64x1xi1>
    %151 = vector.broadcast %150 : vector<64x1xi1> to vector<64x128xi1>
    %152 = arith.select %151, %143, %149 : vector<64x128xi1>, vector<64x128xf32>
    %c8 = arith.constant 8 : index
    %c0_70 = arith.constant 0 : index
    %c0_71 = arith.constant 0 : index
    %153 = vector.load %arg6[%c8, %c0_70, %c0_71] : memref<9x128x128xf32, #tpu.memory_space<vmem>>, vector<1x128x128xf32>
    %154 = vector.shape_cast %153 : vector<1x128x128xf32> to vector<128x128xf32>
    %cst_72 = arith.constant dense<0.000000e+00> : vector<64x128xf32>
    %155 = tpu.matmul %152, %154, %cst_72 {dimension_numbers = #tpu.dot_dimension_numbers<[1], [0], [0], [1], [0, 0, 1, 1], [], []>} : vector<64x128xf32>, vector<128x128xf32>, vector<64x128xf32> -> vector<64x128xf32>
    %156 = arith.addf %140, %155 : vector<64x128xf32>
    %c0_73 = arith.constant 0 : index
    %c0_74 = arith.constant 0 : index
    %157 = vector.load %arg7[%c0_73, %c0_74] : memref<1x128xf32, #tpu.memory_space<vmem>>, vector<1x128xf32>
    %158 = vector.broadcast %157 : vector<1x128xf32> to vector<64x128xf32>
    %159 = arith.addf %156, %158 : vector<64x128xf32>
    %cst_75 = arith.constant 0.000000e+00 : f32
    %160 = vector.broadcast %cst_75 : f32 to vector<64x128xf32>
    %161 = arith.maximumf %159, %160 : vector<64x128xf32>
    %cst_76 = arith.constant 0.000000e+00 : f32
    %162 = vector.broadcast %cst_76 : f32 to vector<18x128xf32>
    %163 = vector.extract_strided_slice %43 {offsets = [0, 0], sizes = [46, 128], strides = [1, 1]} : vector<64x128xf32> to vector<46x128xf32>
    %164 = tpu.concatenate %162, %163 in 0 : vector<18x128xf32>, vector<46x128xf32> -> vector<64x128xf32>
    %c2_i32 = arith.constant 2 : i32
    %165 = vector.broadcast %c2_i32 : i32 to vector<64x1xi32>
    %166 = arith.cmpi sge, %16, %165 : vector<64x1xi32>
    %c10_i32 = arith.constant 10 : i32
    %167 = vector.broadcast %c10_i32 : i32 to vector<64x1xi32>
    %168 = arith.cmpi slt, %16, %167 : vector<64x1xi32>
    %169 = arith.andi %166, %168 : vector<64x1xi1>
    %cst_77 = arith.constant 0.000000e+00 : f32
    %170 = vector.broadcast %cst_77 : f32 to vector<64x128xf32>
    %171 = vector.shape_cast %169 : vector<64x1xi1> to vector<64x1xi1>
    %172 = vector.broadcast %171 : vector<64x1xi1> to vector<64x128xi1>
    %173 = arith.select %172, %164, %170 : vector<64x128xi1>, vector<64x128xf32>
    %c0_78 = arith.constant 0 : index
    %c0_79 = arith.constant 0 : index
    %c0_80 = arith.constant 0 : index
    %174 = vector.load %arg8[%c0_78, %c0_79, %c0_80] : memref<25x128x128xf32, #tpu.memory_space<vmem>>, vector<1x128x128xf32>
    %175 = vector.shape_cast %174 : vector<1x128x128xf32> to vector<128x128xf32>
    %cst_81 = arith.constant dense<0.000000e+00> : vector<64x128xf32>
    %176 = tpu.matmul %173, %175, %cst_81 {dimension_numbers = #tpu.dot_dimension_numbers<[1], [0], [0], [1], [0, 0, 1, 1], [], []>} : vector<64x128xf32>, vector<128x128xf32>, vector<64x128xf32> -> vector<64x128xf32>
    %cst_82 = arith.constant 0.000000e+00 : f32
    %177 = vector.broadcast %cst_82 : f32 to vector<17x128xf32>
    %178 = vector.extract_strided_slice %43 {offsets = [0, 0], sizes = [47, 128], strides = [1, 1]} : vector<64x128xf32> to vector<47x128xf32>
    %179 = tpu.concatenate %177, %178 in 0 : vector<17x128xf32>, vector<47x128xf32> -> vector<64x128xf32>
    %c1_i32_83 = arith.constant 1 : i32
    %180 = vector.broadcast %c1_i32_83 : i32 to vector<64x1xi32>
    %181 = arith.cmpi sge, %16, %180 : vector<64x1xi32>
    %c9_i32_84 = arith.constant 9 : i32
    %182 = vector.broadcast %c9_i32_84 : i32 to vector<64x1xi32>
    %183 = arith.cmpi slt, %16, %182 : vector<64x1xi32>
    %184 = arith.andi %181, %183 : vector<64x1xi1>
    %cst_85 = arith.constant 0.000000e+00 : f32
    %185 = vector.broadcast %cst_85 : f32 to vector<64x128xf32>
    %186 = vector.shape_cast %184 : vector<64x1xi1> to vector<64x1xi1>
    %187 = vector.broadcast %186 : vector<64x1xi1> to vector<64x128xi1>
    %188 = arith.select %187, %179, %185 : vector<64x128xi1>, vector<64x128xf32>
    %c1_86 = arith.constant 1 : index
    %c0_87 = arith.constant 0 : index
    %c0_88 = arith.constant 0 : index
    %189 = vector.load %arg8[%c1_86, %c0_87, %c0_88] : memref<25x128x128xf32, #tpu.memory_space<vmem>>, vector<1x128x128xf32>
    %190 = vector.shape_cast %189 : vector<1x128x128xf32> to vector<128x128xf32>
    %cst_89 = arith.constant dense<0.000000e+00> : vector<64x128xf32>
    %191 = tpu.matmul %188, %190, %cst_89 {dimension_numbers = #tpu.dot_dimension_numbers<[1], [0], [0], [1], [0, 0, 1, 1], [], []>} : vector<64x128xf32>, vector<128x128xf32>, vector<64x128xf32> -> vector<64x128xf32>
    %192 = arith.addf %176, %191 : vector<64x128xf32>
    %cst_90 = arith.constant 0.000000e+00 : f32
    %193 = vector.broadcast %cst_90 : f32 to vector<16x128xf32>
    %194 = vector.extract_strided_slice %43 {offsets = [0, 0], sizes = [48, 128], strides = [1, 1]} : vector<64x128xf32> to vector<48x128xf32>
    %195 = tpu.concatenate %193, %194 in 0 : vector<16x128xf32>, vector<48x128xf32> -> vector<64x128xf32>
    %c2_91 = arith.constant 2 : index
    %c0_92 = arith.constant 0 : index
    %c0_93 = arith.constant 0 : index
    %196 = vector.load %arg8[%c2_91, %c0_92, %c0_93] : memref<25x128x128xf32, #tpu.memory_space<vmem>>, vector<1x128x128xf32>
    %197 = vector.shape_cast %196 : vector<1x128x128xf32> to vector<128x128xf32>
    %cst_94 = arith.constant dense<0.000000e+00> : vector<64x128xf32>
    %198 = tpu.matmul %195, %197, %cst_94 {dimension_numbers = #tpu.dot_dimension_numbers<[1], [0], [0], [1], [0, 0, 1, 1], [], []>} : vector<64x128xf32>, vector<128x128xf32>, vector<64x128xf32> -> vector<64x128xf32>
    %199 = arith.addf %192, %198 : vector<64x128xf32>
    %cst_95 = arith.constant 0.000000e+00 : f32
    %200 = vector.broadcast %cst_95 : f32 to vector<15x128xf32>
    %201 = vector.extract_strided_slice %43 {offsets = [0, 0], sizes = [49, 128], strides = [1, 1]} : vector<64x128xf32> to vector<49x128xf32>
    %202 = tpu.concatenate %200, %201 in 0 : vector<15x128xf32>, vector<49x128xf32> -> vector<64x128xf32>
    %c-1_i32_96 = arith.constant -1 : i32
    %203 = vector.broadcast %c-1_i32_96 : i32 to vector<64x1xi32>
    %204 = arith.cmpi sge, %16, %203 : vector<64x1xi32>
    %c7_i32_97 = arith.constant 7 : i32
    %205 = vector.broadcast %c7_i32_97 : i32 to vector<64x1xi32>
    %206 = arith.cmpi slt, %16, %205 : vector<64x1xi32>
    %207 = arith.andi %204, %206 : vector<64x1xi1>
    %cst_98 = arith.constant 0.000000e+00 : f32
    %208 = vector.broadcast %cst_98 : f32 to vector<64x128xf32>
    %209 = vector.shape_cast %207 : vector<64x1xi1> to vector<64x1xi1>
    %210 = vector.broadcast %209 : vector<64x1xi1> to vector<64x128xi1>
    %211 = arith.select %210, %202, %208 : vector<64x128xi1>, vector<64x128xf32>
    %c3_99 = arith.constant 3 : index
    %c0_100 = arith.constant 0 : index
    %c0_101 = arith.constant 0 : index
    %212 = vector.load %arg8[%c3_99, %c0_100, %c0_101] : memref<25x128x128xf32, #tpu.memory_space<vmem>>, vector<1x128x128xf32>
    %213 = vector.shape_cast %212 : vector<1x128x128xf32> to vector<128x128xf32>
    %cst_102 = arith.constant dense<0.000000e+00> : vector<64x128xf32>
    %214 = tpu.matmul %211, %213, %cst_102 {dimension_numbers = #tpu.dot_dimension_numbers<[1], [0], [0], [1], [0, 0, 1, 1], [], []>} : vector<64x128xf32>, vector<128x128xf32>, vector<64x128xf32> -> vector<64x128xf32>
    %215 = arith.addf %199, %214 : vector<64x128xf32>
    %cst_103 = arith.constant 0.000000e+00 : f32
    %216 = vector.broadcast %cst_103 : f32 to vector<14x128xf32>
    %217 = vector.extract_strided_slice %43 {offsets = [0, 0], sizes = [50, 128], strides = [1, 1]} : vector<64x128xf32> to vector<50x128xf32>
    %218 = tpu.concatenate %216, %217 in 0 : vector<14x128xf32>, vector<50x128xf32> -> vector<64x128xf32>
    %c-2_i32 = arith.constant -2 : i32
    %219 = vector.broadcast %c-2_i32 : i32 to vector<64x1xi32>
    %220 = arith.cmpi sge, %16, %219 : vector<64x1xi32>
    %c6_i32 = arith.constant 6 : i32
    %221 = vector.broadcast %c6_i32 : i32 to vector<64x1xi32>
    %222 = arith.cmpi slt, %16, %221 : vector<64x1xi32>
    %223 = arith.andi %220, %222 : vector<64x1xi1>
    %cst_104 = arith.constant 0.000000e+00 : f32
    %224 = vector.broadcast %cst_104 : f32 to vector<64x128xf32>
    %225 = vector.shape_cast %223 : vector<64x1xi1> to vector<64x1xi1>
    %226 = vector.broadcast %225 : vector<64x1xi1> to vector<64x128xi1>
    %227 = arith.select %226, %218, %224 : vector<64x128xi1>, vector<64x128xf32>
    %c4_105 = arith.constant 4 : index
    %c0_106 = arith.constant 0 : index
    %c0_107 = arith.constant 0 : index
    %228 = vector.load %arg8[%c4_105, %c0_106, %c0_107] : memref<25x128x128xf32, #tpu.memory_space<vmem>>, vector<1x128x128xf32>
    %229 = vector.shape_cast %228 : vector<1x128x128xf32> to vector<128x128xf32>
    %cst_108 = arith.constant dense<0.000000e+00> : vector<64x128xf32>
    %230 = tpu.matmul %227, %229, %cst_108 {dimension_numbers = #tpu.dot_dimension_numbers<[1], [0], [0], [1], [0, 0, 1, 1], [], []>} : vector<64x128xf32>, vector<128x128xf32>, vector<64x128xf32> -> vector<64x128xf32>
    %231 = arith.addf %215, %230 : vector<64x128xf32>
    %cst_109 = arith.constant 0.000000e+00 : f32
    %232 = vector.broadcast %cst_109 : f32 to vector<10x128xf32>
    %233 = vector.extract_strided_slice %43 {offsets = [0, 0], sizes = [54, 128], strides = [1, 1]} : vector<64x128xf32> to vector<54x128xf32>
    %234 = tpu.concatenate %232, %233 in 0 : vector<10x128xf32>, vector<54x128xf32> -> vector<64x128xf32>
    %c2_i32_110 = arith.constant 2 : i32
    %235 = vector.broadcast %c2_i32_110 : i32 to vector<64x1xi32>
    %236 = arith.cmpi sge, %16, %235 : vector<64x1xi32>
    %c10_i32_111 = arith.constant 10 : i32
    %237 = vector.broadcast %c10_i32_111 : i32 to vector<64x1xi32>
    %238 = arith.cmpi slt, %16, %237 : vector<64x1xi32>
    %239 = arith.andi %236, %238 : vector<64x1xi1>
    %cst_112 = arith.constant 0.000000e+00 : f32
    %240 = vector.broadcast %cst_112 : f32 to vector<64x128xf32>
    %241 = vector.shape_cast %239 : vector<64x1xi1> to vector<64x1xi1>
    %242 = vector.broadcast %241 : vector<64x1xi1> to vector<64x128xi1>
    %243 = arith.select %242, %234, %240 : vector<64x128xi1>, vector<64x128xf32>
    %c5_113 = arith.constant 5 : index
    %c0_114 = arith.constant 0 : index
    %c0_115 = arith.constant 0 : index
    %244 = vector.load %arg8[%c5_113, %c0_114, %c0_115] : memref<25x128x128xf32, #tpu.memory_space<vmem>>, vector<1x128x128xf32>
    %245 = vector.shape_cast %244 : vector<1x128x128xf32> to vector<128x128xf32>
    %cst_116 = arith.constant dense<0.000000e+00> : vector<64x128xf32>
    %246 = tpu.matmul %243, %245, %cst_116 {dimension_numbers = #tpu.dot_dimension_numbers<[1], [0], [0], [1], [0, 0, 1, 1], [], []>} : vector<64x128xf32>, vector<128x128xf32>, vector<64x128xf32> -> vector<64x128xf32>
    %247 = arith.addf %231, %246 : vector<64x128xf32>
    %cst_117 = arith.constant 0.000000e+00 : f32
    %248 = vector.broadcast %cst_117 : f32 to vector<9x128xf32>
    %249 = vector.extract_strided_slice %43 {offsets = [0, 0], sizes = [55, 128], strides = [1, 1]} : vector<64x128xf32> to vector<55x128xf32>
    %250 = tpu.concatenate %248, %249 in 0 : vector<9x128xf32>, vector<55x128xf32> -> vector<64x128xf32>
    %c1_i32_118 = arith.constant 1 : i32
    %251 = vector.broadcast %c1_i32_118 : i32 to vector<64x1xi32>
    %252 = arith.cmpi sge, %16, %251 : vector<64x1xi32>
    %c9_i32_119 = arith.constant 9 : i32
    %253 = vector.broadcast %c9_i32_119 : i32 to vector<64x1xi32>
    %254 = arith.cmpi slt, %16, %253 : vector<64x1xi32>
    %255 = arith.andi %252, %254 : vector<64x1xi1>
    %cst_120 = arith.constant 0.000000e+00 : f32
    %256 = vector.broadcast %cst_120 : f32 to vector<64x128xf32>
    %257 = vector.shape_cast %255 : vector<64x1xi1> to vector<64x1xi1>
    %258 = vector.broadcast %257 : vector<64x1xi1> to vector<64x128xi1>
    %259 = arith.select %258, %250, %256 : vector<64x128xi1>, vector<64x128xf32>
    %c6_121 = arith.constant 6 : index
    %c0_122 = arith.constant 0 : index
    %c0_123 = arith.constant 0 : index
    %260 = vector.load %arg8[%c6_121, %c0_122, %c0_123] : memref<25x128x128xf32, #tpu.memory_space<vmem>>, vector<1x128x128xf32>
    %261 = vector.shape_cast %260 : vector<1x128x128xf32> to vector<128x128xf32>
    %cst_124 = arith.constant dense<0.000000e+00> : vector<64x128xf32>
    %262 = tpu.matmul %259, %261, %cst_124 {dimension_numbers = #tpu.dot_dimension_numbers<[1], [0], [0], [1], [0, 0, 1, 1], [], []>} : vector<64x128xf32>, vector<128x128xf32>, vector<64x128xf32> -> vector<64x128xf32>
    %263 = arith.addf %247, %262 : vector<64x128xf32>
    %cst_125 = arith.constant 0.000000e+00 : f32
    %264 = vector.broadcast %cst_125 : f32 to vector<8x128xf32>
    %265 = vector.extract_strided_slice %43 {offsets = [0, 0], sizes = [56, 128], strides = [1, 1]} : vector<64x128xf32> to vector<56x128xf32>
    %266 = tpu.concatenate %264, %265 in 0 : vector<8x128xf32>, vector<56x128xf32> -> vector<64x128xf32>
    %c7_126 = arith.constant 7 : index
    %c0_127 = arith.constant 0 : index
    %c0_128 = arith.constant 0 : index
    %267 = vector.load %arg8[%c7_126, %c0_127, %c0_128] : memref<25x128x128xf32, #tpu.memory_space<vmem>>, vector<1x128x128xf32>
    %268 = vector.shape_cast %267 : vector<1x128x128xf32> to vector<128x128xf32>
    %cst_129 = arith.constant dense<0.000000e+00> : vector<64x128xf32>
    %269 = tpu.matmul %266, %268, %cst_129 {dimension_numbers = #tpu.dot_dimension_numbers<[1], [0], [0], [1], [0, 0, 1, 1], [], []>} : vector<64x128xf32>, vector<128x128xf32>, vector<64x128xf32> -> vector<64x128xf32>
    %270 = arith.addf %263, %269 : vector<64x128xf32>
    %cst_130 = arith.constant 0.000000e+00 : f32
    %271 = vector.broadcast %cst_130 : f32 to vector<7x128xf32>
    %272 = vector.extract_strided_slice %43 {offsets = [0, 0], sizes = [57, 128], strides = [1, 1]} : vector<64x128xf32> to vector<57x128xf32>
    %273 = tpu.concatenate %271, %272 in 0 : vector<7x128xf32>, vector<57x128xf32> -> vector<64x128xf32>
    %c-1_i32_131 = arith.constant -1 : i32
    %274 = vector.broadcast %c-1_i32_131 : i32 to vector<64x1xi32>
    %275 = arith.cmpi sge, %16, %274 : vector<64x1xi32>
    %c7_i32_132 = arith.constant 7 : i32
    %276 = vector.broadcast %c7_i32_132 : i32 to vector<64x1xi32>
    %277 = arith.cmpi slt, %16, %276 : vector<64x1xi32>
    %278 = arith.andi %275, %277 : vector<64x1xi1>
    %cst_133 = arith.constant 0.000000e+00 : f32
    %279 = vector.broadcast %cst_133 : f32 to vector<64x128xf32>
    %280 = vector.shape_cast %278 : vector<64x1xi1> to vector<64x1xi1>
    %281 = vector.broadcast %280 : vector<64x1xi1> to vector<64x128xi1>
    %282 = arith.select %281, %273, %279 : vector<64x128xi1>, vector<64x128xf32>
    %c8_134 = arith.constant 8 : index
    %c0_135 = arith.constant 0 : index
    %c0_136 = arith.constant 0 : index
    %283 = vector.load %arg8[%c8_134, %c0_135, %c0_136] : memref<25x128x128xf32, #tpu.memory_space<vmem>>, vector<1x128x128xf32>
    %284 = vector.shape_cast %283 : vector<1x128x128xf32> to vector<128x128xf32>
    %cst_137 = arith.constant dense<0.000000e+00> : vector<64x128xf32>
    %285 = tpu.matmul %282, %284, %cst_137 {dimension_numbers = #tpu.dot_dimension_numbers<[1], [0], [0], [1], [0, 0, 1, 1], [], []>} : vector<64x128xf32>, vector<128x128xf32>, vector<64x128xf32> -> vector<64x128xf32>
    %286 = arith.addf %270, %285 : vector<64x128xf32>
    %cst_138 = arith.constant 0.000000e+00 : f32
    %287 = vector.broadcast %cst_138 : f32 to vector<6x128xf32>
    %288 = vector.extract_strided_slice %43 {offsets = [0, 0], sizes = [58, 128], strides = [1, 1]} : vector<64x128xf32> to vector<58x128xf32>
    %289 = tpu.concatenate %287, %288 in 0 : vector<6x128xf32>, vector<58x128xf32> -> vector<64x128xf32>
    %c-2_i32_139 = arith.constant -2 : i32
    %290 = vector.broadcast %c-2_i32_139 : i32 to vector<64x1xi32>
    %291 = arith.cmpi sge, %16, %290 : vector<64x1xi32>
    %c6_i32_140 = arith.constant 6 : i32
    %292 = vector.broadcast %c6_i32_140 : i32 to vector<64x1xi32>
    %293 = arith.cmpi slt, %16, %292 : vector<64x1xi32>
    %294 = arith.andi %291, %293 : vector<64x1xi1>
    %cst_141 = arith.constant 0.000000e+00 : f32
    %295 = vector.broadcast %cst_141 : f32 to vector<64x128xf32>
    %296 = vector.shape_cast %294 : vector<64x1xi1> to vector<64x1xi1>
    %297 = vector.broadcast %296 : vector<64x1xi1> to vector<64x128xi1>
    %298 = arith.select %297, %289, %295 : vector<64x128xi1>, vector<64x128xf32>
    %c9 = arith.constant 9 : index
    %c0_142 = arith.constant 0 : index
    %c0_143 = arith.constant 0 : index
    %299 = vector.load %arg8[%c9, %c0_142, %c0_143] : memref<25x128x128xf32, #tpu.memory_space<vmem>>, vector<1x128x128xf32>
    %300 = vector.shape_cast %299 : vector<1x128x128xf32> to vector<128x128xf32>
    %cst_144 = arith.constant dense<0.000000e+00> : vector<64x128xf32>
    %301 = tpu.matmul %298, %300, %cst_144 {dimension_numbers = #tpu.dot_dimension_numbers<[1], [0], [0], [1], [0, 0, 1, 1], [], []>} : vector<64x128xf32>, vector<128x128xf32>, vector<64x128xf32> -> vector<64x128xf32>
    %302 = arith.addf %286, %301 : vector<64x128xf32>
    %cst_145 = arith.constant 0.000000e+00 : f32
    %303 = vector.broadcast %cst_145 : f32 to vector<2x128xf32>
    %304 = vector.extract_strided_slice %43 {offsets = [0, 0], sizes = [62, 128], strides = [1, 1]} : vector<64x128xf32> to vector<62x128xf32>
    %305 = tpu.concatenate %303, %304 in 0 : vector<2x128xf32>, vector<62x128xf32> -> vector<64x128xf32>
    %c2_i32_146 = arith.constant 2 : i32
    %306 = vector.broadcast %c2_i32_146 : i32 to vector<64x1xi32>
    %307 = arith.cmpi sge, %16, %306 : vector<64x1xi32>
    %c10_i32_147 = arith.constant 10 : i32
    %308 = vector.broadcast %c10_i32_147 : i32 to vector<64x1xi32>
    %309 = arith.cmpi slt, %16, %308 : vector<64x1xi32>
    %310 = arith.andi %307, %309 : vector<64x1xi1>
    %cst_148 = arith.constant 0.000000e+00 : f32
    %311 = vector.broadcast %cst_148 : f32 to vector<64x128xf32>
    %312 = vector.shape_cast %310 : vector<64x1xi1> to vector<64x1xi1>
    %313 = vector.broadcast %312 : vector<64x1xi1> to vector<64x128xi1>
    %314 = arith.select %313, %305, %311 : vector<64x128xi1>, vector<64x128xf32>
    %c10 = arith.constant 10 : index
    %c0_149 = arith.constant 0 : index
    %c0_150 = arith.constant 0 : index
    %315 = vector.load %arg8[%c10, %c0_149, %c0_150] : memref<25x128x128xf32, #tpu.memory_space<vmem>>, vector<1x128x128xf32>
    %316 = vector.shape_cast %315 : vector<1x128x128xf32> to vector<128x128xf32>
    %cst_151 = arith.constant dense<0.000000e+00> : vector<64x128xf32>
    %317 = tpu.matmul %314, %316, %cst_151 {dimension_numbers = #tpu.dot_dimension_numbers<[1], [0], [0], [1], [0, 0, 1, 1], [], []>} : vector<64x128xf32>, vector<128x128xf32>, vector<64x128xf32> -> vector<64x128xf32>
    %318 = arith.addf %302, %317 : vector<64x128xf32>
    %cst_152 = arith.constant 0.000000e+00 : f32
    %319 = vector.broadcast %cst_152 : f32 to vector<1x128xf32>
    %320 = vector.extract_strided_slice %43 {offsets = [0, 0], sizes = [63, 128], strides = [1, 1]} : vector<64x128xf32> to vector<63x128xf32>
    %321 = tpu.concatenate %319, %320 in 0 : vector<1x128xf32>, vector<63x128xf32> -> vector<64x128xf32>
    %c1_i32_153 = arith.constant 1 : i32
    %322 = vector.broadcast %c1_i32_153 : i32 to vector<64x1xi32>
    %323 = arith.cmpi sge, %16, %322 : vector<64x1xi32>
    %c9_i32_154 = arith.constant 9 : i32
    %324 = vector.broadcast %c9_i32_154 : i32 to vector<64x1xi32>
    %325 = arith.cmpi slt, %16, %324 : vector<64x1xi32>
    %326 = arith.andi %323, %325 : vector<64x1xi1>
    %cst_155 = arith.constant 0.000000e+00 : f32
    %327 = vector.broadcast %cst_155 : f32 to vector<64x128xf32>
    %328 = vector.shape_cast %326 : vector<64x1xi1> to vector<64x1xi1>
    %329 = vector.broadcast %328 : vector<64x1xi1> to vector<64x128xi1>
    %330 = arith.select %329, %321, %327 : vector<64x128xi1>, vector<64x128xf32>
    %c11 = arith.constant 11 : index
    %c0_156 = arith.constant 0 : index
    %c0_157 = arith.constant 0 : index
    %331 = vector.load %arg8[%c11, %c0_156, %c0_157] : memref<25x128x128xf32, #tpu.memory_space<vmem>>, vector<1x128x128xf32>
    %332 = vector.shape_cast %331 : vector<1x128x128xf32> to vector<128x128xf32>
    %cst_158 = arith.constant dense<0.000000e+00> : vector<64x128xf32>
    %333 = tpu.matmul %330, %332, %cst_158 {dimension_numbers = #tpu.dot_dimension_numbers<[1], [0], [0], [1], [0, 0, 1, 1], [], []>} : vector<64x128xf32>, vector<128x128xf32>, vector<64x128xf32> -> vector<64x128xf32>
    %334 = arith.addf %318, %333 : vector<64x128xf32>
    %c12 = arith.constant 12 : index
    %c0_159 = arith.constant 0 : index
    %c0_160 = arith.constant 0 : index
    %335 = vector.load %arg8[%c12, %c0_159, %c0_160] : memref<25x128x128xf32, #tpu.memory_space<vmem>>, vector<1x128x128xf32>
    %336 = vector.shape_cast %335 : vector<1x128x128xf32> to vector<128x128xf32>
    %cst_161 = arith.constant dense<0.000000e+00> : vector<64x128xf32>
    %337 = tpu.matmul %43, %336, %cst_161 {dimension_numbers = #tpu.dot_dimension_numbers<[1], [0], [0], [1], [0, 0, 1, 1], [], []>} : vector<64x128xf32>, vector<128x128xf32>, vector<64x128xf32> -> vector<64x128xf32>
    %338 = arith.addf %334, %337 : vector<64x128xf32>
    %cst_162 = arith.constant 0.000000e+00 : f32
    %339 = vector.broadcast %cst_162 : f32 to vector<1x128xf32>
    %340 = vector.extract_strided_slice %43 {offsets = [1, 0], sizes = [63, 128], strides = [1, 1]} : vector<64x128xf32> to vector<63x128xf32>
    %341 = tpu.concatenate %340, %339 in 0 : vector<63x128xf32>, vector<1x128xf32> -> vector<64x128xf32>
    %c-1_i32_163 = arith.constant -1 : i32
    %342 = vector.broadcast %c-1_i32_163 : i32 to vector<64x1xi32>
    %343 = arith.cmpi sge, %16, %342 : vector<64x1xi32>
    %c7_i32_164 = arith.constant 7 : i32
    %344 = vector.broadcast %c7_i32_164 : i32 to vector<64x1xi32>
    %345 = arith.cmpi slt, %16, %344 : vector<64x1xi32>
    %346 = arith.andi %343, %345 : vector<64x1xi1>
    %cst_165 = arith.constant 0.000000e+00 : f32
    %347 = vector.broadcast %cst_165 : f32 to vector<64x128xf32>
    %348 = vector.shape_cast %346 : vector<64x1xi1> to vector<64x1xi1>
    %349 = vector.broadcast %348 : vector<64x1xi1> to vector<64x128xi1>
    %350 = arith.select %349, %341, %347 : vector<64x128xi1>, vector<64x128xf32>
    %c13 = arith.constant 13 : index
    %c0_166 = arith.constant 0 : index
    %c0_167 = arith.constant 0 : index
    %351 = vector.load %arg8[%c13, %c0_166, %c0_167] : memref<25x128x128xf32, #tpu.memory_space<vmem>>, vector<1x128x128xf32>
    %352 = vector.shape_cast %351 : vector<1x128x128xf32> to vector<128x128xf32>
    %cst_168 = arith.constant dense<0.000000e+00> : vector<64x128xf32>
    %353 = tpu.matmul %350, %352, %cst_168 {dimension_numbers = #tpu.dot_dimension_numbers<[1], [0], [0], [1], [0, 0, 1, 1], [], []>} : vector<64x128xf32>, vector<128x128xf32>, vector<64x128xf32> -> vector<64x128xf32>
    %354 = arith.addf %338, %353 : vector<64x128xf32>
    %cst_169 = arith.constant 0.000000e+00 : f32
    %355 = vector.broadcast %cst_169 : f32 to vector<2x128xf32>
    %356 = vector.extract_strided_slice %43 {offsets = [2, 0], sizes = [62, 128], strides = [1, 1]} : vector<64x128xf32> to vector<62x128xf32>
    %357 = tpu.concatenate %356, %355 in 0 : vector<62x128xf32>, vector<2x128xf32> -> vector<64x128xf32>
    %c-2_i32_170 = arith.constant -2 : i32
    %358 = vector.broadcast %c-2_i32_170 : i32 to vector<64x1xi32>
    %359 = arith.cmpi sge, %16, %358 : vector<64x1xi32>
    %c6_i32_171 = arith.constant 6 : i32
    %360 = vector.broadcast %c6_i32_171 : i32 to vector<64x1xi32>
    %361 = arith.cmpi slt, %16, %360 : vector<64x1xi32>
    %362 = arith.andi %359, %361 : vector<64x1xi1>
    %cst_172 = arith.constant 0.000000e+00 : f32
    %363 = vector.broadcast %cst_172 : f32 to vector<64x128xf32>
    %364 = vector.shape_cast %362 : vector<64x1xi1> to vector<64x1xi1>
    %365 = vector.broadcast %364 : vector<64x1xi1> to vector<64x128xi1>
    %366 = arith.select %365, %357, %363 : vector<64x128xi1>, vector<64x128xf32>
    %c14 = arith.constant 14 : index
    %c0_173 = arith.constant 0 : index
    %c0_174 = arith.constant 0 : index
    %367 = vector.load %arg8[%c14, %c0_173, %c0_174] : memref<25x128x128xf32, #tpu.memory_space<vmem>>, vector<1x128x128xf32>
    %368 = vector.shape_cast %367 : vector<1x128x128xf32> to vector<128x128xf32>
    %cst_175 = arith.constant dense<0.000000e+00> : vector<64x128xf32>
    %369 = tpu.matmul %366, %368, %cst_175 {dimension_numbers = #tpu.dot_dimension_numbers<[1], [0], [0], [1], [0, 0, 1, 1], [], []>} : vector<64x128xf32>, vector<128x128xf32>, vector<64x128xf32> -> vector<64x128xf32>
    %370 = arith.addf %354, %369 : vector<64x128xf32>
    %cst_176 = arith.constant 0.000000e+00 : f32
    %371 = vector.broadcast %cst_176 : f32 to vector<6x128xf32>
    %372 = vector.extract_strided_slice %43 {offsets = [6, 0], sizes = [58, 128], strides = [1, 1]} : vector<64x128xf32> to vector<58x128xf32>
    %373 = tpu.concatenate %372, %371 in 0 : vector<58x128xf32>, vector<6x128xf32> -> vector<64x128xf32>
    %c2_i32_177 = arith.constant 2 : i32
    %374 = vector.broadcast %c2_i32_177 : i32 to vector<64x1xi32>
    %375 = arith.cmpi sge, %16, %374 : vector<64x1xi32>
    %c10_i32_178 = arith.constant 10 : i32
    %376 = vector.broadcast %c10_i32_178 : i32 to vector<64x1xi32>
    %377 = arith.cmpi slt, %16, %376 : vector<64x1xi32>
    %378 = arith.andi %375, %377 : vector<64x1xi1>
    %cst_179 = arith.constant 0.000000e+00 : f32
    %379 = vector.broadcast %cst_179 : f32 to vector<64x128xf32>
    %380 = vector.shape_cast %378 : vector<64x1xi1> to vector<64x1xi1>
    %381 = vector.broadcast %380 : vector<64x1xi1> to vector<64x128xi1>
    %382 = arith.select %381, %373, %379 : vector<64x128xi1>, vector<64x128xf32>
    %c15 = arith.constant 15 : index
    %c0_180 = arith.constant 0 : index
    %c0_181 = arith.constant 0 : index
    %383 = vector.load %arg8[%c15, %c0_180, %c0_181] : memref<25x128x128xf32, #tpu.memory_space<vmem>>, vector<1x128x128xf32>
    %384 = vector.shape_cast %383 : vector<1x128x128xf32> to vector<128x128xf32>
    %cst_182 = arith.constant dense<0.000000e+00> : vector<64x128xf32>
    %385 = tpu.matmul %382, %384, %cst_182 {dimension_numbers = #tpu.dot_dimension_numbers<[1], [0], [0], [1], [0, 0, 1, 1], [], []>} : vector<64x128xf32>, vector<128x128xf32>, vector<64x128xf32> -> vector<64x128xf32>
    %386 = arith.addf %370, %385 : vector<64x128xf32>
    %cst_183 = arith.constant 0.000000e+00 : f32
    %387 = vector.broadcast %cst_183 : f32 to vector<7x128xf32>
    %388 = vector.extract_strided_slice %43 {offsets = [7, 0], sizes = [57, 128], strides = [1, 1]} : vector<64x128xf32> to vector<57x128xf32>
    %389 = tpu.concatenate %388, %387 in 0 : vector<57x128xf32>, vector<7x128xf32> -> vector<64x128xf32>
    %c1_i32_184 = arith.constant 1 : i32
    %390 = vector.broadcast %c1_i32_184 : i32 to vector<64x1xi32>
    %391 = arith.cmpi sge, %16, %390 : vector<64x1xi32>
    %c9_i32_185 = arith.constant 9 : i32
    %392 = vector.broadcast %c9_i32_185 : i32 to vector<64x1xi32>
    %393 = arith.cmpi slt, %16, %392 : vector<64x1xi32>
    %394 = arith.andi %391, %393 : vector<64x1xi1>
    %cst_186 = arith.constant 0.000000e+00 : f32
    %395 = vector.broadcast %cst_186 : f32 to vector<64x128xf32>
    %396 = vector.shape_cast %394 : vector<64x1xi1> to vector<64x1xi1>
    %397 = vector.broadcast %396 : vector<64x1xi1> to vector<64x128xi1>
    %398 = arith.select %397, %389, %395 : vector<64x128xi1>, vector<64x128xf32>
    %c16 = arith.constant 16 : index
    %c0_187 = arith.constant 0 : index
    %c0_188 = arith.constant 0 : index
    %399 = vector.load %arg8[%c16, %c0_187, %c0_188] : memref<25x128x128xf32, #tpu.memory_space<vmem>>, vector<1x128x128xf32>
    %400 = vector.shape_cast %399 : vector<1x128x128xf32> to vector<128x128xf32>
    %cst_189 = arith.constant dense<0.000000e+00> : vector<64x128xf32>
    %401 = tpu.matmul %398, %400, %cst_189 {dimension_numbers = #tpu.dot_dimension_numbers<[1], [0], [0], [1], [0, 0, 1, 1], [], []>} : vector<64x128xf32>, vector<128x128xf32>, vector<64x128xf32> -> vector<64x128xf32>
    %402 = arith.addf %386, %401 : vector<64x128xf32>
    %cst_190 = arith.constant 0.000000e+00 : f32
    %403 = vector.broadcast %cst_190 : f32 to vector<8x128xf32>
    %404 = vector.extract_strided_slice %43 {offsets = [8, 0], sizes = [56, 128], strides = [1, 1]} : vector<64x128xf32> to vector<56x128xf32>
    %405 = tpu.concatenate %404, %403 in 0 : vector<56x128xf32>, vector<8x128xf32> -> vector<64x128xf32>
    %c17 = arith.constant 17 : index
    %c0_191 = arith.constant 0 : index
    %c0_192 = arith.constant 0 : index
    %406 = vector.load %arg8[%c17, %c0_191, %c0_192] : memref<25x128x128xf32, #tpu.memory_space<vmem>>, vector<1x128x128xf32>
    %407 = vector.shape_cast %406 : vector<1x128x128xf32> to vector<128x128xf32>
    %cst_193 = arith.constant dense<0.000000e+00> : vector<64x128xf32>
    %408 = tpu.matmul %405, %407, %cst_193 {dimension_numbers = #tpu.dot_dimension_numbers<[1], [0], [0], [1], [0, 0, 1, 1], [], []>} : vector<64x128xf32>, vector<128x128xf32>, vector<64x128xf32> -> vector<64x128xf32>
    %409 = arith.addf %402, %408 : vector<64x128xf32>
    %cst_194 = arith.constant 0.000000e+00 : f32
    %410 = vector.broadcast %cst_194 : f32 to vector<9x128xf32>
    %411 = vector.extract_strided_slice %43 {offsets = [9, 0], sizes = [55, 128], strides = [1, 1]} : vector<64x128xf32> to vector<55x128xf32>
    %412 = tpu.concatenate %411, %410 in 0 : vector<55x128xf32>, vector<9x128xf32> -> vector<64x128xf32>
    %c-1_i32_195 = arith.constant -1 : i32
    %413 = vector.broadcast %c-1_i32_195 : i32 to vector<64x1xi32>
    %414 = arith.cmpi sge, %16, %413 : vector<64x1xi32>
    %c7_i32_196 = arith.constant 7 : i32
    %415 = vector.broadcast %c7_i32_196 : i32 to vector<64x1xi32>
    %416 = arith.cmpi slt, %16, %415 : vector<64x1xi32>
    %417 = arith.andi %414, %416 : vector<64x1xi1>
    %cst_197 = arith.constant 0.000000e+00 : f32
    %418 = vector.broadcast %cst_197 : f32 to vector<64x128xf32>
    %419 = vector.shape_cast %417 : vector<64x1xi1> to vector<64x1xi1>
    %420 = vector.broadcast %419 : vector<64x1xi1> to vector<64x128xi1>
    %421 = arith.select %420, %412, %418 : vector<64x128xi1>, vector<64x128xf32>
    %c18 = arith.constant 18 : index
    %c0_198 = arith.constant 0 : index
    %c0_199 = arith.constant 0 : index
    %422 = vector.load %arg8[%c18, %c0_198, %c0_199] : memref<25x128x128xf32, #tpu.memory_space<vmem>>, vector<1x128x128xf32>
    %423 = vector.shape_cast %422 : vector<1x128x128xf32> to vector<128x128xf32>
    %cst_200 = arith.constant dense<0.000000e+00> : vector<64x128xf32>
    %424 = tpu.matmul %421, %423, %cst_200 {dimension_numbers = #tpu.dot_dimension_numbers<[1], [0], [0], [1], [0, 0, 1, 1], [], []>} : vector<64x128xf32>, vector<128x128xf32>, vector<64x128xf32> -> vector<64x128xf32>
    %425 = arith.addf %409, %424 : vector<64x128xf32>
    %cst_201 = arith.constant 0.000000e+00 : f32
    %426 = vector.broadcast %cst_201 : f32 to vector<10x128xf32>
    %427 = vector.extract_strided_slice %43 {offsets = [10, 0], sizes = [54, 128], strides = [1, 1]} : vector<64x128xf32> to vector<54x128xf32>
    %428 = tpu.concatenate %427, %426 in 0 : vector<54x128xf32>, vector<10x128xf32> -> vector<64x128xf32>
    %c-2_i32_202 = arith.constant -2 : i32
    %429 = vector.broadcast %c-2_i32_202 : i32 to vector<64x1xi32>
    %430 = arith.cmpi sge, %16, %429 : vector<64x1xi32>
    %c6_i32_203 = arith.constant 6 : i32
    %431 = vector.broadcast %c6_i32_203 : i32 to vector<64x1xi32>
    %432 = arith.cmpi slt, %16, %431 : vector<64x1xi32>
    %433 = arith.andi %430, %432 : vector<64x1xi1>
    %cst_204 = arith.constant 0.000000e+00 : f32
    %434 = vector.broadcast %cst_204 : f32 to vector<64x128xf32>
    %435 = vector.shape_cast %433 : vector<64x1xi1> to vector<64x1xi1>
    %436 = vector.broadcast %435 : vector<64x1xi1> to vector<64x128xi1>
    %437 = arith.select %436, %428, %434 : vector<64x128xi1>, vector<64x128xf32>
    %c19 = arith.constant 19 : index
    %c0_205 = arith.constant 0 : index
    %c0_206 = arith.constant 0 : index
    %438 = vector.load %arg8[%c19, %c0_205, %c0_206] : memref<25x128x128xf32, #tpu.memory_space<vmem>>, vector<1x128x128xf32>
    %439 = vector.shape_cast %438 : vector<1x128x128xf32> to vector<128x128xf32>
    %cst_207 = arith.constant dense<0.000000e+00> : vector<64x128xf32>
    %440 = tpu.matmul %437, %439, %cst_207 {dimension_numbers = #tpu.dot_dimension_numbers<[1], [0], [0], [1], [0, 0, 1, 1], [], []>} : vector<64x128xf32>, vector<128x128xf32>, vector<64x128xf32> -> vector<64x128xf32>
    %441 = arith.addf %425, %440 : vector<64x128xf32>
    %cst_208 = arith.constant 0.000000e+00 : f32
    %442 = vector.broadcast %cst_208 : f32 to vector<14x128xf32>
    %443 = vector.extract_strided_slice %43 {offsets = [14, 0], sizes = [50, 128], strides = [1, 1]} : vector<64x128xf32> to vector<50x128xf32>
    %444 = tpu.concatenate %443, %442 in 0 : vector<50x128xf32>, vector<14x128xf32> -> vector<64x128xf32>
    %c2_i32_209 = arith.constant 2 : i32
    %445 = vector.broadcast %c2_i32_209 : i32 to vector<64x1xi32>
    %446 = arith.cmpi sge, %16, %445 : vector<64x1xi32>
    %c10_i32_210 = arith.constant 10 : i32
    %447 = vector.broadcast %c10_i32_210 : i32 to vector<64x1xi32>
    %448 = arith.cmpi slt, %16, %447 : vector<64x1xi32>
    %449 = arith.andi %446, %448 : vector<64x1xi1>
    %cst_211 = arith.constant 0.000000e+00 : f32
    %450 = vector.broadcast %cst_211 : f32 to vector<64x128xf32>
    %451 = vector.shape_cast %449 : vector<64x1xi1> to vector<64x1xi1>
    %452 = vector.broadcast %451 : vector<64x1xi1> to vector<64x128xi1>
    %453 = arith.select %452, %444, %450 : vector<64x128xi1>, vector<64x128xf32>
    %c20 = arith.constant 20 : index
    %c0_212 = arith.constant 0 : index
    %c0_213 = arith.constant 0 : index
    %454 = vector.load %arg8[%c20, %c0_212, %c0_213] : memref<25x128x128xf32, #tpu.memory_space<vmem>>, vector<1x128x128xf32>
    %455 = vector.shape_cast %454 : vector<1x128x128xf32> to vector<128x128xf32>
    %cst_214 = arith.constant dense<0.000000e+00> : vector<64x128xf32>
    %456 = tpu.matmul %453, %455, %cst_214 {dimension_numbers = #tpu.dot_dimension_numbers<[1], [0], [0], [1], [0, 0, 1, 1], [], []>} : vector<64x128xf32>, vector<128x128xf32>, vector<64x128xf32> -> vector<64x128xf32>
    %457 = arith.addf %441, %456 : vector<64x128xf32>
    %cst_215 = arith.constant 0.000000e+00 : f32
    %458 = vector.broadcast %cst_215 : f32 to vector<15x128xf32>
    %459 = vector.extract_strided_slice %43 {offsets = [15, 0], sizes = [49, 128], strides = [1, 1]} : vector<64x128xf32> to vector<49x128xf32>
    %460 = tpu.concatenate %459, %458 in 0 : vector<49x128xf32>, vector<15x128xf32> -> vector<64x128xf32>
    %c1_i32_216 = arith.constant 1 : i32
    %461 = vector.broadcast %c1_i32_216 : i32 to vector<64x1xi32>
    %462 = arith.cmpi sge, %16, %461 : vector<64x1xi32>
    %c9_i32_217 = arith.constant 9 : i32
    %463 = vector.broadcast %c9_i32_217 : i32 to vector<64x1xi32>
    %464 = arith.cmpi slt, %16, %463 : vector<64x1xi32>
    %465 = arith.andi %462, %464 : vector<64x1xi1>
    %cst_218 = arith.constant 0.000000e+00 : f32
    %466 = vector.broadcast %cst_218 : f32 to vector<64x128xf32>
    %467 = vector.shape_cast %465 : vector<64x1xi1> to vector<64x1xi1>
    %468 = vector.broadcast %467 : vector<64x1xi1> to vector<64x128xi1>
    %469 = arith.select %468, %460, %466 : vector<64x128xi1>, vector<64x128xf32>
    %c21 = arith.constant 21 : index
    %c0_219 = arith.constant 0 : index
    %c0_220 = arith.constant 0 : index
    %470 = vector.load %arg8[%c21, %c0_219, %c0_220] : memref<25x128x128xf32, #tpu.memory_space<vmem>>, vector<1x128x128xf32>
    %471 = vector.shape_cast %470 : vector<1x128x128xf32> to vector<128x128xf32>
    %cst_221 = arith.constant dense<0.000000e+00> : vector<64x128xf32>
    %472 = tpu.matmul %469, %471, %cst_221 {dimension_numbers = #tpu.dot_dimension_numbers<[1], [0], [0], [1], [0, 0, 1, 1], [], []>} : vector<64x128xf32>, vector<128x128xf32>, vector<64x128xf32> -> vector<64x128xf32>
    %473 = arith.addf %457, %472 : vector<64x128xf32>
    %cst_222 = arith.constant 0.000000e+00 : f32
    %474 = vector.broadcast %cst_222 : f32 to vector<16x128xf32>
    %475 = vector.extract_strided_slice %43 {offsets = [16, 0], sizes = [48, 128], strides = [1, 1]} : vector<64x128xf32> to vector<48x128xf32>
    %476 = tpu.concatenate %475, %474 in 0 : vector<48x128xf32>, vector<16x128xf32> -> vector<64x128xf32>
    %c22 = arith.constant 22 : index
    %c0_223 = arith.constant 0 : index
    %c0_224 = arith.constant 0 : index
    %477 = vector.load %arg8[%c22, %c0_223, %c0_224] : memref<25x128x128xf32, #tpu.memory_space<vmem>>, vector<1x128x128xf32>
    %478 = vector.shape_cast %477 : vector<1x128x128xf32> to vector<128x128xf32>
    %cst_225 = arith.constant dense<0.000000e+00> : vector<64x128xf32>
    %479 = tpu.matmul %476, %478, %cst_225 {dimension_numbers = #tpu.dot_dimension_numbers<[1], [0], [0], [1], [0, 0, 1, 1], [], []>} : vector<64x128xf32>, vector<128x128xf32>, vector<64x128xf32> -> vector<64x128xf32>
    %480 = arith.addf %473, %479 : vector<64x128xf32>
    %cst_226 = arith.constant 0.000000e+00 : f32
    %481 = vector.broadcast %cst_226 : f32 to vector<17x128xf32>
    %482 = vector.extract_strided_slice %43 {offsets = [17, 0], sizes = [47, 128], strides = [1, 1]} : vector<64x128xf32> to vector<47x128xf32>
    %483 = tpu.concatenate %482, %481 in 0 : vector<47x128xf32>, vector<17x128xf32> -> vector<64x128xf32>
    %c-1_i32_227 = arith.constant -1 : i32
    %484 = vector.broadcast %c-1_i32_227 : i32 to vector<64x1xi32>
    %485 = arith.cmpi sge, %16, %484 : vector<64x1xi32>
    %c7_i32_228 = arith.constant 7 : i32
    %486 = vector.broadcast %c7_i32_228 : i32 to vector<64x1xi32>
    %487 = arith.cmpi slt, %16, %486 : vector<64x1xi32>
    %488 = arith.andi %485, %487 : vector<64x1xi1>
    %cst_229 = arith.constant 0.000000e+00 : f32
    %489 = vector.broadcast %cst_229 : f32 to vector<64x128xf32>
    %490 = vector.shape_cast %488 : vector<64x1xi1> to vector<64x1xi1>
    %491 = vector.broadcast %490 : vector<64x1xi1> to vector<64x128xi1>
    %492 = arith.select %491, %483, %489 : vector<64x128xi1>, vector<64x128xf32>
    %c23 = arith.constant 23 : index
    %c0_230 = arith.constant 0 : index
    %c0_231 = arith.constant 0 : index
    %493 = vector.load %arg8[%c23, %c0_230, %c0_231] : memref<25x128x128xf32, #tpu.memory_space<vmem>>, vector<1x128x128xf32>
    %494 = vector.shape_cast %493 : vector<1x128x128xf32> to vector<128x128xf32>
    %cst_232 = arith.constant dense<0.000000e+00> : vector<64x128xf32>
    %495 = tpu.matmul %492, %494, %cst_232 {dimension_numbers = #tpu.dot_dimension_numbers<[1], [0], [0], [1], [0, 0, 1, 1], [], []>} : vector<64x128xf32>, vector<128x128xf32>, vector<64x128xf32> -> vector<64x128xf32>
    %496 = arith.addf %480, %495 : vector<64x128xf32>
    %cst_233 = arith.constant 0.000000e+00 : f32
    %497 = vector.broadcast %cst_233 : f32 to vector<18x128xf32>
    %498 = vector.extract_strided_slice %43 {offsets = [18, 0], sizes = [46, 128], strides = [1, 1]} : vector<64x128xf32> to vector<46x128xf32>
    %499 = tpu.concatenate %498, %497 in 0 : vector<46x128xf32>, vector<18x128xf32> -> vector<64x128xf32>
    %c-2_i32_234 = arith.constant -2 : i32
    %500 = vector.broadcast %c-2_i32_234 : i32 to vector<64x1xi32>
    %501 = arith.cmpi sge, %16, %500 : vector<64x1xi32>
    %c6_i32_235 = arith.constant 6 : i32
    %502 = vector.broadcast %c6_i32_235 : i32 to vector<64x1xi32>
    %503 = arith.cmpi slt, %16, %502 : vector<64x1xi32>
    %504 = arith.andi %501, %503 : vector<64x1xi1>
    %cst_236 = arith.constant 0.000000e+00 : f32
    %505 = vector.broadcast %cst_236 : f32 to vector<64x128xf32>
    %506 = vector.shape_cast %504 : vector<64x1xi1> to vector<64x1xi1>
    %507 = vector.broadcast %506 : vector<64x1xi1> to vector<64x128xi1>
    %508 = arith.select %507, %499, %505 : vector<64x128xi1>, vector<64x128xf32>
    %c24 = arith.constant 24 : index
    %c0_237 = arith.constant 0 : index
    %c0_238 = arith.constant 0 : index
    %509 = vector.load %arg8[%c24, %c0_237, %c0_238] : memref<25x128x128xf32, #tpu.memory_space<vmem>>, vector<1x128x128xf32>
    %510 = vector.shape_cast %509 : vector<1x128x128xf32> to vector<128x128xf32>
    %cst_239 = arith.constant dense<0.000000e+00> : vector<64x128xf32>
    %511 = tpu.matmul %508, %510, %cst_239 {dimension_numbers = #tpu.dot_dimension_numbers<[1], [0], [0], [1], [0, 0, 1, 1], [], []>} : vector<64x128xf32>, vector<128x128xf32>, vector<64x128xf32> -> vector<64x128xf32>
    %512 = arith.addf %496, %511 : vector<64x128xf32>
    %c0_240 = arith.constant 0 : index
    %c0_241 = arith.constant 0 : index
    %513 = vector.load %arg9[%c0_240, %c0_241] : memref<1x128xf32, #tpu.memory_space<vmem>>, vector<1x128xf32>
    %514 = vector.broadcast %513 : vector<1x128xf32> to vector<64x128xf32>
    %515 = arith.addf %512, %514 : vector<64x128xf32>
    %cst_242 = arith.constant 0.000000e+00 : f32
    %516 = vector.broadcast %cst_242 : f32 to vector<64x128xf32>
    %517 = arith.maximumf %515, %516 : vector<64x128xf32>
    %c0_243 = arith.constant 0 : index
    %c0_244 = arith.constant 0 : index
    %518 = vector.load %arg10[%c0_243, %c0_244] : memref<16x32xf32, #tpu.memory_space<vmem>>, vector<16x32xf32>
    %cst_245 = arith.constant dense<0.000000e+00> : vector<64x32xf32>
    %519 = tpu.matmul %33, %518, %cst_245 {dimension_numbers = #tpu.dot_dimension_numbers<[1], [0], [0], [1], [0, 0, 1, 1], [], []>} : vector<64x16xf32>, vector<16x32xf32>, vector<64x32xf32> -> vector<64x32xf32>
    %c0_246 = arith.constant 0 : index
    %c0_247 = arith.constant 0 : index
    %520 = vector.load %arg11[%c0_246, %c0_247] : memref<128x32xf32, #tpu.memory_space<vmem>>, vector<128x32xf32>
    %cst_248 = arith.constant dense<0.000000e+00> : vector<64x32xf32>
    %521 = tpu.matmul %41, %520, %cst_248 {dimension_numbers = #tpu.dot_dimension_numbers<[1], [0], [0], [1], [0, 0, 1, 1], [], []>} : vector<64x128xf32>, vector<128x32xf32>, vector<64x32xf32> -> vector<64x32xf32>
    %522 = arith.addf %519, %521 : vector<64x32xf32>
    %c0_249 = arith.constant 0 : index
    %c0_250 = arith.constant 0 : index
    %523 = vector.load %arg12[%c0_249, %c0_250] : memref<128x32xf32, #tpu.memory_space<vmem>>, vector<128x32xf32>
    %cst_251 = arith.constant dense<0.000000e+00> : vector<64x32xf32>
    %524 = tpu.matmul %161, %523, %cst_251 {dimension_numbers = #tpu.dot_dimension_numbers<[1], [0], [0], [1], [0, 0, 1, 1], [], []>} : vector<64x128xf32>, vector<128x32xf32>, vector<64x32xf32> -> vector<64x32xf32>
    %525 = arith.addf %522, %524 : vector<64x32xf32>
    %c0_252 = arith.constant 0 : index
    %c0_253 = arith.constant 0 : index
    %526 = vector.load %arg13[%c0_252, %c0_253] : memref<128x32xf32, #tpu.memory_space<vmem>>, vector<128x32xf32>
    %cst_254 = arith.constant dense<0.000000e+00> : vector<64x32xf32>
    %527 = tpu.matmul %517, %526, %cst_254 {dimension_numbers = #tpu.dot_dimension_numbers<[1], [0], [0], [1], [0, 0, 1, 1], [], []>} : vector<64x128xf32>, vector<128x32xf32>, vector<64x32xf32> -> vector<64x32xf32>
    %528 = arith.addf %525, %527 : vector<64x32xf32>
    %c0_255 = arith.constant 0 : index
    %c0_256 = arith.constant 0 : index
    %529 = vector.load %arg14[%c0_255, %c0_256] : memref<1x32xf32, #tpu.memory_space<vmem>>, vector<1x32xf32>
    %530 = vector.broadcast %529 : vector<1x32xf32> to vector<64x32xf32>
    %531 = arith.addf %528, %530 : vector<64x32xf32>
    %cst_257 = arith.constant 2.000000e+00 : f32
    %532 = vector.broadcast %cst_257 : f32 to vector<1x16xf32>
    %533 = arith.mulf %532, %25 : vector<1x16xf32>
    %c0_258 = arith.constant 0 : index
    %c0_259 = arith.constant 0 : index
    %534 = vector.load %arg10[%c0_258, %c0_259] : memref<16x32xf32, #tpu.memory_space<vmem>>, vector<16x32xf32>
    %cst_260 = arith.constant dense<0.000000e+00> : vector<1x32xf32>
    %535 = tpu.matmul %533, %534, %cst_260 {dimension_numbers = #tpu.dot_dimension_numbers<[1], [0], [0], [1], [0, 0, 1, 1], [], []>} : vector<1x16xf32>, vector<16x32xf32>, vector<1x32xf32> -> vector<1x32xf32>
    %c0_261 = arith.constant 0 : index
    %c0_262 = arith.constant 0 : index
    %536 = vector.load %arg14[%c0_261, %c0_262] : memref<1x32xf32, #tpu.memory_space<vmem>>, vector<1x32xf32>
    %537 = arith.addf %535, %536 : vector<1x32xf32>
    %538 = vector.shape_cast %537 : vector<1x32xf32> to vector<1x1x32xf32>
    %c0_263 = arith.constant 0 : index
    %c0_264 = arith.constant 0 : index
    %c0_265 = arith.constant 0 : index
    %539 = vector.load %arg15[%c0_263, %c0_264, %c0_265] : memref<1x65x32xf32, #tpu.memory_space<vmem>>, vector<1x1x32xf32>
    tpu.vector_store %arg15[%c0_263, %c0_264, %c0_265], %538 {strides = array<i32>} : memref<1x65x32xf32, #tpu.memory_space<vmem>>, vector<1x1x32xf32>,
    %540 = vector.shape_cast %531 : vector<64x32xf32> to vector<1x64x32xf32>
    %c0_266 = arith.constant 0 : index
    %c1_267 = arith.constant 1 : index
    %c0_268 = arith.constant 0 : index
    %541 = vector.load %arg15[%c0_266, %c1_267, %c0_268] : memref<1x65x32xf32, #tpu.memory_space<vmem>>, vector<1x64x32xf32>
    tpu.vector_store %arg15[%c0_266, %c1_267, %c0_268], %540 {strides = array<i32>} : memref<1x65x32xf32, #tpu.memory_space<vmem>>, vector<1x64x32xf32>,
    return
  }
  func.func @transform_0(%arg0: i32) -> (i32, i32, i32) {
    %c0_i32 = arith.constant 0 : i32
    %c0_i32_0 = arith.constant 0 : i32
    %c0_i32_1 = arith.constant 0 : i32
    return %arg0, %c0_i32, %c0_i32_0 : i32, i32, i32
  }
  func.func @transform_1(%arg0: i32) -> (i32, i32) {
    %c0_i32 = arith.constant 0 : i32
    %c0_i32_0 = arith.constant 0 : i32
    %c0_i32_1 = arith.constant 0 : i32
    return %c0_i32, %c0_i32_0 : i32, i32
  }
  func.func @transform_2(%arg0: i32) -> (i32, i32) {
    %c0_i32 = arith.constant 0 : i32
    %c0_i32_0 = arith.constant 0 : i32
    %c0_i32_1 = arith.constant 0 : i32
    return %c0_i32, %c0_i32_0 : i32, i32
  }
  func.func @transform_3(%arg0: i32) -> (i32, i32) {
    %c0_i32 = arith.constant 0 : i32
    %c0_i32_0 = arith.constant 0 : i32
    %c0_i32_1 = arith.constant 0 : i32
    return %c0_i32, %c0_i32_0 : i32, i32
  }
  func.func @transform_4(%arg0: i32) -> (i32, i32) {
    %c0_i32 = arith.constant 0 : i32
    %c0_i32_0 = arith.constant 0 : i32
    %c0_i32_1 = arith.constant 0 : i32
    return %c0_i32, %c0_i32_0 : i32, i32
  }
  func.func @transform_5(%arg0: i32) -> (i32, i32, i32) {
    %c0_i32 = arith.constant 0 : i32
    %c0_i32_0 = arith.constant 0 : i32
    %c0_i32_1 = arith.constant 0 : i32
    %c0_i32_2 = arith.constant 0 : i32
    return %c0_i32, %c0_i32_0, %c0_i32_1 : i32, i32, i32
  }
  func.func @transform_6(%arg0: i32) -> (i32, i32) {
    %c0_i32 = arith.constant 0 : i32
    %c0_i32_0 = arith.constant 0 : i32
    %c0_i32_1 = arith.constant 0 : i32
    return %c0_i32, %c0_i32_0 : i32, i32
  }
  func.func @transform_7(%arg0: i32) -> (i32, i32, i32) {
    %c0_i32 = arith.constant 0 : i32
    %c0_i32_0 = arith.constant 0 : i32
    %c0_i32_1 = arith.constant 0 : i32
    %c0_i32_2 = arith.constant 0 : i32
    return %c0_i32, %c0_i32_0, %c0_i32_1 : i32, i32, i32
  }
  func.func @transform_8(%arg0: i32) -> (i32, i32) {
    %c0_i32 = arith.constant 0 : i32
    %c0_i32_0 = arith.constant 0 : i32
    %c0_i32_1 = arith.constant 0 : i32
    return %c0_i32, %c0_i32_0 : i32, i32
  }
  func.func @transform_9(%arg0: i32) -> (i32, i32) {
    %c0_i32 = arith.constant 0 : i32
    %c0_i32_0 = arith.constant 0 : i32
    %c0_i32_1 = arith.constant 0 : i32
    return %c0_i32, %c0_i32_0 : i32, i32
  }
  func.func @transform_10(%arg0: i32) -> (i32, i32) {
    %c0_i32 = arith.constant 0 : i32
    %c0_i32_0 = arith.constant 0 : i32
    %c0_i32_1 = arith.constant 0 : i32
    return %c0_i32, %c0_i32_0 : i32, i32
  }
  func.func @transform_11(%arg0: i32) -> (i32, i32) {
    %c0_i32 = arith.constant 0 : i32
    %c0_i32_0 = arith.constant 0 : i32
    %c0_i32_1 = arith.constant 0 : i32
    return %c0_i32, %c0_i32_0 : i32, i32
  }
  func.func @transform_12(%arg0: i32) -> (i32, i32) {
    %c0_i32 = arith.constant 0 : i32
    %c0_i32_0 = arith.constant 0 : i32
    %c0_i32_1 = arith.constant 0 : i32
    return %c0_i32, %c0_i32_0 : i32, i32
  }
  func.func @transform_13(%arg0: i32) -> (i32, i32) {
    %c0_i32 = arith.constant 0 : i32
    %c0_i32_0 = arith.constant 0 : i32
    %c0_i32_1 = arith.constant 0 : i32
    return %c0_i32, %c0_i32_0 : i32, i32
  }
  func.func @transform_14(%arg0: i32) -> (i32, i32, i32) {
    %c0_i32 = arith.constant 0 : i32
    %c0_i32_0 = arith.constant 0 : i32
    %c0_i32_1 = arith.constant 0 : i32
    return %arg0, %c0_i32, %c0_i32_0 : i32, i32, i32
  }
}

module attributes {stable_mosaic.version = 11 : i64} {
  func.func @kernel(%arg0: i32, %arg1: memref<1x65x32xf32, #tpu.memory_space<vmem>>, %arg2: memref<32x16xf32, #tpu.memory_space<vmem>>, %arg3: memref<1x16xf32, #tpu.memory_space<vmem>>, %arg4: memref<16x384xf32, #tpu.memory_space<vmem>>, %arg5: memref<1x384xf32, #tpu.memory_space<vmem>>, %arg6: memref<9x128x128xf32, #tpu.memory_space<vmem>>, %arg7: memref<1x128xf32, #tpu.memory_space<vmem>>, %arg8: memref<25x128x128xf32, #tpu.memory_space<vmem>>, %arg9: memref<1x128xf32, #tpu.memory_space<vmem>>, %arg10: memref<16x32xf32, #tpu.memory_space<vmem>>, %arg11: memref<128x32xf32, #tpu.memory_space<vmem>>, %arg12: memref<128x32xf32, #tpu.memory_space<vmem>>, %arg13: memref<128x32xf32, #tpu.memory_space<vmem>>, %arg14: memref<1x32xf32, #tpu.memory_space<vmem>>, %arg15: memref<1x65x32xf32, #tpu.memory_space<vmem>>) attributes {dimension_semantics = [#tpu.dimension_semantics<parallel>], iteration_bounds = array<i64: 2>, scalar_prefetch = 0 : i64, scratch_operands = 0 : i64, tpu.core_type = #tpu.core_type<tc>, window_params = [{transform_indices = @transform_0, window_bounds = array<i64: 1, 65, 32>}, {pipeline_mode = #tpu.pipeline_mode<synchronous>, transform_indices = @transform_1, window_bounds = array<i64: 32, 16>}, {pipeline_mode = #tpu.pipeline_mode<synchronous>, transform_indices = @transform_2, window_bounds = array<i64: 1, 16>}, {pipeline_mode = #tpu.pipeline_mode<synchronous>, transform_indices = @transform_3, window_bounds = array<i64: 16, 384>}, {pipeline_mode = #tpu.pipeline_mode<synchronous>, transform_indices = @transform_4, window_bounds = array<i64: 1, 384>}, {pipeline_mode = #tpu.pipeline_mode<synchronous>, transform_indices = @transform_5, window_bounds = array<i64: 9, 128, 128>}, {pipeline_mode = #tpu.pipeline_mode<synchronous>, transform_indices = @transform_6, window_bounds = array<i64: 1, 128>}, {pipeline_mode = #tpu.pipeline_mode<synchronous>, transform_indices = @transform_7, window_bounds = array<i64: 25, 128, 128>}, {pipeline_mode = #tpu.pipeline_mode<synchronous>, transform_indices = @transform_8, window_bounds = array<i64: 1, 128>}, {pipeline_mode = #tpu.pipeline_mode<synchronous>, transform_indices = @transform_9, window_bounds = array<i64: 16, 32>}, {pipeline_mode = #tpu.pipeline_mode<synchronous>, transform_indices = @transform_10, window_bounds = array<i64: 128, 32>}, {pipeline_mode = #tpu.pipeline_mode<synchronous>, transform_indices = @transform_11, window_bounds = array<i64: 128, 32>}, {pipeline_mode = #tpu.pipeline_mode<synchronous>, transform_indices = @transform_12, window_bounds = array<i64: 128, 32>}, {pipeline_mode = #tpu.pipeline_mode<synchronous>, transform_indices = @transform_13, window_bounds = array<i64: 1, 32>}, {transform_indices = @transform_14, window_bounds = array<i64: 1, 65, 32>}]} {
    %0 = tpu.iota {dimensions = array<i32: 0>} : vector<64x1xi32>
    %c8_i32 = arith.constant 8 : i32
    %c0_i32 = arith.constant 0 : i32
    %1 = arith.cmpi eq, %c8_i32, %c0_i32 : i32
    %c1_i32 = arith.constant 1 : i32
    %2 = arith.select %1, %c1_i32, %c8_i32 : i32
    %3 = vector.broadcast %2 : i32 to vector<64x1xi32>
    %4 = arith.remsi %0, %3 : vector<64x1xi32>
    %c0_i32_0 = arith.constant 0 : i32
    %5 = vector.broadcast %c0_i32_0 : i32 to vector<64x1xi32>
    %6 = arith.cmpi ne, %4, %5 : vector<64x1xi32>
    %c0_i32_1 = arith.constant 0 : i32
    %7 = vector.broadcast %c0_i32_1 : i32 to vector<64x1xi32>
    %8 = arith.cmpi slt, %4, %7 : vector<64x1xi32>
    %c0_i32_2 = arith.constant 0 : i32
    %9 = arith.cmpi slt, %2, %c0_i32_2 : i32
    %10 = vector.broadcast %9 : i1 to vector<64x1xi1>
    %11 = vector.broadcast %10 : vector<64x1xi1> to vector<64x1xi1>
    %12 = arith.xori %8, %11 : vector<64x1xi1>
    %13 = arith.andi %12, %6 : vector<64x1xi1>
    %14 = vector.broadcast %2 : i32 to vector<64x1xi32>
    %15 = arith.addi %4, %14 : vector<64x1xi32>
    %16 = arith.select %13, %15, %4 : vector<64x1xi1>, vector<64x1xi32>
    %c0 = arith.constant 0 : index
    %c0_3 = arith.constant 0 : index
    %c0_4 = arith.constant 0 : index
    %17 = vector.load %arg1[%c0, %c0_3, %c0_4] : memref<1x65x32xf32, #tpu.memory_space<vmem>>, vector<1x65x32xf32>
    %18 = vector.shape_cast %17 : vector<1x65x32xf32> to vector<65x32xf32>
    %19 = vector.extract_strided_slice %18 {offsets = [0, 0], sizes = [1, 32], strides = [1, 1]} : vector<65x32xf32> to vector<1x32xf32>
    %c0_5 = arith.constant 0 : index
    %c0_6 = arith.constant 0 : index
    %20 = vector.load %arg2[%c0_5, %c0_6] : memref<32x16xf32, #tpu.memory_space<vmem>>, vector<32x16xf32>
    %cst = arith.constant dense<0.000000e+00> : vector<1x16xf32>
    %21 = tpu.matmul %19, %20, %cst {dimension_numbers = #tpu.dot_dimension_numbers<[1], [0], [0], [1], [0, 0, 1, 1], [], []>} : vector<1x32xf32>, vector<32x16xf32>, vector<1x16xf32> -> vector<1x16xf32>
    %c0_7 = arith.constant 0 : index
    %c0_8 = arith.constant 0 : index
    %22 = vector.load %arg3[%c0_7, %c0_8] : memref<1x16xf32, #tpu.memory_space<vmem>>, vector<1x16xf32>
    %23 = arith.addf %21, %22 : vector<1x16xf32>
    %cst_9 = arith.constant 0.000000e+00 : f32
    %24 = vector.broadcast %cst_9 : f32 to vector<1x16xf32>
    %25 = arith.maximumf %23, %24 : vector<1x16xf32>
    %26 = vector.extract_strided_slice %18 {offsets = [1, 0], sizes = [64, 32], strides = [1, 1]} : vector<65x32xf32> to vector<64x32xf32>
    %c0_10 = arith.constant 0 : index
    %c0_11 = arith.constant 0 : index
    %27 = vector.load %arg2[%c0_10, %c0_11] : memref<32x16xf32, #tpu.memory_space<vmem>>, vector<32x16xf32>
    %cst_12 = arith.constant dense<0.000000e+00> : vector<64x16xf32>
    %28 = tpu.matmul %26, %27, %cst_12 {dimension_numbers = #tpu.dot_dimension_numbers<[1], [0], [0], [1], [0, 0, 1, 1], [], []>} : vector<64x32xf32>, vector<32x16xf32>, vector<64x16xf32> -> vector<64x16xf32>
    %c0_13 = arith.constant 0 : index
    %c0_14 = arith.constant 0 : index
    %29 = vector.load %arg3[%c0_13, %c0_14] : memref<1x16xf32, #tpu.memory_space<vmem>>, vector<1x16xf32>
    %30 = vector.broadcast %29 : vector<1x16xf32> to vector<64x16xf32>
    %31 = arith.addf %28, %30 : vector<64x16xf32>
    %cst_15 = arith.constant 0.000000e+00 : f32
    %32 = vector.broadcast %cst_15 : f32 to vector<64x16xf32>
    %33 = arith.maximumf %31, %32 : vector<64x16xf32>
    %c0_16 = arith.constant 0 : index
    %c0_17 = arith.constant 0 : index
    %34 = vector.load %arg4[%c0_16, %c0_17] : memref<16x384xf32, #tpu.memory_space<vmem>>, vector<16x384xf32>
    %cst_18 = arith.constant dense<0.000000e+00> : vector<64x384xf32>
    %35 = tpu.matmul %33, %34, %cst_18 {dimension_numbers = #tpu.dot_dimension_numbers<[1], [0], [0], [1], [0, 0, 1, 1], [], []>} : vector<64x16xf32>, vector<16x384xf32>, vector<64x384xf32> -> vector<64x384xf32>
    %c0_19 = arith.constant 0 : index
    %c0_20 = arith.constant 0 : index
    %36 = vector.load %arg5[%c0_19, %c0_20] : memref<1x384xf32, #tpu.memory_space<vmem>>, vector<1x384xf32>
    %37 = vector.broadcast %36 : vector<1x384xf32> to vector<64x384xf32>
    %38 = arith.addf %35, %37 : vector<64x384xf32>
    %cst_21 = arith.constant 0.000000e+00 : f32
    %39 = vector.broadcast %cst_21 : f32 to vector<64x384xf32>
    %40 = arith.maximumf %38, %39 : vector<64x384xf32>
    %41 = vector.extract_strided_slice %40 {offsets = [0, 0], sizes = [64, 128], strides = [1, 1]} : vector<64x384xf32> to vector<64x128xf32>
    %42 = vector.extract_strided_slice %40 {offsets = [0, 128], sizes = [64, 128], strides = [1, 1]} : vector<64x384xf32> to vector<64x128xf32>
    %43 = vector.extract_strided_slice %40 {offsets = [0, 256], sizes = [64, 128], strides = [1, 1]} : vector<64x384xf32> to vector<64x128xf32>
    %cst_22 = arith.constant 0.000000e+00 : f32
    %44 = vector.broadcast %cst_22 : f32 to vector<9x128xf32>
    %45 = vector.extract_strided_slice %42 {offsets = [0, 0], sizes = [55, 128], strides = [1, 1]} : vector<64x128xf32> to vector<55x128xf32>
    %46 = tpu.concatenate %44, %45 in 0 : vector<9x128xf32>, vector<55x128xf32> -> vector<64x128xf32>
    %c1_i32_23 = arith.constant 1 : i32
    %47 = vector.broadcast %c1_i32_23 : i32 to vector<64x1xi32>
    %48 = arith.cmpi sge, %16, %47 : vector<64x1xi32>
    %c9_i32 = arith.constant 9 : i32
    %49 = vector.broadcast %c9_i32 : i32 to vector<64x1xi32>
    %50 = arith.cmpi slt, %16, %49 : vector<64x1xi32>
    %51 = arith.andi %48, %50 : vector<64x1xi1>
    %cst_24 = arith.constant 0.000000e+00 : f32
    %52 = vector.broadcast %cst_24 : f32 to vector<64x128xf32>
    %53 = vector.shape_cast %51 : vector<64x1xi1> to vector<64x1xi1>
    %54 = vector.broadcast %53 : vector<64x1xi1> to vector<64x128xi1>
    %55 = arith.select %54, %46, %52 : vector<64x128xi1>, vector<64x128xf32>
    %c0_25 = arith.constant 0 : index
    %c0_26 = arith.constant 0 : index
    %c0_27 = arith.constant 0 : index
    %56 = vector.load %arg6[%c0_25, %c0_26, %c0_27] : memref<9x128x128xf32, #tpu.memory_space<vmem>>, vector<1x128x128xf32>
    %57 = vector.shape_cast %56 : vector<1x128x128xf32> to vector<128x128xf32>
    %cst_28 = arith.constant dense<0.000000e+00> : vector<64x128xf32>
    %58 = tpu.matmul %55, %57, %cst_28 {dimension_numbers = #tpu.dot_dimension_numbers<[1], [0], [0], [1], [0, 0, 1, 1], [], []>} : vector<64x128xf32>, vector<128x128xf32>, vector<64x128xf32> -> vector<64x128xf32>
    %cst_29 = arith.constant 0.000000e+00 : f32
    %59 = vector.broadcast %cst_29 : f32 to vector<8x128xf32>
    %60 = vector.extract_strided_slice %42 {offsets = [0, 0], sizes = [56, 128], strides = [1, 1]} : vector<64x128xf32> to vector<56x128xf32>
    %61 = tpu.concatenate %59, %60 in 0 : vector<8x128xf32>, vector<56x128xf32> -> vector<64x128xf32>
    %c1 = arith.constant 1 : index
    %c0_30 = arith.constant 0 : index
    %c0_31 = arith.constant 0 : index
    %62 = vector.load %arg6[%c1, %c0_30, %c0_31] : memref<9x128x128xf32, #tpu.memory_space<vmem>>, vector<1x128x128xf32>
    %63 = vector.shape_cast %62 : vector<1x128x128xf32> to vector<128x128xf32>
    %cst_32 = arith.constant dense<0.000000e+00> : vector<64x128xf32>
    %64 = tpu.matmul %61, %63, %cst_32 {dimension_numbers = #tpu.dot_dimension_numbers<[1], [0], [0], [1], [0, 0, 1, 1], [], []>} : vector<64x128xf32>, vector<128x128xf32>, vector<64x128xf32> -> vector<64x128xf32>
    %65 = arith.addf %58, %64 : vector<64x128xf32>
    %cst_33 = arith.constant 0.000000e+00 : f32
    %66 = vector.broadcast %cst_33 : f32 to vector<7x128xf32>
    %67 = vector.extract_strided_slice %42 {offsets = [0, 0], sizes = [57, 128], strides = [1, 1]} : vector<64x128xf32> to vector<57x128xf32>
    %68 = tpu.concatenate %66, %67 in 0 : vector<7x128xf32>, vector<57x128xf32> -> vector<64x128xf32>
    %c-1_i32 = arith.constant -1 : i32
    %69 = vector.broadcast %c-1_i32 : i32 to vector<64x1xi32>
    %70 = arith.cmpi sge, %16, %69 : vector<64x1xi32>
    %c7_i32 = arith.constant 7 : i32
    %71 = vector.broadcast %c7_i32 : i32 to vector<64x1xi32>
    %72 = arith.cmpi slt, %16, %71 : vector<64x1xi32>
    %73 = arith.andi %70, %72 : vector<64x1xi1>
    %cst_34 = arith.constant 0.000000e+00 : f32
    %74 = vector.broadcast %cst_34 : f32 to vector<64x128xf32>
    %75 = vector.shape_cast %73 : vector<64x1xi1> to vector<64x1xi1>
    %76 = vector.broadcast %75 : vector<64x1xi1> to vector<64x128xi1>
    %77 = arith.select %76, %68, %74 : vector<64x128xi1>, vector<64x128xf32>
    %c2 = arith.constant 2 : index
    %c0_35 = arith.constant 0 : index
    %c0_36 = arith.constant 0 : index
    %78 = vector.load %arg6[%c2, %c0_35, %c0_36] : memref<9x128x128xf32, #tpu.memory_space<vmem>>, vector<1x128x128xf32>
    %79 = vector.shape_cast %78 : vector<1x128x128xf32> to vector<128x128xf32>
    %cst_37 = arith.constant dense<0.000000e+00> : vector<64x128xf32>
    %80 = tpu.matmul %77, %79, %cst_37 {dimension_numbers = #tpu.dot_dimension_numbers<[1], [0], [0], [1], [0, 0, 1, 1], [], []>} : vector<64x128xf32>, vector<128x128xf32>, vector<64x128xf32> -> vector<64x128xf32>
    %81 = arith.addf %65, %80 : vector<64x128xf32>
    %cst_38 = arith.constant 0.000000e+00 : f32
    %82 = vector.broadcast %cst_38 : f32 to vector<1x128xf32>
    %83 = vector.extract_strided_slice %42 {offsets = [0, 0], sizes = [63, 128], strides = [1, 1]} : vector<64x128xf32> to vector<63x128xf32>
    %84 = tpu.concatenate %82, %83 in 0 : vector<1x128xf32>, vector<63x128xf32> -> vector<64x128xf32>
    %c1_i32_39 = arith.constant 1 : i32
    %85 = vector.broadcast %c1_i32_39 : i32 to vector<64x1xi32>
    %86 = arith.cmpi sge, %16, %85 : vector<64x1xi32>
    %c9_i32_40 = arith.constant 9 : i32
    %87 = vector.broadcast %c9_i32_40 : i32 to vector<64x1xi32>
    %88 = arith.cmpi slt, %16, %87 : vector<64x1xi32>
    %89 = arith.andi %86, %88 : vector<64x1xi1>
    %cst_41 = arith.constant 0.000000e+00 : f32
    %90 = vector.broadcast %cst_41 : f32 to vector<64x128xf32>
    %91 = vector.shape_cast %89 : vector<64x1xi1> to vector<64x1xi1>
    %92 = vector.broadcast %91 : vector<64x1xi1> to vector<64x128xi1>
    %93 = arith.select %92, %84, %90 : vector<64x128xi1>, vector<64x128xf32>
    %c3 = arith.constant 3 : index
    %c0_42 = arith.constant 0 : index
    %c0_43 = arith.constant 0 : index
    %94 = vector.load %arg6[%c3, %c0_42, %c0_43] : memref<9x128x128xf32, #tpu.memory_space<vmem>>, vector<1x128x128xf32>
    %95 = vector.shape_cast %94 : vector<1x128x128xf32> to vector<128x128xf32>
    %cst_44 = arith.constant dense<0.000000e+00> : vector<64x128xf32>
    %96 = tpu.matmul %93, %95, %cst_44 {dimension_numbers = #tpu.dot_dimension_numbers<[1], [0], [0], [1], [0, 0, 1, 1], [], []>} : vector<64x128xf32>, vector<128x128xf32>, vector<64x128xf32> -> vector<64x128xf32>
    %97 = arith.addf %81, %96 : vector<64x128xf32>
    %c4 = arith.constant 4 : index
    %c0_45 = arith.constant 0 : index
    %c0_46 = arith.constant 0 : index
    %98 = vector.load %arg6[%c4, %c0_45, %c0_46] : memref<9x128x128xf32, #tpu.memory_space<vmem>>, vector<1x128x128xf32>
    %99 = vector.shape_cast %98 : vector<1x128x128xf32> to vector<128x128xf32>
    %cst_47 = arith.constant dense<0.000000e+00> : vector<64x128xf32>
    %100 = tpu.matmul %42, %99, %cst_47 {dimension_numbers = #tpu.dot_dimension_numbers<[1], [0], [0], [1], [0, 0, 1, 1], [], []>} : vector<64x128xf32>, vector<128x128xf32>, vector<64x128xf32> -> vector<64x128xf32>
    %101 = arith.addf %97, %100 : vector<64x128xf32>
    %cst_48 = arith.constant 0.000000e+00 : f32
    %102 = vector.broadcast %cst_48 : f32 to vector<1x128xf32>
    %103 = vector.extract_strided_slice %42 {offsets = [1, 0], sizes = [63, 128], strides = [1, 1]} : vector<64x128xf32> to vector<63x128xf32>
    %104 = tpu.concatenate %103, %102 in 0 : vector<63x128xf32>, vector<1x128xf32> -> vector<64x128xf32>
    %c-1_i32_49 = arith.constant -1 : i32
    %105 = vector.broadcast %c-1_i32_49 : i32 to vector<64x1xi32>
    %106 = arith.cmpi sge, %16, %105 : vector<64x1xi32>
    %c7_i32_50 = arith.constant 7 : i32
    %107 = vector.broadcast %c7_i32_50 : i32 to vector<64x1xi32>
    %108 = arith.cmpi slt, %16, %107 : vector<64x1xi32>
    %109 = arith.andi %106, %108 : vector<64x1xi1>
    %cst_51 = arith.constant 0.000000e+00 : f32
    %110 = vector.broadcast %cst_51 : f32 to vector<64x128xf32>
    %111 = vector.shape_cast %109 : vector<64x1xi1> to vector<64x1xi1>
    %112 = vector.broadcast %111 : vector<64x1xi1> to vector<64x128xi1>
    %113 = arith.select %112, %104, %110 : vector<64x128xi1>, vector<64x128xf32>
    %c5 = arith.constant 5 : index
    %c0_52 = arith.constant 0 : index
    %c0_53 = arith.constant 0 : index
    %114 = vector.load %arg6[%c5, %c0_52, %c0_53] : memref<9x128x128xf32, #tpu.memory_space<vmem>>, vector<1x128x128xf32>
    %115 = vector.shape_cast %114 : vector<1x128x128xf32> to vector<128x128xf32>
    %cst_54 = arith.constant dense<0.000000e+00> : vector<64x128xf32>
    %116 = tpu.matmul %113, %115, %cst_54 {dimension_numbers = #tpu.dot_dimension_numbers<[1], [0], [0], [1], [0, 0, 1, 1], [], []>} : vector<64x128xf32>, vector<128x128xf32>, vector<64x128xf32> -> vector<64x128xf32>
    %117 = arith.addf %101, %116 : vector<64x128xf32>
    %cst_55 = arith.constant 0.000000e+00 : f32
    %118 = vector.broadcast %cst_55 : f32 to vector<7x128xf32>
    %119 = vector.extract_strided_slice %42 {offsets = [7, 0], sizes = [57, 128], strides = [1, 1]} : vector<64x128xf32> to vector<57x128xf32>
    %120 = tpu.concatenate %119, %118 in 0 : vector<57x128xf32>, vector<7x128xf32> -> vector<64x128xf32>
    %c1_i32_56 = arith.constant 1 : i32
    %121 = vector.broadcast %c1_i32_56 : i32 to vector<64x1xi32>
    %122 = arith.cmpi sge, %16, %121 : vector<64x1xi32>
    %c9_i32_57 = arith.constant 9 : i32
    %123 = vector.broadcast %c9_i32_57 : i32 to vector<64x1xi32>
    %124 = arith.cmpi slt, %16, %123 : vector<64x1xi32>
    %125 = arith.andi %122, %124 : vector<64x1xi1>
    %cst_58 = arith.constant 0.000000e+00 : f32
    %126 = vector.broadcast %cst_58 : f32 to vector<64x128xf32>
    %127 = vector.shape_cast %125 : vector<64x1xi1> to vector<64x1xi1>
    %128 = vector.broadcast %127 : vector<64x1xi1> to vector<64x128xi1>
    %129 = arith.select %128, %120, %126 : vector<64x128xi1>, vector<64x128xf32>
    %c6 = arith.constant 6 : index
    %c0_59 = arith.constant 0 : index
    %c0_60 = arith.constant 0 : index
    %130 = vector.load %arg6[%c6, %c0_59, %c0_60] : memref<9x128x128xf32, #tpu.memory_space<vmem>>, vector<1x128x128xf32>
    %131 = vector.shape_cast %130 : vector<1x128x128xf32> to vector<128x128xf32>
    %cst_61 = arith.constant dense<0.000000e+00> : vector<64x128xf32>
    %132 = tpu.matmul %129, %131, %cst_61 {dimension_numbers = #tpu.dot_dimension_numbers<[1], [0], [0], [1], [0, 0, 1, 1], [], []>} : vector<64x128xf32>, vector<128x128xf32>, vector<64x128xf32> -> vector<64x128xf32>
    %133 = arith.addf %117, %132 : vector<64x128xf32>
    %cst_62 = arith.constant 0.000000e+00 : f32
    %134 = vector.broadcast %cst_62 : f32 to vector<8x128xf32>
    %135 = vector.extract_strided_slice %42 {offsets = [8, 0], sizes = [56, 128], strides = [1, 1]} : vector<64x128xf32> to vector<56x128xf32>
    %136 = tpu.concatenate %135, %134 in 0 : vector<56x128xf32>, vector<8x128xf32> -> vector<64x128xf32>
    %c7 = arith.constant 7 : index
    %c0_63 = arith.constant 0 : index
    %c0_64 = arith.constant 0 : index
    %137 = vector.load %arg6[%c7, %c0_63, %c0_64] : memref<9x128x128xf32, #tpu.memory_space<vmem>>, vector<1x128x128xf32>
    %138 = vector.shape_cast %137 : vector<1x128x128xf32> to vector<128x128xf32>
    %cst_65 = arith.constant dense<0.000000e+00> : vector<64x128xf32>
    %139 = tpu.matmul %136, %138, %cst_65 {dimension_numbers = #tpu.dot_dimension_numbers<[1], [0], [0], [1], [0, 0, 1, 1], [], []>} : vector<64x128xf32>, vector<128x128xf32>, vector<64x128xf32> -> vector<64x128xf32>
    %140 = arith.addf %133, %139 : vector<64x128xf32>
    %cst_66 = arith.constant 0.000000e+00 : f32
    %141 = vector.broadcast %cst_66 : f32 to vector<9x128xf32>
    %142 = vector.extract_strided_slice %42 {offsets = [9, 0], sizes = [55, 128], strides = [1, 1]} : vector<64x128xf32> to vector<55x128xf32>
    %143 = tpu.concatenate %142, %141 in 0 : vector<55x128xf32>, vector<9x128xf32> -> vector<64x128xf32>
    %c-1_i32_67 = arith.constant -1 : i32
    %144 = vector.broadcast %c-1_i32_67 : i32 to vector<64x1xi32>
    %145 = arith.cmpi sge, %16, %144 : vector<64x1xi32>
    %c7_i32_68 = arith.constant 7 : i32
    %146 = vector.broadcast %c7_i32_68 : i32 to vector<64x1xi32>
    %147 = arith.cmpi slt, %16, %146 : vector<64x1xi32>
    %148 = arith.andi %145, %147 : vector<64x1xi1>
    %cst_69 = arith.constant 0.000000e+00 : f32
    %149 = vector.broadcast %cst_69 : f32 to vector<64x128xf32>
    %150 = vector.shape_cast %148 : vector<64x1xi1> to vector<64x1xi1>
    %151 = vector.broadcast %150 : vector<64x1xi1> to vector<64x128xi1>
    %152 = arith.select %151, %143, %149 : vector<64x128xi1>, vector<64x128xf32>
    %c8 = arith.constant 8 : index
    %c0_70 = arith.constant 0 : index
    %c0_71 = arith.constant 0 : index
    %153 = vector.load %arg6[%c8, %c0_70, %c0_71] : memref<9x128x128xf32, #tpu.memory_space<vmem>>, vector<1x128x128xf32>
    %154 = vector.shape_cast %153 : vector<1x128x128xf32> to vector<128x128xf32>
    %cst_72 = arith.constant dense<0.000000e+00> : vector<64x128xf32>
    %155 = tpu.matmul %152, %154, %cst_72 {dimension_numbers = #tpu.dot_dimension_numbers<[1], [0], [0], [1], [0, 0, 1, 1], [], []>} : vector<64x128xf32>, vector<128x128xf32>, vector<64x128xf32> -> vector<64x128xf32>
    %156 = arith.addf %140, %155 : vector<64x128xf32>
    %c0_73 = arith.constant 0 : index
    %c0_74 = arith.constant 0 : index
    %157 = vector.load %arg7[%c0_73, %c0_74] : memref<1x128xf32, #tpu.memory_space<vmem>>, vector<1x128xf32>
    %158 = vector.broadcast %157 : vector<1x128xf32> to vector<64x128xf32>
    %159 = arith.addf %156, %158 : vector<64x128xf32>
    %cst_75 = arith.constant 0.000000e+00 : f32
    %160 = vector.broadcast %cst_75 : f32 to vector<64x128xf32>
    %161 = arith.maximumf %159, %160 : vector<64x128xf32>
    %cst_76 = arith.constant 0.000000e+00 : f32
    %162 = vector.broadcast %cst_76 : f32 to vector<18x128xf32>
    %163 = vector.extract_strided_slice %43 {offsets = [0, 0], sizes = [46, 128], strides = [1, 1]} : vector<64x128xf32> to vector<46x128xf32>
    %164 = tpu.concatenate %162, %163 in 0 : vector<18x128xf32>, vector<46x128xf32> -> vector<64x128xf32>
    %c2_i32 = arith.constant 2 : i32
    %165 = vector.broadcast %c2_i32 : i32 to vector<64x1xi32>
    %166 = arith.cmpi sge, %16, %165 : vector<64x1xi32>
    %c10_i32 = arith.constant 10 : i32
    %167 = vector.broadcast %c10_i32 : i32 to vector<64x1xi32>
    %168 = arith.cmpi slt, %16, %167 : vector<64x1xi32>
    %169 = arith.andi %166, %168 : vector<64x1xi1>
    %cst_77 = arith.constant 0.000000e+00 : f32
    %170 = vector.broadcast %cst_77 : f32 to vector<64x128xf32>
    %171 = vector.shape_cast %169 : vector<64x1xi1> to vector<64x1xi1>
    %172 = vector.broadcast %171 : vector<64x1xi1> to vector<64x128xi1>
    %173 = arith.select %172, %164, %170 : vector<64x128xi1>, vector<64x128xf32>
    %c0_78 = arith.constant 0 : index
    %c0_79 = arith.constant 0 : index
    %c0_80 = arith.constant 0 : index
    %174 = vector.load %arg8[%c0_78, %c0_79, %c0_80] : memref<25x128x128xf32, #tpu.memory_space<vmem>>, vector<1x128x128xf32>
    %175 = vector.shape_cast %174 : vector<1x128x128xf32> to vector<128x128xf32>
    %cst_81 = arith.constant dense<0.000000e+00> : vector<64x128xf32>
    %176 = tpu.matmul %173, %175, %cst_81 {dimension_numbers = #tpu.dot_dimension_numbers<[1], [0], [0], [1], [0, 0, 1, 1], [], []>} : vector<64x128xf32>, vector<128x128xf32>, vector<64x128xf32> -> vector<64x128xf32>
    %cst_82 = arith.constant 0.000000e+00 : f32
    %177 = vector.broadcast %cst_82 : f32 to vector<17x128xf32>
    %178 = vector.extract_strided_slice %43 {offsets = [0, 0], sizes = [47, 128], strides = [1, 1]} : vector<64x128xf32> to vector<47x128xf32>
    %179 = tpu.concatenate %177, %178 in 0 : vector<17x128xf32>, vector<47x128xf32> -> vector<64x128xf32>
    %c1_i32_83 = arith.constant 1 : i32
    %180 = vector.broadcast %c1_i32_83 : i32 to vector<64x1xi32>
    %181 = arith.cmpi sge, %16, %180 : vector<64x1xi32>
    %c9_i32_84 = arith.constant 9 : i32
    %182 = vector.broadcast %c9_i32_84 : i32 to vector<64x1xi32>
    %183 = arith.cmpi slt, %16, %182 : vector<64x1xi32>
    %184 = arith.andi %181, %183 : vector<64x1xi1>
    %cst_85 = arith.constant 0.000000e+00 : f32
    %185 = vector.broadcast %cst_85 : f32 to vector<64x128xf32>
    %186 = vector.shape_cast %184 : vector<64x1xi1> to vector<64x1xi1>
    %187 = vector.broadcast %186 : vector<64x1xi1> to vector<64x128xi1>
    %188 = arith.select %187, %179, %185 : vector<64x128xi1>, vector<64x128xf32>
    %c1_86 = arith.constant 1 : index
    %c0_87 = arith.constant 0 : index
    %c0_88 = arith.constant 0 : index
    %189 = vector.load %arg8[%c1_86, %c0_87, %c0_88] : memref<25x128x128xf32, #tpu.memory_space<vmem>>, vector<1x128x128xf32>
    %190 = vector.shape_cast %189 : vector<1x128x128xf32> to vector<128x128xf32>
    %cst_89 = arith.constant dense<0.000000e+00> : vector<64x128xf32>
    %191 = tpu.matmul %188, %190, %cst_89 {dimension_numbers = #tpu.dot_dimension_numbers<[1], [0], [0], [1], [0, 0, 1, 1], [], []>} : vector<64x128xf32>, vector<128x128xf32>, vector<64x128xf32> -> vector<64x128xf32>
    %192 = arith.addf %176, %191 : vector<64x128xf32>
    %cst_90 = arith.constant 0.000000e+00 : f32
    %193 = vector.broadcast %cst_90 : f32 to vector<16x128xf32>
    %194 = vector.extract_strided_slice %43 {offsets = [0, 0], sizes = [48, 128], strides = [1, 1]} : vector<64x128xf32> to vector<48x128xf32>
    %195 = tpu.concatenate %193, %194 in 0 : vector<16x128xf32>, vector<48x128xf32> -> vector<64x128xf32>
    %c2_91 = arith.constant 2 : index
    %c0_92 = arith.constant 0 : index
    %c0_93 = arith.constant 0 : index
    %196 = vector.load %arg8[%c2_91, %c0_92, %c0_93] : memref<25x128x128xf32, #tpu.memory_space<vmem>>, vector<1x128x128xf32>
    %197 = vector.shape_cast %196 : vector<1x128x128xf32> to vector<128x128xf32>
    %cst_94 = arith.constant dense<0.000000e+00> : vector<64x128xf32>
    %198 = tpu.matmul %195, %197, %cst_94 {dimension_numbers = #tpu.dot_dimension_numbers<[1], [0], [0], [1], [0, 0, 1, 1], [], []>} : vector<64x128xf32>, vector<128x128xf32>, vector<64x128xf32> -> vector<64x128xf32>
    %199 = arith.addf %192, %198 : vector<64x128xf32>
    %cst_95 = arith.constant 0.000000e+00 : f32
    %200 = vector.broadcast %cst_95 : f32 to vector<15x128xf32>
    %201 = vector.extract_strided_slice %43 {offsets = [0, 0], sizes = [49, 128], strides = [1, 1]} : vector<64x128xf32> to vector<49x128xf32>
    %202 = tpu.concatenate %200, %201 in 0 : vector<15x128xf32>, vector<49x128xf32> -> vector<64x128xf32>
    %c-1_i32_96 = arith.constant -1 : i32
    %203 = vector.broadcast %c-1_i32_96 : i32 to vector<64x1xi32>
    %204 = arith.cmpi sge, %16, %203 : vector<64x1xi32>
    %c7_i32_97 = arith.constant 7 : i32
    %205 = vector.broadcast %c7_i32_97 : i32 to vector<64x1xi32>
    %206 = arith.cmpi slt, %16, %205 : vector<64x1xi32>
    %207 = arith.andi %204, %206 : vector<64x1xi1>
    %cst_98 = arith.constant 0.000000e+00 : f32
    %208 = vector.broadcast %cst_98 : f32 to vector<64x128xf32>
    %209 = vector.shape_cast %207 : vector<64x1xi1> to vector<64x1xi1>
    %210 = vector.broadcast %209 : vector<64x1xi1> to vector<64x128xi1>
    %211 = arith.select %210, %202, %208 : vector<64x128xi1>, vector<64x128xf32>
    %c3_99 = arith.constant 3 : index
    %c0_100 = arith.constant 0 : index
    %c0_101 = arith.constant 0 : index
    %212 = vector.load %arg8[%c3_99, %c0_100, %c0_101] : memref<25x128x128xf32, #tpu.memory_space<vmem>>, vector<1x128x128xf32>
    %213 = vector.shape_cast %212 : vector<1x128x128xf32> to vector<128x128xf32>
    %cst_102 = arith.constant dense<0.000000e+00> : vector<64x128xf32>
    %214 = tpu.matmul %211, %213, %cst_102 {dimension_numbers = #tpu.dot_dimension_numbers<[1], [0], [0], [1], [0, 0, 1, 1], [], []>} : vector<64x128xf32>, vector<128x128xf32>, vector<64x128xf32> -> vector<64x128xf32>
    %215 = arith.addf %199, %214 : vector<64x128xf32>
    %cst_103 = arith.constant 0.000000e+00 : f32
    %216 = vector.broadcast %cst_103 : f32 to vector<14x128xf32>
    %217 = vector.extract_strided_slice %43 {offsets = [0, 0], sizes = [50, 128], strides = [1, 1]} : vector<64x128xf32> to vector<50x128xf32>
    %218 = tpu.concatenate %216, %217 in 0 : vector<14x128xf32>, vector<50x128xf32> -> vector<64x128xf32>
    %c-2_i32 = arith.constant -2 : i32
    %219 = vector.broadcast %c-2_i32 : i32 to vector<64x1xi32>
    %220 = arith.cmpi sge, %16, %219 : vector<64x1xi32>
    %c6_i32 = arith.constant 6 : i32
    %221 = vector.broadcast %c6_i32 : i32 to vector<64x1xi32>
    %222 = arith.cmpi slt, %16, %221 : vector<64x1xi32>
    %223 = arith.andi %220, %222 : vector<64x1xi1>
    %cst_104 = arith.constant 0.000000e+00 : f32
    %224 = vector.broadcast %cst_104 : f32 to vector<64x128xf32>
    %225 = vector.shape_cast %223 : vector<64x1xi1> to vector<64x1xi1>
    %226 = vector.broadcast %225 : vector<64x1xi1> to vector<64x128xi1>
    %227 = arith.select %226, %218, %224 : vector<64x128xi1>, vector<64x128xf32>
    %c4_105 = arith.constant 4 : index
    %c0_106 = arith.constant 0 : index
    %c0_107 = arith.constant 0 : index
    %228 = vector.load %arg8[%c4_105, %c0_106, %c0_107] : memref<25x128x128xf32, #tpu.memory_space<vmem>>, vector<1x128x128xf32>
    %229 = vector.shape_cast %228 : vector<1x128x128xf32> to vector<128x128xf32>
    %cst_108 = arith.constant dense<0.000000e+00> : vector<64x128xf32>
    %230 = tpu.matmul %227, %229, %cst_108 {dimension_numbers = #tpu.dot_dimension_numbers<[1], [0], [0], [1], [0, 0, 1, 1], [], []>} : vector<64x128xf32>, vector<128x128xf32>, vector<64x128xf32> -> vector<64x128xf32>
    %231 = arith.addf %215, %230 : vector<64x128xf32>
    %cst_109 = arith.constant 0.000000e+00 : f32
    %232 = vector.broadcast %cst_109 : f32 to vector<10x128xf32>
    %233 = vector.extract_strided_slice %43 {offsets = [0, 0], sizes = [54, 128], strides = [1, 1]} : vector<64x128xf32> to vector<54x128xf32>
    %234 = tpu.concatenate %232, %233 in 0 : vector<10x128xf32>, vector<54x128xf32> -> vector<64x128xf32>
    %c2_i32_110 = arith.constant 2 : i32
    %235 = vector.broadcast %c2_i32_110 : i32 to vector<64x1xi32>
    %236 = arith.cmpi sge, %16, %235 : vector<64x1xi32>
    %c10_i32_111 = arith.constant 10 : i32
    %237 = vector.broadcast %c10_i32_111 : i32 to vector<64x1xi32>
    %238 = arith.cmpi slt, %16, %237 : vector<64x1xi32>
    %239 = arith.andi %236, %238 : vector<64x1xi1>
    %cst_112 = arith.constant 0.000000e+00 : f32
    %240 = vector.broadcast %cst_112 : f32 to vector<64x128xf32>
    %241 = vector.shape_cast %239 : vector<64x1xi1> to vector<64x1xi1>
    %242 = vector.broadcast %241 : vector<64x1xi1> to vector<64x128xi1>
    %243 = arith.select %242, %234, %240 : vector<64x128xi1>, vector<64x128xf32>
    %c5_113 = arith.constant 5 : index
    %c0_114 = arith.constant 0 : index
    %c0_115 = arith.constant 0 : index
    %244 = vector.load %arg8[%c5_113, %c0_114, %c0_115] : memref<25x128x128xf32, #tpu.memory_space<vmem>>, vector<1x128x128xf32>
    %245 = vector.shape_cast %244 : vector<1x128x128xf32> to vector<128x128xf32>
    %cst_116 = arith.constant dense<0.000000e+00> : vector<64x128xf32>
    %246 = tpu.matmul %243, %245, %cst_116 {dimension_numbers = #tpu.dot_dimension_numbers<[1], [0], [0], [1], [0, 0, 1, 1], [], []>} : vector<64x128xf32>, vector<128x128xf32>, vector<64x128xf32> -> vector<64x128xf32>
    %247 = arith.addf %231, %246 : vector<64x128xf32>
    %cst_117 = arith.constant 0.000000e+00 : f32
    %248 = vector.broadcast %cst_117 : f32 to vector<9x128xf32>
    %249 = vector.extract_strided_slice %43 {offsets = [0, 0], sizes = [55, 128], strides = [1, 1]} : vector<64x128xf32> to vector<55x128xf32>
    %250 = tpu.concatenate %248, %249 in 0 : vector<9x128xf32>, vector<55x128xf32> -> vector<64x128xf32>
    %c1_i32_118 = arith.constant 1 : i32
    %251 = vector.broadcast %c1_i32_118 : i32 to vector<64x1xi32>
    %252 = arith.cmpi sge, %16, %251 : vector<64x1xi32>
    %c9_i32_119 = arith.constant 9 : i32
    %253 = vector.broadcast %c9_i32_119 : i32 to vector<64x1xi32>
    %254 = arith.cmpi slt, %16, %253 : vector<64x1xi32>
    %255 = arith.andi %252, %254 : vector<64x1xi1>
    %cst_120 = arith.constant 0.000000e+00 : f32
    %256 = vector.broadcast %cst_120 : f32 to vector<64x128xf32>
    %257 = vector.shape_cast %255 : vector<64x1xi1> to vector<64x1xi1>
    %258 = vector.broadcast %257 : vector<64x1xi1> to vector<64x128xi1>
    %259 = arith.select %258, %250, %256 : vector<64x128xi1>, vector<64x128xf32>
    %c6_121 = arith.constant 6 : index
    %c0_122 = arith.constant 0 : index
    %c0_123 = arith.constant 0 : index
    %260 = vector.load %arg8[%c6_121, %c0_122, %c0_123] : memref<25x128x128xf32, #tpu.memory_space<vmem>>, vector<1x128x128xf32>
    %261 = vector.shape_cast %260 : vector<1x128x128xf32> to vector<128x128xf32>
    %cst_124 = arith.constant dense<0.000000e+00> : vector<64x128xf32>
    %262 = tpu.matmul %259, %261, %cst_124 {dimension_numbers = #tpu.dot_dimension_numbers<[1], [0], [0], [1], [0, 0, 1, 1], [], []>} : vector<64x128xf32>, vector<128x128xf32>, vector<64x128xf32> -> vector<64x128xf32>
    %263 = arith.addf %247, %262 : vector<64x128xf32>
    %cst_125 = arith.constant 0.000000e+00 : f32
    %264 = vector.broadcast %cst_125 : f32 to vector<8x128xf32>
    %265 = vector.extract_strided_slice %43 {offsets = [0, 0], sizes = [56, 128], strides = [1, 1]} : vector<64x128xf32> to vector<56x128xf32>
    %266 = tpu.concatenate %264, %265 in 0 : vector<8x128xf32>, vector<56x128xf32> -> vector<64x128xf32>
    %c7_126 = arith.constant 7 : index
    %c0_127 = arith.constant 0 : index
    %c0_128 = arith.constant 0 : index
    %267 = vector.load %arg8[%c7_126, %c0_127, %c0_128] : memref<25x128x128xf32, #tpu.memory_space<vmem>>, vector<1x128x128xf32>
    %268 = vector.shape_cast %267 : vector<1x128x128xf32> to vector<128x128xf32>
    %cst_129 = arith.constant dense<0.000000e+00> : vector<64x128xf32>
    %269 = tpu.matmul %266, %268, %cst_129 {dimension_numbers = #tpu.dot_dimension_numbers<[1], [0], [0], [1], [0, 0, 1, 1], [], []>} : vector<64x128xf32>, vector<128x128xf32>, vector<64x128xf32> -> vector<64x128xf32>
    %270 = arith.addf %263, %269 : vector<64x128xf32>
    %cst_130 = arith.constant 0.000000e+00 : f32
    %271 = vector.broadcast %cst_130 : f32 to vector<7x128xf32>
    %272 = vector.extract_strided_slice %43 {offsets = [0, 0], sizes = [57, 128], strides = [1, 1]} : vector<64x128xf32> to vector<57x128xf32>
    %273 = tpu.concatenate %271, %272 in 0 : vector<7x128xf32>, vector<57x128xf32> -> vector<64x128xf32>
    %c-1_i32_131 = arith.constant -1 : i32
    %274 = vector.broadcast %c-1_i32_131 : i32 to vector<64x1xi32>
    %275 = arith.cmpi sge, %16, %274 : vector<64x1xi32>
    %c7_i32_132 = arith.constant 7 : i32
    %276 = vector.broadcast %c7_i32_132 : i32 to vector<64x1xi32>
    %277 = arith.cmpi slt, %16, %276 : vector<64x1xi32>
    %278 = arith.andi %275, %277 : vector<64x1xi1>
    %cst_133 = arith.constant 0.000000e+00 : f32
    %279 = vector.broadcast %cst_133 : f32 to vector<64x128xf32>
    %280 = vector.shape_cast %278 : vector<64x1xi1> to vector<64x1xi1>
    %281 = vector.broadcast %280 : vector<64x1xi1> to vector<64x128xi1>
    %282 = arith.select %281, %273, %279 : vector<64x128xi1>, vector<64x128xf32>
    %c8_134 = arith.constant 8 : index
    %c0_135 = arith.constant 0 : index
    %c0_136 = arith.constant 0 : index
    %283 = vector.load %arg8[%c8_134, %c0_135, %c0_136] : memref<25x128x128xf32, #tpu.memory_space<vmem>>, vector<1x128x128xf32>
    %284 = vector.shape_cast %283 : vector<1x128x128xf32> to vector<128x128xf32>
    %cst_137 = arith.constant dense<0.000000e+00> : vector<64x128xf32>
    %285 = tpu.matmul %282, %284, %cst_137 {dimension_numbers = #tpu.dot_dimension_numbers<[1], [0], [0], [1], [0, 0, 1, 1], [], []>} : vector<64x128xf32>, vector<128x128xf32>, vector<64x128xf32> -> vector<64x128xf32>
    %286 = arith.addf %270, %285 : vector<64x128xf32>
    %cst_138 = arith.constant 0.000000e+00 : f32
    %287 = vector.broadcast %cst_138 : f32 to vector<6x128xf32>
    %288 = vector.extract_strided_slice %43 {offsets = [0, 0], sizes = [58, 128], strides = [1, 1]} : vector<64x128xf32> to vector<58x128xf32>
    %289 = tpu.concatenate %287, %288 in 0 : vector<6x128xf32>, vector<58x128xf32> -> vector<64x128xf32>
    %c-2_i32_139 = arith.constant -2 : i32
    %290 = vector.broadcast %c-2_i32_139 : i32 to vector<64x1xi32>
    %291 = arith.cmpi sge, %16, %290 : vector<64x1xi32>
    %c6_i32_140 = arith.constant 6 : i32
    %292 = vector.broadcast %c6_i32_140 : i32 to vector<64x1xi32>
    %293 = arith.cmpi slt, %16, %292 : vector<64x1xi32>
    %294 = arith.andi %291, %293 : vector<64x1xi1>
    %cst_141 = arith.constant 0.000000e+00 : f32
    %295 = vector.broadcast %cst_141 : f32 to vector<64x128xf32>
    %296 = vector.shape_cast %294 : vector<64x1xi1> to vector<64x1xi1>
    %297 = vector.broadcast %296 : vector<64x1xi1> to vector<64x128xi1>
    %298 = arith.select %297, %289, %295 : vector<64x128xi1>, vector<64x128xf32>
    %c9 = arith.constant 9 : index
    %c0_142 = arith.constant 0 : index
    %c0_143 = arith.constant 0 : index
    %299 = vector.load %arg8[%c9, %c0_142, %c0_143] : memref<25x128x128xf32, #tpu.memory_space<vmem>>, vector<1x128x128xf32>
    %300 = vector.shape_cast %299 : vector<1x128x128xf32> to vector<128x128xf32>
    %cst_144 = arith.constant dense<0.000000e+00> : vector<64x128xf32>
    %301 = tpu.matmul %298, %300, %cst_144 {dimension_numbers = #tpu.dot_dimension_numbers<[1], [0], [0], [1], [0, 0, 1, 1], [], []>} : vector<64x128xf32>, vector<128x128xf32>, vector<64x128xf32> -> vector<64x128xf32>
    %302 = arith.addf %286, %301 : vector<64x128xf32>
    %cst_145 = arith.constant 0.000000e+00 : f32
    %303 = vector.broadcast %cst_145 : f32 to vector<2x128xf32>
    %304 = vector.extract_strided_slice %43 {offsets = [0, 0], sizes = [62, 128], strides = [1, 1]} : vector<64x128xf32> to vector<62x128xf32>
    %305 = tpu.concatenate %303, %304 in 0 : vector<2x128xf32>, vector<62x128xf32> -> vector<64x128xf32>
    %c2_i32_146 = arith.constant 2 : i32
    %306 = vector.broadcast %c2_i32_146 : i32 to vector<64x1xi32>
    %307 = arith.cmpi sge, %16, %306 : vector<64x1xi32>
    %c10_i32_147 = arith.constant 10 : i32
    %308 = vector.broadcast %c10_i32_147 : i32 to vector<64x1xi32>
    %309 = arith.cmpi slt, %16, %308 : vector<64x1xi32>
    %310 = arith.andi %307, %309 : vector<64x1xi1>
    %cst_148 = arith.constant 0.000000e+00 : f32
    %311 = vector.broadcast %cst_148 : f32 to vector<64x128xf32>
    %312 = vector.shape_cast %310 : vector<64x1xi1> to vector<64x1xi1>
    %313 = vector.broadcast %312 : vector<64x1xi1> to vector<64x128xi1>
    %314 = arith.select %313, %305, %311 : vector<64x128xi1>, vector<64x128xf32>
    %c10 = arith.constant 10 : index
    %c0_149 = arith.constant 0 : index
    %c0_150 = arith.constant 0 : index
    %315 = vector.load %arg8[%c10, %c0_149, %c0_150] : memref<25x128x128xf32, #tpu.memory_space<vmem>>, vector<1x128x128xf32>
    %316 = vector.shape_cast %315 : vector<1x128x128xf32> to vector<128x128xf32>
    %cst_151 = arith.constant dense<0.000000e+00> : vector<64x128xf32>
    %317 = tpu.matmul %314, %316, %cst_151 {dimension_numbers = #tpu.dot_dimension_numbers<[1], [0], [0], [1], [0, 0, 1, 1], [], []>} : vector<64x128xf32>, vector<128x128xf32>, vector<64x128xf32> -> vector<64x128xf32>
    %318 = arith.addf %302, %317 : vector<64x128xf32>
    %cst_152 = arith.constant 0.000000e+00 : f32
    %319 = vector.broadcast %cst_152 : f32 to vector<1x128xf32>
    %320 = vector.extract_strided_slice %43 {offsets = [0, 0], sizes = [63, 128], strides = [1, 1]} : vector<64x128xf32> to vector<63x128xf32>
    %321 = tpu.concatenate %319, %320 in 0 : vector<1x128xf32>, vector<63x128xf32> -> vector<64x128xf32>
    %c1_i32_153 = arith.constant 1 : i32
    %322 = vector.broadcast %c1_i32_153 : i32 to vector<64x1xi32>
    %323 = arith.cmpi sge, %16, %322 : vector<64x1xi32>
    %c9_i32_154 = arith.constant 9 : i32
    %324 = vector.broadcast %c9_i32_154 : i32 to vector<64x1xi32>
    %325 = arith.cmpi slt, %16, %324 : vector<64x1xi32>
    %326 = arith.andi %323, %325 : vector<64x1xi1>
    %cst_155 = arith.constant 0.000000e+00 : f32
    %327 = vector.broadcast %cst_155 : f32 to vector<64x128xf32>
    %328 = vector.shape_cast %326 : vector<64x1xi1> to vector<64x1xi1>
    %329 = vector.broadcast %328 : vector<64x1xi1> to vector<64x128xi1>
    %330 = arith.select %329, %321, %327 : vector<64x128xi1>, vector<64x128xf32>
    %c11 = arith.constant 11 : index
    %c0_156 = arith.constant 0 : index
    %c0_157 = arith.constant 0 : index
    %331 = vector.load %arg8[%c11, %c0_156, %c0_157] : memref<25x128x128xf32, #tpu.memory_space<vmem>>, vector<1x128x128xf32>
    %332 = vector.shape_cast %331 : vector<1x128x128xf32> to vector<128x128xf32>
    %cst_158 = arith.constant dense<0.000000e+00> : vector<64x128xf32>
    %333 = tpu.matmul %330, %332, %cst_158 {dimension_numbers = #tpu.dot_dimension_numbers<[1], [0], [0], [1], [0, 0, 1, 1], [], []>} : vector<64x128xf32>, vector<128x128xf32>, vector<64x128xf32> -> vector<64x128xf32>
    %334 = arith.addf %318, %333 : vector<64x128xf32>
    %c12 = arith.constant 12 : index
    %c0_159 = arith.constant 0 : index
    %c0_160 = arith.constant 0 : index
    %335 = vector.load %arg8[%c12, %c0_159, %c0_160] : memref<25x128x128xf32, #tpu.memory_space<vmem>>, vector<1x128x128xf32>
    %336 = vector.shape_cast %335 : vector<1x128x128xf32> to vector<128x128xf32>
    %cst_161 = arith.constant dense<0.000000e+00> : vector<64x128xf32>
    %337 = tpu.matmul %43, %336, %cst_161 {dimension_numbers = #tpu.dot_dimension_numbers<[1], [0], [0], [1], [0, 0, 1, 1], [], []>} : vector<64x128xf32>, vector<128x128xf32>, vector<64x128xf32> -> vector<64x128xf32>
    %338 = arith.addf %334, %337 : vector<64x128xf32>
    %cst_162 = arith.constant 0.000000e+00 : f32
    %339 = vector.broadcast %cst_162 : f32 to vector<1x128xf32>
    %340 = vector.extract_strided_slice %43 {offsets = [1, 0], sizes = [63, 128], strides = [1, 1]} : vector<64x128xf32> to vector<63x128xf32>
    %341 = tpu.concatenate %340, %339 in 0 : vector<63x128xf32>, vector<1x128xf32> -> vector<64x128xf32>
    %c-1_i32_163 = arith.constant -1 : i32
    %342 = vector.broadcast %c-1_i32_163 : i32 to vector<64x1xi32>
    %343 = arith.cmpi sge, %16, %342 : vector<64x1xi32>
    %c7_i32_164 = arith.constant 7 : i32
    %344 = vector.broadcast %c7_i32_164 : i32 to vector<64x1xi32>
    %345 = arith.cmpi slt, %16, %344 : vector<64x1xi32>
    %346 = arith.andi %343, %345 : vector<64x1xi1>
    %cst_165 = arith.constant 0.000000e+00 : f32
    %347 = vector.broadcast %cst_165 : f32 to vector<64x128xf32>
    %348 = vector.shape_cast %346 : vector<64x1xi1> to vector<64x1xi1>
    %349 = vector.broadcast %348 : vector<64x1xi1> to vector<64x128xi1>
    %350 = arith.select %349, %341, %347 : vector<64x128xi1>, vector<64x128xf32>
    %c13 = arith.constant 13 : index
    %c0_166 = arith.constant 0 : index
    %c0_167 = arith.constant 0 : index
    %351 = vector.load %arg8[%c13, %c0_166, %c0_167] : memref<25x128x128xf32, #tpu.memory_space<vmem>>, vector<1x128x128xf32>
    %352 = vector.shape_cast %351 : vector<1x128x128xf32> to vector<128x128xf32>
    %cst_168 = arith.constant dense<0.000000e+00> : vector<64x128xf32>
    %353 = tpu.matmul %350, %352, %cst_168 {dimension_numbers = #tpu.dot_dimension_numbers<[1], [0], [0], [1], [0, 0, 1, 1], [], []>} : vector<64x128xf32>, vector<128x128xf32>, vector<64x128xf32> -> vector<64x128xf32>
    %354 = arith.addf %338, %353 : vector<64x128xf32>
    %cst_169 = arith.constant 0.000000e+00 : f32
    %355 = vector.broadcast %cst_169 : f32 to vector<2x128xf32>
    %356 = vector.extract_strided_slice %43 {offsets = [2, 0], sizes = [62, 128], strides = [1, 1]} : vector<64x128xf32> to vector<62x128xf32>
    %357 = tpu.concatenate %356, %355 in 0 : vector<62x128xf32>, vector<2x128xf32> -> vector<64x128xf32>
    %c-2_i32_170 = arith.constant -2 : i32
    %358 = vector.broadcast %c-2_i32_170 : i32 to vector<64x1xi32>
    %359 = arith.cmpi sge, %16, %358 : vector<64x1xi32>
    %c6_i32_171 = arith.constant 6 : i32
    %360 = vector.broadcast %c6_i32_171 : i32 to vector<64x1xi32>
    %361 = arith.cmpi slt, %16, %360 : vector<64x1xi32>
    %362 = arith.andi %359, %361 : vector<64x1xi1>
    %cst_172 = arith.constant 0.000000e+00 : f32
    %363 = vector.broadcast %cst_172 : f32 to vector<64x128xf32>
    %364 = vector.shape_cast %362 : vector<64x1xi1> to vector<64x1xi1>
    %365 = vector.broadcast %364 : vector<64x1xi1> to vector<64x128xi1>
    %366 = arith.select %365, %357, %363 : vector<64x128xi1>, vector<64x128xf32>
    %c14 = arith.constant 14 : index
    %c0_173 = arith.constant 0 : index
    %c0_174 = arith.constant 0 : index
    %367 = vector.load %arg8[%c14, %c0_173, %c0_174] : memref<25x128x128xf32, #tpu.memory_space<vmem>>, vector<1x128x128xf32>
    %368 = vector.shape_cast %367 : vector<1x128x128xf32> to vector<128x128xf32>
    %cst_175 = arith.constant dense<0.000000e+00> : vector<64x128xf32>
    %369 = tpu.matmul %366, %368, %cst_175 {dimension_numbers = #tpu.dot_dimension_numbers<[1], [0], [0], [1], [0, 0, 1, 1], [], []>} : vector<64x128xf32>, vector<128x128xf32>, vector<64x128xf32> -> vector<64x128xf32>
    %370 = arith.addf %354, %369 : vector<64x128xf32>
    %cst_176 = arith.constant 0.000000e+00 : f32
    %371 = vector.broadcast %cst_176 : f32 to vector<6x128xf32>
    %372 = vector.extract_strided_slice %43 {offsets = [6, 0], sizes = [58, 128], strides = [1, 1]} : vector<64x128xf32> to vector<58x128xf32>
    %373 = tpu.concatenate %372, %371 in 0 : vector<58x128xf32>, vector<6x128xf32> -> vector<64x128xf32>
    %c2_i32_177 = arith.constant 2 : i32
    %374 = vector.broadcast %c2_i32_177 : i32 to vector<64x1xi32>
    %375 = arith.cmpi sge, %16, %374 : vector<64x1xi32>
    %c10_i32_178 = arith.constant 10 : i32
    %376 = vector.broadcast %c10_i32_178 : i32 to vector<64x1xi32>
    %377 = arith.cmpi slt, %16, %376 : vector<64x1xi32>
    %378 = arith.andi %375, %377 : vector<64x1xi1>
    %cst_179 = arith.constant 0.000000e+00 : f32
    %379 = vector.broadcast %cst_179 : f32 to vector<64x128xf32>
    %380 = vector.shape_cast %378 : vector<64x1xi1> to vector<64x1xi1>
    %381 = vector.broadcast %380 : vector<64x1xi1> to vector<64x128xi1>
    %382 = arith.select %381, %373, %379 : vector<64x128xi1>, vector<64x128xf32>
    %c15 = arith.constant 15 : index
    %c0_180 = arith.constant 0 : index
    %c0_181 = arith.constant 0 : index
    %383 = vector.load %arg8[%c15, %c0_180, %c0_181] : memref<25x128x128xf32, #tpu.memory_space<vmem>>, vector<1x128x128xf32>
    %384 = vector.shape_cast %383 : vector<1x128x128xf32> to vector<128x128xf32>
    %cst_182 = arith.constant dense<0.000000e+00> : vector<64x128xf32>
    %385 = tpu.matmul %382, %384, %cst_182 {dimension_numbers = #tpu.dot_dimension_numbers<[1], [0], [0], [1], [0, 0, 1, 1], [], []>} : vector<64x128xf32>, vector<128x128xf32>, vector<64x128xf32> -> vector<64x128xf32>
    %386 = arith.addf %370, %385 : vector<64x128xf32>
    %cst_183 = arith.constant 0.000000e+00 : f32
    %387 = vector.broadcast %cst_183 : f32 to vector<7x128xf32>
    %388 = vector.extract_strided_slice %43 {offsets = [7, 0], sizes = [57, 128], strides = [1, 1]} : vector<64x128xf32> to vector<57x128xf32>
    %389 = tpu.concatenate %388, %387 in 0 : vector<57x128xf32>, vector<7x128xf32> -> vector<64x128xf32>
    %c1_i32_184 = arith.constant 1 : i32
    %390 = vector.broadcast %c1_i32_184 : i32 to vector<64x1xi32>
    %391 = arith.cmpi sge, %16, %390 : vector<64x1xi32>
    %c9_i32_185 = arith.constant 9 : i32
    %392 = vector.broadcast %c9_i32_185 : i32 to vector<64x1xi32>
    %393 = arith.cmpi slt, %16, %392 : vector<64x1xi32>
    %394 = arith.andi %391, %393 : vector<64x1xi1>
    %cst_186 = arith.constant 0.000000e+00 : f32
    %395 = vector.broadcast %cst_186 : f32 to vector<64x128xf32>
    %396 = vector.shape_cast %394 : vector<64x1xi1> to vector<64x1xi1>
    %397 = vector.broadcast %396 : vector<64x1xi1> to vector<64x128xi1>
    %398 = arith.select %397, %389, %395 : vector<64x128xi1>, vector<64x128xf32>
    %c16 = arith.constant 16 : index
    %c0_187 = arith.constant 0 : index
    %c0_188 = arith.constant 0 : index
    %399 = vector.load %arg8[%c16, %c0_187, %c0_188] : memref<25x128x128xf32, #tpu.memory_space<vmem>>, vector<1x128x128xf32>
    %400 = vector.shape_cast %399 : vector<1x128x128xf32> to vector<128x128xf32>
    %cst_189 = arith.constant dense<0.000000e+00> : vector<64x128xf32>
    %401 = tpu.matmul %398, %400, %cst_189 {dimension_numbers = #tpu.dot_dimension_numbers<[1], [0], [0], [1], [0, 0, 1, 1], [], []>} : vector<64x128xf32>, vector<128x128xf32>, vector<64x128xf32> -> vector<64x128xf32>
    %402 = arith.addf %386, %401 : vector<64x128xf32>
    %cst_190 = arith.constant 0.000000e+00 : f32
    %403 = vector.broadcast %cst_190 : f32 to vector<8x128xf32>
    %404 = vector.extract_strided_slice %43 {offsets = [8, 0], sizes = [56, 128], strides = [1, 1]} : vector<64x128xf32> to vector<56x128xf32>
    %405 = tpu.concatenate %404, %403 in 0 : vector<56x128xf32>, vector<8x128xf32> -> vector<64x128xf32>
    %c17 = arith.constant 17 : index
    %c0_191 = arith.constant 0 : index
    %c0_192 = arith.constant 0 : index
    %406 = vector.load %arg8[%c17, %c0_191, %c0_192] : memref<25x128x128xf32, #tpu.memory_space<vmem>>, vector<1x128x128xf32>
    %407 = vector.shape_cast %406 : vector<1x128x128xf32> to vector<128x128xf32>
    %cst_193 = arith.constant dense<0.000000e+00> : vector<64x128xf32>
    %408 = tpu.matmul %405, %407, %cst_193 {dimension_numbers = #tpu.dot_dimension_numbers<[1], [0], [0], [1], [0, 0, 1, 1], [], []>} : vector<64x128xf32>, vector<128x128xf32>, vector<64x128xf32> -> vector<64x128xf32>
    %409 = arith.addf %402, %408 : vector<64x128xf32>
    %cst_194 = arith.constant 0.000000e+00 : f32
    %410 = vector.broadcast %cst_194 : f32 to vector<9x128xf32>
    %411 = vector.extract_strided_slice %43 {offsets = [9, 0], sizes = [55, 128], strides = [1, 1]} : vector<64x128xf32> to vector<55x128xf32>
    %412 = tpu.concatenate %411, %410 in 0 : vector<55x128xf32>, vector<9x128xf32> -> vector<64x128xf32>
    %c-1_i32_195 = arith.constant -1 : i32
    %413 = vector.broadcast %c-1_i32_195 : i32 to vector<64x1xi32>
    %414 = arith.cmpi sge, %16, %413 : vector<64x1xi32>
    %c7_i32_196 = arith.constant 7 : i32
    %415 = vector.broadcast %c7_i32_196 : i32 to vector<64x1xi32>
    %416 = arith.cmpi slt, %16, %415 : vector<64x1xi32>
    %417 = arith.andi %414, %416 : vector<64x1xi1>
    %cst_197 = arith.constant 0.000000e+00 : f32
    %418 = vector.broadcast %cst_197 : f32 to vector<64x128xf32>
    %419 = vector.shape_cast %417 : vector<64x1xi1> to vector<64x1xi1>
    %420 = vector.broadcast %419 : vector<64x1xi1> to vector<64x128xi1>
    %421 = arith.select %420, %412, %418 : vector<64x128xi1>, vector<64x128xf32>
    %c18 = arith.constant 18 : index
    %c0_198 = arith.constant 0 : index
    %c0_199 = arith.constant 0 : index
    %422 = vector.load %arg8[%c18, %c0_198, %c0_199] : memref<25x128x128xf32, #tpu.memory_space<vmem>>, vector<1x128x128xf32>
    %423 = vector.shape_cast %422 : vector<1x128x128xf32> to vector<128x128xf32>
    %cst_200 = arith.constant dense<0.000000e+00> : vector<64x128xf32>
    %424 = tpu.matmul %421, %423, %cst_200 {dimension_numbers = #tpu.dot_dimension_numbers<[1], [0], [0], [1], [0, 0, 1, 1], [], []>} : vector<64x128xf32>, vector<128x128xf32>, vector<64x128xf32> -> vector<64x128xf32>
    %425 = arith.addf %409, %424 : vector<64x128xf32>
    %cst_201 = arith.constant 0.000000e+00 : f32
    %426 = vector.broadcast %cst_201 : f32 to vector<10x128xf32>
    %427 = vector.extract_strided_slice %43 {offsets = [10, 0], sizes = [54, 128], strides = [1, 1]} : vector<64x128xf32> to vector<54x128xf32>
    %428 = tpu.concatenate %427, %426 in 0 : vector<54x128xf32>, vector<10x128xf32> -> vector<64x128xf32>
    %c-2_i32_202 = arith.constant -2 : i32
    %429 = vector.broadcast %c-2_i32_202 : i32 to vector<64x1xi32>
    %430 = arith.cmpi sge, %16, %429 : vector<64x1xi32>
    %c6_i32_203 = arith.constant 6 : i32
    %431 = vector.broadcast %c6_i32_203 : i32 to vector<64x1xi32>
    %432 = arith.cmpi slt, %16, %431 : vector<64x1xi32>
    %433 = arith.andi %430, %432 : vector<64x1xi1>
    %cst_204 = arith.constant 0.000000e+00 : f32
    %434 = vector.broadcast %cst_204 : f32 to vector<64x128xf32>
    %435 = vector.shape_cast %433 : vector<64x1xi1> to vector<64x1xi1>
    %436 = vector.broadcast %435 : vector<64x1xi1> to vector<64x128xi1>
    %437 = arith.select %436, %428, %434 : vector<64x128xi1>, vector<64x128xf32>
    %c19 = arith.constant 19 : index
    %c0_205 = arith.constant 0 : index
    %c0_206 = arith.constant 0 : index
    %438 = vector.load %arg8[%c19, %c0_205, %c0_206] : memref<25x128x128xf32, #tpu.memory_space<vmem>>, vector<1x128x128xf32>
    %439 = vector.shape_cast %438 : vector<1x128x128xf32> to vector<128x128xf32>
    %cst_207 = arith.constant dense<0.000000e+00> : vector<64x128xf32>
    %440 = tpu.matmul %437, %439, %cst_207 {dimension_numbers = #tpu.dot_dimension_numbers<[1], [0], [0], [1], [0, 0, 1, 1], [], []>} : vector<64x128xf32>, vector<128x128xf32>, vector<64x128xf32> -> vector<64x128xf32>
    %441 = arith.addf %425, %440 : vector<64x128xf32>
    %cst_208 = arith.constant 0.000000e+00 : f32
    %442 = vector.broadcast %cst_208 : f32 to vector<14x128xf32>
    %443 = vector.extract_strided_slice %43 {offsets = [14, 0], sizes = [50, 128], strides = [1, 1]} : vector<64x128xf32> to vector<50x128xf32>
    %444 = tpu.concatenate %443, %442 in 0 : vector<50x128xf32>, vector<14x128xf32> -> vector<64x128xf32>
    %c2_i32_209 = arith.constant 2 : i32
    %445 = vector.broadcast %c2_i32_209 : i32 to vector<64x1xi32>
    %446 = arith.cmpi sge, %16, %445 : vector<64x1xi32>
    %c10_i32_210 = arith.constant 10 : i32
    %447 = vector.broadcast %c10_i32_210 : i32 to vector<64x1xi32>
    %448 = arith.cmpi slt, %16, %447 : vector<64x1xi32>
    %449 = arith.andi %446, %448 : vector<64x1xi1>
    %cst_211 = arith.constant 0.000000e+00 : f32
    %450 = vector.broadcast %cst_211 : f32 to vector<64x128xf32>
    %451 = vector.shape_cast %449 : vector<64x1xi1> to vector<64x1xi1>
    %452 = vector.broadcast %451 : vector<64x1xi1> to vector<64x128xi1>
    %453 = arith.select %452, %444, %450 : vector<64x128xi1>, vector<64x128xf32>
    %c20 = arith.constant 20 : index
    %c0_212 = arith.constant 0 : index
    %c0_213 = arith.constant 0 : index
    %454 = vector.load %arg8[%c20, %c0_212, %c0_213] : memref<25x128x128xf32, #tpu.memory_space<vmem>>, vector<1x128x128xf32>
    %455 = vector.shape_cast %454 : vector<1x128x128xf32> to vector<128x128xf32>
    %cst_214 = arith.constant dense<0.000000e+00> : vector<64x128xf32>
    %456 = tpu.matmul %453, %455, %cst_214 {dimension_numbers = #tpu.dot_dimension_numbers<[1], [0], [0], [1], [0, 0, 1, 1], [], []>} : vector<64x128xf32>, vector<128x128xf32>, vector<64x128xf32> -> vector<64x128xf32>
    %457 = arith.addf %441, %456 : vector<64x128xf32>
    %cst_215 = arith.constant 0.000000e+00 : f32
    %458 = vector.broadcast %cst_215 : f32 to vector<15x128xf32>
    %459 = vector.extract_strided_slice %43 {offsets = [15, 0], sizes = [49, 128], strides = [1, 1]} : vector<64x128xf32> to vector<49x128xf32>
    %460 = tpu.concatenate %459, %458 in 0 : vector<49x128xf32>, vector<15x128xf32> -> vector<64x128xf32>
    %c1_i32_216 = arith.constant 1 : i32
    %461 = vector.broadcast %c1_i32_216 : i32 to vector<64x1xi32>
    %462 = arith.cmpi sge, %16, %461 : vector<64x1xi32>
    %c9_i32_217 = arith.constant 9 : i32
    %463 = vector.broadcast %c9_i32_217 : i32 to vector<64x1xi32>
    %464 = arith.cmpi slt, %16, %463 : vector<64x1xi32>
    %465 = arith.andi %462, %464 : vector<64x1xi1>
    %cst_218 = arith.constant 0.000000e+00 : f32
    %466 = vector.broadcast %cst_218 : f32 to vector<64x128xf32>
    %467 = vector.shape_cast %465 : vector<64x1xi1> to vector<64x1xi1>
    %468 = vector.broadcast %467 : vector<64x1xi1> to vector<64x128xi1>
    %469 = arith.select %468, %460, %466 : vector<64x128xi1>, vector<64x128xf32>
    %c21 = arith.constant 21 : index
    %c0_219 = arith.constant 0 : index
    %c0_220 = arith.constant 0 : index
    %470 = vector.load %arg8[%c21, %c0_219, %c0_220] : memref<25x128x128xf32, #tpu.memory_space<vmem>>, vector<1x128x128xf32>
    %471 = vector.shape_cast %470 : vector<1x128x128xf32> to vector<128x128xf32>
    %cst_221 = arith.constant dense<0.000000e+00> : vector<64x128xf32>
    %472 = tpu.matmul %469, %471, %cst_221 {dimension_numbers = #tpu.dot_dimension_numbers<[1], [0], [0], [1], [0, 0, 1, 1], [], []>} : vector<64x128xf32>, vector<128x128xf32>, vector<64x128xf32> -> vector<64x128xf32>
    %473 = arith.addf %457, %472 : vector<64x128xf32>
    %cst_222 = arith.constant 0.000000e+00 : f32
    %474 = vector.broadcast %cst_222 : f32 to vector<16x128xf32>
    %475 = vector.extract_strided_slice %43 {offsets = [16, 0], sizes = [48, 128], strides = [1, 1]} : vector<64x128xf32> to vector<48x128xf32>
    %476 = tpu.concatenate %475, %474 in 0 : vector<48x128xf32>, vector<16x128xf32> -> vector<64x128xf32>
    %c22 = arith.constant 22 : index
    %c0_223 = arith.constant 0 : index
    %c0_224 = arith.constant 0 : index
    %477 = vector.load %arg8[%c22, %c0_223, %c0_224] : memref<25x128x128xf32, #tpu.memory_space<vmem>>, vector<1x128x128xf32>
    %478 = vector.shape_cast %477 : vector<1x128x128xf32> to vector<128x128xf32>
    %cst_225 = arith.constant dense<0.000000e+00> : vector<64x128xf32>
    %479 = tpu.matmul %476, %478, %cst_225 {dimension_numbers = #tpu.dot_dimension_numbers<[1], [0], [0], [1], [0, 0, 1, 1], [], []>} : vector<64x128xf32>, vector<128x128xf32>, vector<64x128xf32> -> vector<64x128xf32>
    %480 = arith.addf %473, %479 : vector<64x128xf32>
    %cst_226 = arith.constant 0.000000e+00 : f32
    %481 = vector.broadcast %cst_226 : f32 to vector<17x128xf32>
    %482 = vector.extract_strided_slice %43 {offsets = [17, 0], sizes = [47, 128], strides = [1, 1]} : vector<64x128xf32> to vector<47x128xf32>
    %483 = tpu.concatenate %482, %481 in 0 : vector<47x128xf32>, vector<17x128xf32> -> vector<64x128xf32>
    %c-1_i32_227 = arith.constant -1 : i32
    %484 = vector.broadcast %c-1_i32_227 : i32 to vector<64x1xi32>
    %485 = arith.cmpi sge, %16, %484 : vector<64x1xi32>
    %c7_i32_228 = arith.constant 7 : i32
    %486 = vector.broadcast %c7_i32_228 : i32 to vector<64x1xi32>
    %487 = arith.cmpi slt, %16, %486 : vector<64x1xi32>
    %488 = arith.andi %485, %487 : vector<64x1xi1>
    %cst_229 = arith.constant 0.000000e+00 : f32
    %489 = vector.broadcast %cst_229 : f32 to vector<64x128xf32>
    %490 = vector.shape_cast %488 : vector<64x1xi1> to vector<64x1xi1>
    %491 = vector.broadcast %490 : vector<64x1xi1> to vector<64x128xi1>
    %492 = arith.select %491, %483, %489 : vector<64x128xi1>, vector<64x128xf32>
    %c23 = arith.constant 23 : index
    %c0_230 = arith.constant 0 : index
    %c0_231 = arith.constant 0 : index
    %493 = vector.load %arg8[%c23, %c0_230, %c0_231] : memref<25x128x128xf32, #tpu.memory_space<vmem>>, vector<1x128x128xf32>
    %494 = vector.shape_cast %493 : vector<1x128x128xf32> to vector<128x128xf32>
    %cst_232 = arith.constant dense<0.000000e+00> : vector<64x128xf32>
    %495 = tpu.matmul %492, %494, %cst_232 {dimension_numbers = #tpu.dot_dimension_numbers<[1], [0], [0], [1], [0, 0, 1, 1], [], []>} : vector<64x128xf32>, vector<128x128xf32>, vector<64x128xf32> -> vector<64x128xf32>
    %496 = arith.addf %480, %495 : vector<64x128xf32>
    %cst_233 = arith.constant 0.000000e+00 : f32
    %497 = vector.broadcast %cst_233 : f32 to vector<18x128xf32>
    %498 = vector.extract_strided_slice %43 {offsets = [18, 0], sizes = [46, 128], strides = [1, 1]} : vector<64x128xf32> to vector<46x128xf32>
    %499 = tpu.concatenate %498, %497 in 0 : vector<46x128xf32>, vector<18x128xf32> -> vector<64x128xf32>
    %c-2_i32_234 = arith.constant -2 : i32
    %500 = vector.broadcast %c-2_i32_234 : i32 to vector<64x1xi32>
    %501 = arith.cmpi sge, %16, %500 : vector<64x1xi32>
    %c6_i32_235 = arith.constant 6 : i32
    %502 = vector.broadcast %c6_i32_235 : i32 to vector<64x1xi32>
    %503 = arith.cmpi slt, %16, %502 : vector<64x1xi32>
    %504 = arith.andi %501, %503 : vector<64x1xi1>
    %cst_236 = arith.constant 0.000000e+00 : f32
    %505 = vector.broadcast %cst_236 : f32 to vector<64x128xf32>
    %506 = vector.shape_cast %504 : vector<64x1xi1> to vector<64x1xi1>
    %507 = vector.broadcast %506 : vector<64x1xi1> to vector<64x128xi1>
    %508 = arith.select %507, %499, %505 : vector<64x128xi1>, vector<64x128xf32>
    %c24 = arith.constant 24 : index
    %c0_237 = arith.constant 0 : index
    %c0_238 = arith.constant 0 : index
    %509 = vector.load %arg8[%c24, %c0_237, %c0_238] : memref<25x128x128xf32, #tpu.memory_space<vmem>>, vector<1x128x128xf32>
    %510 = vector.shape_cast %509 : vector<1x128x128xf32> to vector<128x128xf32>
    %cst_239 = arith.constant dense<0.000000e+00> : vector<64x128xf32>
    %511 = tpu.matmul %508, %510, %cst_239 {dimension_numbers = #tpu.dot_dimension_numbers<[1], [0], [0], [1], [0, 0, 1, 1], [], []>} : vector<64x128xf32>, vector<128x128xf32>, vector<64x128xf32> -> vector<64x128xf32>
    %512 = arith.addf %496, %511 : vector<64x128xf32>
    %c0_240 = arith.constant 0 : index
    %c0_241 = arith.constant 0 : index
    %513 = vector.load %arg9[%c0_240, %c0_241] : memref<1x128xf32, #tpu.memory_space<vmem>>, vector<1x128xf32>
    %514 = vector.broadcast %513 : vector<1x128xf32> to vector<64x128xf32>
    %515 = arith.addf %512, %514 : vector<64x128xf32>
    %cst_242 = arith.constant 0.000000e+00 : f32
    %516 = vector.broadcast %cst_242 : f32 to vector<64x128xf32>
    %517 = arith.maximumf %515, %516 : vector<64x128xf32>
    %c0_243 = arith.constant 0 : index
    %c0_244 = arith.constant 0 : index
    %518 = vector.load %arg10[%c0_243, %c0_244] : memref<16x32xf32, #tpu.memory_space<vmem>>, vector<16x32xf32>
    %cst_245 = arith.constant dense<0.000000e+00> : vector<64x32xf32>
    %519 = tpu.matmul %33, %518, %cst_245 {dimension_numbers = #tpu.dot_dimension_numbers<[1], [0], [0], [1], [0, 0, 1, 1], [], []>} : vector<64x16xf32>, vector<16x32xf32>, vector<64x32xf32> -> vector<64x32xf32>
    %c0_246 = arith.constant 0 : index
    %c0_247 = arith.constant 0 : index
    %520 = vector.load %arg11[%c0_246, %c0_247] : memref<128x32xf32, #tpu.memory_space<vmem>>, vector<128x32xf32>
    %cst_248 = arith.constant dense<0.000000e+00> : vector<64x32xf32>
    %521 = tpu.matmul %41, %520, %cst_248 {dimension_numbers = #tpu.dot_dimension_numbers<[1], [0], [0], [1], [0, 0, 1, 1], [], []>} : vector<64x128xf32>, vector<128x32xf32>, vector<64x32xf32> -> vector<64x32xf32>
    %522 = arith.addf %519, %521 : vector<64x32xf32>
    %c0_249 = arith.constant 0 : index
    %c0_250 = arith.constant 0 : index
    %523 = vector.load %arg12[%c0_249, %c0_250] : memref<128x32xf32, #tpu.memory_space<vmem>>, vector<128x32xf32>
    %cst_251 = arith.constant dense<0.000000e+00> : vector<64x32xf32>
    %524 = tpu.matmul %161, %523, %cst_251 {dimension_numbers = #tpu.dot_dimension_numbers<[1], [0], [0], [1], [0, 0, 1, 1], [], []>} : vector<64x128xf32>, vector<128x32xf32>, vector<64x32xf32> -> vector<64x32xf32>
    %525 = arith.addf %522, %524 : vector<64x32xf32>
    %c0_252 = arith.constant 0 : index
    %c0_253 = arith.constant 0 : index
    %526 = vector.load %arg13[%c0_252, %c0_253] : memref<128x32xf32, #tpu.memory_space<vmem>>, vector<128x32xf32>
    %cst_254 = arith.constant dense<0.000000e+00> : vector<64x32xf32>
    %527 = tpu.matmul %517, %526, %cst_254 {dimension_numbers = #tpu.dot_dimension_numbers<[1], [0], [0], [1], [0, 0, 1, 1], [], []>} : vector<64x128xf32>, vector<128x32xf32>, vector<64x32xf32> -> vector<64x32xf32>
    %528 = arith.addf %525, %527 : vector<64x32xf32>
    %c0_255 = arith.constant 0 : index
    %c0_256 = arith.constant 0 : index
    %529 = vector.load %arg14[%c0_255, %c0_256] : memref<1x32xf32, #tpu.memory_space<vmem>>, vector<1x32xf32>
    %530 = vector.broadcast %529 : vector<1x32xf32> to vector<64x32xf32>
    %531 = arith.addf %528, %530 : vector<64x32xf32>
    %cst_257 = arith.constant 2.000000e+00 : f32
    %532 = vector.broadcast %cst_257 : f32 to vector<1x16xf32>
    %533 = arith.mulf %532, %25 : vector<1x16xf32>
    %c0_258 = arith.constant 0 : index
    %c0_259 = arith.constant 0 : index
    %534 = vector.load %arg10[%c0_258, %c0_259] : memref<16x32xf32, #tpu.memory_space<vmem>>, vector<16x32xf32>
    %cst_260 = arith.constant dense<0.000000e+00> : vector<1x32xf32>
    %535 = tpu.matmul %533, %534, %cst_260 {dimension_numbers = #tpu.dot_dimension_numbers<[1], [0], [0], [1], [0, 0, 1, 1], [], []>} : vector<1x16xf32>, vector<16x32xf32>, vector<1x32xf32> -> vector<1x32xf32>
    %c0_261 = arith.constant 0 : index
    %c0_262 = arith.constant 0 : index
    %536 = vector.load %arg14[%c0_261, %c0_262] : memref<1x32xf32, #tpu.memory_space<vmem>>, vector<1x32xf32>
    %537 = arith.addf %535, %536 : vector<1x32xf32>
    %538 = vector.shape_cast %537 : vector<1x32xf32> to vector<1x1x32xf32>
    %c0_263 = arith.constant 0 : index
    %c0_264 = arith.constant 0 : index
    %c0_265 = arith.constant 0 : index
    %539 = vector.load %arg15[%c0_263, %c0_264, %c0_265] : memref<1x65x32xf32, #tpu.memory_space<vmem>>, vector<1x1x32xf32>
    tpu.vector_store %arg15[%c0_263, %c0_264, %c0_265], %538 {strides = array<i32>} : memref<1x65x32xf32, #tpu.memory_space<vmem>>, vector<1x1x32xf32>,
    %540 = vector.shape_cast %531 : vector<64x32xf32> to vector<1x64x32xf32>
    %c0_266 = arith.constant 0 : index
    %c1_267 = arith.constant 1 : index
    %c0_268 = arith.constant 0 : index
    %541 = vector.load %arg15[%c0_266, %c1_267, %c0_268] : memref<1x65x32xf32, #tpu.memory_space<vmem>>, vector<1x64x32xf32>
    tpu.vector_store %arg15[%c0_266, %c1_267, %c0_268], %540 {strides = array<i32>} : memref<1x65x32xf32, #tpu.memory_space<vmem>>, vector<1x64x32xf32>,
    return
  }
  func.func @transform_0(%arg0: i32) -> (i32, i32, i32) {
    %c0_i32 = arith.constant 0 : i32
    %c0_i32_0 = arith.constant 0 : i32
    %c0_i32_1 = arith.constant 0 : i32
    return %arg0, %c0_i32, %c0_i32_0 : i32, i32, i32
  }
  func.func @transform_1(%arg0: i32) -> (i32, i32) {
    %c0_i32 = arith.constant 0 : i32
    %c0_i32_0 = arith.constant 0 : i32
    %c0_i32_1 = arith.constant 0 : i32
    return %c0_i32, %c0_i32_0 : i32, i32
  }
  func.func @transform_2(%arg0: i32) -> (i32, i32) {
    %c0_i32 = arith.constant 0 : i32
    %c0_i32_0 = arith.constant 0 : i32
    %c0_i32_1 = arith.constant 0 : i32
    return %c0_i32, %c0_i32_0 : i32, i32
  }
  func.func @transform_3(%arg0: i32) -> (i32, i32) {
    %c0_i32 = arith.constant 0 : i32
    %c0_i32_0 = arith.constant 0 : i32
    %c0_i32_1 = arith.constant 0 : i32
    return %c0_i32, %c0_i32_0 : i32, i32
  }
  func.func @transform_4(%arg0: i32) -> (i32, i32) {
    %c0_i32 = arith.constant 0 : i32
    %c0_i32_0 = arith.constant 0 : i32
    %c0_i32_1 = arith.constant 0 : i32
    return %c0_i32, %c0_i32_0 : i32, i32
  }
  func.func @transform_5(%arg0: i32) -> (i32, i32, i32) {
    %c0_i32 = arith.constant 0 : i32
    %c0_i32_0 = arith.constant 0 : i32
    %c0_i32_1 = arith.constant 0 : i32
    %c0_i32_2 = arith.constant 0 : i32
    return %c0_i32, %c0_i32_0, %c0_i32_1 : i32, i32, i32
  }
  func.func @transform_6(%arg0: i32) -> (i32, i32) {
    %c0_i32 = arith.constant 0 : i32
    %c0_i32_0 = arith.constant 0 : i32
    %c0_i32_1 = arith.constant 0 : i32
    return %c0_i32, %c0_i32_0 : i32, i32
  }
  func.func @transform_7(%arg0: i32) -> (i32, i32, i32) {
    %c0_i32 = arith.constant 0 : i32
    %c0_i32_0 = arith.constant 0 : i32
    %c0_i32_1 = arith.constant 0 : i32
    %c0_i32_2 = arith.constant 0 : i32
    return %c0_i32, %c0_i32_0, %c0_i32_1 : i32, i32, i32
  }
  func.func @transform_8(%arg0: i32) -> (i32, i32) {
    %c0_i32 = arith.constant 0 : i32
    %c0_i32_0 = arith.constant 0 : i32
    %c0_i32_1 = arith.constant 0 : i32
    return %c0_i32, %c0_i32_0 : i32, i32
  }
  func.func @transform_9(%arg0: i32) -> (i32, i32) {
    %c0_i32 = arith.constant 0 : i32
    %c0_i32_0 = arith.constant 0 : i32
    %c0_i32_1 = arith.constant 0 : i32
    return %c0_i32, %c0_i32_0 : i32, i32
  }
  func.func @transform_10(%arg0: i32) -> (i32, i32) {
    %c0_i32 = arith.constant 0 : i32
    %c0_i32_0 = arith.constant 0 : i32
    %c0_i32_1 = arith.constant 0 : i32
    return %c0_i32, %c0_i32_0 : i32, i32
  }
  func.func @transform_11(%arg0: i32) -> (i32, i32) {
    %c0_i32 = arith.constant 0 : i32
    %c0_i32_0 = arith.constant 0 : i32
    %c0_i32_1 = arith.constant 0 : i32
    return %c0_i32, %c0_i32_0 : i32, i32
  }
  func.func @transform_12(%arg0: i32) -> (i32, i32) {
    %c0_i32 = arith.constant 0 : i32
    %c0_i32_0 = arith.constant 0 : i32
    %c0_i32_1 = arith.constant 0 : i32
    return %c0_i32, %c0_i32_0 : i32, i32
  }
  func.func @transform_13(%arg0: i32) -> (i32, i32) {
    %c0_i32 = arith.constant 0 : i32
    %c0_i32_0 = arith.constant 0 : i32
    %c0_i32_1 = arith.constant 0 : i32
    return %c0_i32, %c0_i32_0 : i32, i32
  }
  func.func @transform_14(%arg0: i32) -> (i32, i32, i32) {
    %c0_i32 = arith.constant 0 : i32
    %c0_i32_0 = arith.constant 0 : i32
    %c0_i32_1 = arith.constant 0 : i32
    return %arg0, %c0_i32, %c0_i32_0 : i32, i32, i32
  }
}

</mosaic_0001>

<bundles_post_ra>
// kernel: mul_conv_adapter.1
= control target key start
LH: loop header
LB: loop body
LE: loop exit
PB: predicated region body
PF: predicated region fallthrough
CT: control target
= control target key end

     0   :  { %s4868_s29 = smov 0   ;;  %s8545_s0 = inlined_call_operand.vmem [shape: f32[2,65,32], index: 0, kind: input, shape index: {}]   ;;  %s8546_s1 = inlined_call_operand.vmem [shape: f32[32,16], index: 1, kind: input, shape index: {}]   ;;  %s8547_s2 = inlined_call_operand.vmem [shape: f32[1,16], index: 2, kind: input, shape index: {}]   ;;  %s8548_s3 = inlined_call_operand.vmem [shape: f32[16,384], index: 3, kind: input, shape index: {}]   ;;  %s8549_s4 = inlined_call_operand.vmem [shape: f32[1,384], index: 4, kind: input, shape index: {}]   ;;  %s8550_s5 = inlined_call_operand.vmem [shape: f32[9,128,128], index: 5, kind: input, shape index: {}]   ;;  %s8551_s6 = inlined_call_operand.vmem [shape: f32[1,128], index: 6, kind: input, shape index: {}]   ;;  %s8552_s7 = inlined_call_operand.vmem [shape: f32[25,128,128], index: 7, kind: input, shape index: {}]   ;;  %s8553_s8 = inlined_call_operand.vmem [shape: f32[1,128], index: 8, kind: input, shape index: {}]   ;;  %s8554_s9 = inlined_call_operand.vmem [shape: f32[16,32], index: 9, kind: input, shape index: {}]   ;;  %s8555_s10 = inlined_call_operand.vmem [shape: f32[128,32], index: 10, kind: input, shape index: {}]   ;;  %s8556_s11 = inlined_call_operand.vmem [shape: f32[128,32], index: 11, kind: input, shape index: {}]   ;;  %s8557_s12 = inlined_call_operand.vmem [shape: f32[128,32], index: 12, kind: input, shape index: {}]   ;;  %s8558_s13 = inlined_call_operand.vmem [shape: f32[1,32], index: 13, kind: input, shape index: {}]   ;;  %s8559_s14 = inlined_call_operand.vmem [shape: f32[2,65,32], index: 14, kind: output, shape index: {}]  }
   0x1 LB: > { %s3998_s30 = sadd.s32 4294967295, %s4790_s29   ;;  %p4002_p0 = scmp.ge.s32.totalorder %s4790_s29, 1  ;;  %s4790_s29 = sphi %s4868_s29, %s24_s29  }
   0x2   : > { %p412_p1 = scmp.lt.s32.totalorder %s4790_s29, 3 }
   0x4   : > { %p413_p2 = pnand %p4002_p0, %p412_p1 }
   0x6   : > { %416 = sbr.rel (%p413_p2) target bundleno = 1125 (0x465), region = 76 }
   0xb   : > { %v585_v0 = vld [vmem:[%s8546_s1 + $0x18] sm:$0xff]  ;;  %v584_v1 = vld [vmem:[%s8546_s1 + $0x10] sm:$0xff]  ;;  %p458_p3 = scmp.lt.s32.totalorder %s3998_s30, 1  ;;  %v583_v2 = vld [vmem:[%s8546_s1 + $0x8] sm:$0xff]  ;;  %vm8560_vm0 = vcmask 261120   ;;  %vm623_vm1 = vcmask 1046528  }
   0xc   : > { %669 = vmatpush.msra.mxu1 %v585_v0  ;;  %603 = vmatpush.msra.mxu0 %v585_v0  ;;  %v582_v3 = vld [vmem:[%s8546_s1] sm:$0xff]  ;;  %v709_v30 = vld [vmem:[%s8548_s3 + $0x18] sm:$0xff]  ;;  %v707_v33 = vld [vmem:[%s8548_s3 + $0x8] sm:$0xff]  ;;  %vm8561_vm2 = vcmask 130048   ;;  %vm8587_vm3 = vcmask 1040384  }
   0xd   : > { %s8852_s30 = smov (!%p458_p3, %s3998_s30), 1  ;;  %v710_v31 = vld [vmem:[%s8548_s3 + $0x20] sm:$0xff]  ;;  %4751 = vmatpush.msra.mxu2 %v709_v30  ;;  %v711_v34 = vld [vmem:[%s8548_s3 + $0x28] sm:$0xff]  ;;  %v708_v35 = vld [vmem:[%s8548_s3 + $0x10] sm:$0xff] }
   0xe   : > { %670 = vmatpush.msra.mxu1 %v584_v1  ;;  %604 = vmatpush.msra.mxu0 %v584_v1  ;;  %s4769_s23 = smul.u32 72, %s8852_s30  ;;  %v706_v32 = vld [vmem:[%s8548_s3] sm:$0xff]  ;;  %v983_v52 = vld [vmem:[%s8550_s5 + $0x78] sm:$0xff]  ;;  %v982_v53 = vld [vmem:[%s8550_s5 + $0x70] sm:$0xff] }
   0xf   : > { %800 = vmatpush.msra.mxu3 %v710_v31  ;;  %4752 = vmatpush.msra.mxu2 %v706_v32  ;;  %v4779_v36 = vld [vmem:[%s8547_s2] ss:$0 sm:$0xff]  ;;  %v981_v57 = vld [vmem:[%s8550_s5 + $0x68] sm:$0xff]  ;;  %v979_v62 = vld [vmem:[%s8550_s5 + $0x58] sm:$0xff] }
  0x10   : > { %671 = vmatpush.msra.mxu1 %v583_v2  ;;  %605 = vmatpush.msra.mxu0 %v583_v2  ;;  %s4896_s26 = scalar_lea.vmem %s8545_s0, %s4769_s23  ;;  %v980_v58 = vld [vmem:[%s8550_s5 + $0x60] sm:$0xff]  ;;  %v978_v63 = vld [vmem:[%s8550_s5 + $0x50] sm:$0xff]  ;;  %v4053_v0 = vld [vmem:[%s8550_s5 + $0xf8] sm:$0xff]  ;;  %s8511_s20 = scalar_lea.vmem %s8559_s14, %s4769_s23 }
  0x11   : > { %v573_v4 = vld [vmem:[%s4896_s26] sm:$0xff]  ;;  %v574_v5 = vld [vmem:[%s4896_s26 + $0x8] sm:$0xff]  ;;  %v575_v8 = vld [vmem:[%s4896_s26 + $0x10] sm:$0xff]  ;;  %801 = vmatpush.msra.mxu3 %v707_v33  ;;  %1001 = vmatpush.msrb.mxu2 %v4053_v0 }
  0x12   : > { %672 = vmatpush.msra.mxu1 %v582_v3  ;;  %606 = vmatpush.msra.mxu0 %v582_v3  ;;  %v624_v6 = vrot.slane %v573_v4, 1  ;;  %v625_v7 = vrot.slane %v574_v5, 1  ;;  %v627_v10 = vrot.slane %v575_v8, 1  ;;  %v576_v12 = vld [vmem:[%s4896_s26 + $0x18] sm:$0xff]  ;;  %v577_v15 = vld [vmem:[%s4896_s26 + $0x20] sm:$0xff]  ;;  %v578_v18 = vld [vmem:[%s4896_s26 + $0x28] sm:$0xff] }
  0x13   : > { %4005 = vmatmul.msk.f32.vlgmr.msra.gmra.mxu0 %vm8560_vm0, %v573_v4  ;;  %v629_v13 = vrot.slane %v576_v12, 1  ;;  %v631_v16 = vrot.slane %v577_v15, 1  ;;  %v633_v19 = vrot.slane %v578_v18, 1  ;;  %v579_v21 = vld [vmem:[%s4896_s26 + $0x30] sm:$0xff]  ;;  %v580_v24 = vld [vmem:[%s4896_s26 + $0x38] sm:$0xff]  ;;  %1042 = vmatpush.msrb.mxu3 %v983_v52  ;;  %v977_v3 = vld [vmem:[%s8550_s5 + $0x48] sm:$0xff] }
  0x14   : > { %v626_v9 = vsel %vm623_vm1, %v624_v6, %v625_v7  ;;  %v628_v11 = vsel %vm623_vm1, %v625_v7, %v627_v10  ;;  %v635_v22 = vrot.slane %v579_v21, 1  ;;  %v637_v25 = vrot.slane %v580_v24, 1  ;;  %v581_v27 = vld [vmem:[%s4896_s26 + $0x40] sm:$0x1]  ;;  %759 = vmatpush.msrb.mxu0 %v709_v30  ;;  %v4052_v1 = vld [vmem:[%s8550_s5 + $0xf0] sm:$0xff]  ;;  %v4051_v4 = vld [vmem:[%s8550_s5 + $0xe8] sm:$0xff] }
  0x15   : > { %4006 = vmatmul.msk.f32.vlgmr.msra.gmra.mxu1 %vm8560_vm0, %v626_v9  ;;  %v630_v14 = vsel %vm623_vm1, %v627_v10, %v629_v13  ;;  %v632_v17 = vsel %vm623_vm1, %v629_v13, %v631_v16  ;;  %v634_v20 = vsel %vm623_vm1, %v631_v16, %v633_v19  ;;  %v639_v28 = vrot.slane %v581_v27, 1  ;;  %1043 = vmatpush.msrb.mxu3 %v982_v53  ;;  %v4050_v6 = vld [vmem:[%s8550_s5 + $0xe0] sm:$0xff]  ;;  %v4076_v9 = vld [vmem:[%s8550_s5 + $0x178] sm:$0xff]  ;;  %v4075_v12 = vld [vmem:[%s8550_s5 + $0x170] sm:$0xff] }
  0x16   : > { %v636_v23 = vsel %vm623_vm1, %v633_v19, %v635_v22  ;;  %v638_v26 = vsel %vm623_vm1, %v635_v22, %v637_v25  ;;  %760 = vmatpush.msrb.mxu0 %v706_v32  ;;  %1002 = vmatpush.msrb.mxu2 %v4052_v1  ;;  %v976_v8 = vld [vmem:[%s8550_s5 + $0x40] sm:$0xff]  ;;  %v4100_v10 = vld [vmem:[%s8550_s5 + $0x1f8] sm:$0xff]  ;;  %v4099_v15 = vld [vmem:[%s8550_s5 + $0x1f0] sm:$0xff] }
  0x17   : > { %v640_v29 = vsel %vm623_vm1, %v637_v25, %v639_v28  ;;  %1044 = vmatpush.msrb.mxu3 %v981_v57  ;;  %1173 = vmatpush.msrb.mxu1 %v4076_v9  ;;  %v975_v13 = vld [vmem:[%s8550_s5 + $0x38] sm:$0xff]  ;;  %v974_v16 = vld [vmem:[%s8550_s5 + $0x30] sm:$0xff]  ;;  %v4047_v18 = vld [vmem:[%s8550_s5 + $0xc8] sm:$0xff]  ;;  %v8569_v57 = vmov 0.0  }
  0x18   : > { %841 = vmatpush.msra.mxu0 %v711_v34  ;;  %1003 = vmatpush.msrb.mxu2 %v4051_v4  ;;  %v4098_v19 = vld [vmem:[%s8550_s5 + $0x1e8] sm:$0xff]  ;;  %v4073_v21 = vld [vmem:[%s8550_s5 + $0x160] sm:$0xff]  ;;  %v4045_v25 = vld [vmem:[%s8550_s5 + $0xb8] sm:$0xff] }
  0x19   : > { %1045 = vmatpush.msrb.mxu3 %v980_v58  ;;  %1174 = vmatpush.msrb.mxu1 %v4075_v12  ;;  %v4046_v22 = vld [vmem:[%s8550_s5 + $0xc0] sm:$0xff]  ;;  %v971_v27 = vld [vmem:[%s8550_s5 + $0x18] sm:$0xff]  ;;  %v4071_v30 = vld [vmem:[%s8550_s5 + $0x150] sm:$0xff] }
  0x1a   : > { %842 = vmatpush.msra.mxu0 %v708_v35  ;;  %1004 = vmatpush.msrb.mxu2 %v4050_v6  ;;  %v972_v24 = vld [vmem:[%s8550_s5 + $0x20] sm:$0xff]  ;;  %v4096_v28 = vld [vmem:[%s8550_s5 + $0x1d8] sm:$0xff]  ;;  %v4095_v31 = vld [vmem:[%s8550_s5 + $0x1d0] sm:$0xff] }
  0x1b   : > { %1046 = vmatpush.msrb.mxu3 %v979_v62  ;;  %v970_v32 = vld [vmem:[%s8550_s5 + $0x10] sm:$0xff]  ;;  %v4043_v33 = vld [vmem:[%s8550_s5 + $0xa8] sm:$0xff]  ;;  %v4038_v52 = vld [vmem:[%s8550_s5 + $0x80] sm:$0xff] }
  0x1c   : > { %v4070_v34 = vld [vmem:[%s8550_s5 + $0x148] sm:$0xff]  ;;  %v968_v53 = vld [vmem:[%s8550_s5] sm:$0xff]  ;;  %v4124_v58 = vld [vmem:[%s8550_s5 + $0x278] sm:$0xff] }
  0x1d   : > { %4007 = vmatmul.msk.f32.gmra.mxu1 %vm8560_vm0, %v628_v11  ;;  %1047 = vmatpush.msrb.mxu3 %v978_v63  ;;  %v4049_v11 = vld [vmem:[%s8550_s5 + $0xd8] sm:$0xff]  ;;  %v4094_v35 = vld [vmem:[%s8550_s5 + $0x1c8] sm:$0xff]  ;;  %v4063_v1 = vld [vmem:[%s8550_s5 + $0x110] sm:$0xff] }
  0x1e   : > { %1005 = vmatpush.msrb.mxu2 %v4049_v11  ;;  %v4064_v62 = vld [vmem:[%s8550_s5 + $0x118] sm:$0xff]  ;;  %v4139_v4 = vld [vmem:[%s8550_s5 + $0x2f0] sm:$0xff]  ;;  %v4086_v6 = vld [vmem:[%s8550_s5 + $0x188] sm:$0xff] }
  0x1f   : > { %1048 = vmatpush.msrb.mxu3 %v977_v3  ;;  %v4088_v63 = vld [vmem:[%s8550_s5 + $0x198] sm:$0xff]  ;;  %v4123_v3 = vld [vmem:[%s8550_s5 + $0x270] sm:$0xff]  ;;  %v4061_v9 = vld [vmem:[%s8550_s5 + $0x100] sm:$0xff] }
  0x20   : > { %v4140_v0 = vld [vmem:[%s8550_s5 + $0x2f8] sm:$0xff]  ;;  %v4138_v11 = vld [vmem:[%s8550_s5 + $0x2e8] sm:$0xff]  ;;  %v4121_v12 = vld [vmem:[%s8550_s5 + $0x260] sm:$0xff] }
  0x21   : > { %1049 = vmatpush.msrb.mxu3 %v976_v8  ;;  %v4122_v8 = vld [vmem:[%s8550_s5 + $0x268] sm:$0xff] }
  0x23   : > { %1050 = vmatpush.msrb.mxu3 %v975_v13  ;;  %v4137_v13 = vld [vmem:[%s8550_s5 + $0x2e0] sm:$0xff] }
  0x25   : > { %4008 = vmatmul.msk.f32.gmra.mxu1 %vm8560_vm0, %v630_v14  ;;  %v4048_v14 = vld [vmem:[%s8550_s5 + $0xd0] sm:$0xff]  ;;  %1051 = vmatpush.msrb.mxu3 %v974_v16  ;;  %v4136_v16 = vld [vmem:[%s8550_s5 + $0x2d8] sm:$0xff] }
  0x26   : > { %1006 = vmatpush.msrb.mxu2 %v4048_v14  ;;  %v4120_v14 = vld [vmem:[%s8550_s5 + $0x258] sm:$0xff] }
  0x28   : > { %1007 = vmatpush.msrb.mxu2 %v4047_v18  ;;  %v4119_v18 = vld [vmem:[%s8550_s5 + $0x250] sm:$0xff] }
  0x2a   : > { %1008 = vmatpush.msrb.mxu2 %v4046_v22 }
  0x2c   : > { %1009 = vmatpush.msrb.mxu2 %v4045_v25 }
  0x2d   : > { %4009 = vmatmul.msk.f32.gmra.mxu1 %vm8560_vm0, %v632_v17  ;;  %v4074_v17 = vld [vmem:[%s8550_s5 + $0x168] sm:$0xff] }
  0x2e   : > { %1175 = vmatpush.msrb.mxu1 %v4074_v17  ;;  %v468_v17 = vlaneseq }
  0x30   : > { %1176 = vmatpush.msrb.mxu1 %v4073_v21  ;;  %v5244_v21 = vshrl.u32 %v468_v17, 7 }
  0x35   : > { %4010 = vmatmul.msk.f32.gmra.mxu1 %vm8560_vm0, %v634_v20  ;;  %v973_v20 = vld [vmem:[%s8550_s5 + $0x28] sm:$0xff] }
  0x36   : > { %1052 = vmatpush.msrb.mxu3 %v973_v20  ;;  %v4118_v20 = vld [vmem:[%s8550_s5 + $0x248] sm:$0xff] }
  0x38   : > { %1053 = vmatpush.msrb.mxu3 %v972_v24  ;;  %v5254_v24 = vld [vmem:[%s8549_s4] sm:$0x7] }
  0x39   : > { %v5257_v25 = vperm.slane %v5254_v24, 1 }
  0x3a   : > { %1054 = vmatpush.msrb.mxu3 %v971_v27  ;;  %v4117_v27 = vld [vmem:[%s8550_s5 + $0x240] sm:$0xff] }
  0x3c   : > { %1055 = vmatpush.msrb.mxu3 %v970_v32 }
  0x3d   : > { %4011 = vmatmul.msk.f32.gmra.mxu1 %vm8560_vm0, %v636_v23  ;;  %v4097_v23 = vld [vmem:[%s8550_s5 + $0x1e0] sm:$0xff] }
  0x45   : > { %4012 = vmatmul.msk.f32.gmra.mxu1 %vm8560_vm0, %v638_v26  ;;  %v4072_v26 = vld [vmem:[%s8550_s5 + $0x158] sm:$0xff] }
  0x46   : > { %1177 = vmatpush.msrb.mxu1 %v4072_v26  ;;  %v470_v26 = vadd.s32 8, %v5244_v21 }
  0x48   : > { %1178 = vmatpush.msrb.mxu1 %v4071_v30  ;;  %v5270_v32 = vand.u32 7, %v470_v26  ;;  %v4159_v26 = vld [vmem:[%s8550_s5 + $0x350] sm:$0xff] }
  0x4a   : > { %1179 = vmatpush.msrb.mxu1 %v4070_v34  ;;  %vm8567_vm4 = vcmp.ge.s32.totalorder %v5270_v32, 1  ;;  %vm8564_vm8 = vcmp.lt.s32.totalorder %v5270_v32, 7 }
  0x4d   : > { %4013 = vmatmul.msk.f32.gmra.mxu1 %vm8560_vm0, %v640_v29  ;;  %v4044_v29 = vld [vmem:[%s8550_s5 + $0xb0] sm:$0xff] }
  0x4e   : > { %1010 = vmatpush.msrb.mxu2 %v4044_v29  ;;  %v4116_v29 = vld [vmem:[%s8550_s5 + $0x238] sm:$0xff] }
  0x50   : > { %1011 = vmatpush.msrb.mxu2 %v4043_v33  ;;  %v5273_v33 = vand.u32 7, %v5244_v21 }
  0x52   : > { %vm8574_vm5 = vcmp.lt.s32.totalorder %v5273_v33, 7  ;;  %vm8565_vm6 = vcmp.ge.s32.totalorder %v5273_v33, 1 }
  0x92   : > { %v674_v37 = vpop.f32.mrf.mxu1 }
  0x93   : > { %v675_v38 = vadd.f32 %v4779_v36, %v674_v37  ;;  %v4042_v37 = vld [vmem:[%s8550_s5 + $0xa0] sm:$0xff] }
  0x94   : > { %1012 = vmatpush.msrb.mxu2 %v4042_v37  ;;  %v471_v37 = vadd.s32 16, %v5244_v21 }
  0x95   : > { %v4945_v39 = vmax.f32 %v675_v38, 0.0  ;;  %v4069_v38 = vld [vmem:[%s8550_s5 + $0x140] sm:$0xff] }
  0x96   : > { %1180 = vmatpush.msrb.mxu1 %v4069_v38 }
  0x97   : > { %8642 = vst [vmem:[#allocation2_spill] sm:$0xff] %v4945_v39  ;;  %4014 = vmatmul.msk.f32.vlgmr.msrb.gmra.mxu0 %vm8561_vm2, %v4945_v39  ;;  %4022 = vmatmul.msk.f32.vlgmr.msra.gmra.mxu3 %vm8561_vm2, %v4945_v39 }
  0x98   : > { %1250 = vmatpush.msrb.mxu0 %v4100_v10  ;;  %v4085_v10 = vld [vmem:[%s8550_s5 + $0x180] sm:$0xff] }
  0x9a   : > { %v677_v40 = vpop.f32.mrf.mxu1  ;;  %1251 = vmatpush.msrb.mxu0 %v4099_v15  ;;  %v5230_v15 = vpop.f32.mrf.mxu0 }
  0x9b   : > { %v678_v41 = vadd.f32 %v4779_v36, %v677_v40  ;;  %v4041_v40 = vld [vmem:[%s8550_s5 + $0x98] sm:$0xff]  ;;  %8650 = vst [vmem:[#allocation10_spill] sm:$0xff] %v5230_v15 }
  0x9c   : > { %1252 = vmatpush.msrb.mxu0 %v4098_v19  ;;  %1013 = vmatpush.msrb.mxu2 %v4041_v40  ;;  %v4135_v19 = vld [vmem:[%s8550_s5 + $0x2d0] sm:$0xff] }
  0x9d   : > { %v4951_v42 = vmax.f32 %v678_v41, 0.0  ;;  %v4093_v41 = vld [vmem:[%s8550_s5 + $0x1c0] sm:$0xff] }
  0x9e   : > { %1253 = vmatpush.msrb.mxu0 %v4097_v23  ;;  %v4134_v23 = vld [vmem:[%s8550_s5 + $0x2c8] sm:$0xff] }
  0x9f   : > { %8643 = vst [vmem:[#allocation3_spill] sm:$0xff] %v4951_v42  ;;  %4015 = vmatmul.msk.f32.gmra.mxu0 %vm8561_vm2, %v4951_v42  ;;  %4023 = vmatmul.msk.f32.gmra.mxu3 %vm8561_vm2, %v4951_v42 }
  0xa0   : > { %1254 = vmatpush.msrb.mxu0 %v4096_v28  ;;  %v4133_v28 = vld [vmem:[%s8550_s5 + $0x2c0] sm:$0xff] }
  0xa2   : > { %v680_v43 = vpop.f32.mrf.mxu1  ;;  %1255 = vmatpush.msrb.mxu0 %v4095_v31 }
  0xa3   : > { %v681_v44 = vadd.f32 %v4779_v36, %v680_v43  ;;  %v4068_v43 = vld [vmem:[%s8550_s5 + $0x138] sm:$0xff] }
  0xa4   : > { %1256 = vmatpush.msrb.mxu0 %v4094_v35  ;;  %1181 = vmatpush.msrb.mxu1 %v4068_v43  ;;  %v4131_v43 = vld [vmem:[%s8550_s5 + $0x2b0] sm:$0xff] }
  0xa5   : > { %v4957_v45 = vmax.f32 %v681_v44, 0.0  ;;  %v4040_v44 = vld [vmem:[%s8550_s5 + $0x90] sm:$0xff] }
  0xa6   : > { %1257 = vmatpush.msrb.mxu0 %v4093_v41  ;;  %1014 = vmatpush.msrb.mxu2 %v4040_v44  ;;  %v4115_v41 = vld [vmem:[%s8550_s5 + $0x230] sm:$0xff]  ;;  %v4114_v44 = vld [vmem:[%s8550_s5 + $0x228] sm:$0xff] }
  0xa7   : > { %8644 = vst [vmem:[#allocation4_spill] sm:$0xff] %v4957_v45  ;;  %4016 = vmatmul.msk.f32.gmra.mxu0 %vm8561_vm2, %v4957_v45  ;;  %4024 = vmatmul.msk.f32.gmra.mxu3 %vm8561_vm2, %v4957_v45 }
  0xaa   : > { %v683_v46 = vpop.f32.mrf.mxu1 }
  0xab   : > { %v684_v47 = vadd.f32 %v4779_v36, %v683_v46  ;;  %v4092_v46 = vld [vmem:[%s8550_s5 + $0x1b8] sm:$0xff] }
  0xac   : > { %1258 = vmatpush.msrb.mxu0 %v4092_v46 }
  0xad   : > { %v4963_v48 = vmax.f32 %v684_v47, 0.0  ;;  %v4039_v47 = vld [vmem:[%s8550_s5 + $0x88] sm:$0xff] }
  0xae   : > { %1015 = vmatpush.msrb.mxu2 %v4039_v47 }
  0xaf   : > { %8645 = vst [vmem:[#allocation5_spill] sm:$0xff] %v4963_v48  ;;  %4017 = vmatmul.msk.f32.vlgmr.msra.gmra.mxu2 %vm8561_vm2, %v4963_v48  ;;  %4025 = vmatmul.msk.f32.gmra.mxu3 %vm8561_vm2, %v4963_v48 }
  0xb0   : > { %4030 = vmatmul.msk.f32.vlgmr.msra.gmra.mxu0 %vm8561_vm2, %v4945_v39  ;;  %1016 = vmatpush.msrb.mxu2 %v4038_v52 }
  0xb2   : > { %v686_v49 = vpop.f32.mrf.mxu1  ;;  %1316 = vmatpush.msra.mxu2 %v4124_v58 }
  0xb3   : > { %v687_v50 = vadd.f32 %v4779_v36, %v686_v49  ;;  %v4067_v49 = vld [vmem:[%s8550_s5 + $0x130] sm:$0xff] }
  0xb4   : > { %1182 = vmatpush.msrb.mxu1 %v4067_v49  ;;  %1317 = vmatpush.msra.mxu2 %v4123_v3  ;;  %v4113_v3 = vld [vmem:[%s8550_s5 + $0x220] sm:$0xff] }
  0xb5   : > { %v4971_v51 = vmax.f32 %v687_v50, 0.0  ;;  %v4091_v50 = vld [vmem:[%s8550_s5 + $0x1b0] sm:$0xff] }
  0xb6   : > { %1259 = vmatpush.msrb.mxu0 %v4091_v50  ;;  %1318 = vmatpush.msra.mxu2 %v4122_v8  ;;  %v5304_v50 = vand.u32 7, %v471_v37  ;;  %v4183_v37 = vld [vmem:[%s8550_s5 + $0x3d0] sm:$0xff] }
  0xb7   : > { %8646 = vst [vmem:[#allocation6_spill] sm:$0xff] %v4971_v51  ;;  %4018 = vmatmul.msk.f32.gmra.mxu2 %vm8561_vm2, %v4971_v51  ;;  %4026 = vmatmul.msk.f32.gmra.mxu3 %vm8561_vm2, %v4971_v51 }
  0xb8   : > { %4031 = vmatmul.msk.f32.gmra.mxu0 %vm8561_vm2, %v4951_v42  ;;  %1319 = vmatpush.msra.mxu2 %v4121_v12  ;;  %vm8605_vm7 = vcmp.ge.s32.totalorder %v5304_v50, 1  ;;  %vm8596_vm10 = vcmp.lt.s32.totalorder %v5304_v50, 7 }
  0xba   : > { %v689_v54 = vpop.f32.mrf.mxu1  ;;  %1320 = vmatpush.msra.mxu2 %v4120_v14  ;;  %v4185_v14 = vld [vmem:[%s8550_s5 + $0x3e0] sm:$0xff] }
  0xbb   : > { %v690_v55 = vadd.f32 %v4779_v36, %v689_v54  ;;  %v4066_v54 = vld [vmem:[%s8550_s5 + $0x128] sm:$0xff] }
  0xbc   : > { %1183 = vmatpush.msrb.mxu1 %v4066_v54  ;;  %1321 = vmatpush.msra.mxu2 %v4119_v18  ;;  %v4188_v54 = vld [vmem:[%s8550_s5 + $0x3f8] sm:$0xff] }
  0xbd   : > { %v4985_v56 = vmax.f32 %v690_v55, 0.0  ;;  %v4090_v55 = vld [vmem:[%s8550_s5 + $0x1a8] sm:$0xff] }
  0xbe   : > { %1260 = vmatpush.msrb.mxu0 %v4090_v55  ;;  %1322 = vmatpush.msra.mxu2 %v4118_v20  ;;  %v4184_v20 = vld [vmem:[%s8550_s5 + $0x3d8] sm:$0xff] }
  0xbf   : > { %8647 = vst [vmem:[#allocation7_spill] sm:$0xff] %v4985_v56  ;;  %4019 = vmatmul.msk.f32.gmra.mxu2 %vm8561_vm2, %v4985_v56  ;;  %4027 = vmatmul.msk.f32.gmra.mxu3 %vm8561_vm2, %v4985_v56 }
  0xc0   : > { %4032 = vmatmul.msk.f32.gmra.mxu0 %vm8561_vm2, %v4957_v45  ;;  %1323 = vmatpush.msra.mxu2 %v4117_v27  ;;  %v4326_v45 = vld [vmem:[%s8552_s7 + $0x308] sm:$0xff] }
  0xc2   : > { %v692_v59 = vpop.f32.mrf.mxu1  ;;  %1324 = vmatpush.msra.mxu2 %v4116_v29  ;;  %v4111_v29 = vld [vmem:[%s8550_s5 + $0x210] sm:$0xff] }
  0xc3   : > { %v693_v60 = vadd.f32 %v4779_v36, %v692_v59  ;;  %v4065_v59 = vld [vmem:[%s8550_s5 + $0x120] sm:$0xff] }
  0xc4   : > { %1184 = vmatpush.msrb.mxu1 %v4065_v59  ;;  %1325 = vmatpush.msra.mxu2 %v4115_v41  ;;  %v4130_v59 = vld [vmem:[%s8550_s5 + $0x2a8] sm:$0xff] }
  0xc5   : > { %v4999_v61 = vmax.f32 %v693_v60, 0.0  ;;  %v4089_v60 = vld [vmem:[%s8550_s5 + $0x1a0] sm:$0xff] }
  0xc6   : > { %1261 = vmatpush.msrb.mxu0 %v4089_v60  ;;  %1185 = vmatpush.msrb.mxu1 %v4064_v62  ;;  %v4163_v60 = vld [vmem:[%s8550_s5 + $0x370] sm:$0xff] }
  0xc7   : > { %8648 = vst [vmem:[#allocation8_spill] sm:$0xff] %v4999_v61  ;;  %4020 = vmatmul.msk.f32.gmra.mxu2 %vm8561_vm2, %v4999_v61  ;;  %4028 = vmatmul.msk.f32.gmra.mxu3 %vm8561_vm2, %v4999_v61  ;;  %v4187_v62 = vld [vmem:[%s8550_s5 + $0x3f0] sm:$0xff] }
  0xc8   : > { %4033 = vmatmul.msk.f32.gmra.mxu0 %vm8561_vm2, %v4963_v48  ;;  %1186 = vmatpush.msrb.mxu1 %v4063_v1  ;;  %v472_v1 = vadd.s32 24, %v5244_v21  ;;  %v4304_v48 = vld [vmem:[%s8552_s7 + $0x290] sm:$0xff] }
  0xc9   : > { %1262 = vmatpush.msrb.mxu0 %v4088_v63  ;;  %1326 = vmatpush.msra.mxu2 %v4114_v44 }
  0xca   : > { %v695_v2 = vpop.f32.mrf.mxu1 }
  0xcb   : > { %v696_v5 = vadd.f32 %v4779_v36, %v695_v2  ;;  %v969_v36 = vld [vmem:[%s8550_s5 + $0x8] sm:$0xff]  ;;  %v4087_v2 = vld [vmem:[%s8550_s5 + $0x190] sm:$0xff]  ;;  %1327 = vmatpush.msra.mxu2 %v4113_v3 }
  0xcc   : > { %1056 = vmatpush.msrb.mxu3 %v969_v36  ;;  %1263 = vmatpush.msrb.mxu0 %v4087_v2  ;;  %v4132_v36 = vld [vmem:[%s8550_s5 + $0x2b8] sm:$0xff]  ;;  %v4162_v2 = vld [vmem:[%s8550_s5 + $0x368] sm:$0xff] }
  0xcd   : > { %v5028_v7 = vmax.f32 %v696_v5, 0.0  ;;  %v4062_v5 = vld [vmem:[%s8550_s5 + $0x108] sm:$0xff] }
  0xce   : > { %1057 = vmatpush.msrb.mxu3 %v968_v53  ;;  %1187 = vmatpush.msrb.mxu1 %v4062_v5  ;;  %v4164_v53 = vld [vmem:[%s8550_s5 + $0x378] sm:$0xff] }
  0xcf   : > { %8649 = vst [vmem:[#allocation9_spill] sm:$0xff] %v5028_v7  ;;  %4029 = vmatmul.msk.f32.gmra.mxu3 %vm8561_vm2, %v5028_v7  ;;  %4021 = vmatmul.msk.f32.gmra.mxu2 %vm8561_vm2, %v5028_v7  ;;  %v4112_v5 = vld [vmem:[%s8550_s5 + $0x218] sm:$0xff] }
  0xd0   : > { %4034 = vmatmul.msk.f32.gmra.mxu0 %vm8561_vm2, %v4971_v51  ;;  %1392 = vmatpush.msra.mxu3 %v4140_v0 }
  0xd1   : > { %1264 = vmatpush.msrb.mxu0 %v4086_v6  ;;  %1188 = vmatpush.msrb.mxu1 %v4061_v9  ;;  %v4186_v9 = vld [vmem:[%s8550_s5 + $0x3e8] sm:$0xff] }
  0xd2   : > { %1393 = vmatpush.msra.mxu3 %v4139_v4  ;;  %v4129_v4 = vld [vmem:[%s8550_s5 + $0x2a0] sm:$0xff]  ;;  %1328 = vmatpush.msra.mxu2 %v4112_v5  ;;  %v4180_v5 = vld [vmem:[%s8550_s5 + $0x3b8] sm:$0xff] }
  0xd3   : > { %1265 = vmatpush.msrb.mxu0 %v4085_v10  ;;  %1468 = vmatpush.msra.mxu1 %v4164_v53  ;;  %v4161_v10 = vld [vmem:[%s8550_s5 + $0x360] sm:$0xff] }
  0xd4   : > { %1394 = vmatpush.msra.mxu3 %v4138_v11  ;;  %1329 = vmatpush.msra.mxu2 %v4111_v29  ;;  %v4181_v53 = vld [vmem:[%s8550_s5 + $0x3c0] sm:$0xff]  ;;  %v4152_v29 = vld [vmem:[%s8550_s5 + $0x318] sm:$0xff] }
  0xd5   : > { %1534 = vmatpush.msra.mxu0 %v4188_v54  ;;  %1469 = vmatpush.msra.mxu1 %v4163_v60  ;;  %v4126_v54 = vld [vmem:[%s8550_s5 + $0x288] sm:$0xff]  ;;  %v4109_v60 = vld [vmem:[%s8550_s5 + $0x200] sm:$0xff] }
  0xd6   : > { %1395 = vmatpush.msra.mxu3 %v4137_v13  ;;  %v5368_v13 = vand.u32 7, %v472_v1  ;;  %v4155_v1 = vld [vmem:[%s8550_s5 + $0x330] sm:$0xff] }
  0xd7   : > { %1017 = vmatmul.f32.vlgmr.msrb.gmra.mxu2 %v8569_v57  ;;  %1058 = vmatmul.f32.vlgmr.msrb.gmra.mxu3 %v8569_v57 }
  0xd8   : > { %4035 = vmatmul.msk.f32.gmra.mxu0 %vm8561_vm2, %v4985_v56  ;;  %1396 = vmatpush.msra.mxu3 %v4136_v16  ;;  %v4160_v16 = vld [vmem:[%s8550_s5 + $0x358] sm:$0xff]  ;;  %vm8610_vm9 = vcmp.ge.s32.totalorder %v5368_v13, 1  ;;  %vm1119_vm12 = vcmp.lt.s32.totalorder %v5368_v13, 7  ;;  %v4308_v56 = vld [vmem:[%s8552_s7 + $0x2b0] sm:$0xff] }
  0xd9   : > { %1535 = vmatpush.msra.mxu0 %v4187_v62  ;;  %1470 = vmatpush.msra.mxu1 %v4162_v2  ;;  %v4125_v2 = vld [vmem:[%s8550_s5 + $0x280] sm:$0xff] }
  0xda   : > { %1397 = vmatpush.msra.mxu3 %v4135_v19  ;;  %v4128_v19 = vld [vmem:[%s8550_s5 + $0x298] sm:$0xff] }
  0xdb   : > { %1536 = vmatpush.msra.mxu0 %v4186_v9  ;;  %1471 = vmatpush.msra.mxu1 %v4161_v10  ;;  %v4204_v9 = vld [vmem:[%s8550_s5 + $0x478] sm:$0xff] }
  0xdc   : > { %1398 = vmatpush.msra.mxu3 %v4134_v23  ;;  %v473_v23 = vadd.s32 32, %v5244_v21 }
  0xdd   : > { %1537 = vmatpush.msra.mxu0 %v4185_v14  ;;  %1472 = vmatpush.msra.mxu1 %v4160_v16  ;;  %v4179_v16 = vld [vmem:[%s8550_s5 + $0x3b0] sm:$0xff] }
  0xde   : > { %1399 = vmatpush.msra.mxu3 %v4133_v28  ;;  %v5419_v41 = vand.u32 7, %v473_v23 }
  0xdf   : > { %1538 = vmatpush.msra.mxu0 %v4184_v20  ;;  %1473 = vmatpush.msra.mxu1 %v4159_v26  ;;  %v4153_v20 = vld [vmem:[%s8550_s5 + $0x320] sm:$0xff] }
  0xe0   : > { %4036 = vmatmul.msk.f32.gmra.mxu0 %vm8561_vm2, %v4999_v61  ;;  %1400 = vmatpush.msra.mxu3 %v4132_v36  ;;  %vm8578_vm11 = vcmp.ge.s32.totalorder %v5419_v41, 1  ;;  %vm1120_vm14 = vcmp.lt.s32.totalorder %v5419_v41, 7 }
  0xe1   : > { %1539 = vmatpush.msra.mxu0 %v4183_v37 }
  0xe2   : > { %1401 = vmatpush.msra.mxu3 %v4131_v43  ;;  %v4110_v43 = vld [vmem:[%s8550_s5 + $0x208] sm:$0xff] }
  0xe3   : > { %1330 = vmatpush.msra.mxu2 %v4110_v43 }
  0xe4   : > { %1402 = vmatpush.msra.mxu3 %v4130_v59  ;;  %v4156_v59 = vld [vmem:[%s8550_s5 + $0x338] sm:$0xff] }
  0xe5   : > { %1331 = vmatpush.msra.mxu2 %v4109_v60  ;;  %v4202_v60 = vld [vmem:[%s8550_s5 + $0x468] sm:$0xff] }
  0xe6   : > { %1403 = vmatpush.msra.mxu3 %v4129_v4 }
  0xe7   : > { %1607 = vmatpush.msrb.mxu2 %v4204_v9  ;;  %v4175_v9 = vld [vmem:[%s8550_s5 + $0x390] sm:$0xff] }
  0xe8   : > { %4037 = vmatmul.msk.f32.gmra.mxu0 %vm8561_vm2, %v5028_v7  ;;  %1404 = vmatpush.msra.mxu3 %v4128_v19  ;;  %v4227_v19 = vld [vmem:[%s8552_s7 + $0xf8] sm:$0xff]  ;;  %v4256_v7 = vld [vmem:[%s8552_s7 + $0x180] sm:$0xff] }
 0x114   : > { %v5246_v22 = vpop.f32.mrf.mxu0 }
 0x115   : > { %8651 = vst [vmem:[#allocation11_spill] sm:$0xff] %v5246_v22 }
 0x11a   : > { %v803_v30 = vpop.f32.mrf.mxu3 }
 0x11b   : > { %v804_v31 = vadd.f32 %v803_v30, %v5257_v25  ;;  %v4127_v30 = vld [vmem:[%s8550_s5 + $0x290] sm:$0xff] }
 0x11c   : > { %v5275_v34 = vpop.f32.mrf.mxu0  ;;  %1405 = vmatpush.msra.mxu3 %v4127_v30 }
 0x11d   : > { %8652 = vst [vmem:[#allocation12_spill] sm:$0xff] %v5275_v34  ;;  %v5277_v35 = vmax.f32 %v804_v31, 0.0  ;;  %v8678_v34 = vmov 0.0  }
 0x11e   : > { %1406 = vmatpush.msra.mxu3 %v4126_v54 }
 0x11f   : > { %1020 = vmatmul.f32.gmra.mxu2 %v5277_v35  ;;  %v900_v38 = vrot.slane %v5277_v35, 7  ;;  %v1084_v40 = vrot.slane %v5277_v35, 1 }
 0x120   : > { %1407 = vmatpush.msra.mxu3 %v4125_v2 }
 0x121   : > { %v920_v46 = vsel %vm8587_vm3, 0.0, %v900_v38  ;;  %v1107_v47 = vsel %vm623_vm1, 0.0, %v1084_v40 }
 0x122   : > { %v806_v49 = vpop.f32.mrf.mxu3  ;;  %4054 = vmatmul.msk.f32.gmra.mxu3 %vm8567_vm4, %v920_v46  ;;  %4077 = vmatmul.msk.f32.vlgmr.msrb.gmra.mxu1 %vm8574_vm5, %v1107_v47  ;;  %v4157_v47 = vld [vmem:[%s8550_s5 + $0x340] sm:$0xff] }
 0x123   : > { %v807_v52 = vadd.f32 %v806_v49, %v5257_v25  ;;  %4101 = vmatmul.msk.f32.vlgmr.msrb.gmra.mxu0 %vm8565_vm6, %v920_v46  ;;  %v4182_v46 = vld [vmem:[%s8550_s5 + $0x3c8] sm:$0xff]  ;;  %1804 = vmatpush.msrb.mxu3 %v4227_v19  ;;  %v4224_v19 = vld [vmem:[%s8552_s7 + $0xe0] sm:$0xff] }
 0x124   : > { %v5315_v55 = vpop.f32.mrf.mxu0  ;;  %1540 = vmatpush.msra.mxu0 %v4182_v46  ;;  %v4177_v46 = vld [vmem:[%s8550_s5 + $0x3a0] sm:$0xff] }
 0x125   : > { %8653 = vst [vmem:[#allocation13_spill] sm:$0xff] %v5315_v55  ;;  %v5317_v58 = vmax.f32 %v807_v52, 0.0 }
 0x126   : > { %1541 = vmatpush.msra.mxu0 %v4181_v53 }
 0x127   : > { %1023 = vmatmul.f32.gmra.mxu2 %v5317_v58  ;;  %v901_v63 = vrot.slane %v5317_v58, 7  ;;  %v1085_v0 = vrot.slane %v5317_v58, 1 }
 0x128   : > { %1542 = vmatpush.msra.mxu0 %v4180_v5 }
 0x129   : > { %v5347_v6 = vsel %vm8587_vm3, %v900_v38, %v901_v63  ;;  %v5350_v8 = vsel %vm623_vm1, %v1084_v40, %v1085_v0  ;;  %v4158_v38 = vld [vmem:[%s8550_s5 + $0x348] sm:$0xff] }
 0x12a   : > { %v809_v11 = vpop.f32.mrf.mxu3  ;;  %4055 = vmatmul.msk.f32.gmra.mxu3 %vm8605_vm7, %v5347_v6  ;;  %4078 = vmatmul.msk.f32.gmra.mxu1 %vm8564_vm8, %v5350_v8 }
 0x12b   : > { %v810_v12 = vadd.f32 %v809_v11, %v5257_v25  ;;  %4102 = vmatmul.msk.f32.gmra.mxu0 %vm8567_vm4, %v5347_v6  ;;  %1474 = vmatpush.msra.mxu1 %v4158_v38  ;;  %v4154_v11 = vld [vmem:[%s8550_s5 + $0x328] sm:$0xff]  ;;  %v4203_v38 = vld [vmem:[%s8550_s5 + $0x470] sm:$0xff] }
 0x12c   : > { %1543 = vmatpush.msra.mxu0 %v4179_v16  ;;  %1608 = vmatpush.msrb.mxu2 %v4203_v38  ;;  %v4201_v16 = vld [vmem:[%s8550_s5 + $0x460] sm:$0xff] }
 0x12d   : > { %v5376_v17 = vmax.f32 %v810_v12, 0.0  ;;  %v5378_v18 = vpop.f32.mrf.mxu0  ;;  %1475 = vmatpush.msra.mxu1 %v4157_v47  ;;  %v4226_v47 = vld [vmem:[%s8552_s7 + $0xf0] sm:$0xff] }
 0x12e   : > { %1805 = vmatpush.msrb.mxu3 %v4226_v47  ;;  %1609 = vmatpush.msrb.mxu2 %v4202_v60  ;;  %v4222_v47 = vld [vmem:[%s8552_s7 + $0xd0] sm:$0xff] }
 0x12f   : > { %1026 = vmatmul.f32.gmra.mxu2 %v5376_v17  ;;  %v903_v27 = vrot.slane %v5376_v17, 7  ;;  %v1087_v28 = vrot.slane %v5376_v17, 1  ;;  %1476 = vmatpush.msra.mxu1 %v4156_v59  ;;  %v4150_v59 = vld [vmem:[%s8550_s5 + $0x308] sm:$0xff] }
 0x130   : > { %1610 = vmatpush.msrb.mxu2 %v4201_v16  ;;  %v4220_v16 = vld [vmem:[%s8552_s7 + $0xc0] sm:$0xff] }
 0x131   : > { %v5402_v31 = vsel %vm8587_vm3, %v901_v63, %v903_v27  ;;  %v5405_v36 = vsel %vm623_vm1, %v1085_v0, %v1087_v28  ;;  %v474_v0 = vadd.s32 40, %v5244_v21  ;;  %1477 = vmatpush.msra.mxu1 %v4155_v1  ;;  %v4149_v1 = vld [vmem:[%s8550_s5 + $0x300] sm:$0xff] }
 0x132   : > { %v812_v40 = vpop.f32.mrf.mxu3  ;;  %4056 = vmatmul.msk.f32.gmra.mxu3 %vm8610_vm9, %v5402_v31  ;;  %4079 = vmatmul.msk.f32.gmra.mxu1 %vm8596_vm10, %v5405_v36 }
 0x133   : > { %v813_v44 = vadd.f32 %v812_v40, %v5257_v25  ;;  %4103 = vmatmul.msk.f32.gmra.mxu0 %vm8605_vm7, %v5402_v31  ;;  %v5487_v14 = vand.u32 7, %v474_v0  ;;  %1478 = vmatpush.msra.mxu1 %v4154_v11  ;;  %v4151_v40 = vld [vmem:[%s8550_s5 + $0x310] sm:$0xff]  ;;  %v4225_v0 = vld [vmem:[%s8552_s7 + $0xe8] sm:$0xff] }
 0x134   : > { %1806 = vmatpush.msrb.mxu3 %v4225_v0 }
 0x135   : > { %v5434_v49 = vmax.f32 %v813_v44, 0.0  ;;  %v5436_v52 = vpop.f32.mrf.mxu0  ;;  %vm8562_vm13 = vcmp.ge.s32.totalorder %v5487_v14, 1  ;;  %1479 = vmatpush.msra.mxu1 %v4153_v20  ;;  %vm1121_vm0 = vcmp.lt.s32.totalorder %v5487_v14, 7  ;;  %v4200_v20 = vld [vmem:[%s8550_s5 + $0x458] sm:$0xff] }
 0x136   : > { %1807 = vmatpush.msrb.mxu3 %v4224_v19  ;;  %1611 = vmatpush.msrb.mxu2 %v4200_v20 }
 0x137   : > { %1029 = vmatmul.f32.gmra.mxu2 %v5434_v49  ;;  %v905_v62 = vrot.slane %v5434_v49, 7  ;;  %v1089_v63 = vrot.slane %v5434_v49, 1  ;;  %1480 = vmatpush.msra.mxu1 %v4152_v29 }
 0x139   : > { %v5463_v3 = vsel %vm8587_vm3, %v903_v27, %v905_v62  ;;  %v5466_v4 = vsel %vm623_vm1, %v1087_v28, %v1089_v63  ;;  %v4178_v27 = vld [vmem:[%s8550_s5 + $0x3a8] sm:$0xff]  ;;  %v475_v28 = vadd.s32 48, %v5244_v21  ;;  %1481 = vmatpush.msra.mxu1 %v4151_v40  ;;  %v4223_v40 = vld [vmem:[%s8552_s7 + $0xd8] sm:$0xff] }
 0x13a   : > { %v815_v10 = vpop.f32.mrf.mxu3  ;;  %4057 = vmatmul.msk.f32.gmra.mxu3 %vm8578_vm11, %v5463_v3  ;;  %4080 = vmatmul.msk.f32.gmra.mxu1 %vm1119_vm12, %v5466_v4 }
 0x13b   : > { %v816_v12 = vadd.f32 %v815_v10, %v5257_v25  ;;  %4104 = vmatmul.msk.f32.gmra.mxu0 %vm8610_vm9, %v5463_v3  ;;  %v5538_v54 = vand.u32 7, %v475_v28  ;;  %1482 = vmatpush.msra.mxu1 %v4150_v59 }
 0x13c   : > { %1544 = vmatpush.msra.mxu0 %v4178_v27  ;;  %1808 = vmatpush.msrb.mxu3 %v4223_v40 }
 0x13d   : > { %v5498_v23 = vmax.f32 %v816_v12, 0.0  ;;  %v5500_v26 = vpop.f32.mrf.mxu0  ;;  %vm8563_vm15 = vcmp.ge.s32.totalorder %v5538_v54, 1  ;;  %v476_v12 = vadd.s32 56, %v5244_v21  ;;  %1483 = vmatpush.msra.mxu1 %v4149_v1  ;;  %v4174_v21 = vld [vmem:[%s8550_s5 + $0x388] sm:$0xff] }
 0x13e   : > { %1545 = vmatpush.msra.mxu0 %v4177_v46  ;;  %v4199_v46 = vld [vmem:[%s8550_s5 + $0x450] sm:$0xff]  ;;  %1809 = vmatpush.msrb.mxu3 %v4222_v47 }
 0x13f   : > { %1032 = vmatmul.f32.gmra.mxu2 %v5498_v23  ;;  %v907_v30 = vrot.slane %v5498_v23, 7  ;;  %v1091_v37 = vrot.slane %v5498_v23, 1  ;;  %v5603_v38 = vand.u32 7, %v476_v12  ;;  %v4218_v47 = vld [vmem:[%s8552_s7 + $0xb0] sm:$0xff] }
 0x140   : > { %1612 = vmatpush.msrb.mxu2 %v4199_v46  ;;  %v4195_v46 = vld [vmem:[%s8550_s5 + $0x430] sm:$0xff] }
 0x141   : > { %v5521_v43 = vsel %vm8587_vm3, %v905_v62, %v907_v30  ;;  %v5524_v44 = vsel %vm623_vm1, %v1089_v63, %v1091_v37  ;;  %v4176_v63 = vld [vmem:[%s8550_s5 + $0x398] sm:$0xff]  ;;  %vm8584_vm2 = vcmp.ge.s32.totalorder %v5603_v38, 1 }
 0x142   : > { %v818_v53 = vpop.f32.mrf.mxu3  ;;  %4058 = vmatmul.msk.f32.gmra.mxu3 %vm8562_vm13, %v5521_v43  ;;  %4081 = vmatmul.msk.f32.gmra.mxu1 %vm1120_vm14, %v5524_v44 }
 0x143   : > { %v819_v62 = vadd.f32 %v818_v53, %v5257_v25  ;;  %4105 = vmatmul.msk.f32.gmra.mxu0 %vm8578_vm11, %v5521_v43 }
 0x144   : > { %1546 = vmatpush.msra.mxu0 %v4176_v63  ;;  %v4198_v63 = vld [vmem:[%s8550_s5 + $0x448] sm:$0xff] }
 0x145   : > { %v5559_v2 = vmax.f32 %v819_v62, 0.0  ;;  %v5561_v5 = vpop.f32.mrf.mxu0  ;;  %1613 = vmatpush.msrb.mxu2 %v4198_v63  ;;  %v4194_v63 = vld [vmem:[%s8550_s5 + $0x428] sm:$0xff] }
 0x146   : > { %1547 = vmatpush.msra.mxu0 %v4175_v9 }
 0x147   : > { %1035 = vmatmul.f32.gmra.mxu2 %v5559_v2  ;;  %v909_v10 = vrot.slane %v5559_v2, 7  ;;  %v1093_v11 = vrot.slane %v5559_v2, 1 }
 0x148   : > { %1548 = vmatpush.msra.mxu0 %v4174_v21 }
 0x149   : > { %v5582_v27 = vsel %vm8587_vm3, %v907_v30, %v909_v10  ;;  %v5585_v28 = vsel %vm623_vm1, %v1091_v37, %v1093_v11  ;;  %v4173_v30 = vld [vmem:[%s8550_s5 + $0x380] sm:$0xff] }
 0x14a   : > { %v821_v29 = vpop.f32.mrf.mxu3  ;;  %4059 = vmatmul.msk.f32.gmra.mxu3 %vm8563_vm15, %v5582_v27  ;;  %4082 = vmatmul.msk.f32.gmra.mxu1 %vm1121_vm0, %v5585_v28 }
 0x14b   : > { %v822_v37 = vadd.f32 %v821_v29, %v5257_v25  ;;  %4106 = vmatmul.msk.f32.gmra.mxu0 %vm8562_vm13, %v5582_v27  ;;  %vm8580_vm13 = vcmp.lt.s32.totalorder %v5538_v54, 7  ;;  %v4196_v29 = vld [vmem:[%s8550_s5 + $0x438] sm:$0xff] }
 0x14c   : > { %1549 = vmatpush.msra.mxu0 %v4173_v30  ;;  %v5661_v30 = vperm.slane %v5254_v24, 2  ;;  %v4219_v24 = vld [vmem:[%s8552_s7 + $0xb8] sm:$0xff] }
 0x14d   : > { %v5614_v53 = vmax.f32 %v822_v37, 0.0  ;;  %v5616_v59 = vpop.f32.mrf.mxu0 }
 0x14f   : > { %1038 = vmatmul.f32.gmra.mxu2 %v5614_v53  ;;  %v911_v60 = vrot.slane %v5614_v53, 7  ;;  %v1095_v62 = vrot.slane %v5614_v53, 1 }
 0x151   : > { %v5627_v0 = vsel %vm8587_vm3, %v909_v10, %v911_v60  ;;  %v5630_v1 = vsel %vm623_vm1, %v1093_v11, %v1095_v62  ;;  %v4221_v10 = vld [vmem:[%s8552_s7 + $0xc8] sm:$0xff]  ;;  %v4197_v11 = vld [vmem:[%s8550_s5 + $0x440] sm:$0xff] }
 0x152   : > { %v824_v9 = vpop.f32.mrf.mxu3  ;;  %4060 = vmatmul.msk.f32.gmra.mxu3 %vm8584_vm2, %v5627_v0  ;;  %4083 = vmatmul.msk.f32.gmra.mxu1 %vm8580_vm13, %v5630_v1 }
 0x153   : > { %v825_v12 = vadd.f32 %v824_v9, %v5257_v25  ;;  %4107 = vmatmul.msk.f32.gmra.mxu0 %vm8563_vm15, %v5627_v0  ;;  %1810 = vmatpush.msrb.mxu3 %v4221_v10  ;;  %vm8577_vm15 = vcmp.lt.s32.totalorder %v5603_v38, 7 }
 0x154   : > { %1614 = vmatpush.msrb.mxu2 %v4197_v11  ;;  %v4217_v11 = vld [vmem:[%s8552_s7 + $0xa8] sm:$0xff] }
 0x155   : > { %v5651_v19 = vmax.f32 %v825_v12, 0.0  ;;  %v859_v25 = vpop.f32.mrf.mxu0  ;;  %1811 = vmatpush.msrb.mxu3 %v4220_v16  ;;  %v1762_v16 = vld [vmem:[%s8552_s7 + $0x78] sm:$0xff] }
 0x156   : > { %1615 = vmatpush.msrb.mxu2 %v4196_v29  ;;  %v860_v40 = vadd.f32 %v859_v25, %v5661_v30  ;;  %v4255_v25 = vld [vmem:[%s8552_s7 + $0x178] sm:$0xff]  ;;  %1845 = vmatpush.msrb.mxu1 %v1762_v16  ;;  %v4254_v29 = vld [vmem:[%s8552_s7 + $0x170] sm:$0xff]  ;;  %v1759_v16 = vld [vmem:[%s8552_s7 + $0x60] sm:$0xff] }
 0x157   : > { %1332 = vmatmul.f32.vlgmr.msra.gmra.mxu2 %v5277_v35  ;;  %v1097_v20 = vrot.slane %v5651_v19, 1  ;;  %v1222_v21 = vrot.slane %v5651_v19, 7  ;;  %1812 = vmatpush.msrb.mxu3 %v4219_v24 }
 0x158   : > { %1616 = vmatpush.msrb.mxu2 %v4195_v46  ;;  %1903 = vmatpush.msrb.mxu0 %v4255_v25  ;;  %v4216_v46 = vld [vmem:[%s8552_s7 + $0xa0] sm:$0xff] }
 0x159   : > { %v5666_v37 = vsel %vm623_vm1, %v1095_v62, %v1097_v20  ;;  %v5671_v35 = vsel %vm8587_vm3, %v911_v60, %v1222_v21  ;;  %1813 = vmatpush.msrb.mxu3 %v4218_v47  ;;  %v4252_v25 = vld [vmem:[%s8552_s7 + $0x160] sm:$0xff] }
 0x15a   : > { %4084 = vmatmul.msk.f32.gmra.mxu1 %vm8577_vm15, %v5666_v37  ;;  %4141 = vmatmul.msk.f32.vlgmr.msra.gmra.mxu3 %vm8574_vm5, %v5350_v8  ;;  %v5692_v8 = vmax.f32 %v860_v40, 0.0 }
 0x15b   : > { %4108 = vmatmul.msk.f32.gmra.mxu0 %vm8584_vm2, %v5671_v35  ;;  %1617 = vmatpush.msrb.mxu2 %v4194_v63  ;;  %v4192_v63 = vld [vmem:[%s8550_s5 + $0x418] sm:$0xff] }
 0x15c   : > { %v8566_v12 = vrot.slane %v5692_v8, 6  ;;  %1814 = vmatpush.msrb.mxu3 %v4217_v11  ;;  %1904 = vmatpush.msrb.mxu0 %v4254_v29 }
 0x15d   : > { %v862_v60 = vpop.f32.mrf.mxu0 }
 0x15e   : > { %v863_v62 = vadd.f32 %v862_v60, %v5661_v30  ;;  %1815 = vmatpush.msrb.mxu3 %v4216_v46  ;;  %v1760_v60 = vld [vmem:[%s8552_s7 + $0x68] sm:$0xff]  ;;  %v1758_v46 = vld [vmem:[%s8552_s7 + $0x58] sm:$0xff] }
 0x15f   : > { %1335 = vmatmul.f32.gmra.mxu2 %v5317_v58 }
 0x160   : > { %v5699_v9 = vmax.f32 %v863_v62, 0.0  ;;  %v4253_v62 = vld [vmem:[%s8552_s7 + $0x168] sm:$0xff] }
 0x161   : > { %1905 = vmatpush.msrb.mxu0 %v4253_v62 }
 0x162   : > { %4142 = vmatmul.msk.f32.gmra.mxu3 %vm8564_vm8, %v5405_v36  ;;  %4165 = vmatmul.msk.f32.vlgmr.msra.gmra.mxu1 %vm8565_vm6, %v5347_v6  ;;  %v2182_v10 = vrot.slane %v5699_v9, 6  ;;  %vm1682_vm8 = vcmask 1041408   ;;  %v4193_v6 = vld [vmem:[%s8550_s5 + $0x420] sm:$0xff]  ;;  %vm2047_vm6 = vcmask 1045504  }
 0x163   : > { %1550 = vmatmul.f32.vlgmr.msra.gmra.mxu0 %v5317_v58  ;;  %v1761_v58 = vld [vmem:[%s8552_s7 + $0x70] sm:$0xff]  ;;  %1618 = vmatpush.msrb.mxu2 %v4193_v6  ;;  %v5755_v6 = vpop.f32.mrf.mxu2 }
 0x164   : > { %v5731_v40 = vsel %vm1682_vm8, %v8566_v12, %v2182_v10  ;;  %1846 = vmatpush.msrb.mxu1 %v1761_v58  ;;  %8656 = vst [vmem:[#allocation16_spill] sm:$0xff] %v5755_v6  ;;  %v8568_v58 = vrot.slane %v5699_v9, 2  ;;  %1906 = vmatpush.msrb.mxu0 %v4252_v25  ;;  %v4214_v25 = vld [vmem:[%s8552_s7 + $0x90] sm:$0xff] }
 0x165   : > { %8654 = vst [vmem:[#allocation14_spill] sm:$0xff] %v5731_v40  ;;  %v865_v24 = vpop.f32.mrf.mxu0  ;;  %1619 = vmatpush.msrb.mxu2 %v4192_v63 }
 0x166   : > { %v866_v47 = vadd.f32 %v865_v24, %v5661_v30  ;;  %1847 = vmatpush.msrb.mxu1 %v1760_v60  ;;  %v4215_v24 = vld [vmem:[%s8552_s7 + $0x98] sm:$0xff]  ;;  %v1757_v60 = vld [vmem:[%s8552_s7 + $0x50] sm:$0xff] }
 0x167   : > { %1338 = vmatmul.f32.gmra.mxu2 %v5376_v17  ;;  %1816 = vmatpush.msrb.mxu3 %v4215_v24 }
 0x168   : > { %v5747_v11 = vmax.f32 %v866_v47, 0.0  ;;  %1848 = vmatpush.msrb.mxu1 %v1759_v16  ;;  %v4251_v47 = vld [vmem:[%s8552_s7 + $0x158] sm:$0xff]  ;;  %v4250_v16 = vld [vmem:[%s8552_s7 + $0x150] sm:$0xff] }
 0x169   : > { %1907 = vmatpush.msrb.mxu0 %v4251_v47  ;;  %1817 = vmatpush.msrb.mxu3 %v4214_v25  ;;  %v4249_v47 = vld [vmem:[%s8552_s7 + $0x148] sm:$0xff]  ;;  %v4247_v25 = vld [vmem:[%s8552_s7 + $0x138] sm:$0xff] }
 0x16a   : > { %8655 = vst [vmem:[#allocation15_spill] sm:$0xff] %v5747_v11  ;;  %4143 = vmatmul.msk.f32.gmra.mxu3 %vm8596_vm10, %v5466_v4  ;;  %4166 = vmatmul.msk.f32.gmra.mxu1 %vm8567_vm4, %v5402_v31  ;;  %v2478_v29 = vrot.slane %v5747_v11, 2  ;;  %v2555_v31 = vrot.slane %v5747_v11, 6  ;;  %vm8664_vm4 = vcmp.ge.s32.totalorder %v5487_v14, 1 }
 0x16b   : > { %1553 = vmatmul.f32.gmra.mxu0 %v5376_v17  ;;  %v4191_v17 = vld [vmem:[%s8550_s5 + $0x410] sm:$0xff]  ;;  %1849 = vmatpush.msrb.mxu1 %v1758_v46  ;;  %v4190_v46 = vld [vmem:[%s8550_s5 + $0x408] sm:$0xff] }
 0x16c   : > { %v5785_v62 = vsel %vm2047_vm6, %v8568_v58, %v2478_v29  ;;  %v5788_v63 = vsel %vm2047_vm6, %v2478_v29, 0.0  ;;  %1620 = vmatpush.msrb.mxu2 %v4191_v17  ;;  %v5797_v24 = vsel %vm1682_vm8, %v2182_v10, %v2555_v31  ;;  %v5800_v12 = vsel %vm1682_vm8, %v2555_v31, 0.0  ;;  %v1756_v29 = vld [vmem:[%s8552_s7 + $0x48] sm:$0xff]  ;;  %1908 = vmatpush.msrb.mxu0 %v4250_v16  ;;  %v1755_v10 = vld [vmem:[%s8552_s7 + $0x40] sm:$0xff]  ;;  %v5831_v16 = vpop.f32.mrf.mxu2 }
 0x16d   : > { %8657 = vst [vmem:[#allocation17_spill] sm:$0xff] %v5785_v62  ;;  %1850 = vmatpush.msrb.mxu1 %v1757_v60  ;;  %v4248_v31 = vld [vmem:[%s8552_s7 + $0x140] sm:$0xff]  ;;  %v4213_v17 = vld [vmem:[%s8552_s7 + $0x88] sm:$0xff]  ;;  %v1754_v60 = vld [vmem:[%s8552_s7 + $0x38] sm:$0xff] }
 0x16e   : > { %8658 = vst [vmem:[#allocation18_spill] sm:$0xff] %v5788_v63  ;;  %1621 = vmatpush.msrb.mxu2 %v4190_v46  ;;  %1909 = vmatpush.msrb.mxu0 %v4249_v47  ;;  %v1752_v46 = vld [vmem:[%s8552_s7 + $0x28] sm:$0xff]  ;;  %v1751_v47 = vld [vmem:[%s8552_s7 + $0x20] sm:$0xff] }
 0x16f   : > { %8659 = vst [vmem:[#allocation19_spill] sm:$0xff] %v5797_v24  ;;  %1341 = vmatmul.f32.gmra.mxu2 %v5434_v49  ;;  %1851 = vmatpush.msrb.mxu1 %v1756_v29  ;;  %v4212_v29 = vld [vmem:[%s8552_s7 + $0x80] sm:$0xff]  ;;  %v4427_v24 = vld [vmem:[%s8552_s7 + $0x578] sm:$0xff] }
 0x170   : > { %8660 = vst [vmem:[#allocation20_spill] sm:$0xff] %v5800_v12  ;;  %1818 = vmatpush.msrb.mxu3 %v4213_v17  ;;  %1910 = vmatpush.msrb.mxu0 %v4248_v31  ;;  %v4246_v31 = vld [vmem:[%s8552_s7 + $0x130] sm:$0xff]  ;;  %v4245_v17 = vld [vmem:[%s8552_s7 + $0x128] sm:$0xff] }
 0x171   : > { %1852 = vmatpush.msrb.mxu1 %v1755_v10  ;;  %8661 = vst [vmem:[#allocation21_spill] sm:$0xff] %v5831_v16  ;;  %v4271_v10 = vld [vmem:[%s8552_s7 + $0x1f8] sm:$0xff] }
 0x172   : > { %4144 = vmatmul.msk.f32.gmra.mxu3 %vm1119_vm12, %v5524_v44  ;;  %4167 = vmatmul.msk.f32.gmra.mxu1 %vm8605_vm7, %v5463_v3  ;;  %v1753_v3 = vld [vmem:[%s8552_s7 + $0x30] sm:$0xff] }
 0x173   : > { %1556 = vmatmul.f32.gmra.mxu0 %v5434_v49  ;;  %v4189_v49 = vld [vmem:[%s8550_s5 + $0x400] sm:$0xff]  ;;  %1853 = vmatpush.msrb.mxu1 %v1754_v60  ;;  %v4294_v60 = vld [vmem:[%s8552_s7 + $0x278] sm:$0xff] }
 0x174   : > { %1622 = vmatpush.msrb.mxu2 %v4189_v49  ;;  %1819 = vmatpush.msrb.mxu3 %v4212_v29  ;;  %v1750_v49 = vld [vmem:[%s8552_s7 + $0x18] sm:$0xff]  ;;  %v5886_v29 = vpop.f32.mrf.mxu2 }
 0x175   : > { %1854 = vmatpush.msrb.mxu1 %v1753_v3  ;;  %1911 = vmatpush.msrb.mxu0 %v4247_v25  ;;  %v4244_v3 = vld [vmem:[%s8552_s7 + $0x120] sm:$0xff]  ;;  %v4293_v25 = vld [vmem:[%s8552_s7 + $0x270] sm:$0xff]  ;;  %8662 = vst [vmem:[#allocation22_spill] sm:$0xff] %v5886_v29 }
 0x176   : > { %1998 = vmatpush.msra.mxu2 %v4271_v10  ;;  %2133 = vmatpush.msra.mxu3 %v4294_v60  ;;  %v4243_v10 = vld [vmem:[%s8552_s7 + $0x118] sm:$0xff]  ;;  %v4292_v60 = vld [vmem:[%s8552_s7 + $0x268] sm:$0xff] }
 0x177   : > { %1344 = vmatmul.f32.gmra.mxu2 %v5498_v23  ;;  %1855 = vmatpush.msrb.mxu1 %v1752_v46  ;;  %v1748_v46 = vld [vmem:[%s8552_s7 + $0x8] sm:$0xff] }
 0x178   : > { %1912 = vmatpush.msrb.mxu0 %v4246_v31  ;;  %2134 = vmatpush.msra.mxu3 %v4293_v25  ;;  %v4269_v31 = vld [vmem:[%s8552_s7 + $0x1e8] sm:$0xff]  ;;  %v4290_v25 = vld [vmem:[%s8552_s7 + $0x258] sm:$0xff] }
 0x179   : > { %1856 = vmatpush.msrb.mxu1 %v1751_v47  ;;  %v1747_v47 = vld [vmem:[%s8552_s7] sm:$0xff] }
 0x17a   : > { %4145 = vmatmul.msk.f32.gmra.mxu3 %vm1120_vm14, %v5585_v28  ;;  %4168 = vmatmul.msk.f32.gmra.mxu1 %vm8610_vm9, %v5521_v43  ;;  %v4270_v43 = vld [vmem:[%s8552_s7 + $0x1f0] sm:$0xff] }
 0x17b   : > { %1559 = vmatmul.f32.gmra.mxu0 %v5498_v23  ;;  %v1749_v23 = vld [vmem:[%s8552_s7 + $0x10] sm:$0xff]  ;;  %1857 = vmatpush.msrb.mxu1 %v1750_v49  ;;  %v4268_v49 = vld [vmem:[%s8552_s7 + $0x1e0] sm:$0xff] }
 0x17c   : > { %1999 = vmatpush.msra.mxu2 %v4270_v43  ;;  %1913 = vmatpush.msrb.mxu0 %v4245_v17  ;;  %v4242_v17 = vld [vmem:[%s8552_s7 + $0x110] sm:$0xff]  ;;  %v5924_v43 = vpop.f32.mrf.mxu2 }
 0x17d   : > { %1858 = vmatpush.msrb.mxu1 %v1749_v23  ;;  %2135 = vmatpush.msra.mxu3 %v4292_v60  ;;  %8663 = vst [vmem:[#allocation23_spill] sm:$0xff] %v5924_v43  ;;  %v4240_v23 = vld [vmem:[%s8552_s7 + $0x100] sm:$0xff]  ;;  %v1442_v60 = vsel %vm8587_vm3, %v1222_v21, 0.0  ;;  %v845_v21 = vadd.f32 %v5378_v18, %v5661_v30  ;;  %v4261_v18 = vld [vmem:[%s8552_s7 + $0x1a8] sm:$0xff] }
 0x17e   : > { %1914 = vmatpush.msrb.mxu0 %v4244_v3  ;;  %2000 = vmatpush.msra.mxu2 %v4269_v31  ;;  %v4267_v3 = vld [vmem:[%s8552_s7 + $0x1d8] sm:$0xff]  ;;  %v4264_v31 = vld [vmem:[%s8552_s7 + $0x1c0] sm:$0xff] }
 0x17f   : > { %1347 = vmatmul.f32.gmra.mxu2 %v5559_v2  ;;  %1859 = vmatpush.msrb.mxu1 %v1748_v46  ;;  %v4266_v46 = vld [vmem:[%s8552_s7 + $0x1d0] sm:$0xff] }
 0x180   : > { %1915 = vmatpush.msrb.mxu0 %v4243_v10  ;;  %2001 = vmatpush.msra.mxu2 %v4268_v49  ;;  %v5954_v10 = vsel %vm623_vm1, %v1097_v20, 0.0  ;;  %v4288_v20 = vld [vmem:[%s8552_s7 + $0x248] sm:$0xff]  ;;  %v4263_v49 = vld [vmem:[%s8552_s7 + $0x1b8] sm:$0xff] }
 0x181   : > { %1860 = vmatpush.msrb.mxu1 %v1747_v47  ;;  %v4265_v47 = vld [vmem:[%s8552_s7 + $0x1c8] sm:$0xff] }
 0x182   : > { %4146 = vmatmul.msk.f32.gmra.mxu3 %vm1121_vm0, %v5630_v1  ;;  %4169 = vmatmul.msk.f32.gmra.mxu1 %vm8578_vm11, %v5582_v27  ;;  %v4241_v27 = vld [vmem:[%s8552_s7 + $0x108] sm:$0xff] }
 0x183   : > { %1562 = vmatmul.f32.gmra.mxu0 %v5559_v2  ;;  %v4291_v2 = vld [vmem:[%s8552_s7 + $0x260] sm:$0xff]  ;;  %2002 = vmatpush.msra.mxu2 %v4267_v3 }
 0x184   : > { %1916 = vmatpush.msrb.mxu0 %v4242_v17  ;;  %2136 = vmatpush.msra.mxu3 %v4291_v2  ;;  %v4285_v2 = vld [vmem:[%s8552_s7 + $0x230] sm:$0xff] }
 0x185   : > { %2003 = vmatpush.msra.mxu2 %v4266_v46 }
 0x186   : > { %1917 = vmatpush.msrb.mxu0 %v4241_v27  ;;  %2137 = vmatpush.msra.mxu3 %v4290_v25  ;;  %v5998_v27 = vpop.f32.mrf.mxu3  ;;  %v6010_v25 = vmax.f32 %v845_v21, 0.0 }
 0x187   : > { %1350 = vmatmul.f32.gmra.mxu2 %v5614_v53 }
 0x188   : > { %1918 = vmatpush.msrb.mxu0 %v4240_v23  ;;  %2004 = vmatpush.msra.mxu2 %v4265_v47  ;;  %v4340_v47 = vld [vmem:[%s8552_s7 + $0x378] sm:$0xff]  ;;  %v1683_v58 = vrot.slane %v6010_v25, 6  ;;  %v2048_v12 = vrot.slane %v6010_v25, 2 }
 0x18a   : > { %4147 = vmatmul.msk.f32.gmra.mxu3 %vm8580_vm13, %v5666_v37  ;;  %4170 = vmatmul.msk.f32.gmra.mxu1 %vm8664_vm4, %v5627_v0  ;;  %v4289_v0 = vld [vmem:[%s8552_s7 + $0x250] sm:$0xff]  ;;  %vm8666_vm4 = vcmp.ge.s32.totalorder %v5538_v54, 1 }
 0x18b   : > { %1565 = vmatmul.f32.gmra.mxu0 %v5614_v53  ;;  %2138 = vmatpush.msra.mxu3 %v4289_v0  ;;  %v5949_v53 = vpop.f32.mrf.mxu2  ;;  %v4317_v0 = vld [vmem:[%s8552_s7 + $0x2f8] sm:$0xff] }
 0x18c   : > { %8665 = vst [vmem:[#allocation24_spill] sm:$0xff] %v5949_v53  ;;  %2005 = vmatpush.msra.mxu2 %v4264_v31  ;;  %2209 = vmatpush.msra.mxu1 %v4317_v0  ;;  %v848_v31 = vadd.f32 %v5436_v52, %v5661_v30  ;;  %v4283_v52 = vld [vmem:[%s8552_s7 + $0x220] sm:$0xff] }
 0x18d   : > { %2139 = vmatpush.msra.mxu3 %v4288_v20  ;;  %v4260_v20 = vld [vmem:[%s8552_s7 + $0x1a0] sm:$0xff]  ;;  %2285 = vmatpush.msra.mxu0 %v4340_v47 }
 0x18e   : > { %2006 = vmatpush.msra.mxu2 %v4263_v49  ;;  %v4316_v49 = vld [vmem:[%s8552_s7 + $0x2f0] sm:$0xff]  ;;  %v4337_v47 = vld [vmem:[%s8552_s7 + $0x360] sm:$0xff] }
 0x18f   : > { %1353 = vmatmul.f32.gmra.mxu2 %v5651_v19  ;;  %2210 = vmatpush.msra.mxu1 %v4316_v49  ;;  %v4313_v49 = vld [vmem:[%s8552_s7 + $0x2d8] sm:$0xff] }
 0x192   : > { %4148 = vmatmul.msk.f32.gmra.mxu3 %vm8577_vm15, %v5954_v10  ;;  %4171 = vmatmul.msk.f32.gmra.mxu1 %vm8666_vm4, %v5671_v35  ;;  %v4287_v35 = vld [vmem:[%s8552_s7 + $0x240] sm:$0xff]  ;;  %vm8667_vm4 = vcmp.lt.s32.totalorder %v5270_v32, 7  ;;  %vm1705_vm15 = vcmp.ge.s32.totalorder %v5419_v41, 2 }
 0x193   : > { %1568 = vmatmul.f32.gmra.mxu0 %v5651_v19  ;;  %2140 = vmatpush.msra.mxu3 %v4287_v35  ;;  %v5978_v17 = vpop.f32.mrf.mxu2  ;;  %v4262_v19 = vld [vmem:[%s8552_s7 + $0x1b0] sm:$0xff] }
 0x194   : > { %2007 = vmatpush.msra.mxu2 %v4262_v19 }
 0x196   : > { %2008 = vmatpush.msra.mxu2 %v4261_v18 }
 0x197   : > { %4205 = vmatmul.msk.f32.vlgmr.msrb.gmra.mxu2 %vm8574_vm5, %v5405_v36  ;;  %v4286_v36 = vld [vmem:[%s8552_s7 + $0x238] sm:$0xff]  ;;  %vm1704_vm5 = vcmp.ge.s32.totalorder %v5368_v13, 2 }
 0x198   : > { %2141 = vmatpush.msra.mxu3 %v4286_v36  ;;  %2009 = vmatpush.msra.mxu2 %v4260_v20  ;;  %v4339_v36 = vld [vmem:[%s8552_s7 + $0x370] sm:$0xff] }
 0x199   : > { %2286 = vmatpush.msra.mxu0 %v4339_v36  ;;  %v4336_v36 = vld [vmem:[%s8552_s7 + $0x358] sm:$0xff] }
 0x19a   : > { %4172 = vmatmul.msk.f32.gmra.mxu1 %vm8584_vm2, %v1442_v60  ;;  %1820 = vmatmul.f32.vlgmr.msrb.gmra.mxu3 %v8569_v57  ;;  %v1763_v60 = vrot.slane %v6010_v25, 7 }
 0x19b   : > { %1571 = vmatmul.f32.gmra.mxu0 %v8569_v57  ;;  %2142 = vmatpush.msra.mxu3 %v4285_v2  ;;  %v4315_v2 = vld [vmem:[%s8552_s7 + $0x2e8] sm:$0xff] }
 0x19c   : > { %2211 = vmatpush.msra.mxu1 %v4315_v2  ;;  %v6060_v0 = vsel %vm8587_vm3, 0.0, %v1763_v60  ;;  %v851_v2 = vadd.f32 %v5500_v26, %v5661_v30  ;;  %v4281_v26 = vld [vmem:[%s8552_s7 + $0x210] sm:$0xff] }
 0x19d   : > { %8669 = vst [vmem:[#allocation26_spill] sm:$0xff] %v6060_v0 }
 0x19f   : > { %v6003_v23 = vpop.f32.mrf.mxu1  ;;  %4206 = vmatmul.msk.f32.gmra.mxu2 %vm8667_vm4, %v5466_v4  ;;  %v4284_v4 = vld [vmem:[%s8552_s7 + $0x228] sm:$0xff]  ;;  %vm1703_vm4 = vcmp.ge.s32.totalorder %v5304_v50, 2 }
 0x1a0   : > { %v6008_v3 = vpop.f32.mrf.mxu0  ;;  %2143 = vmatpush.msra.mxu3 %v4284_v4  ;;  %v6057_v4 = vmax.f32 %v848_v31, 0.0  ;;  %v4259_v31 = vld [vmem:[%s8552_s7 + $0x198] sm:$0xff] }
 0x1a1   : > { %2010 = vmatpush.msra.mxu2 %v4259_v31 }
 0x1a2   : > { %v1021_v46 = vpop.f32.mrf.mxu2  ;;  %1823 = vmatmul.f32.gmra.mxu3 %v8569_v57  ;;  %1861 = vmatmul.f32.vlgmr.msrb.gmra.mxu1 %v8569_v57  ;;  %8668 = vst [vmem:[#allocation25_spill] sm:$0xff] %v6057_v4  ;;  %v1764_v31 = vrot.slane %v6057_v4, 7  ;;  %v1684_v43 = vrot.slane %v6057_v4, 6  ;;  %v2049_v62 = vrot.slane %v6057_v4, 2 }
 0x1a3   : > { %1919 = vmatmul.f32.vlgmr.msrb.gmra.mxu0 %v8569_v57  ;;  %2144 = vmatpush.msra.mxu3 %v4283_v52  ;;  %v4258_v52 = vld [vmem:[%s8552_s7 + $0x190] sm:$0xff] }
 0x1a4   : > { %2011 = vmatpush.msra.mxu2 %v4258_v52  ;;  %v6120_v52 = vsel %vm1682_vm8, 0.0, %v1683_v58 }
 0x1a5   : > { %v1062_v35 = vpop.f32.mrf.mxu3  ;;  %8671 = vst [vmem:[#allocation28_spill] sm:$0xff] %v6120_v52 }
 0x1a6   : > { %v6039_v19 = vadd.f32 %v1062_v35, %v1021_v46  ;;  %v4338_v46 = vld [vmem:[%s8552_s7 + $0x368] sm:$0xff]  ;;  %v4282_v35 = vld [vmem:[%s8552_s7 + $0x218] sm:$0xff] }
 0x1a7   : > { %v6044_v21 = vpop.f32.mrf.mxu1  ;;  %4207 = vmatmul.msk.f32.gmra.mxu2 %vm8596_vm10, %v5524_v44  ;;  %2287 = vmatpush.msra.mxu0 %v4338_v46  ;;  %v4314_v44 = vld [vmem:[%s8552_s7 + $0x2e0] sm:$0xff] }
 0x1a8   : > { %v6055_v18 = vpop.f32.mrf.mxu0  ;;  %2212 = vmatpush.msra.mxu1 %v4314_v44  ;;  %2145 = vmatpush.msra.mxu3 %v4282_v35  ;;  %v4335_v44 = vld [vmem:[%s8552_s7 + $0x350] sm:$0xff] }
 0x1a9   : > { %2288 = vmatpush.msra.mxu0 %v4337_v47 }
 0x1aa   : > { %v1024_v20 = vpop.f32.mrf.mxu2  ;;  %4228 = vmatmul.msk.f32.gmra.mxu3 %vm8605_vm7, %v6060_v0  ;;  %1864 = vmatmul.f32.gmra.mxu1 %v8569_v57 }
 0x1ab   : > { %1922 = vmatmul.f32.gmra.mxu0 %v8569_v57  ;;  %v4312_v57 = vld [vmem:[%s8552_s7 + $0x2d0] sm:$0xff]  ;;  %2213 = vmatpush.msra.mxu1 %v4313_v49  ;;  %v6114_v49 = vmax.f32 %v851_v2, 0.0  ;;  %v4333_v2 = vld [vmem:[%s8552_s7 + $0x340] sm:$0xff] }
 0x1ac   : > { %2289 = vmatpush.msra.mxu0 %v4336_v36  ;;  %2146 = vmatpush.msra.mxu3 %v4281_v26  ;;  %v6117_v36 = vsel %vm8587_vm3, %v1763_v60, %v1764_v31  ;;  %v4310_v60 = vld [vmem:[%s8552_s7 + $0x2c0] sm:$0xff]  ;;  %v4309_v26 = vld [vmem:[%s8552_s7 + $0x2b8] sm:$0xff] }
 0x1ad   : > { %v1065_v46 = vpop.f32.mrf.mxu3  ;;  %2214 = vmatpush.msra.mxu1 %v4312_v57  ;;  %8670 = vst [vmem:[#allocation27_spill] sm:$0xff] %v6117_v36  ;;  %v4257_v57 = vld [vmem:[%s8552_s7 + $0x188] sm:$0xff]  ;;  %v1766_v61 = vrot.slane %v6114_v49, 7  ;;  %v1686_v16 = vrot.slane %v6114_v49, 6 }
 0x1ae   : > { %v6098_v47 = vadd.f32 %v1065_v46, %v1024_v20  ;;  %2290 = vmatpush.msra.mxu0 %v4335_v44  ;;  %v4311_v20 = vld [vmem:[%s8552_s7 + $0x2c8] sm:$0xff]  ;;  %2012 = vmatpush.msra.mxu2 %v4257_v57 }
 0x1af   : > { %v6103_v15 = vpop.f32.mrf.mxu1  ;;  %4208 = vmatmul.msk.f32.gmra.mxu2 %vm1119_vm12, %v5585_v28  ;;  %v4334_v28 = vld [vmem:[%s8552_s7 + $0x348] sm:$0xff]  ;;  %2215 = vmatpush.msra.mxu1 %v4311_v20  ;;  %v854_v20 = vadd.f32 %v5561_v5, %v5661_v30  ;;  %v4279_v5 = vld [vmem:[%s8552_s7 + $0x200] sm:$0xff] }
 0x1b0   : > { %v6109_v35 = vpop.f32.mrf.mxu0  ;;  %v4280_v44 = vld [vmem:[%s8552_s7 + $0x208] sm:$0xff]  ;;  %2291 = vmatpush.msra.mxu0 %v4334_v28  ;;  %v4332_v28 = vld [vmem:[%s8552_s7 + $0x338] sm:$0xff]  ;;  %2013 = vmatpush.msra.mxu2 %v4256_v7 }
 0x1b1   : > { %2216 = vmatpush.msra.mxu1 %v4310_v60  ;;  %2147 = vmatpush.msra.mxu3 %v4280_v44  ;;  %v4307_v7 = vld [vmem:[%s8552_s7 + $0x2a8] sm:$0xff]  ;;  %v6179_v60 = vsel %vm8587_vm3, %v1764_v31, %v1766_v61  ;;  %v4363_v31 = vld [vmem:[%s8552_s7 + $0x3f8] sm:$0xff] }
 0x1b2   : > { %v1027_v46 = vpop.f32.mrf.mxu2  ;;  %4229 = vmatmul.msk.f32.gmra.mxu3 %vm8610_vm9, %v6117_v36  ;;  %4234 = vmatmul.msk.f32.gmra.mxu1 %vm1703_vm4, %v6120_v52  ;;  %8672 = vst [vmem:[#allocation29_spill] sm:$0xff] %v6179_v60 }
 0x1b3   : > { %1925 = vmatmul.f32.gmra.mxu0 %v6010_v25  ;;  %2217 = vmatpush.msra.mxu1 %v4309_v26  ;;  %v4379_v26 = vld [vmem:[%s8552_s7 + $0x478] sm:$0xff] }
 0x1b4   : > { %2292 = vmatpush.msra.mxu0 %v4333_v2  ;;  %2148 = vmatpush.msra.mxu3 %v4279_v5  ;;  %v6182_v2 = vsel %vm1682_vm8, %v1683_v58, %v1684_v43  ;;  %v4330_v58 = vld [vmem:[%s8552_s7 + $0x328] sm:$0xff]  ;;  %v857_v5 = vadd.f32 %v5616_v59, %v5661_v30  ;;  %v4378_v59 = vld [vmem:[%s8552_s7 + $0x470] sm:$0xff] }
 0x1b5   : > { %v1068_v53 = vpop.f32.mrf.mxu3  ;;  %8673 = vst [vmem:[#allocation30_spill] sm:$0xff] %v6182_v2  ;;  %2218 = vmatpush.msra.mxu1 %v4308_v56  ;;  %v4306_v56 = vld [vmem:[%s8552_s7 + $0x2a0] sm:$0xff]  ;;  %2351 = vmatpush.msrb.mxu2 %v4363_v31 }
 0x1b6   : > { %v6157_v57 = vadd.f32 %v1068_v53, %v1027_v46  ;;  %2293 = vmatpush.msra.mxu0 %v4332_v28  ;;  %v6176_v46 = vmax.f32 %v854_v20, 0.0  ;;  %v4305_v20 = vld [vmem:[%s8552_s7 + $0x298] sm:$0xff]  ;;  %v4362_v28 = vld [vmem:[%s8552_s7 + $0x3f0] sm:$0xff]  ;;  %2429 = vmatpush.msrb.mxu3 %v4379_v26 }
 0x1b7   : > { %v6165_v29 = vpop.f32.mrf.mxu1  ;;  %4209 = vmatmul.msk.f32.gmra.mxu2 %vm1120_vm14, %v5630_v1  ;;  %v4331_v1 = vld [vmem:[%s8552_s7 + $0x330] sm:$0xff]  ;;  %2219 = vmatpush.msra.mxu1 %v4307_v7 }
 0x1b8   : > { %v6171_v53 = vpop.f32.mrf.mxu0  ;;  %2294 = vmatpush.msra.mxu0 %v4331_v1  ;;  %v1768_v51 = vrot.slane %v6176_v46, 7  ;;  %v4329_v1 = vld [vmem:[%s8552_s7 + $0x320] sm:$0xff]  ;;  %2352 = vmatpush.msrb.mxu2 %v4362_v28  ;;  %v6244_v28 = vsel %vm1682_vm8, %v1684_v43, %v1686_v16  ;;  %v1688_v6 = vrot.slane %v6176_v46, 6 }
 0x1b9   : > { %2220 = vmatpush.msra.mxu1 %v4306_v56  ;;  %2430 = vmatpush.msrb.mxu3 %v4378_v59  ;;  %v4303_v56 = vld [vmem:[%s8552_s7 + $0x288] sm:$0xff]  ;;  %8674 = vst [vmem:[#allocation31_spill] sm:$0xff] %v6244_v28  ;;  %v4302_v43 = vld [vmem:[%s8552_s7 + $0x280] sm:$0xff] }
 0x1ba   : > { %v1030_v44 = vpop.f32.mrf.mxu2  ;;  %4230 = vmatmul.msk.f32.gmra.mxu3 %vm8578_vm11, %v6179_v60  ;;  %4235 = vmatmul.msk.f32.gmra.mxu1 %vm1704_vm5, %v6182_v2  ;;  %v6241_v26 = vsel %vm8587_vm3, %v1766_v61, %v1768_v51  ;;  %vm8675_vm11 = vcmp.ge.s32.totalorder %v5487_v14, 1  ;;  %v4361_v61 = vld [vmem:[%s8552_s7 + $0x3e8] sm:$0xff] }
 0x1bb   : > { %1928 = vmatmul.f32.gmra.mxu0 %v6057_v4  ;;  %2221 = vmatpush.msra.mxu1 %v4305_v20 }
 0x1bc   : > { %2295 = vmatpush.msra.mxu0 %v4330_v58  ;;  %v6238_v58 = vmax.f32 %v857_v5, 0.0  ;;  %v4377_v5 = vld [vmem:[%s8552_s7 + $0x468] sm:$0xff]  ;;  %2353 = vmatpush.msrb.mxu2 %v4361_v61 }
 0x1bd   : > { %v1071_v7 = vpop.f32.mrf.mxu3  ;;  %2222 = vmatpush.msra.mxu1 %v4304_v48  ;;  %v4327_v48 = vld [vmem:[%s8552_s7 + $0x310] sm:$0xff]  ;;  %2431 = vmatpush.msrb.mxu3 %v4377_v5 }
 0x1be   : > { %v6219_v31 = vadd.f32 %v1071_v7, %v1030_v44  ;;  %2296 = vmatpush.msra.mxu0 %v4329_v1  ;;  %v4360_v7 = vld [vmem:[%s8552_s7 + $0x3e0] sm:$0xff]  ;;  %v1770_v59 = vrot.slane %v6238_v58, 7 }
 0x1bf   : > { %v6227_v30 = vpop.f32.mrf.mxu1  ;;  %4210 = vmatmul.msk.f32.gmra.mxu2 %vm1121_vm0, %v5666_v37  ;;  %v4328_v37 = vld [vmem:[%s8552_s7 + $0x318] sm:$0xff]  ;;  %2223 = vmatpush.msra.mxu1 %v4303_v56 }
 0x1c0   : > { %v6233_v44 = vpop.f32.mrf.mxu0  ;;  %2297 = vmatpush.msra.mxu0 %v4328_v37  ;;  %2354 = vmatpush.msrb.mxu2 %v4360_v7  ;;  %v4376_v37 = vld [vmem:[%s8552_s7 + $0x460] sm:$0xff]  ;;  %v8582_v7 = vrot.slane %v5692_v8, 7 }
 0x1c1   : > { %2224 = vmatpush.msra.mxu1 %v4302_v43  ;;  %2432 = vmatpush.msrb.mxu3 %v4376_v37  ;;  %v6293_v43 = vsel %vm1682_vm8, %v1686_v16, %v1688_v6  ;;  %v4358_v16 = vld [vmem:[%s8552_s7 + $0x3d0] sm:$0xff] }
 0x1c2   : > { %v1033_v20 = vpop.f32.mrf.mxu2  ;;  %4231 = vmatmul.msk.f32.gmra.mxu3 %vm8675_vm11, %v6241_v26  ;;  %4236 = vmatmul.msk.f32.gmra.mxu1 %vm1705_vm15, %v6244_v28  ;;  %vm1706_vm11 = vcmp.ge.s32.totalorder %v5487_v14, 2  ;;  %8676 = vst [vmem:[#allocation32_spill] sm:$0xff] %v6293_v43 }
 0x1c3   : > { %1931 = vmatmul.f32.gmra.mxu0 %v6114_v49 }
 0x1c4   : > { %2298 = vmatpush.msra.mxu0 %v4327_v48  ;;  %v4325_v48 = vld [vmem:[%s8552_s7 + $0x300] sm:$0xff] }
 0x1c5   : > { %v1074_v1 = vpop.f32.mrf.mxu3 }
 0x1c6   : > { %v6276_v56 = vadd.f32 %v1074_v1, %v1033_v20  ;;  %2299 = vmatpush.msra.mxu0 %v4326_v45  ;;  %v6290_v20 = vsel %vm8587_vm3, %v1768_v51, %v1770_v59  ;;  %v4359_v45 = vld [vmem:[%s8552_s7 + $0x3d8] sm:$0xff]  ;;  %v1690_v1 = vrot.slane %v6238_v58, 6 }
 0x1c7   : > { %v6281_v61 = vpop.f32.mrf.mxu1  ;;  %4211 = vmatmul.msk.f32.gmra.mxu2 %vm8580_vm13, %v5954_v10  ;;  %vm8677_vm13 = vcmp.ge.s32.totalorder %v5538_v54, 1  ;;  %v4375_v51 = vld [vmem:[%s8552_s7 + $0x458] sm:$0xff] }
 0x1c8   : > { %v6287_v55 = vpop.f32.mrf.mxu0  ;;  %2355 = vmatpush.msrb.mxu2 %v4359_v45  ;;  %2300 = vmatpush.msra.mxu0 %v4325_v48  ;;  %v4374_v45 = vld [vmem:[%s8552_s7 + $0x450] sm:$0xff] }
 0x1c9   : > { %2433 = vmatpush.msrb.mxu3 %v4375_v51  ;;  %v6330_v51 = vsel %vm8587_vm3, %v1770_v59, %v8582_v7  ;;  %v1060_v59 = vadd.f32 %v5998_v27, %v5978_v17  ;;  %v4372_v17 = vld [vmem:[%s8552_s7 + $0x440] sm:$0xff]  ;;  %vm8593_vm3 = vcmp.lt.s32.totalorder %v5270_v32, 6 }
 0x1ca   : > { %v1036_v5 = vpop.f32.mrf.mxu2  ;;  %4232 = vmatmul.msk.f32.gmra.mxu3 %vm8677_vm13, %v6290_v20  ;;  %4237 = vmatmul.msk.f32.gmra.mxu1 %vm1706_vm11, %v6293_v43  ;;  %vm1707_vm13 = vcmp.ge.s32.totalorder %v5538_v54, 2 }
 0x1cb   : > { %1934 = vmatmul.f32.gmra.mxu0 %v6176_v46  ;;  %2356 = vmatpush.msrb.mxu2 %v4358_v16  ;;  %v1214_v7 = vadd.f32 %v6003_v23, %v1060_v59  ;;  %v8680_v23 = vrot.slane %v5692_v8, 6  ;;  %v1953_v59 = vrot.slane %v6010_v25, 1 }
 0x1cc   : > { %2434 = vmatpush.msrb.mxu3 %v4374_v45  ;;  %v4356_v45 = vld [vmem:[%s8552_s7 + $0x3c0] sm:$0xff]  ;;  %2583 = vmatpush.msrb.mxu0 %v4427_v24 }
 0x1cd   : > { %v1077_v10 = vpop.f32.mrf.mxu3 }
 0x1ce   : > { %v6316_v37 = vadd.f32 %v1077_v10, %v1036_v5  ;;  %v6333_v5 = vsel %vm1682_vm8, %v1688_v6, %v1690_v1  ;;  %v4357_v10 = vld [vmem:[%s8552_s7 + $0x3c8] sm:$0xff] }
 0x1cf   : > { %v6321_v42 = vpop.f32.mrf.mxu1  ;;  %1644 = vmatmul.f32.gmra.mxu2 %v8678_v34  ;;  %8679 = vst [vmem:[#allocation33_spill] sm:$0xff] %v6333_v5  ;;  %v4373_v6 = vld [vmem:[%s8552_s7 + $0x448] sm:$0xff] }
 0x1d0   : > { %v6325_v48 = vpop.f32.mrf.mxu0  ;;  %2357 = vmatpush.msrb.mxu2 %v4357_v10  ;;  %2435 = vmatpush.msrb.mxu3 %v4373_v6  ;;  %v1291_v6 = vadd.f32 %v6008_v3, %v1214_v7  ;;  %v4371_v3 = vld [vmem:[%s8552_s7 + $0x438] sm:$0xff]  ;;  %v4354_v7 = vld [vmem:[%s8552_s7 + $0x3b0] sm:$0xff] }
 0x1d2   : > { %v1039_v16 = vpop.f32.mrf.mxu2  ;;  %4233 = vmatmul.msk.f32.gmra.mxu3 %vm8584_vm2, %v6330_v51  ;;  %4238 = vmatmul.msk.f32.gmra.mxu1 %vm1707_vm13, %v6333_v5  ;;  %vm8616_vm2 = vcmp.ge.s32.totalorder %v5603_v38, 2 }
 0x1d3   : > { %1937 = vmatmul.f32.gmra.mxu0 %v6238_v58  ;;  %2358 = vmatpush.msrb.mxu2 %v4356_v45  ;;  %v4355_v45 = vld [vmem:[%s8552_s7 + $0x3b8] sm:$0xff] }
 0x1d4   : > { %2436 = vmatpush.msrb.mxu3 %v4372_v17 }
 0x1d5   : > { %v1080_v39 = vpop.f32.mrf.mxu3  ;;  %2359 = vmatpush.msrb.mxu2 %v4355_v45  ;;  %v4370_v45 = vld [vmem:[%s8552_s7 + $0x430] sm:$0xff] }
 0x1d6   : > { %v6354_v22 = vadd.f32 %v1080_v39, %v1039_v16  ;;  %v6369_v39 = vsel %vm1682_vm8, %v1690_v1, %v8680_v23  ;;  %2437 = vmatpush.msrb.mxu3 %v4371_v3  ;;  %v1215_v1 = vadd.f32 %v6044_v21, %v6039_v19  ;;  %vm8682_vm8 = vcmp.lt.s32.totalorder %v5270_v32, 7 }
 0x1d7   : > { %v6359_v27 = vpop.f32.mrf.mxu1  ;;  %2014 = vmatmul.f32.vlgmr.msra.gmra.mxu2 %v8678_v34  ;;  %8681 = vst [vmem:[#allocation34_spill] sm:$0xff] %v6369_v39 }
 0x1d8   : > { %v6363_v10 = vpop.f32.mrf.mxu0  ;;  %2360 = vmatpush.msrb.mxu2 %v4354_v7  ;;  %2438 = vmatpush.msrb.mxu3 %v4370_v45  ;;  %v1292_v21 = vadd.f32 %v6055_v18, %v1215_v1  ;;  %v1954_v7 = vrot.slane %v6057_v4, 1  ;;  %v4369_v18 = vld [vmem:[%s8552_s7 + $0x428] sm:$0xff]  ;;  %v4403_v1 = vld [vmem:[%s8552_s7 + $0x4f8] sm:$0xff] }
 0x1d9   : > { %2506 = vmatpush.msrb.mxu1 %v4403_v1  ;;  %v4426_v1 = vld [vmem:[%s8552_s7 + $0x570] sm:$0xff] }
 0x1da   : > { %v1333_v16 = vpop.f32.mrf.mxu2  ;;  %4239 = vmatmul.msk.f32.gmra.mxu1 %vm8616_vm2, %v6369_v39  ;;  %2149 = vmatmul.f32.vlgmr.msra.gmra.mxu3 %v8678_v34 }
 0x1db   : > { %v1357_v17 = vadd.f32 %v1333_v16, %v1291_v6  ;;  %1940 = vmatmul.f32.gmra.mxu0 %v5692_v8  ;;  %v6392_v16 = vsel %vm623_vm1, 0.0, %v1953_v59  ;;  %2439 = vmatpush.msrb.mxu3 %v4369_v18  ;;  %v4402_v18 = vld [vmem:[%s8552_s7 + $0x4f0] sm:$0xff] }
 0x1dc   : > { %2507 = vmatpush.msrb.mxu1 %v4402_v18  ;;  %2584 = vmatpush.msrb.mxu0 %v4426_v1  ;;  %v4424_v1 = vld [vmem:[%s8552_s7 + $0x560] sm:$0xff] }
 0x1dd   : > { %v1409_v23 = vpop.f32.mrf.mxu3 }
 0x1de   : > { %v6389_v6 = vadd.f32 %v1409_v23, %v1357_v17  ;;  %v6407_v17 = vsel %vm2047_vm6, 0.0, %v2048_v12  ;;  %v4353_v23 = vld [vmem:[%s8552_s7 + $0x3a8] sm:$0xff] }
 0x1df   : > { %v6397_v63 = vpop.f32.mrf.mxu1  ;;  %4272 = vmatmul.msk.f32.gmra.mxu2 %vm8682_vm8, %v6392_v16  ;;  %8683 = vst [vmem:[#allocation35_spill] sm:$0xff] %v6407_v17  ;;  %vm2079_vm8 = vcmp.lt.s32.totalorder %v5304_v50, 6 }
 0x1e0   : > { %v6403_v19 = vpop.f32.mrf.mxu0  ;;  %2361 = vmatpush.msrb.mxu2 %v4353_v23 }
 0x1e2   : > { %v1336_v3 = vpop.f32.mrf.mxu2  ;;  %4295 = vmatmul.msk.f32.gmra.mxu3 %vm8593_vm3, %v6407_v17  ;;  %2225 = vmatmul.f32.vlgmr.msra.gmra.mxu1 %v8678_v34  ;;  %v6436_v17 = vsel %vm623_vm1, %v1953_v59, %v1954_v7  ;;  %vm1702_vm3 = vcmp.ge.s32.totalorder %v5270_v32, 2 }
 0x1e3   : > { %v1358_v45 = vadd.f32 %v1336_v3, %v1292_v21  ;;  %2301 = vmatmul.f32.vlgmr.msra.gmra.mxu0 %v8678_v34  ;;  %v4352_v21 = vld [vmem:[%s8552_s7 + $0x3a0] sm:$0xff]  ;;  %v1216_v3 = vadd.f32 %v6103_v15, %v6098_v47 }
 0x1e4   : > { %2362 = vmatpush.msrb.mxu2 %v4352_v21  ;;  %v4368_v15 = vld [vmem:[%s8552_s7 + $0x420] sm:$0xff]  ;;  %v4401_v21 = vld [vmem:[%s8552_s7 + $0x4e8] sm:$0xff] }
 0x1e5   : > { %v1412_v23 = vpop.f32.mrf.mxu3  ;;  %2440 = vmatpush.msrb.mxu3 %v4368_v15  ;;  %v1293_v59 = vadd.f32 %v6109_v35, %v1216_v3  ;;  %v4351_v35 = vld [vmem:[%s8552_s7 + $0x398] sm:$0xff]  ;;  %v4400_v3 = vld [vmem:[%s8552_s7 + $0x4e0] sm:$0xff]  ;;  %2508 = vmatpush.msrb.mxu1 %v4401_v21 }
 0x1e6   : > { %v6433_v11 = vadd.f32 %v1412_v23, %v1358_v45  ;;  %v6458_v45 = vsel %vm2047_vm6, %v2048_v12, %v2049_v62  ;;  %v4425_v23 = vld [vmem:[%s8552_s7 + $0x568] sm:$0xff]  ;;  %v1956_v12 = vrot.slane %v6114_v49, 1  ;;  %v4367_v15 = vld [vmem:[%s8552_s7 + $0x418] sm:$0xff]  ;;  %2363 = vmatpush.msrb.mxu2 %v4351_v35 }
 0x1e7   : > { %v6447_v47 = vpop.f32.mrf.mxu1  ;;  %4273 = vmatmul.msk.f32.gmra.mxu2 %vm8596_vm10, %v6436_v17  ;;  %8684 = vst [vmem:[#allocation36_spill] sm:$0xff] %v6458_v45  ;;  %vm8685_vm10 = vcmp.ge.s32.totalorder %v5270_v32, 1  ;;  %2585 = vmatpush.msrb.mxu0 %v4425_v23  ;;  %v4423_v23 = vld [vmem:[%s8552_s7 + $0x558] sm:$0xff] }
 0x1e8   : > { %v6454_v24 = vpop.f32.mrf.mxu0  ;;  %2509 = vmatpush.msrb.mxu1 %v4400_v3  ;;  %2441 = vmatpush.msrb.mxu3 %v4367_v15  ;;  %v4422_v15 = vld [vmem:[%s8552_s7 + $0x550] sm:$0xff] }
 0x1e9   : > { %2586 = vmatpush.msrb.mxu0 %v4424_v1 }
 0x1ea   : > { %v1339_v4 = vpop.f32.mrf.mxu2  ;;  %4296 = vmatmul.msk.f32.gmra.mxu3 %vm2079_vm8, %v6458_v45  ;;  %4318 = vmatmul.msk.f32.gmra.mxu1 %vm1702_vm3, %v6120_v52  ;;  %v4399_v45 = vld [vmem:[%s8552_s7 + $0x4d8] sm:$0xff]  ;;  %v6503_v52 = vsel %vm623_vm1, %v1954_v7, %v1956_v12 }
 0x1eb   : > { %v1359_v18 = vadd.f32 %v1339_v4, %v1293_v59  ;;  %4341 = vmatmul.msk.f32.gmra.mxu0 %vm8685_vm10, %v6060_v0  ;;  %v4350_v4 = vld [vmem:[%s8552_s7 + $0x390] sm:$0xff]  ;;  %v1217_v59 = vadd.f32 %v6165_v29, %v6157_v57  ;;  %v2051_v0 = vrot.slane %v6114_v49, 2  ;;  %vm8636_vm10 = vcmp.lt.s32.totalorder %v5368_v13, 6  ;;  %2510 = vmatpush.msrb.mxu1 %v4399_v45  ;;  %v4396_v45 = vld [vmem:[%s8552_s7 + $0x4c0] sm:$0xff] }
 0x1ec   : > { %2364 = vmatpush.msrb.mxu2 %v4350_v4  ;;  %v4398_v29 = vld [vmem:[%s8552_s7 + $0x4d0] sm:$0xff]  ;;  %2587 = vmatpush.msrb.mxu0 %v4423_v23  ;;  %v4397_v4 = vld [vmem:[%s8552_s7 + $0x4c8] sm:$0xff] }
 0x1ed   : > { %v1415_v21 = vpop.f32.mrf.mxu3  ;;  %v4366_v57 = vld [vmem:[%s8552_s7 + $0x410] sm:$0xff]  ;;  %v6521_v1 = vsel %vm2047_vm6, %v2049_v62, %v2051_v0  ;;  %2511 = vmatpush.msrb.mxu1 %v4398_v29  ;;  %v1958_v62 = vrot.slane %v6176_v46, 1  ;;  %v4421_v23 = vld [vmem:[%s8552_s7 + $0x548] sm:$0xff] }
 0x1ee   : > { %v6500_v35 = vadd.f32 %v1415_v21, %v1359_v18  ;;  %2442 = vmatpush.msrb.mxu3 %v4366_v57  ;;  %v1294_v18 = vadd.f32 %v6171_v53, %v1217_v59  ;;  %8686 = vst [vmem:[#allocation37_spill] sm:$0xff] %v6521_v1  ;;  %v4349_v53 = vld [vmem:[%s8552_s7 + $0x388] sm:$0xff]  ;;  %2588 = vmatpush.msrb.mxu0 %v4422_v15  ;;  %v4395_v57 = vld [vmem:[%s8552_s7 + $0x4b8] sm:$0xff]  ;;  %v4420_v15 = vld [vmem:[%s8552_s7 + $0x540] sm:$0xff] }
 0x1ef   : > { %v6511_v3 = vpop.f32.mrf.mxu1  ;;  %4274 = vmatmul.msk.f32.gmra.mxu2 %vm1119_vm12, %v6503_v52  ;;  %2512 = vmatpush.msrb.mxu1 %v4397_v4  ;;  %v4365_v29 = vld [vmem:[%s8552_s7 + $0x408] sm:$0xff]  ;;  %v1218_v4 = vadd.f32 %v6227_v30, %v6219_v31  ;;  %v4394_v31 = vld [vmem:[%s8552_s7 + $0x4b0] sm:$0xff]  ;;  %v4364_v30 = vld [vmem:[%s8552_s7 + $0x400] sm:$0xff] }
 0x1f0   : > { %v6517_v7 = vpop.f32.mrf.mxu0  ;;  %2365 = vmatpush.msrb.mxu2 %v4349_v53  ;;  %2443 = vmatpush.msrb.mxu3 %v4365_v29  ;;  %v4419_v29 = vld [vmem:[%s8552_s7 + $0x538] sm:$0xff] }
 0x1f1   : > { %2513 = vmatpush.msrb.mxu1 %v4396_v45  ;;  %2589 = vmatpush.msrb.mxu0 %v4421_v23 }
 0x1f2   : > { %v1342_v21 = vpop.f32.mrf.mxu2  ;;  %4297 = vmatmul.msk.f32.gmra.mxu3 %vm8636_vm10, %v6521_v1  ;;  %4319 = vmatmul.msk.f32.gmra.mxu1 %vm1703_vm4, %v6182_v2  ;;  %v6566_v1 = vsel %vm623_vm1, %v1956_v12, %v1958_v62 }
 0x1f3   : > { %v1360_v59 = vadd.f32 %v1342_v21, %v1294_v18  ;;  %4342 = vmatmul.msk.f32.gmra.mxu0 %vm8605_vm7, %v6117_v36  ;;  %v4348_v18 = vld [vmem:[%s8552_s7 + $0x380] sm:$0xff]  ;;  %v2053_v36 = vrot.slane %v6176_v46, 2  ;;  %8687 = vst [vmem:[#allocation38_spill] sm:$0xff] %v6566_v1  ;;  %vm8611_vm7 = vcmp.lt.s32.totalorder %v5419_v41, 6  ;;  %2514 = vmatpush.msrb.mxu1 %v4395_v57 }
 0x1f4   : > { %2366 = vmatpush.msrb.mxu2 %v4348_v18  ;;  %2590 = vmatpush.msrb.mxu0 %v4420_v15  ;;  %v4393_v18 = vld [vmem:[%s8552_s7 + $0x4a8] sm:$0xff]  ;;  %v4392_v57 = vld [vmem:[%s8552_s7 + $0x4a0] sm:$0xff]  ;;  %v4418_v15 = vld [vmem:[%s8552_s7 + $0x530] sm:$0xff] }
 0x1f5   : > { %v1418_v21 = vpop.f32.mrf.mxu3  ;;  %2444 = vmatpush.msrb.mxu3 %v4364_v30  ;;  %v6584_v23 = vsel %vm2047_vm6, %v2051_v0, %v2053_v36  ;;  %2515 = vmatpush.msrb.mxu1 %v4394_v31  ;;  %v1960_v0 = vrot.slane %v6238_v58, 1  ;;  %v1219_v31 = vadd.f32 %v6281_v61, %v6276_v56  ;;  %v4475_v56 = vld [vmem:[%s8552_s7 + $0x678] sm:$0xff]  ;;  %v4450_v61 = vld [vmem:[%s8552_s7 + $0x5f0] sm:$0xff] }
 0x1f6   : > { %v6563_v53 = vadd.f32 %v1418_v21, %v1360_v59  ;;  %v1295_v59 = vadd.f32 %v6233_v44, %v1218_v4  ;;  %8688 = vst [vmem:[#allocation39_spill] sm:$0xff] %v6584_v23  ;;  %v4451_v44 = vld [vmem:[%s8552_s7 + $0x5f8] sm:$0xff]  ;;  %2591 = vmatpush.msrb.mxu0 %v4419_v29 }
 0x1f7   : > { %v6574_v45 = vpop.f32.mrf.mxu1  ;;  %4275 = vmatmul.msk.f32.gmra.mxu2 %vm1120_vm14, %v6566_v1  ;;  %2516 = vmatpush.msrb.mxu1 %v4393_v18  ;;  %v6623_v29 = vsel %vm623_vm1, %v1958_v62, %v1960_v0  ;;  %v4390_v62 = vld [vmem:[%s8552_s7 + $0x490] sm:$0xff] }
 0x1f8   : > { %v6580_v12 = vpop.f32.mrf.mxu0  ;;  %2660 = vmatpush.msra.mxu2 %v4451_v44  ;;  %8689 = vst [vmem:[#allocation40_spill] sm:$0xff] %v6623_v29  ;;  %2592 = vmatpush.msrb.mxu0 %v4418_v15 }
 0x1f9   : > { %2517 = vmatpush.msrb.mxu1 %v4392_v57  ;;  %2726 = vmatpush.msra.mxu3 %v4475_v56  ;;  %v4474_v57 = vld [vmem:[%s8552_s7 + $0x670] sm:$0xff]  ;;  %v4415_v56 = vld [vmem:[%s8552_s7 + $0x518] sm:$0xff] }
 0x1fa   : > { %v1345_v21 = vpop.f32.mrf.mxu2  ;;  %4298 = vmatmul.msk.f32.gmra.mxu3 %vm8611_vm7, %v6584_v23  ;;  %4320 = vmatmul.msk.f32.gmra.mxu1 %vm1704_vm5, %v6244_v28  ;;  %v2055_v23 = vrot.slane %v6238_v58, 2  ;;  %vm8691_vm7 = vcmp.ge.s32.totalorder %v5419_v41, 1 }
 0x1fb   : > { %v1361_v4 = vadd.f32 %v1345_v21, %v1295_v59  ;;  %4343 = vmatmul.msk.f32.gmra.mxu0 %vm8610_vm9, %v6179_v60  ;;  %v4417_v59 = vld [vmem:[%s8552_s7 + $0x528] sm:$0xff]  ;;  %v4391_v21 = vld [vmem:[%s8552_s7 + $0x498] sm:$0xff]  ;;  %vm8614_vm9 = vcmp.lt.s32.totalorder %v5487_v14, 6  ;;  %2661 = vmatpush.msra.mxu2 %v4450_v61  ;;  %v4388_v61 = vld [vmem:[%s8552_s7 + $0x480] sm:$0xff] }
 0x1fc   : > { %2518 = vmatpush.msrb.mxu1 %v4391_v21  ;;  %2593 = vmatpush.msrb.mxu0 %v4417_v59  ;;  %v6647_v15 = vsel %vm2047_vm6, %v2053_v36, %v2055_v23  ;;  %v4389_v59 = vld [vmem:[%s8552_s7 + $0x488] sm:$0xff] }
 0x1fd   : > { %v1421_v30 = vpop.f32.mrf.mxu3  ;;  %8690 = vst [vmem:[#allocation41_spill] sm:$0xff] %v6647_v15  ;;  %v4449_v36 = vld [vmem:[%s8552_s7 + $0x5e8] sm:$0xff]  ;;  %2727 = vmatpush.msra.mxu3 %v4474_v57 }
 0x1fe   : > { %v6620_v60 = vadd.f32 %v1421_v30, %v1361_v4  ;;  %v1296_v4 = vadd.f32 %v6287_v55, %v1219_v31  ;;  %v4416_v30 = vld [vmem:[%s8552_s7 + $0x520] sm:$0xff]  ;;  %2519 = vmatpush.msrb.mxu1 %v4390_v62  ;;  %v1962_v55 = vrot.slane %v5692_v8, 1  ;;  %v1220_v62 = vadd.f32 %v6321_v42, %v6316_v37  ;;  %2662 = vmatpush.msra.mxu2 %v4449_v36  ;;  %v4473_v57 = vld [vmem:[%s8552_s7 + $0x668] sm:$0xff] }
 0x1ff   : > { %v6625_v18 = vpop.f32.mrf.mxu1  ;;  %4276 = vmatmul.msk.f32.gmra.mxu2 %vm1121_vm0, %v6623_v29  ;;  %2594 = vmatpush.msrb.mxu0 %v4416_v30  ;;  %v4448_v30 = vld [vmem:[%s8552_s7 + $0x5e0] sm:$0xff] }
 0x200   : > { %v6640_v44 = vpop.f32.mrf.mxu0  ;;  %2520 = vmatpush.msrb.mxu1 %v4389_v59  ;;  %v6689_v42 = vsel %vm623_vm1, %v1960_v0, %v1962_v55  ;;  %v4472_v37 = vld [vmem:[%s8552_s7 + $0x660] sm:$0xff]  ;;  %2728 = vmatpush.msra.mxu3 %v4473_v57  ;;  %v1297_v0 = vadd.f32 %v6325_v48, %v1220_v62  ;;  %v4447_v48 = vld [vmem:[%s8552_s7 + $0x5d8] sm:$0xff]  ;;  %v1221_v57 = vadd.f32 %v6359_v27, %v6354_v22 }
 0x201   : > { %8692 = vst [vmem:[#allocation42_spill] sm:$0xff] %v6689_v42  ;;  %2595 = vmatpush.msrb.mxu0 %v4415_v56  ;;  %2663 = vmatpush.msra.mxu2 %v4448_v30  ;;  %v4413_v56 = vld [vmem:[%s8552_s7 + $0x508] sm:$0xff]  ;;  %v4412_v62 = vld [vmem:[%s8552_s7 + $0x500] sm:$0xff] }
 0x202   : > { %v1348_v21 = vpop.f32.mrf.mxu2  ;;  %4299 = vmatmul.msk.f32.gmra.mxu3 %vm8614_vm9, %v6647_v15  ;;  %4321 = vmatmul.msk.f32.gmra.mxu1 %vm1705_vm15, %v6293_v43  ;;  %vm8615_vm9 = vcmp.lt.s32.totalorder %v5538_v54, 6 }
 0x203   : > { %v1362_v31 = vadd.f32 %v1348_v21, %v1296_v4  ;;  %4344 = vmatmul.msk.f32.gmra.mxu0 %vm8691_vm7, %v6241_v26  ;;  %v2057_v4 = vrot.slane %v5692_v8, 2  ;;  %v4414_v21 = vld [vmem:[%s8552_s7 + $0x510] sm:$0xff]  ;;  %2521 = vmatpush.msrb.mxu1 %v4388_v61  ;;  %vm8693_vm7 = vcmp.lt.s32.totalorder %v5538_v54, 7 }
 0x204   : > { %2596 = vmatpush.msrb.mxu0 %v4414_v21  ;;  %2729 = vmatpush.msra.mxu3 %v4472_v37  ;;  %v4471_v37 = vld [vmem:[%s8552_s7 + $0x658] sm:$0xff] }
 0x205   : > { %v1424_v15 = vpop.f32.mrf.mxu3  ;;  %2664 = vmatpush.msra.mxu2 %v4447_v48 }
 0x206   : > { %v6686_v59 = vadd.f32 %v1424_v15, %v1362_v31  ;;  %v6704_v31 = vsel %vm2047_vm6, %v2055_v23, %v2057_v4  ;;  %2597 = vmatpush.msrb.mxu0 %v4413_v56  ;;  %v8695_v56 = vrot.slane %v5699_v9, 1  ;;  %2730 = vmatpush.msra.mxu3 %v4471_v37  ;;  %v4445_v37 = vld [vmem:[%s8552_s7 + $0x5c8] sm:$0xff] }
 0x207   : > { %v6694_v36 = vpop.f32.mrf.mxu1  ;;  %4277 = vmatmul.msk.f32.gmra.mxu2 %vm8693_vm7, %v6689_v42  ;;  %vm8694_vm7 = vcmp.ge.s32.totalorder %v5487_v14, 1 }
 0x208   : > { %v6700_v15 = vpop.f32.mrf.mxu0  ;;  %v6741_v48 = vsel %vm623_vm1, %v1962_v55, %v8695_v56  ;;  %2598 = vmatpush.msrb.mxu0 %v4412_v62  ;;  %v4468_v56 = vld [vmem:[%s8552_s7 + $0x640] sm:$0xff] }
 0x209   : > { %8696 = vst [vmem:[#allocation43_spill] sm:$0xff] %v6741_v48 }
 0x20a   : > { %v1351_v61 = vpop.f32.mrf.mxu2  ;;  %4300 = vmatmul.msk.f32.gmra.mxu3 %vm8615_vm9, %v6704_v31  ;;  %4322 = vmatmul.msk.f32.gmra.mxu1 %vm1706_vm11, %v6333_v5  ;;  %vm2084_vm9 = vcmp.lt.s32.totalorder %v5603_v38, 6 }
 0x20b   : > { %v1363_v23 = vadd.f32 %v1351_v61, %v1297_v0  ;;  %4345 = vmatmul.msk.f32.gmra.mxu0 %vm8694_vm7, %v6290_v20  ;;  %v4446_v0 = vld [vmem:[%s8552_s7 + $0x5d0] sm:$0xff]  ;;  %vm8697_vm7 = vcmp.lt.s32.totalorder %v5603_v38, 7 }
 0x20c   : > { %v4470_v61 = vld [vmem:[%s8552_s7 + $0x650] sm:$0xff]  ;;  %2665 = vmatpush.msra.mxu2 %v4446_v0 }
 0x20d   : > { %v1427_v30 = vpop.f32.mrf.mxu3  ;;  %2731 = vmatpush.msra.mxu3 %v4470_v61  ;;  %v4444_v61 = vld [vmem:[%s8552_s7 + $0x5c0] sm:$0xff] }
 0x20e   : > { %v6736_v21 = vadd.f32 %v1427_v30, %v1363_v23  ;;  %v1298_v23 = vadd.f32 %v6363_v10, %v1221_v57  ;;  %v8698_v30 = vrot.slane %v5699_v9, 2  ;;  %2666 = vmatpush.msra.mxu2 %v4445_v37  ;;  %v1509_v10 = vadd.f32 %v6397_v63, %v6389_v6  ;;  %v4469_v57 = vld [vmem:[%s8552_s7 + $0x648] sm:$0xff] }
 0x20f   : > { %v6743_v22 = vpop.f32.mrf.mxu1  ;;  %4278 = vmatmul.msk.f32.gmra.mxu2 %vm8697_vm7, %v6741_v48  ;;  %vm8699_vm7 = vcmp.ge.s32.totalorder %v5538_v54, 1  ;;  %2732 = vmatpush.msra.mxu3 %v4469_v57  ;;  %v1510_v57 = vadd.f32 %v6447_v47, %v6433_v11 }
 0x210   : > { %v6749_v27 = vpop.f32.mrf.mxu0  ;;  %v6755_v55 = vsel %vm2047_vm6, %v2057_v4, %v8698_v30  ;;  %v8617_v30 = vrot.slane %v5699_v9, 7  ;;  %2667 = vmatpush.msra.mxu2 %v4444_v61  ;;  %vm8701_vm6 = vcmask 1040384  }
 0x211   : > { %2733 = vmatpush.msra.mxu3 %v4468_v56  ;;  %v4442_v56 = vld [vmem:[%s8552_s7 + $0x5b0] sm:$0xff]  ;;  %v1576_v47 = vadd.f32 %v6454_v24, %v1510_v57  ;;  %v1511_v24 = vadd.f32 %v6511_v3, %v6500_v35  ;;  %v4440_v35 = vld [vmem:[%s8552_s7 + $0x5a0] sm:$0xff] }
 0x212   : > { %v1354_v62 = vpop.f32.mrf.mxu2  ;;  %4301 = vmatmul.msk.f32.gmra.mxu3 %vm2084_vm9, %v6755_v55  ;;  %4323 = vmatmul.msk.f32.gmra.mxu1 %vm1707_vm13, %v6369_v39  ;;  %v4490_v3 = vld [vmem:[%s8552_s7 + $0x6f0] sm:$0xff] }
 0x213   : > { %v1364_v0 = vadd.f32 %v1354_v62, %v1298_v23  ;;  %4346 = vmatmul.msk.f32.gmra.mxu0 %vm8699_vm7, %v6330_v51  ;;  %v1575_v62 = vadd.f32 %v6403_v19, %v1509_v10  ;;  %vm8703_vm7 = vcmp.lt.s32.totalorder %v5273_v33, 7  ;;  %v4443_v19 = vld [vmem:[%s8552_s7 + $0x5b8] sm:$0xff] }
 0x214   : > { %2668 = vmatpush.msra.mxu2 %v4443_v19  ;;  %v8707_v19 = vld [vmem:[#allocation35_spill] sm:$0xff] }
 0x215   : > { %v1430_v4 = vpop.f32.mrf.mxu3 }
 0x216   : > { %v6780_v23 = vadd.f32 %v1430_v4, %v1364_v0  ;;  %v8700_v0 = vrot.slane %v5692_v8, 7  ;;  %2669 = vmatpush.msra.mxu2 %v4442_v56 }
 0x217   : > { %v6783_v63 = vpop.f32.mrf.mxu1  ;;  %2367 = vmatmul.f32.vlgmr.msrb.gmra.mxu2 %v8678_v34 }
 0x218   : > { %v6786_v6 = vpop.f32.mrf.mxu0  ;;  %v6797_v4 = vsel %vm8701_vm6, %v8700_v0, %v8617_v30  ;;  %vm8621_vm6 = vcmp.ge.s32.totalorder %v5273_v33, 2  ;;  %v8709_v30 = vld [vmem:[#allocation28_spill] sm:$0xff] }
 0x219   : > { %8702 = vst [vmem:[#allocation44_spill] sm:$0xff] %v6797_v4 }
 0x21a   : > { %v1624_v37 = vpop.f32.mrf.mxu2  ;;  %4324 = vmatmul.msk.f32.gmra.mxu1 %vm8616_vm2, %v5731_v40  ;;  %4380 = vmatmul.msk.f32.vlgmr.msrb.gmra.mxu3 %vm8703_vm7, %v6392_v16  ;;  %vm8705_vm2 = vcmp.ge.s32.totalorder %v5603_v38, 1  ;;  %v4467_v16 = vld [vmem:[%s8552_s7 + $0x638] sm:$0xff]  ;;  %vm8706_vm7 = vcmp.lt.s32.totalorder %v5270_v32, 7 }
 0x21b   : > { %v6805_v10 = vadd.f32 %v1624_v37, %v1575_v62  ;;  %4347 = vmatmul.msk.f32.gmra.mxu0 %vm8705_vm2, %v6797_v4  ;;  %v4466_v62 = vld [vmem:[%s8552_s7 + $0x630] sm:$0xff]  ;;  %2734 = vmatpush.msra.mxu3 %v4467_v16  ;;  %vm2077_vm2 = vcmp.lt.s32.totalorder %v5273_v33, 6  ;;  %v4441_v16 = vld [vmem:[%s8552_s7 + $0x5a8] sm:$0xff] }
 0x21c   : > { %2670 = vmatpush.msra.mxu2 %v4441_v16  ;;  %v8710_v16 = vld [vmem:[#allocation25_spill] sm:$0xff]  ;;  %v8712_v4 = vld [vmem:[#allocation36_spill] sm:$0xff] }
 0x21d   : > { %8704 = vst [vmem:[#allocation45_spill] sm:$0xff] %v6805_v10  ;;  %v6812_v61 = vpop.f32.mrf.mxu3  ;;  %2735 = vmatpush.msra.mxu3 %v4466_v62  ;;  %v4465_v62 = vld [vmem:[%s8552_s7 + $0x628] sm:$0xff] }
 0x21e   : > { %2671 = vmatpush.msra.mxu2 %v4440_v35  ;;  %v4489_v10 = vld [vmem:[%s8552_s7 + $0x6e8] sm:$0xff] }
 0x21f   : > { %v6823_v37 = vpop.f32.mrf.mxu1  ;;  %2370 = vmatmul.f32.gmra.mxu2 %v6010_v25  ;;  %2736 = vmatpush.msra.mxu3 %v4465_v62  ;;  %v4464_v62 = vld [vmem:[%s8552_s7 + $0x620] sm:$0xff] }
 0x220   : > { %v6827_v11 = vpop.f32.mrf.mxu0 }
 0x221   : > { %2737 = vmatpush.msra.mxu3 %v4464_v62 }
 0x222   : > { %v1627_v0 = vpop.f32.mrf.mxu2  ;;  %4381 = vmatmul.msk.f32.gmra.mxu3 %vm8706_vm7, %v6436_v17  ;;  %4404 = vmatmul.msk.f32.vlgmr.msrb.gmra.mxu1 %vm2077_vm2, %v8707_v19  ;;  %v4491_v19 = vld [vmem:[%s8552_s7 + $0x6f8] sm:$0xff]  ;;  %vm8711_vm7 = vcmp.lt.s32.totalorder %v5304_v50, 7 }
 0x223   : > { %v6840_v56 = vadd.f32 %v1627_v0, %v1576_v47  ;;  %4428 = vmatmul.msk.f32.vlgmr.msrb.gmra.mxu0 %vm8621_vm6, %v8709_v30  ;;  %v4515_v47 = vld [vmem:[%s8552_s7 + $0x778] sm:$0xff]  ;;  %2802 = vmatpush.msra.mxu1 %v4491_v19  ;;  %v4514_v30 = vld [vmem:[%s8552_s7 + $0x770] sm:$0xff]  ;;  %vm8713_vm6 = vcmp.lt.s32.totalorder %v5270_v32, 6 }
 0x224   : > { %2878 = vmatpush.msra.mxu0 %v4515_v47  ;;  %v4513_v47 = vld [vmem:[%s8552_s7 + $0x768] sm:$0xff] }
 0x225   : > { %8708 = vst [vmem:[#allocation35_spill] sm:$0xff] %v6840_v56  ;;  %v6847_v57 = vpop.f32.mrf.mxu3  ;;  %2803 = vmatpush.msra.mxu1 %v4490_v3  ;;  %v1577_v56 = vadd.f32 %v6517_v7, %v1511_v24  ;;  %v4439_v7 = vld [vmem:[%s8552_s7 + $0x598] sm:$0xff]  ;;  %v4488_v24 = vld [vmem:[%s8552_s7 + $0x6e0] sm:$0xff] }
 0x226   : > { %2879 = vmatpush.msra.mxu0 %v4514_v30  ;;  %v4512_v3 = vld [vmem:[%s8552_s7 + $0x760] sm:$0xff]  ;;  %2672 = vmatpush.msra.mxu2 %v4439_v7  ;;  %v1512_v30 = vadd.f32 %v6574_v45, %v6563_v53  ;;  %v4438_v53 = vld [vmem:[%s8552_s7 + $0x590] sm:$0xff] }
 0x227   : > { %v6867_v0 = vpop.f32.mrf.mxu1  ;;  %2373 = vmatmul.f32.gmra.mxu2 %v8710_v16  ;;  %2804 = vmatpush.msra.mxu1 %v4489_v10  ;;  %v4487_v10 = vld [vmem:[%s8552_s7 + $0x6d8] sm:$0xff]  ;;  %v4486_v45 = vld [vmem:[%s8552_s7 + $0x6d0] sm:$0xff] }
 0x228   : > { %v6873_v19 = vpop.f32.mrf.mxu0  ;;  %2880 = vmatpush.msra.mxu0 %v4513_v47  ;;  %v4462_v7 = vld [vmem:[%s8552_s7 + $0x610] sm:$0xff]  ;;  %2673 = vmatpush.msra.mxu2 %v4438_v53  ;;  %v4509_v53 = vld [vmem:[%s8552_s7 + $0x748] sm:$0xff] }
 0x229   : > { %2805 = vmatpush.msra.mxu1 %v4488_v24 }
 0x22a   : > { %v1630_v34 = vpop.f32.mrf.mxu2  ;;  %4382 = vmatmul.msk.f32.gmra.mxu3 %vm8711_vm7, %v6503_v52  ;;  %4405 = vmatmul.msk.f32.gmra.mxu1 %vm8713_vm6, %v8712_v4  ;;  %vm8720_vm6 = vcmp.lt.s32.totalorder %v5419_v41, 6  ;;  %vm8722_vm7 = vcmp.lt.s32.totalorder %v5538_v54, 7 }
 0x22b   : > { %v6894_v35 = vadd.f32 %v1630_v34, %v1577_v56  ;;  %4429 = vmatmul.msk.f32.gmra.mxu0 %vm1702_vm3, %v6182_v2  ;;  %v4463_v34 = vld [vmem:[%s8552_s7 + $0x618] sm:$0xff]  ;;  %2806 = vmatpush.msra.mxu1 %v4487_v10  ;;  %v4485_v10 = vld [vmem:[%s8552_s7 + $0x6c8] sm:$0xff] }
 0x22c   : > { %v4511_v56 = vld [vmem:[%s8552_s7 + $0x758] sm:$0xff]  ;;  %2881 = vmatpush.msra.mxu0 %v4512_v3  ;;  %2738 = vmatpush.msra.mxu3 %v4463_v34  ;;  %v1578_v3 = vadd.f32 %v6580_v12, %v1512_v30  ;;  %v4510_v34 = vld [vmem:[%s8552_s7 + $0x750] sm:$0xff]  ;;  %v4437_v12 = vld [vmem:[%s8552_s7 + $0x588] sm:$0xff] }
 0x22d   : > { %8714 = vst [vmem:[#allocation28_spill] sm:$0xff] %v6894_v35  ;;  %v6904_v62 = vpop.f32.mrf.mxu3  ;;  %2807 = vmatpush.msra.mxu1 %v4486_v45  ;;  %v8715_v2 = vld [vmem:[#allocation37_spill] sm:$0xff]  ;;  %v4484_v30 = vld [vmem:[%s8552_s7 + $0x6c0] sm:$0xff]  ;;  %2674 = vmatpush.msra.mxu2 %v4437_v12  ;;  %v1513_v45 = vadd.f32 %v6625_v18, %v6620_v60  ;;  %v4482_v18 = vld [vmem:[%s8552_s7 + $0x6b0] sm:$0xff] }
 0x22e   : > { %2882 = vmatpush.msra.mxu0 %v4511_v56  ;;  %2739 = vmatpush.msra.mxu3 %v4462_v7  ;;  %v4436_v60 = vld [vmem:[%s8552_s7 + $0x580] sm:$0xff] }
 0x22f   : > { %v6921_v47 = vpop.f32.mrf.mxu1  ;;  %2376 = vmatmul.f32.gmra.mxu2 %v6114_v49  ;;  %2808 = vmatpush.msra.mxu1 %v4485_v10  ;;  %v4483_v10 = vld [vmem:[%s8552_s7 + $0x6b8] sm:$0xff]  ;;  %v4460_v12 = vld [vmem:[%s8552_s7 + $0x600] sm:$0xff] }
 0x230   : > { %v6927_v24 = vpop.f32.mrf.mxu0  ;;  %2883 = vmatpush.msra.mxu0 %v4510_v34  ;;  %2675 = vmatpush.msra.mxu2 %v4436_v60  ;;  %v4506_v60 = vld [vmem:[%s8552_s7 + $0x730] sm:$0xff] }
 0x231   : > { %2809 = vmatpush.msra.mxu1 %v4484_v30 }
 0x232   : > { %v1633_v35 = vpop.f32.mrf.mxu2  ;;  %4383 = vmatmul.msk.f32.gmra.mxu3 %vm1119_vm12, %v6566_v1  ;;  %4406 = vmatmul.msk.f32.gmra.mxu1 %vm2079_vm8, %v8715_v2 }
 0x233   : > { %v6948_v56 = vadd.f32 %v1633_v35, %v1578_v3  ;;  %4430 = vmatmul.msk.f32.gmra.mxu0 %vm1703_vm4, %v6244_v28  ;;  %v4508_v35 = vld [vmem:[%s8552_s7 + $0x740] sm:$0xff]  ;;  %v4461_v3 = vld [vmem:[%s8552_s7 + $0x608] sm:$0xff]  ;;  %2810 = vmatpush.msra.mxu1 %v4483_v10 }
 0x234   : > { %2884 = vmatpush.msra.mxu0 %v4509_v53  ;;  %2740 = vmatpush.msra.mxu3 %v4461_v3  ;;  %v1579_v53 = vadd.f32 %v6640_v44, %v1513_v45  ;;  %v4507_v3 = vld [vmem:[%s8552_s7 + $0x738] sm:$0xff]  ;;  %v4481_v10 = vld [vmem:[%s8552_s7 + $0x6a8] sm:$0xff]  ;;  %v4480_v45 = vld [vmem:[%s8552_s7 + $0x6a0] sm:$0xff] }
 0x235   : > { %8716 = vst [vmem:[#allocation25_spill] sm:$0xff] %v6948_v56  ;;  %v6958_v7 = vpop.f32.mrf.mxu3  ;;  %2811 = vmatpush.msra.mxu1 %v4482_v18  ;;  %v8717_v28 = vld [vmem:[#allocation39_spill] sm:$0xff]  ;;  %v4539_v44 = vld [vmem:[%s8552_s7 + $0x7f8] sm:$0xff] }
 0x236   : > { %2885 = vmatpush.msra.mxu0 %v4508_v35  ;;  %2741 = vmatpush.msra.mxu3 %v4460_v12  ;;  %v4563_v18 = vld [vmem:[%s8552_s7 + $0x878] sm:$0xff]  ;;  %v4538_v12 = vld [vmem:[%s8552_s7 + $0x7f0] sm:$0xff] }
 0x237   : > { %v6975_v34 = vpop.f32.mrf.mxu1  ;;  %2379 = vmatmul.f32.gmra.mxu2 %v6176_v46  ;;  %2812 = vmatpush.msra.mxu1 %v4481_v10  ;;  %v4505_v10 = vld [vmem:[%s8552_s7 + $0x728] sm:$0xff] }
 0x238   : > { %v6981_v30 = vpop.f32.mrf.mxu0  ;;  %2886 = vmatpush.msra.mxu0 %v4507_v3  ;;  %2954 = vmatpush.msrb.mxu2 %v4539_v44  ;;  %v4478_v3 = vld [vmem:[%s8552_s7 + $0x690] sm:$0xff] }
 0x239   : > { %2813 = vmatpush.msra.mxu1 %v4480_v45  ;;  %3030 = vmatpush.msrb.mxu3 %v4563_v18  ;;  %v4562_v44 = vld [vmem:[%s8552_s7 + $0x870] sm:$0xff]  ;;  %v4504_v45 = vld [vmem:[%s8552_s7 + $0x720] sm:$0xff] }
 0x23a   : > { %v1636_v56 = vpop.f32.mrf.mxu2  ;;  %4384 = vmatmul.msk.f32.gmra.mxu3 %vm1120_vm14, %v6623_v29  ;;  %4407 = vmatmul.msk.f32.gmra.mxu1 %vm8636_vm10, %v8717_v28 }
 0x23b   : > { %v7002_v35 = vadd.f32 %v1636_v56, %v1579_v53  ;;  %4431 = vmatmul.msk.f32.gmra.mxu0 %vm1704_vm5, %v6293_v43  ;;  %v4479_v56 = vld [vmem:[%s8552_s7 + $0x698] sm:$0xff]  ;;  %v1514_v53 = vadd.f32 %v6694_v36, %v6686_v59  ;;  %2955 = vmatpush.msrb.mxu2 %v4538_v12  ;;  %v4476_v12 = vld [vmem:[%s8552_s7 + $0x680] sm:$0xff] }
 0x23c   : > { %2887 = vmatpush.msra.mxu0 %v4506_v60  ;;  %2814 = vmatpush.msra.mxu1 %v4479_v56  ;;  %v4477_v60 = vld [vmem:[%s8552_s7 + $0x688] sm:$0xff]  ;;  %v8719_v56 = vld [vmem:[#allocation41_spill] sm:$0xff] }
 0x23d   : > { %8718 = vst [vmem:[#allocation36_spill] sm:$0xff] %v7002_v35  ;;  %v7021_v35 = vpop.f32.mrf.mxu3  ;;  %3031 = vmatpush.msrb.mxu3 %v4562_v44  ;;  %v1580_v36 = vadd.f32 %v6700_v15, %v1514_v53  ;;  %v4537_v15 = vld [vmem:[%s8552_s7 + $0x7e8] sm:$0xff]  ;;  %v4536_v44 = vld [vmem:[%s8552_s7 + $0x7e0] sm:$0xff] }
 0x23e   : > { %2888 = vmatpush.msra.mxu0 %v4505_v10  ;;  %2815 = vmatpush.msra.mxu1 %v4478_v3  ;;  %v4503_v10 = vld [vmem:[%s8552_s7 + $0x718] sm:$0xff]  ;;  %v4561_v3 = vld [vmem:[%s8552_s7 + $0x868] sm:$0xff] }
 0x23f   : > { %v7032_v43 = vpop.f32.mrf.mxu1  ;;  %2382 = vmatmul.f32.gmra.mxu2 %v6238_v58  ;;  %3032 = vmatpush.msrb.mxu3 %v4561_v3  ;;  %v4534_v3 = vld [vmem:[%s8552_s7 + $0x7d0] sm:$0xff] }
 0x240   : > { %v7035_v59 = vpop.f32.mrf.mxu0  ;;  %2816 = vmatpush.msra.mxu1 %v4477_v60  ;;  %2889 = vmatpush.msra.mxu0 %v4504_v45  ;;  %v4560_v60 = vld [vmem:[%s8552_s7 + $0x860] sm:$0xff]  ;;  %v4501_v45 = vld [vmem:[%s8552_s7 + $0x708] sm:$0xff] }
 0x241   : > { %2956 = vmatpush.msrb.mxu2 %v4537_v15  ;;  %3033 = vmatpush.msrb.mxu3 %v4560_v60  ;;  %v8725_v60 = vld [vmem:[#allocation15_spill] sm:$0xff] }
 0x242   : > { %v1639_v18 = vpop.f32.mrf.mxu2  ;;  %4385 = vmatmul.msk.f32.gmra.mxu3 %vm1121_vm0, %v6689_v42  ;;  %4408 = vmatmul.msk.f32.gmra.mxu1 %vm8720_vm6, %v8719_v56  ;;  %vm8723_vm6 = vcmp.lt.s32.totalorder %v5487_v14, 6 }
 0x243   : > { %v7056_v53 = vadd.f32 %v1639_v18, %v1580_v36  ;;  %4432 = vmatmul.msk.f32.gmra.mxu0 %vm1705_vm15, %v6333_v5  ;;  %v1515_v36 = vadd.f32 %v6743_v22, %v6736_v21  ;;  %2817 = vmatpush.msra.mxu1 %v4476_v12  ;;  %v4535_v12 = vld [vmem:[%s8552_s7 + $0x7d8] sm:$0xff] }
 0x244   : > { %2890 = vmatpush.msra.mxu0 %v4503_v10  ;;  %2957 = vmatpush.msrb.mxu2 %v4536_v44  ;;  %v4559_v10 = vld [vmem:[%s8552_s7 + $0x858] sm:$0xff]  ;;  %v1516_v44 = vadd.f32 %v6783_v63, %v6780_v23  ;;  %v8726_v23 = vrot.slane %v5699_v9, 1 }
 0x245   : > { %8721 = vst [vmem:[#allocation39_spill] sm:$0xff] %v7056_v53  ;;  %v7072_v18 = vpop.f32.mrf.mxu3  ;;  %v4502_v53 = vld [vmem:[%s8552_s7 + $0x710] sm:$0xff]  ;;  %v1581_v22 = vadd.f32 %v6749_v27, %v1515_v36  ;;  %v4500_v27 = vld [vmem:[%s8552_s7 + $0x700] sm:$0xff]  ;;  %3034 = vmatpush.msrb.mxu3 %v4559_v10 }
 0x246   : > { %2891 = vmatpush.msra.mxu0 %v4502_v53  ;;  %2958 = vmatpush.msrb.mxu2 %v4535_v12  ;;  %v1582_v10 = vadd.f32 %v6786_v6, %v1516_v44  ;;  %v4533_v6 = vld [vmem:[%s8552_s7 + $0x7c8] sm:$0xff] }
 0x247   : > { %v7080_v5 = vpop.f32.mrf.mxu1  ;;  %2385 = vmatmul.f32.gmra.mxu2 %v5692_v8  ;;  %v4557_v44 = vld [vmem:[%s8552_s7 + $0x848] sm:$0xff] }
 0x248   : > { %v7083_v21 = vpop.f32.mrf.mxu0  ;;  %2892 = vmatpush.msra.mxu0 %v4501_v45  ;;  %2959 = vmatpush.msrb.mxu2 %v4534_v3 }
 0x24a   : > { %v1642_v15 = vpop.f32.mrf.mxu2  ;;  %4386 = vmatmul.msk.f32.gmra.mxu3 %vm8722_vm7, %v6741_v48  ;;  %4409 = vmatmul.msk.f32.gmra.mxu1 %vm8723_vm6, %v6704_v31  ;;  %vm8727_vm7 = vcmp.lt.s32.totalorder %v5603_v38, 7  ;;  %vm8728_vm6 = vcmp.lt.s32.totalorder %v5538_v54, 6 }
 0x24b   : > { %v7098_v53 = vadd.f32 %v1642_v15, %v1581_v22  ;;  %4433 = vmatmul.msk.f32.gmra.mxu0 %vm1706_vm11, %v6369_v39  ;;  %v8629_v22 = vrot.slane %v8725_v60, 1  ;;  %v4558_v15 = vld [vmem:[%s8552_s7 + $0x850] sm:$0xff]  ;;  %2960 = vmatpush.msrb.mxu2 %v4533_v6  ;;  %v8730_v6 = vld [vmem:[#allocation26_spill] sm:$0xff] }
 0x24c   : > { %2893 = vmatpush.msra.mxu0 %v4500_v27  ;;  %3035 = vmatpush.msrb.mxu3 %v4558_v15  ;;  %v4532_v15 = vld [vmem:[%s8552_s7 + $0x7c0] sm:$0xff]  ;;  %v4550_v39 = vld [vmem:[%s8552_s7 + $0x810] sm:$0xff] }
 0x24d   : > { %8724 = vst [vmem:[#allocation41_spill] sm:$0xff] %v7098_v53  ;;  %v7114_v36 = vpop.f32.mrf.mxu3  ;;  %v7131_v63 = vsel %vm623_vm1, %v8726_v23, %v8629_v22  ;;  %v1863_v23 = vadd.f32 %v6823_v37, %v6812_v61  ;;  %2961 = vmatpush.msrb.mxu2 %v4532_v15  ;;  %v8732_v61 = vld [vmem:[#allocation17_spill] sm:$0xff] }
 0x24e   : > { %3036 = vmatpush.msrb.mxu3 %v4557_v44  ;;  %v4531_v37 = vld [vmem:[%s8552_s7 + $0x7b8] sm:$0xff] }
 0x24f   : > { %v7120_v12 = vpop.f32.mrf.mxu1  ;;  %2388 = vmatmul.f32.gmra.mxu2 %v5699_v9  ;;  %v1944_v44 = vadd.f32 %v6827_v11, %v1863_v23  ;;  %v4555_v11 = vld [vmem:[%s8552_s7 + $0x838] sm:$0xff]  ;;  %v4530_v23 = vld [vmem:[%s8552_s7 + $0x7b0] sm:$0xff] }
 0x250   : > { %v7123_v45 = vpop.f32.mrf.mxu0  ;;  %2962 = vmatpush.msrb.mxu2 %v4531_v37  ;;  %v8735_v37 = vld [vmem:[#allocation27_spill] sm:$0xff] }
 0x252   : > { %v1645_v27 = vpop.f32.mrf.mxu2  ;;  %4387 = vmatmul.msk.f32.gmra.mxu3 %vm8727_vm7, %v7131_v63  ;;  %4410 = vmatmul.msk.f32.gmra.mxu1 %vm8728_vm6, %v6755_v55  ;;  %vm8731_vm7 = vcmp.ge.s32.totalorder %v5273_v33, 1  ;;  %vm8734_vm6 = vcmp.ge.s32.totalorder %v5603_v38, 2 }
 0x253   : > { %v7142_v3 = vadd.f32 %v1645_v27, %v1582_v10  ;;  %4434 = vmatmul.msk.f32.gmra.mxu0 %vm1707_vm13, %v5731_v40  ;;  %v4556_v10 = vld [vmem:[%s8552_s7 + $0x840] sm:$0xff]  ;;  %v8733_v40 = vld [vmem:[#allocation19_spill] sm:$0xff]  ;;  %2963 = vmatpush.msrb.mxu2 %v4530_v23  ;;  %v4587_v23 = vld [vmem:[%s8552_s7 + $0x8f8] sm:$0xff] }
 0x254   : > { %3037 = vmatpush.msrb.mxu3 %v4556_v10  ;;  %3096 = vmatpush.msrb.mxu1 %v4587_v23  ;;  %v4585_v23 = vld [vmem:[%s8552_s7 + $0x8e8] sm:$0xff] }
 0x255   : > { %8729 = vst [vmem:[#allocation15_spill] sm:$0xff] %v7142_v3  ;;  %v7155_v22 = vpop.f32.mrf.mxu3 }
 0x256   : > { %3038 = vmatpush.msrb.mxu3 %v4555_v11 }
 0x257   : > { %v7160_v27 = vpop.f32.mrf.mxu1  ;;  %4452 = vmatmul.msk.f32.vlgmr.msra.gmra.mxu2 %vm8731_vm7, %v8730_v6  ;;  %v4554_v6 = vld [vmem:[%s8552_s7 + $0x830] sm:$0xff]  ;;  %vm8736_vm7 = vcmp.ge.s32.totalorder %v5270_v32, 1 }
 0x258   : > { %v7165_v3 = vpop.f32.mrf.mxu0  ;;  %3039 = vmatpush.msrb.mxu3 %v4554_v6 }
 0x25a   : > { %v2015_v53 = vpop.f32.mrf.mxu2  ;;  %4411 = vmatmul.msk.f32.gmra.mxu1 %vm2084_vm9, %v8732_v61  ;;  %2742 = vmatmul.f32.vlgmr.msra.gmra.mxu3 %v6010_v25  ;;  %v1866_v25 = vadd.f32 %v6867_v0, %v6847_v57  ;;  %v4529_v0 = vld [vmem:[%s8552_s7 + $0x7a8] sm:$0xff] }
 0x25b   : > { %v2039_v15 = vadd.f32 %v2015_v53, %v1944_v44  ;;  %4435 = vmatmul.msk.f32.gmra.mxu0 %vm8734_vm6, %v8733_v40  ;;  %vm8737_vm6 = vcmp.lt.s32.totalorder %v5273_v33, 7  ;;  %2964 = vmatpush.msrb.mxu2 %v4529_v0  ;;  %v4552_v0 = vld [vmem:[%s8552_s7 + $0x820] sm:$0xff] }
 0x25c   : > { %v1945_v11 = vadd.f32 %v6873_v19, %v1866_v25  ;;  %v4553_v19 = vld [vmem:[%s8552_s7 + $0x828] sm:$0xff]  ;;  %v4528_v25 = vld [vmem:[%s8552_s7 + $0x7a0] sm:$0xff] }
 0x25d   : > { %v2150_v10 = vpop.f32.mrf.mxu3  ;;  %3040 = vmatpush.msrb.mxu3 %v4553_v19  ;;  %2965 = vmatpush.msrb.mxu2 %v4528_v25 }
 0x25e   : > { %v7186_v53 = vadd.f32 %v2150_v10, %v2039_v15 }
 0x25f   : > { %v7191_v44 = vpop.f32.mrf.mxu1  ;;  %4453 = vmatmul.msk.f32.gmra.mxu2 %vm8736_vm7, %v8735_v37  ;;  %vm8739_vm7 = vcmp.ge.s32.totalorder %v5304_v50, 1  ;;  %3041 = vmatpush.msrb.mxu3 %v4552_v0  ;;  %v4583_v0 = vld [vmem:[%s8552_s7 + $0x8d8] sm:$0xff] }
 0x260   : > { %v7196_v40 = vpop.f32.mrf.mxu0 }
 0x262   : > { %v2018_v57 = vpop.f32.mrf.mxu2  ;;  %2745 = vmatmul.f32.gmra.mxu3 %v8710_v16  ;;  %4492 = vmatmul.msk.f32.vlgmr.msra.gmra.mxu1 %vm8737_vm6, %v6436_v17  ;;  %v4603_v17 = vld [vmem:[%s8552_s7 + $0x978] sm:$0xff]  ;;  %vm8740_vm6 = vcmp.lt.s32.totalorder %v5270_v32, 7 }
 0x263   : > { %v2040_v15 = vadd.f32 %v2018_v57, %v1945_v11  ;;  %4516 = vmatmul.msk.f32.vlgmr.msra.gmra.mxu0 %vm2077_vm2, %v8712_v4  ;;  %v1869_v4 = vadd.f32 %v6921_v47, %v6904_v62  ;;  %v4586_v11 = vld [vmem:[%s8552_s7 + $0x8f0] sm:$0xff]  ;;  %v8738_v62 = vld [vmem:[#allocation29_spill] sm:$0xff] }
 0x264   : > { %3169 = vmatpush.msrb.mxu0 %v4603_v17  ;;  %v4602_v57 = vld [vmem:[%s8552_s7 + $0x970] sm:$0xff]  ;;  %3097 = vmatpush.msrb.mxu1 %v4586_v11  ;;  %v4601_v17 = vld [vmem:[%s8552_s7 + $0x968] sm:$0xff]  ;;  %v4600_v11 = vld [vmem:[%s8552_s7 + $0x960] sm:$0xff] }
 0x265   : > { %v2153_v10 = vpop.f32.mrf.mxu3 }
 0x266   : > { %v7223_v6 = vadd.f32 %v2153_v10, %v2040_v15  ;;  %3170 = vmatpush.msrb.mxu0 %v4602_v57  ;;  %v1946_v15 = vadd.f32 %v6927_v24, %v1869_v4  ;;  %v4527_v10 = vld [vmem:[%s8552_s7 + $0x798] sm:$0xff]  ;;  %v4584_v24 = vld [vmem:[%s8552_s7 + $0x8e0] sm:$0xff]  ;;  %3098 = vmatpush.msrb.mxu1 %v4585_v23  ;;  %v1872_v23 = vadd.f32 %v6975_v34, %v6958_v7 }
 0x267   : > { %v7234_v19 = vpop.f32.mrf.mxu1  ;;  %4454 = vmatmul.msk.f32.gmra.mxu2 %vm8739_vm7, %v8738_v62  ;;  %vm8741_vm7 = vcmp.lt.s32.totalorder %v5270_v32, 6  ;;  %v4551_v57 = vld [vmem:[%s8552_s7 + $0x818] sm:$0xff] }
 0x268   : > { %v7239_v47 = vpop.f32.mrf.mxu0  ;;  %3171 = vmatpush.msrb.mxu0 %v4601_v17  ;;  %2966 = vmatpush.msrb.mxu2 %v4527_v10  ;;  %v4582_v10 = vld [vmem:[%s8552_s7 + $0x8d0] sm:$0xff] }
 0x269   : > { %3099 = vmatpush.msrb.mxu1 %v4584_v24  ;;  %3042 = vmatpush.msrb.mxu3 %v4551_v57  ;;  %v1947_v24 = vadd.f32 %v6981_v30, %v1872_v23  ;;  %v4579_v23 = vld [vmem:[%s8552_s7 + $0x8b8] sm:$0xff] }
 0x26a   : > { %v2021_v25 = vpop.f32.mrf.mxu2  ;;  %2748 = vmatmul.f32.gmra.mxu3 %v6114_v49  ;;  %4493 = vmatmul.msk.f32.gmra.mxu1 %vm8740_vm6, %v6503_v52  ;;  %vm8742_vm6 = vcmp.ge.s32.totalorder %v5368_v13, 1 }
 0x26b   : > { %v2041_v4 = vadd.f32 %v2021_v25, %v1946_v15  ;;  %4517 = vmatmul.msk.f32.gmra.mxu0 %vm8741_vm7, %v8715_v2  ;;  %v4526_v15 = vld [vmem:[%s8552_s7 + $0x790] sm:$0xff]  ;;  %v4599_v2 = vld [vmem:[%s8552_s7 + $0x958] sm:$0xff]  ;;  %3100 = vmatpush.msrb.mxu1 %v4583_v0  ;;  %vm8743_vm7 = vcmp.lt.s32.totalorder %v5304_v50, 7  ;;  %v4597_v0 = vld [vmem:[%s8552_s7 + $0x948] sm:$0xff] }
 0x26c   : > { %3172 = vmatpush.msrb.mxu0 %v4600_v11  ;;  %2967 = vmatpush.msrb.mxu2 %v4526_v15  ;;  %v4581_v11 = vld [vmem:[%s8552_s7 + $0x8c8] sm:$0xff] }
 0x26d   : > { %v2156_v25 = vpop.f32.mrf.mxu3  ;;  %3043 = vmatpush.msrb.mxu3 %v4550_v39  ;;  %3101 = vmatpush.msrb.mxu1 %v4582_v10  ;;  %v4580_v39 = vld [vmem:[%s8552_s7 + $0x8c0] sm:$0xff]  ;;  %v4549_v15 = vld [vmem:[%s8552_s7 + $0x808] sm:$0xff]  ;;  %v1875_v10 = vadd.f32 %v7032_v43, %v7021_v35 }
 0x26e   : > { %v7278_v17 = vadd.f32 %v2156_v25, %v2041_v4  ;;  %3173 = vmatpush.msrb.mxu0 %v4599_v2  ;;  %v4598_v4 = vld [vmem:[%s8552_s7 + $0x950] sm:$0xff]  ;;  %v4525_v2 = vld [vmem:[%s8552_s7 + $0x788] sm:$0xff]  ;;  %v4524_v25 = vld [vmem:[%s8552_s7 + $0x780] sm:$0xff] }
 0x26f   : > { %v7286_v7 = vpop.f32.mrf.mxu1  ;;  %4455 = vmatmul.msk.f32.gmra.mxu2 %vm8742_vm6, %v6241_v26  ;;  %3102 = vmatpush.msrb.mxu1 %v4581_v11  ;;  %v4596_v11 = vld [vmem:[%s8552_s7 + $0x940] sm:$0xff]  ;;  %vm8744_vm6 = vcmp.ge.s32.totalorder %v5419_v41, 1 }
 0x270   : > { %v7291_v34 = vpop.f32.mrf.mxu0  ;;  %3174 = vmatpush.msrb.mxu0 %v4598_v4  ;;  %2968 = vmatpush.msrb.mxu2 %v4525_v2  ;;  %v4548_v2 = vld [vmem:[%s8552_s7 + $0x800] sm:$0xff] }
 0x271   : > { %3103 = vmatpush.msrb.mxu1 %v4580_v39  ;;  %3044 = vmatpush.msrb.mxu3 %v4549_v15  ;;  %v1948_v39 = vadd.f32 %v7035_v59, %v1875_v10  ;;  %v4626_v59 = vld [vmem:[%s8552_s7 + $0x9f8] sm:$0xff]  ;;  %v4594_v10 = vld [vmem:[%s8552_s7 + $0x930] sm:$0xff] }
 0x272   : > { %v2024_v57 = vpop.f32.mrf.mxu2  ;;  %2751 = vmatmul.f32.gmra.mxu3 %v6176_v46  ;;  %4494 = vmatmul.msk.f32.gmra.mxu1 %vm8743_vm7, %v6566_v1  ;;  %vm8745_vm7 = vcmp.ge.s32.totalorder %v5487_v14, 1 }
 0x273   : > { %v2042_v30 = vadd.f32 %v2024_v57, %v1947_v24  ;;  %4518 = vmatmul.msk.f32.gmra.mxu0 %vm2079_vm8, %v8717_v28  ;;  %2969 = vmatpush.msrb.mxu2 %v4524_v25  ;;  %v4578_v57 = vld [vmem:[%s8552_s7 + $0x8b0] sm:$0xff] }
 0x274   : > { %3175 = vmatpush.msrb.mxu0 %v4597_v0  ;;  %3104 = vmatpush.msrb.mxu1 %v4579_v23  ;;  %v4577_v0 = vld [vmem:[%s8552_s7 + $0x8a8] sm:$0xff]  ;;  %v4576_v23 = vld [vmem:[%s8552_s7 + $0x8a0] sm:$0xff] }
 0x275   : > { %v2159_v24 = vpop.f32.mrf.mxu3  ;;  %3045 = vmatpush.msrb.mxu3 %v4548_v2  ;;  %3242 = vmatpush.msra.mxu2 %v4626_v59  ;;  %v1878_v2 = vadd.f32 %v7080_v5, %v7072_v18  ;;  %v4648_v59 = vld [vmem:[%s8552_s7 + $0xa70] sm:$0xff] }
 0x276   : > { %v7330_v4 = vadd.f32 %v2159_v24, %v2042_v30  ;;  %3176 = vmatpush.msrb.mxu0 %v4596_v11  ;;  %v4595_v30 = vld [vmem:[%s8552_s7 + $0x938] sm:$0xff]  ;;  %3105 = vmatpush.msrb.mxu1 %v4578_v57  ;;  %v4625_v57 = vld [vmem:[%s8552_s7 + $0x9f0] sm:$0xff] }
 0x277   : > { %v7338_v43 = vpop.f32.mrf.mxu1  ;;  %4456 = vmatmul.msk.f32.gmra.mxu2 %vm8744_vm6, %v6290_v20  ;;  %v4649_v24 = vld [vmem:[%s8552_s7 + $0xa78] sm:$0xff]  ;;  %vm8746_vm6 = vcmp.lt.s32.totalorder %v5419_v41, 6 }
 0x278   : > { %v7343_v35 = vpop.f32.mrf.mxu0  ;;  %3106 = vmatpush.msrb.mxu1 %v4577_v0  ;;  %3177 = vmatpush.msrb.mxu0 %v4595_v30  ;;  %v4575_v11 = vld [vmem:[%s8552_s7 + $0x898] sm:$0xff]  ;;  %v4593_v0 = vld [vmem:[%s8552_s7 + $0x928] sm:$0xff] }
 0x279   : > { %3315 = vmatpush.msra.mxu3 %v4649_v24  ;;  %3243 = vmatpush.msra.mxu2 %v4625_v57 }
 0x27a   : > { %v2027_v15 = vpop.f32.mrf.mxu2  ;;  %2754 = vmatmul.f32.gmra.mxu3 %v6238_v58  ;;  %4495 = vmatmul.msk.f32.gmra.mxu1 %vm1119_vm12, %v6623_v29 }
 0x27b   : > { %v2043_v25 = vadd.f32 %v2027_v15, %v1948_v39  ;;  %4519 = vmatmul.msk.f32.gmra.mxu0 %vm8636_vm10, %v8719_v56  ;;  %3107 = vmatpush.msrb.mxu1 %v4576_v23  ;;  %v4574_v15 = vld [vmem:[%s8552_s7 + $0x890] sm:$0xff]  ;;  %v1949_v23 = vadd.f32 %v7083_v21, %v1878_v2  ;;  %v4624_v21 = vld [vmem:[%s8552_s7 + $0x9e8] sm:$0xff]  ;;  %v4591_v2 = vld [vmem:[%s8552_s7 + $0x918] sm:$0xff]  ;;  %vm8759_vm10 = vcmp.ge.s32.totalorder %v5273_v33, 1 }
 0x27c   : > { %3178 = vmatpush.msrb.mxu0 %v4594_v10  ;;  %3316 = vmatpush.msra.mxu3 %v4648_v59  ;;  %v4573_v10 = vld [vmem:[%s8552_s7 + $0x888] sm:$0xff] }
 0x27d   : > { %v2162_v39 = vpop.f32.mrf.mxu3  ;;  %3108 = vmatpush.msrb.mxu1 %v4575_v11  ;;  %v4572_v11 = vld [vmem:[%s8552_s7 + $0x880] sm:$0xff]  ;;  %3244 = vmatpush.msra.mxu2 %v4624_v21  ;;  %v8747_v21 = vld [vmem:[#allocation44_spill] sm:$0xff] }
 0x27e   : > { %v7382_v30 = vadd.f32 %v2162_v39, %v2043_v25  ;;  %3179 = vmatpush.msrb.mxu0 %v4593_v0  ;;  %v4592_v25 = vld [vmem:[%s8552_s7 + $0x920] sm:$0xff]  ;;  %v4647_v39 = vld [vmem:[%s8552_s7 + $0xa68] sm:$0xff] }
 0x27f   : > { %v7390_v5 = vpop.f32.mrf.mxu1  ;;  %4457 = vmatmul.msk.f32.gmra.mxu2 %vm8745_vm7, %v6330_v51  ;;  %3109 = vmatpush.msrb.mxu1 %v4574_v15  ;;  %v4623_v0 = vld [vmem:[%s8552_s7 + $0x9e0] sm:$0xff]  ;;  %v1881_v15 = vadd.f32 %v7120_v12, %v7114_v36  ;;  %vm8748_vm7 = vcmp.ge.s32.totalorder %v5538_v54, 1 }
 0x280   : > { %v7395_v18 = vpop.f32.mrf.mxu0  ;;  %3180 = vmatpush.msrb.mxu0 %v4592_v25  ;;  %3317 = vmatpush.msra.mxu3 %v4647_v39  ;;  %v4622_v39 = vld [vmem:[%s8552_s7 + $0x9d8] sm:$0xff] }
 0x281   : > { %3110 = vmatpush.msrb.mxu1 %v4573_v10  ;;  %3245 = vmatpush.msra.mxu2 %v4623_v0  ;;  %v1950_v12 = vadd.f32 %v7123_v45, %v1881_v15  ;;  %v4588_v45 = vld [vmem:[%s8552_s7 + $0x900] sm:$0xff]  ;;  %v4645_v15 = vld [vmem:[%s8552_s7 + $0xa58] sm:$0xff] }
 0x282   : > { %v2030_v24 = vpop.f32.mrf.mxu2  ;;  %2757 = vmatmul.f32.gmra.mxu3 %v5692_v8  ;;  %4496 = vmatmul.msk.f32.gmra.mxu1 %vm1120_vm14, %v6689_v42 }
 0x283   : > { %v2044_v57 = vadd.f32 %v2030_v24, %v1949_v23  ;;  %4520 = vmatmul.msk.f32.gmra.mxu0 %vm8746_vm6, %v6704_v31  ;;  %v4590_v23 = vld [vmem:[%s8552_s7 + $0x910] sm:$0xff]  ;;  %3111 = vmatpush.msrb.mxu1 %v4572_v11  ;;  %v4646_v24 = vld [vmem:[%s8552_s7 + $0xa60] sm:$0xff]  ;;  %v4589_v11 = vld [vmem:[%s8552_s7 + $0x908] sm:$0xff]  ;;  %vm8749_vm6 = vcmp.lt.s32.totalorder %v5487_v14, 6 }
 0x284   : > { %3181 = vmatpush.msrb.mxu0 %v4591_v2  ;;  %3318 = vmatpush.msra.mxu3 %v4646_v24  ;;  %v8635_v2 = vrot.slane %v8725_v60, 7 }
 0x285   : > { %v2165_v59 = vpop.f32.mrf.mxu3  ;;  %3246 = vmatpush.msra.mxu2 %v4622_v39 }
 0x286   : > { %v7431_v10 = vadd.f32 %v2165_v59, %v2044_v57  ;;  %3182 = vmatpush.msrb.mxu0 %v4590_v23  ;;  %v4621_v59 = vld [vmem:[%s8552_s7 + $0x9d0] sm:$0xff]  ;;  %3319 = vmatpush.msra.mxu3 %v4645_v15  ;;  %v1884_v23 = vadd.f32 %v7160_v27, %v7155_v22 }
 0x287   : > { %v7436_v25 = vpop.f32.mrf.mxu1  ;;  %4458 = vmatmul.msk.f32.gmra.mxu2 %vm8748_vm7, %v8747_v21  ;;  %vm8751_vm7 = vcmask 1040384  }
 0x288   : > { %v7441_v36 = vpop.f32.mrf.mxu0  ;;  %3183 = vmatpush.msrb.mxu0 %v4589_v11  ;;  %3247 = vmatpush.msra.mxu2 %v4621_v59  ;;  %v4644_v11 = vld [vmem:[%s8552_s7 + $0xa50] sm:$0xff]  ;;  %v1951_v27 = vadd.f32 %v7165_v3, %v1884_v23  ;;  %v4643_v3 = vld [vmem:[%s8552_s7 + $0xa48] sm:$0xff]  ;;  %v4619_v23 = vld [vmem:[%s8552_s7 + $0x9c0] sm:$0xff] }
 0x289   : > { %3320 = vmatpush.msra.mxu3 %v4644_v11 }
 0x28a   : > { %v2033_v57 = vpop.f32.mrf.mxu2  ;;  %2760 = vmatmul.f32.gmra.mxu3 %v5699_v9  ;;  %4497 = vmatmul.msk.f32.gmra.mxu1 %vm1121_vm0, %v6741_v48 }
 0x28b   : > { %v2045_v0 = vadd.f32 %v2033_v57, %v1950_v12  ;;  %4521 = vmatmul.msk.f32.gmra.mxu0 %vm8749_vm6, %v6755_v55  ;;  %v8750_v57 = vrot.slane %v5699_v9, 7  ;;  %vm8752_vm6 = vcmp.ge.s32.totalorder %v5603_v38, 1  ;;  %3321 = vmatpush.msra.mxu3 %v4643_v3 }
 0x28c   : > { %3184 = vmatpush.msrb.mxu0 %v4588_v45  ;;  %v4620_v45 = vld [vmem:[%s8552_s7 + $0x9c8] sm:$0xff] }
 0x28d   : > { %v2168_v24 = vpop.f32.mrf.mxu3  ;;  %v7476_v39 = vsel %vm8751_vm7, %v8750_v57, %v8635_v2  ;;  %vm8753_vm7 = vcmp.lt.s32.totalorder %v5538_v54, 7  ;;  %3248 = vmatpush.msra.mxu2 %v4620_v45  ;;  %v8755_v45 = vld [vmem:[#allocation30_spill] sm:$0xff] }
 0x28e   : > { %v7469_v12 = vadd.f32 %v2168_v24, %v2045_v0  ;;  %v2250_v24 = vadd.f32 %v7191_v44, %v7186_v53  ;;  %v8757_v53 = vrot.slane %v8725_v60, 1 }
 0x28f   : > { %v7481_v15 = vpop.f32.mrf.mxu1  ;;  %4459 = vmatmul.msk.f32.gmra.mxu2 %vm8752_vm6, %v7476_v39  ;;  %vm8754_vm6 = vcmp.lt.s32.totalorder %v5538_v54, 6 }
 0x290   : > { %v7486_v22 = vpop.f32.mrf.mxu0  ;;  %3249 = vmatpush.msra.mxu2 %v4619_v23  ;;  %v2326_v3 = vadd.f32 %v7196_v40, %v2250_v24  ;;  %v7523_v44 = vsel %vm623_vm1, %v8757_v53, 0.0  ;;  %v4618_v23 = vld [vmem:[%s8552_s7 + $0x9b8] sm:$0xff]  ;;  %v8760_v40 = vld [vmem:[#allocation18_spill] sm:$0xff]  ;;  %v4640_v53 = vld [vmem:[%s8552_s7 + $0xa30] sm:$0xff]  ;;  %vm8762_vm1 = vcmp.ge.s32.totalorder %v5270_v32, 1 }
 0x291   : > { %v4641_v24 = vld [vmem:[%s8552_s7 + $0xa38] sm:$0xff] }
 0x292   : > { %v2036_v0 = vpop.f32.mrf.mxu2  ;;  %2763 = vmatmul.f32.gmra.mxu3 %v8725_v60  ;;  %4498 = vmatmul.msk.f32.gmra.mxu1 %vm8753_vm7, %v7131_v63  ;;  %vm8756_vm7 = vcmp.ge.s32.totalorder %v5273_v33, 2 }
 0x293   : > { %v2046_v59 = vadd.f32 %v2036_v0, %v1951_v27  ;;  %4522 = vmatmul.msk.f32.gmra.mxu0 %vm8754_vm6, %v8732_v61  ;;  %v4642_v27 = vld [vmem:[%s8552_s7 + $0xa40] sm:$0xff]  ;;  %vm8758_vm6 = vcmp.lt.s32.totalorder %v5603_v38, 7  ;;  %3250 = vmatpush.msra.mxu2 %v4618_v23  ;;  %v8761_v23 = vld [vmem:[#allocation31_spill] sm:$0xff]  ;;  %v4636_v61 = vld [vmem:[%s8552_s7 + $0xa10] sm:$0xff] }
 0x294   : > { %3322 = vmatpush.msra.mxu3 %v4642_v27  ;;  %v4617_v27 = vld [vmem:[%s8552_s7 + $0x9b0] sm:$0xff] }
 0x295   : > { %v2171_v57 = vpop.f32.mrf.mxu3  ;;  %3251 = vmatpush.msra.mxu2 %v4617_v27  ;;  %v4672_v27 = vld [vmem:[%s8552_s7 + $0xaf8] sm:$0xff] }
 0x296   : > { %v7507_v11 = vadd.f32 %v2171_v57, %v2046_v59  ;;  %3323 = vmatpush.msra.mxu3 %v4641_v24  ;;  %3388 = vmatpush.msra.mxu1 %v4672_v27  ;;  %v4670_v27 = vld [vmem:[%s8552_s7 + $0xae8] sm:$0xff] }
 0x297   : > { %v7512_v0 = vpop.f32.mrf.mxu1  ;;  %4540 = vmatmul.msk.f32.vlgmr.msrb.gmra.mxu2 %vm8756_vm7, %v8755_v45  ;;  %vm8766_vm7 = vcmp.lt.s32.totalorder %v5270_v32, 7 }
 0x298   : > { %v7517_v2 = vpop.f32.mrf.mxu0  ;;  %3324 = vmatpush.msra.mxu3 %v4640_v53 }
 0x29a   : > { %v2368_v59 = vpop.f32.mrf.mxu2  ;;  %4499 = vmatmul.msk.f32.gmra.mxu1 %vm8758_vm6, %v7523_v44  ;;  %4564 = vmatmul.msk.f32.vlgmr.msrb.gmra.mxu3 %vm8759_vm10, %v8735_v37  ;;  %v2251_v37 = vadd.f32 %v7234_v19, %v7223_v6  ;;  %v4616_v19 = vld [vmem:[%s8552_s7 + $0x9a8] sm:$0xff]  ;;  %vm8765_vm10 = vcmp.ge.s32.totalorder %v5304_v50, 1  ;;  %vm8768_vm6 = vcmp.ge.s32.totalorder %v5368_v13, 1 }
 0x29b   : > { %v2392_v57 = vadd.f32 %v2368_v59, %v2326_v3  ;;  %4523 = vmatmul.msk.f32.gmra.mxu0 %vm2084_vm9, %v8760_v40  ;;  %vm8763_vm9 = vcmp.lt.s32.totalorder %v5273_v33, 7  ;;  %3252 = vmatpush.msra.mxu2 %v4616_v19  ;;  %v4638_v19 = vld [vmem:[%s8552_s7 + $0xa20] sm:$0xff] }
 0x29c   : > { %v2327_v24 = vadd.f32 %v7239_v47, %v2251_v37  ;;  %v4639_v47 = vld [vmem:[%s8552_s7 + $0xa28] sm:$0xff]  ;;  %v4615_v37 = vld [vmem:[%s8552_s7 + $0x9a0] sm:$0xff] }
 0x29d   : > { %v2446_v45 = vpop.f32.mrf.mxu3  ;;  %3325 = vmatpush.msra.mxu3 %v4639_v47  ;;  %3253 = vmatpush.msra.mxu2 %v4615_v37 }
 0x29e   : > { %v7545_v3 = vadd.f32 %v2446_v45, %v2392_v57 }
 0x29f   : > { %v7550_v59 = vpop.f32.mrf.mxu1  ;;  %4541 = vmatmul.msk.f32.gmra.mxu2 %vm1702_vm3, %v8761_v23  ;;  %3326 = vmatpush.msra.mxu3 %v4638_v19  ;;  %v4668_v19 = vld [vmem:[%s8552_s7 + $0xad8] sm:$0xff] }
 0x2a0   : > { %v7555_v40 = vpop.f32.mrf.mxu0 }
 0x2a2   : > { %v2371_v6 = vpop.f32.mrf.mxu2  ;;  %4565 = vmatmul.msk.f32.gmra.mxu3 %vm8762_vm1, %v8738_v62  ;;  %3112 = vmatmul.f32.vlgmr.msrb.gmra.mxu1 %v8710_v16  ;;  %v4695_v16 = vld [vmem:[%s8552_s7 + $0xb78] sm:$0xff]  ;;  %vm8769_vm1 = vcmp.lt.s32.totalorder %v5304_v50, 7 }
 0x2a3   : > { %v2393_v57 = vadd.f32 %v2371_v6, %v2327_v24  ;;  %4604 = vmatmul.msk.f32.vlgmr.msrb.gmra.mxu0 %vm8763_vm9, %v6503_v52  ;;  %v2252_v52 = vadd.f32 %v7286_v7, %v7278_v17  ;;  %v4671_v24 = vld [vmem:[%s8552_s7 + $0xaf0] sm:$0xff]  ;;  %vm8771_vm9 = vcmp.ge.s32.totalorder %v5419_v41, 1 }
 0x2a4   : > { %3454 = vmatpush.msra.mxu0 %v4695_v16  ;;  %v4694_v6 = vld [vmem:[%s8552_s7 + $0xb70] sm:$0xff]  ;;  %3389 = vmatpush.msra.mxu1 %v4671_v24  ;;  %v4693_v16 = vld [vmem:[%s8552_s7 + $0xb68] sm:$0xff]  ;;  %v4692_v24 = vld [vmem:[%s8552_s7 + $0xb60] sm:$0xff] }
 0x2a5   : > { %v2449_v45 = vpop.f32.mrf.mxu3  ;;  %v8764_v17 = vld [vmem:[#allocation32_spill] sm:$0xff] }
 0x2a6   : > { %v7582_v53 = vadd.f32 %v2449_v45, %v2393_v57  ;;  %3455 = vmatpush.msra.mxu0 %v4694_v6  ;;  %v2328_v57 = vadd.f32 %v7291_v34, %v2252_v52  ;;  %v4614_v45 = vld [vmem:[%s8552_s7 + $0x998] sm:$0xff]  ;;  %v4669_v34 = vld [vmem:[%s8552_s7 + $0xae0] sm:$0xff]  ;;  %3390 = vmatpush.msra.mxu1 %v4670_v27  ;;  %v2253_v27 = vadd.f32 %v7338_v43, %v7330_v4 }
 0x2a7   : > { %v7593_v47 = vpop.f32.mrf.mxu1  ;;  %4542 = vmatmul.msk.f32.gmra.mxu2 %vm1703_vm4, %v8764_v17  ;;  %v4637_v6 = vld [vmem:[%s8552_s7 + $0xa18] sm:$0xff] }
 0x2a8   : > { %v7598_v7 = vpop.f32.mrf.mxu0  ;;  %3456 = vmatpush.msra.mxu0 %v4693_v16  ;;  %3254 = vmatpush.msra.mxu2 %v4614_v45  ;;  %v4667_v45 = vld [vmem:[%s8552_s7 + $0xad0] sm:$0xff]  ;;  %v8767_v43 = vld [vmem:[#allocation33_spill] sm:$0xff] }
 0x2a9   : > { %3391 = vmatpush.msra.mxu1 %v4669_v34  ;;  %3327 = vmatpush.msra.mxu3 %v4637_v6  ;;  %v4666_v6 = vld [vmem:[%s8552_s7 + $0xac8] sm:$0xff] }
 0x2aa   : > { %v2374_v37 = vpop.f32.mrf.mxu2  ;;  %4566 = vmatmul.msk.f32.gmra.mxu3 %vm8765_vm10, %v6241_v26  ;;  %3115 = vmatmul.f32.gmra.mxu1 %v6114_v49  ;;  %vm8773_vm10 = vcmp.ge.s32.totalorder %v5487_v14, 1 }
 0x2ab   : > { %v2394_v52 = vadd.f32 %v2374_v37, %v2328_v57  ;;  %4605 = vmatmul.msk.f32.gmra.mxu0 %vm8766_vm7, %v6566_v1  ;;  %v4613_v57 = vld [vmem:[%s8552_s7 + $0x990] sm:$0xff]  ;;  %v4691_v1 = vld [vmem:[%s8552_s7 + $0xb58] sm:$0xff]  ;;  %3392 = vmatpush.msra.mxu1 %v4668_v19  ;;  %v4689_v19 = vld [vmem:[%s8552_s7 + $0xb48] sm:$0xff]  ;;  %vm8775_vm7 = vcmp.ge.s32.totalorder %v5538_v54, 1 }
 0x2ac   : > { %3457 = vmatpush.msra.mxu0 %v4692_v24  ;;  %3255 = vmatpush.msra.mxu2 %v4613_v57  ;;  %v4690_v24 = vld [vmem:[%s8552_s7 + $0xb50] sm:$0xff] }
 0x2ad   : > { %v2452_v37 = vpop.f32.mrf.mxu3  ;;  %3328 = vmatpush.msra.mxu3 %v4636_v61  ;;  %3393 = vmatpush.msra.mxu1 %v4667_v45  ;;  %v4665_v61 = vld [vmem:[%s8552_s7 + $0xac0] sm:$0xff] }
 0x2ae   : > { %v7637_v16 = vadd.f32 %v2452_v37, %v2394_v52  ;;  %3458 = vmatpush.msra.mxu0 %v4691_v1  ;;  %v2329_v52 = vadd.f32 %v7343_v35, %v2253_v27  ;;  %v4612_v1 = vld [vmem:[%s8552_s7 + $0x988] sm:$0xff]  ;;  %v4664_v37 = vld [vmem:[%s8552_s7 + $0xab8] sm:$0xff]  ;;  %v4611_v45 = vld [vmem:[%s8552_s7 + $0x980] sm:$0xff] }
 0x2af   : > { %v7645_v4 = vpop.f32.mrf.mxu1  ;;  %4543 = vmatmul.msk.f32.gmra.mxu2 %vm1704_vm5, %v8767_v43  ;;  %3394 = vmatpush.msra.mxu1 %v4666_v6  ;;  %v4635_v27 = vld [vmem:[%s8552_s7 + $0xa08] sm:$0xff] }
 0x2b0   : > { %v7650_v34 = vpop.f32.mrf.mxu0  ;;  %3459 = vmatpush.msra.mxu0 %v4690_v24  ;;  %3256 = vmatpush.msra.mxu2 %v4612_v1  ;;  %v4663_v1 = vld [vmem:[%s8552_s7 + $0xab0] sm:$0xff] }
 0x2b1   : > { %3395 = vmatpush.msra.mxu1 %v4665_v61  ;;  %3329 = vmatpush.msra.mxu3 %v4635_v27  ;;  %v4662_v27 = vld [vmem:[%s8552_s7 + $0xaa8] sm:$0xff] }
 0x2b2   : > { %v2377_v57 = vpop.f32.mrf.mxu2  ;;  %4567 = vmatmul.msk.f32.gmra.mxu3 %vm8768_vm6, %v6290_v20  ;;  %3118 = vmatmul.f32.gmra.mxu1 %v6176_v46  ;;  %vm8777_vm6 = vcmp.ge.s32.totalorder %v5603_v38, 2 }
 0x2b3   : > { %v2395_v35 = vadd.f32 %v2377_v57, %v2329_v52  ;;  %4606 = vmatmul.msk.f32.gmra.mxu0 %vm8769_vm1, %v6623_v29  ;;  %v2254_v52 = vadd.f32 %v7390_v5, %v7382_v30  ;;  %v4688_v57 = vld [vmem:[%s8552_s7 + $0xb40] sm:$0xff]  ;;  %3257 = vmatpush.msra.mxu2 %v4611_v45  ;;  %vm8779_vm1 = vcmask 1040384  }
 0x2b4   : > { %3460 = vmatpush.msra.mxu0 %v4689_v19  ;;  %v4634_v29 = vld [vmem:[%s8552_s7 + $0xa00] sm:$0xff]  ;;  %3396 = vmatpush.msra.mxu1 %v4664_v37  ;;  %v4687_v19 = vld [vmem:[%s8552_s7 + $0xb38] sm:$0xff] }
 0x2b5   : > { %v2455_v6 = vpop.f32.mrf.mxu3  ;;  %v8770_v5 = vld [vmem:[#allocation34_spill] sm:$0xff]  ;;  %3330 = vmatpush.msra.mxu3 %v4634_v29  ;;  %v4711_v29 = vld [vmem:[%s8552_s7 + $0xbf8] sm:$0xff] }
 0x2b6   : > { %v7689_v24 = vadd.f32 %v2455_v6, %v2395_v35  ;;  %3461 = vmatpush.msra.mxu0 %v4688_v57  ;;  %v2330_v35 = vadd.f32 %v7395_v18, %v2254_v52  ;;  %3397 = vmatpush.msra.mxu1 %v4663_v1  ;;  %v4661_v18 = vld [vmem:[%s8552_s7 + $0xaa0] sm:$0xff]  ;;  %v4686_v52 = vld [vmem:[%s8552_s7 + $0xb30] sm:$0xff]  ;;  %v4733_v6 = vld [vmem:[%s8552_s7 + $0xc78] sm:$0xff] }
 0x2b7   : > { %v7697_v30 = vpop.f32.mrf.mxu1  ;;  %4544 = vmatmul.msk.f32.gmra.mxu2 %vm1705_vm15, %v8770_v5  ;;  %v4660_v57 = vld [vmem:[%s8552_s7 + $0xa98] sm:$0xff]  ;;  %v4710_v1 = vld [vmem:[%s8552_s7 + $0xbf0] sm:$0xff]  ;;  %3598 = vmatpush.msrb.mxu3 %v4733_v6 }
 0x2b8   : > { %v7702_v61 = vpop.f32.mrf.mxu0  ;;  %3398 = vmatpush.msra.mxu1 %v4662_v27  ;;  %3462 = vmatpush.msra.mxu0 %v4687_v19  ;;  %v4685_v27 = vld [vmem:[%s8552_s7 + $0xb28] sm:$0xff] }
 0x2b9   : > { %3526 = vmatpush.msrb.mxu2 %v4711_v29  ;;  %v4659_v29 = vld [vmem:[%s8552_s7 + $0xa90] sm:$0xff] }
 0x2ba   : > { %v2380_v45 = vpop.f32.mrf.mxu2  ;;  %4568 = vmatmul.msk.f32.gmra.mxu3 %vm8771_vm9, %v6330_v51  ;;  %3121 = vmatmul.f32.gmra.mxu1 %v6238_v58  ;;  %vm8780_vm9 = vcmp.ge.s32.totalorder %v5603_v38, 1  ;;  %v4704_v38 = vld [vmem:[%s8552_s7 + $0xbc0] sm:$0xff] }
 0x2bb   : > { %v2396_v37 = vadd.f32 %v2380_v45, %v2330_v35  ;;  %4607 = vmatmul.msk.f32.gmra.mxu0 %vm1119_vm12, %v6689_v42  ;;  %v2255_v35 = vadd.f32 %v7436_v25, %v7431_v10  ;;  %3399 = vmatpush.msra.mxu1 %v4661_v18  ;;  %v4732_v42 = vld [vmem:[%s8552_s7 + $0xc70] sm:$0xff]  ;;  %v8772_v25 = vld [vmem:[#allocation14_spill] sm:$0xff] }
 0x2bc   : > { %3463 = vmatpush.msra.mxu0 %v4686_v52  ;;  %3527 = vmatpush.msrb.mxu2 %v4710_v1  ;;  %v4658_v52 = vld [vmem:[%s8552_s7 + $0xa88] sm:$0xff] }
 0x2bd   : > { %v2458_v45 = vpop.f32.mrf.mxu3  ;;  %3400 = vmatpush.msra.mxu1 %v4660_v57  ;;  %3599 = vmatpush.msrb.mxu3 %v4732_v42  ;;  %v2331_v18 = vadd.f32 %v7441_v36, %v2255_v35  ;;  %v4709_v42 = vld [vmem:[%s8552_s7 + $0xbe8] sm:$0xff]  ;;  %v4657_v36 = vld [vmem:[%s8552_s7 + $0xa80] sm:$0xff]  ;;  %v4683_v35 = vld [vmem:[%s8552_s7 + $0xb18] sm:$0xff] }
 0x2be   : > { %v7741_v19 = vadd.f32 %v2458_v45, %v2396_v37  ;;  %3464 = vmatpush.msra.mxu0 %v4685_v27  ;;  %v4684_v37 = vld [vmem:[%s8552_s7 + $0xb20] sm:$0xff]  ;;  %v4731_v45 = vld [vmem:[%s8552_s7 + $0xc68] sm:$0xff]  ;;  %3528 = vmatpush.msrb.mxu2 %v4709_v42 }
 0x2bf   : > { %v7749_v10 = vpop.f32.mrf.mxu1  ;;  %4545 = vmatmul.msk.f32.gmra.mxu2 %vm1706_vm11, %v8772_v25  ;;  %3401 = vmatpush.msra.mxu1 %v4659_v29  ;;  %v4708_v27 = vld [vmem:[%s8552_s7 + $0xbe0] sm:$0xff]  ;;  %v2256_v29 = vadd.f32 %v7481_v15, %v7469_v12  ;;  %v8774_v42 = vld [vmem:[#allocation19_spill] sm:$0xff] }
 0x2c0   : > { %v7761_v6 = vpop.f32.mrf.mxu0  ;;  %3465 = vmatpush.msra.mxu0 %v4684_v37  ;;  %3600 = vmatpush.msrb.mxu3 %v4731_v45  ;;  %v4681_v15 = vld [vmem:[%s8552_s7 + $0xb08] sm:$0xff]  ;;  %v4706_v45 = vld [vmem:[%s8552_s7 + $0xbd0] sm:$0xff] }
 0x2c1   : > { %3402 = vmatpush.msra.mxu1 %v4658_v52  ;;  %3529 = vmatpush.msrb.mxu2 %v4708_v27  ;;  %v2332_v12 = vadd.f32 %v7486_v22, %v2256_v29  ;;  %v4729_v22 = vld [vmem:[%s8552_s7 + $0xc58] sm:$0xff]  ;;  %v2257_v29 = vadd.f32 %v7512_v0, %v7507_v11  ;;  %v8778_v11 = vrot.slane %v8725_v60, 7 }
 0x2c2   : > { %v2383_v1 = vpop.f32.mrf.mxu2  ;;  %4569 = vmatmul.msk.f32.gmra.mxu3 %vm8773_vm10, %v8747_v21  ;;  %3124 = vmatmul.f32.gmra.mxu1 %v5692_v8  ;;  %vm8781_vm10 = vcmp.lt.s32.totalorder %v5538_v54, 7 }
 0x2c3   : > { %v2397_v57 = vadd.f32 %v2383_v1, %v2331_v18  ;;  %4608 = vmatmul.msk.f32.gmra.mxu0 %vm1120_vm14, %v6741_v48  ;;  %v4682_v1 = vld [vmem:[%s8552_s7 + $0xb10] sm:$0xff]  ;;  %3403 = vmatpush.msra.mxu1 %v4657_v36  ;;  %v4730_v48 = vld [vmem:[%s8552_s7 + $0xc60] sm:$0xff]  ;;  %v7841_v0 = vsel %vm8779_vm1, %v8778_v11, 0.0  ;;  %v8782_v11 = vld [vmem:[#allocation37_spill] sm:$0xff]  ;;  %vm8786_vm1 = vcmp.ge.s32.totalorder %v5273_v33, 1 }
 0x2c4   : > { %3466 = vmatpush.msra.mxu0 %v4683_v35  ;;  %3601 = vmatpush.msrb.mxu3 %v4730_v48  ;;  %v4680_v48 = vld [vmem:[%s8552_s7 + $0xb00] sm:$0xff] }
 0x2c5   : > { %v2461_v18 = vpop.f32.mrf.mxu3 }
 0x2c6   : > { %v7790_v52 = vadd.f32 %v2461_v18, %v2397_v57  ;;  %3467 = vmatpush.msra.mxu0 %v4682_v1  ;;  %v4707_v57 = vld [vmem:[%s8552_s7 + $0xbd8] sm:$0xff]  ;;  %3602 = vmatpush.msrb.mxu3 %v4729_v22 }
 0x2c7   : > { %v7795_v37 = vpop.f32.mrf.mxu1  ;;  %4546 = vmatmul.msk.f32.gmra.mxu2 %vm1707_vm13, %v8774_v42 }
 0x2c8   : > { %3530 = vmatpush.msrb.mxu2 %v4707_v57  ;;  %v7823_v27 = vpop.f32.mrf.mxu0  ;;  %3468 = vmatpush.msra.mxu0 %v4681_v15  ;;  %v8776_v57 = vld [vmem:[#allocation20_spill] sm:$0xff]  ;;  %v2333_v15 = vadd.f32 %v7517_v2, %v2257_v29  ;;  %v4727_v2 = vld [vmem:[%s8552_s7 + $0xc48] sm:$0xff] }
 0x2ca   : > { %v2386_v36 = vpop.f32.mrf.mxu2  ;;  %4570 = vmatmul.msk.f32.gmra.mxu3 %vm8775_vm7, %v7476_v39  ;;  %3127 = vmatmul.f32.gmra.mxu1 %v5699_v9  ;;  %vm8784_vm7 = vcmp.ge.s32.totalorder %v5273_v33, 2 }
 0x2cb   : > { %v2398_v35 = vadd.f32 %v2386_v36, %v2332_v12  ;;  %4609 = vmatmul.msk.f32.gmra.mxu0 %vm1121_vm0, %v7131_v63  ;;  %3531 = vmatpush.msrb.mxu2 %v4706_v45  ;;  %v4728_v12 = vld [vmem:[%s8552_s7 + $0xc50] sm:$0xff]  ;;  %v2547_v45 = vadd.f32 %v7550_v59, %v7545_v3  ;;  %v8783_v59 = vmov 0.0  }
 0x2cc   : > { %3469 = vmatpush.msra.mxu0 %v4680_v48  ;;  %3603 = vmatpush.msrb.mxu3 %v4728_v12  ;;  %v4705_v48 = vld [vmem:[%s8552_s7 + $0xbc8] sm:$0xff] }
 0x2cd   : > { %v2464_v18 = vpop.f32.mrf.mxu3  ;;  %3532 = vmatpush.msrb.mxu2 %v4705_v48 }
 0x2ce   : > { %v7827_v1 = vadd.f32 %v2464_v18, %v2398_v35  ;;  %3604 = vmatpush.msrb.mxu3 %v4727_v2 }
 0x2cf   : > { %v7832_v36 = vpop.f32.mrf.mxu1  ;;  %4547 = vmatmul.msk.f32.gmra.mxu2 %vm8777_vm6, %v8776_v57  ;;  %vm8785_vm6 = vcmp.lt.s32.totalorder %v5270_v32, 6 }
 0x2d0   : > { %3533 = vmatpush.msrb.mxu2 %v4704_v38  ;;  %v7861_v18 = vpop.f32.mrf.mxu0  ;;  %v4702_v38 = vld [vmem:[%s8552_s7 + $0xbb0] sm:$0xff] }
 0x2d2   : > { %v2389_v35 = vpop.f32.mrf.mxu2  ;;  %4571 = vmatmul.msk.f32.gmra.mxu3 %vm8780_vm9, %v7841_v0  ;;  %3130 = vmatmul.f32.gmra.mxu1 %v8725_v60  ;;  %vm8789_vm9 = vcmp.ge.s32.totalorder %v5304_v50, 1 }
 0x2d3   : > { %v2399_v22 = vadd.f32 %v2389_v35, %v2333_v15  ;;  %4610 = vmatmul.msk.f32.gmra.mxu0 %vm8781_vm10, %v7523_v44  ;;  %v4726_v15 = vld [vmem:[%s8552_s7 + $0xc40] sm:$0xff]  ;;  %v2624_v35 = vadd.f32 %v7555_v40, %v2547_v45  ;;  %v4725_v40 = vld [vmem:[%s8552_s7 + $0xc38] sm:$0xff]  ;;  %vm8791_vm10 = vcmp.ge.s32.totalorder %v5368_v13, 1 }
 0x2d4   : > { %3605 = vmatpush.msrb.mxu3 %v4726_v15  ;;  %v4724_v15 = vld [vmem:[%s8552_s7 + $0xc30] sm:$0xff] }
 0x2d5   : > { %v2467_v29 = vpop.f32.mrf.mxu3 }
 0x2d6   : > { %v7863_v12 = vadd.f32 %v2467_v29, %v2399_v22  ;;  %v4703_v22 = vld [vmem:[%s8552_s7 + $0xbb8] sm:$0xff]  ;;  %3606 = vmatpush.msrb.mxu3 %v4725_v40 }
 0x2d7   : > { %4627 = vmatmul.msk.f32.vlgmr.msra.gmra.mxu2 %vm2077_vm2, %v8782_v11  ;;  %v7872_v48 = vpop.f32.mrf.mxu1 }
 0x2d8   : > { %3534 = vmatpush.msrb.mxu2 %v4703_v22  ;;  %3607 = vmatpush.msrb.mxu3 %v4724_v15  ;;  %v7898_v11 = vpop.f32.mrf.mxu0 }
 0x2da   : > { %v2677_v3 = vpop.f32.mrf.mxu2  ;;  %3133 = vmatmul.f32.gmra.mxu1 %v8783_v59  ;;  %4650 = vmatmul.msk.f32.vlgmr.msra.gmra.mxu3 %vm8784_vm7, %v8761_v23  ;;  %v2548_v23 = vadd.f32 %v7593_v47, %v7582_v53  ;;  %v4701_v53 = vld [vmem:[%s8552_s7 + $0xba8] sm:$0xff]  ;;  %vm8794_vm7 = vcmp.ge.s32.totalorder %v5419_v41, 1 }
 0x2db   : > { %v2701_v2 = vadd.f32 %v2677_v3, %v2624_v35  ;;  %3206 = vmatmul.f32.gmra.mxu0 %v8783_v59  ;;  %3535 = vmatpush.msrb.mxu2 %v4702_v38  ;;  %v3683_v38 = vld [vmem:[%s8555_s10 + $0x70] sm:$0xff] }
 0x2dc   : > { %v2625_v35 = vadd.f32 %v7598_v7, %v2548_v23  ;;  %v4723_v7 = vld [vmem:[%s8552_s7 + $0xc28] sm:$0xff]  ;;  %v4722_v23 = vld [vmem:[%s8552_s7 + $0xc20] sm:$0xff] }
 0x2dd   : > { %v2743_v45 = vpop.f32.mrf.mxu3  ;;  %3536 = vmatpush.msrb.mxu2 %v4701_v53  ;;  %3608 = vmatpush.msrb.mxu3 %v4723_v7  ;;  %v3680_v53 = vld [vmem:[%s8555_s10 + $0x58] sm:$0xff] }
 0x2de   : > { %v7890_v29 = vadd.f32 %v2743_v45, %v2701_v2  ;;  %v2549_v2 = vadd.f32 %v7645_v4, %v7637_v16  ;;  %v3682_v4 = vld [vmem:[%s8555_s10 + $0x68] sm:$0xff] }
 0x2df   : > { %4628 = vmatmul.msk.f32.gmra.mxu2 %vm8785_vm6, %v8717_v28  ;;  %v7910_v47 = vpop.f32.mrf.mxu1  ;;  %3609 = vmatpush.msrb.mxu3 %v4722_v23  ;;  %vm8797_vm6 = vcmp.ge.s32.totalorder %v5487_v14, 1 }
 0x2e0   : > { %v2626_v16 = vadd.f32 %v7650_v34, %v2549_v2  ;;  %v7939_v45 = vpop.f32.mrf.mxu0  ;;  %v3681_v34 = vld [vmem:[%s8555_s10 + $0x60] sm:$0xff]  ;;  %v4720_v2 = vld [vmem:[%s8552_s7 + $0xc10] sm:$0xff] }
 0x2e2   : > { %v2680_v3 = vpop.f32.mrf.mxu2  ;;  %4651 = vmatmul.msk.f32.gmra.mxu3 %vm1702_vm3, %v8764_v17  ;;  %4673 = vmatmul.msk.f32.vlgmr.msra.gmra.mxu1 %vm8786_vm1, %v8738_v62  ;;  %v3684_v17 = vld [vmem:[%s8555_s10 + $0x78] sm:$0xff]  ;;  %v4700_v62 = vld [vmem:[%s8552_s7 + $0xba0] sm:$0xff]  ;;  %vm8787_vm3 = vcmp.ge.s32.totalorder %v5270_v32, 1  ;;  %vm8800_vm1 = vcmp.lt.s32.totalorder %v5273_v33, 7 }
 0x2e3   : > { %v2702_v22 = vadd.f32 %v2680_v3, %v2625_v35  ;;  %3470 = vmatmul.f32.vlgmr.msra.gmra.mxu0 %v6114_v49  ;;  %3685 = vmatpush.msrb.mxu1 %v3684_v17  ;;  %v4699_v35 = vld [vmem:[%s8552_s7 + $0xb98] sm:$0xff] }
 0x2e4   : > { %3537 = vmatpush.msrb.mxu2 %v4700_v62  ;;  %v3679_v62 = vld [vmem:[%s8555_s10 + $0x50] sm:$0xff] }
 0x2e5   : > { %v2746_v40 = vpop.f32.mrf.mxu3  ;;  %3686 = vmatpush.msrb.mxu1 %v3683_v38  ;;  %v4697_v38 = vld [vmem:[%s8552_s7 + $0xb88] sm:$0xff] }
 0x2e6   : > { %v7924_v49 = vadd.f32 %v2746_v40, %v2702_v22  ;;  %3538 = vmatpush.msrb.mxu2 %v4699_v35  ;;  %v2550_v22 = vadd.f32 %v7697_v30, %v7689_v24  ;;  %v3678_v30 = vld [vmem:[%s8555_s10 + $0x48] sm:$0xff] }
 0x2e7   : > { %4629 = vmatmul.msk.f32.gmra.mxu2 %vm2079_vm8, %v8719_v56  ;;  %3687 = vmatpush.msrb.mxu1 %v3682_v4  ;;  %v7965_v7 = vpop.f32.mrf.mxu1  ;;  %v3676_v4 = vld [vmem:[%s8555_s10 + $0x38] sm:$0xff] }
 0x2e8   : > { %v2627_v24 = vadd.f32 %v7702_v61, %v2550_v22  ;;  %v3677_v61 = vld [vmem:[%s8555_s10 + $0x40] sm:$0xff]  ;;  %v2844_v33 = vadd.f32 %v7965_v7, %v7924_v49 }
 0x2e9   : > { %3688 = vmatpush.msrb.mxu1 %v3681_v34  ;;  %v3675_v34 = vld [vmem:[%s8555_s10 + $0x30] sm:$0xff] }
 0x2ea   : > { %v2683_v15 = vpop.f32.mrf.mxu2  ;;  %4652 = vmatmul.msk.f32.gmra.mxu3 %vm1703_vm4, %v8767_v43  ;;  %4674 = vmatmul.msk.f32.gmra.mxu1 %vm8787_vm3, %v6241_v26  ;;  %v4721_v43 = vld [vmem:[%s8552_s7 + $0xc18] sm:$0xff]  ;;  %v4698_v26 = vld [vmem:[%s8552_s7 + $0xb90] sm:$0xff]  ;;  %vm8788_vm4 = vcmp.lt.s32.totalorder %v5368_v13, 6  ;;  %vm8804_vm3 = vcmp.lt.s32.totalorder %v5270_v32, 6 }
 0x2eb   : > { %v2703_v3 = vadd.f32 %v2683_v15, %v2626_v16  ;;  %3473 = vmatmul.f32.gmra.mxu0 %v6176_v46  ;;  %3610 = vmatpush.msrb.mxu3 %v4721_v43  ;;  %v8001_v16 = vpop.f32.mrf.mxu0 }
 0x2ec   : > { %3539 = vmatpush.msrb.mxu2 %v4698_v26  ;;  %3689 = vmatpush.msrb.mxu1 %v3680_v53  ;;  %v3673_v53 = vld [vmem:[%s8555_s10 + $0x20] sm:$0xff]  ;;  %v2920_v49 = vadd.f32 %v8001_v16, %v2844_v33 }
 0x2ed   : > { %v2749_v46 = vpop.f32.mrf.mxu3  ;;  %3611 = vmatpush.msrb.mxu3 %v4720_v2  ;;  %v3671_v2 = vld [vmem:[%s8555_s10 + $0x10] sm:$0xff] }
 0x2ee   : > { %v7967_v17 = vadd.f32 %v2749_v46, %v2703_v3  ;;  %3690 = vmatpush.msrb.mxu1 %v3679_v62  ;;  %3540 = vmatpush.msrb.mxu2 %v4697_v38  ;;  %v4718_v3 = vld [vmem:[%s8552_s7 + $0xc00] sm:$0xff]  ;;  %v2552_v46 = vadd.f32 %v7795_v37, %v7790_v52  ;;  %v3670_v52 = vld [vmem:[%s8555_s10 + $0x8] sm:$0xff] }
 0x2ef   : > { %4630 = vmatmul.msk.f32.gmra.mxu2 %vm8788_vm4, %v6704_v31  ;;  %v8016_v43 = vpop.f32.mrf.mxu1  ;;  %v8059_v37 = vld [vmem:[%s8554_s9 + $0x8] sm:$0xff]  ;;  %vm8806_vm4 = vcmask 130048  }
 0x2f0   : > { %3691 = vmatpush.msrb.mxu1 %v3678_v30  ;;  %3740 = vmatpush.msrb.mxu0 %v8059_v37  ;;  %v2845_v16 = vadd.f32 %v8016_v43, %v7967_v17 }
 0x2f2   : > { %v2686_v40 = vpop.f32.mrf.mxu2  ;;  %4653 = vmatmul.msk.f32.gmra.mxu3 %vm1704_vm5, %v8770_v5  ;;  %4675 = vmatmul.msk.f32.gmra.mxu1 %vm8789_vm9, %v6290_v20  ;;  %v4719_v5 = vld [vmem:[%s8552_s7 + $0xc08] sm:$0xff]  ;;  %v4696_v20 = vld [vmem:[%s8552_s7 + $0xb80] sm:$0xff]  ;;  %vm8790_vm5 = vcmp.lt.s32.totalorder %v5419_v41, 6  ;;  %vm8809_vm9 = vcmp.lt.s32.totalorder %v5304_v50, 7  ;;  %v3774_v50 = vld [vmem:[%s8556_s11 + $0x38] sm:$0xff] }
 0x2f3   : > { %v2704_v23 = vadd.f32 %v2686_v40, %v2627_v24  ;;  %3476 = vmatmul.f32.gmra.mxu0 %v6238_v58  ;;  %3612 = vmatpush.msrb.mxu3 %v4719_v5  ;;  %v2551_v58 = vadd.f32 %v7749_v10, %v7741_v19  ;;  %v3674_v10 = vld [vmem:[%s8555_s10 + $0x28] sm:$0xff]  ;;  %v8040_v62 = vpop.f32.mrf.mxu0  ;;  %v8792_v24 = vld [vmem:[#allocation17_spill] sm:$0xff]  ;;  %v8795_v5 = vld [vmem:[#allocation18_spill] sm:$0xff] }
 0x2f4   : > { %3692 = vmatpush.msrb.mxu1 %v3677_v61  ;;  %3541 = vmatpush.msrb.mxu2 %v4696_v20  ;;  %v8074_v61 = vld [vmem:[%s8554_s9] sm:$0xff]  ;;  %v2921_v17 = vadd.f32 %v8040_v62, %v2845_v16  ;;  %v8812_v62 = vld [vmem:[#allocation13_spill] sm:$0xff] }
 0x2f5   : > { %v2752_v15 = vpop.f32.mrf.mxu3  ;;  %3613 = vmatpush.msrb.mxu3 %v4718_v3  ;;  %v2628_v19 = vadd.f32 %v7761_v6, %v2551_v58  ;;  %v3672_v6 = vld [vmem:[%s8555_s10 + $0x18] sm:$0xff]  ;;  %3741 = vmatpush.msrb.mxu0 %v8074_v61  ;;  %v2554_v58 = vadd.f32 %v7872_v48, %v7863_v12  ;;  %v3767_v16 = vld [vmem:[%s8556_s11] sm:$0xff] }
 0x2f6   : > { %v8008_v35 = vadd.f32 %v2752_v15, %v2704_v23  ;;  %3693 = vmatpush.msrb.mxu1 %v3676_v4 }
 0x2f7   : > { %4631 = vmatmul.msk.f32.gmra.mxu2 %vm8790_vm5, %v6755_v55  ;;  %v8051_v30 = vpop.f32.mrf.mxu1  ;;  %vm8811_vm5 = vmmov %vm8806_vm4 }
 0x2f8   : > { %3694 = vmatpush.msrb.mxu1 %v3675_v34 }
 0x2fa   : > { %v2689_v26 = vpop.f32.mrf.mxu2  ;;  %4654 = vmatmul.msk.f32.gmra.mxu3 %vm1705_vm15, %v8772_v25  ;;  %4676 = vmatmul.msk.f32.gmra.mxu1 %vm8791_vm10, %v6330_v51  ;;  %vm8793_vm15 = vcmp.lt.s32.totalorder %v5487_v14, 6  ;;  %vm8818_vm10 = vcmp.lt.s32.totalorder %v5419_v41, 6 }
 0x2fb   : > { %v2705_v22 = vadd.f32 %v2689_v26, %v2628_v19  ;;  %3479 = vmatmul.f32.gmra.mxu0 %v5692_v8  ;;  %3695 = vmatpush.msrb.mxu1 %v3674_v10  ;;  %v2629_v8 = vadd.f32 %v7823_v27, %v2552_v46  ;;  %v3669_v27 = vld [vmem:[%s8555_s10] sm:$0xff]  ;;  %v3780_v46 = vld [vmem:[%s8556_s11 + $0x68] sm:$0xff] }
 0x2fd   : > { %v2755_v25 = vpop.f32.mrf.mxu3  ;;  %3696 = vmatpush.msrb.mxu1 %v3673_v53  ;;  %v8801_v53 = vld [vmem:[#allocation11_spill] sm:$0xff] }
 0x2fe   : > { %v8042_v51 = vadd.f32 %v2755_v25, %v2705_v22 }
 0x2ff   : > { %4632 = vmatmul.msk.f32.gmra.mxu2 %vm8793_vm15, %v8792_v24  ;;  %3697 = vmatpush.msrb.mxu1 %v3672_v6 }
 0x301   : > { %3698 = vmatpush.msrb.mxu1 %v3671_v2  ;;  %v8802_v2 = vld [vmem:[#allocation40_spill] sm:$0xff] }
 0x302   : > { %v2692_v40 = vpop.f32.mrf.mxu2  ;;  %4655 = vmatmul.msk.f32.gmra.mxu3 %vm1706_vm11, %v8774_v42  ;;  %4677 = vmatmul.msk.f32.gmra.mxu1 %vm8794_vm7, %v8747_v21  ;;  %v2553_v42 = vadd.f32 %v7832_v36, %v7827_v1  ;;  %vm8796_vm11 = vcmp.lt.s32.totalorder %v5538_v54, 6  ;;  %v8094_v1 = vpop.f32.mrf.mxu1  ;;  %vm8823_vm7 = vmmov %vm8806_vm4 }
 0x303   : > { %v2706_v38 = vadd.f32 %v2692_v40, %v2629_v8  ;;  %3482 = vmatmul.f32.gmra.mxu0 %v5699_v9  ;;  %3699 = vmatpush.msrb.mxu1 %v3670_v52  ;;  %v8085_v9 = vpop.f32.mrf.mxu0  ;;  %v3779_v52 = vld [vmem:[%s8556_s11 + $0x60] sm:$0xff]  ;;  %v3778_v40 = vld [vmem:[%s8556_s11 + $0x58] sm:$0xff] }
 0x304   : > { %v2630_v20 = vadd.f32 %v7861_v18, %v2553_v42  ;;  %v2631_v18 = vadd.f32 %v7898_v11, %v2554_v58  ;;  %v8799_v11 = vld [vmem:[#allocation38_spill] sm:$0xff]  ;;  %v8807_v42 = vld [vmem:[#allocation12_spill] sm:$0xff]  ;;  %v3776_v58 = vld [vmem:[%s8556_s11 + $0x48] sm:$0xff] }
 0x305   : > { %v2758_v23 = vpop.f32.mrf.mxu3  ;;  %3700 = vmatpush.msrb.mxu1 %v3669_v27 }
 0x306   : > { %v8079_v21 = vadd.f32 %v2758_v23, %v2706_v38  ;;  %v8805_v38 = vld [vmem:[#allocation2_spill] sm:$0xff] }
 0x307   : > { %4633 = vmatmul.msk.f32.gmra.mxu2 %vm8796_vm11, %v8795_v5 }
 0x30a   : > { %v2695_v4 = vpop.f32.mrf.mxu2  ;;  %4656 = vmatmul.msk.f32.gmra.mxu3 %vm1707_vm13, %v8776_v57  ;;  %4678 = vmatmul.msk.f32.gmra.mxu1 %vm8797_vm6, %v7476_v39  ;;  %vm8798_vm13 = vcmp.ge.s32.totalorder %v5538_v54, 1  ;;  %v2843_v39 = vadd.f32 %v7910_v47, %v7890_v29  ;;  %v8112_v12 = vpop.f32.mrf.mxu1  ;;  %v4783_v54 = vld [vmem:[%s8549_s4] sm:$0x7]  ;;  %v3782_v29 = vld [vmem:[%s8556_s11 + $0x78] sm:$0xff] }
 0x30b   : > { %v2707_v36 = vadd.f32 %v2695_v4, %v2630_v20  ;;  %3485 = vmatmul.f32.gmra.mxu0 %v8725_v60  ;;  %v8103_v57 = vpop.f32.mrf.mxu0  ;;  %3783 = vmatpush.msra.mxu2 %v3782_v29  ;;  %v8808_v4 = vld [vmem:[#allocation42_spill] sm:$0xff]  ;;  %v3772_v29 = vld [vmem:[%s8556_s11 + $0x28] sm:$0xff] }
 0x30c   : > { %v2919_v10 = vadd.f32 %v7939_v45, %v2843_v39  ;;  %v3781_v45 = vld [vmem:[%s8556_s11 + $0x70] sm:$0xff] }
 0x30d   : > { %v2761_v15 = vpop.f32.mrf.mxu3  ;;  %3784 = vmatpush.msra.mxu2 %v3781_v45 }
 0x30e   : > { %v8099_v34 = vadd.f32 %v2761_v15, %v2707_v36 }
 0x30f   : > { %3279 = vmatmul.f32.gmra.mxu2 %v8783_v59 }
 0x310   : > { %3785 = vmatpush.msra.mxu2 %v3780_v46  ;;  %v3771_v46 = vld [vmem:[%s8556_s11 + $0x20] sm:$0xff] }
 0x312   : > { %v2698_v3 = vpop.f32.mrf.mxu2  ;;  %3352 = vmatmul.f32.gmra.mxu3 %v8783_v59  ;;  %4679 = vmatmul.msk.f32.gmra.mxu1 %vm8798_vm13, %v7841_v0  ;;  %v8122_v0 = vperm.slane %v4783_v54, 0  ;;  %v8149_v25 = vpop.f32.mrf.mxu1 }
 0x313   : > { %v2708_v60 = vadd.f32 %v2698_v3, %v2631_v18  ;;  %3488 = vmatmul.f32.gmra.mxu0 %v8783_v59  ;;  %v8140_v6 = vpop.f32.mrf.mxu0  ;;  %3786 = vmatpush.msra.mxu2 %v3779_v52  ;;  %v3775_v18 = vld [vmem:[%s8556_s11 + $0x40] sm:$0xff] }
 0x314   : > { %v763_v22 = vadd.f32 %v8801_v53, %v8122_v0  ;;  %v766_v23 = vadd.f32 %v8807_v42, %v8122_v0  ;;  %v769_v39 = vadd.f32 %v8812_v62, %v8122_v0 }
 0x315   : > { %v2764_v48 = vpop.f32.mrf.mxu3  ;;  %3787 = vmatpush.msra.mxu2 %v3778_v40 }
 0x316   : > { %v8114_v19 = vadd.f32 %v2764_v48, %v2708_v60  ;;  %v868_v8 = vmax.f32 %v763_v22, 0.0  ;;  %v871_v36 = vmax.f32 %v766_v23, 0.0  ;;  %v8810_v60 = vld [vmem:[#allocation3_spill] sm:$0xff]  ;;  %v2846_v48 = vadd.f32 %v8051_v30, %v8008_v35  ;;  %v8815_v22 = vld [vmem:[#allocation4_spill] sm:$0xff] }
 0x317   : > { %4712 = vmatmul.msk.f32.vlgmr.msrb.gmra.mxu2 %vm8800_vm1, %v8799_v11  ;;  %v874_v54 = vmax.f32 %v769_v39, 0.0  ;;  %v8825_v39 = vld [vmem:[#allocation7_spill] sm:$0xff]  ;;  %vm8843_vm1 = vcmask 261120  }
 0x318   : > { %v2922_v35 = vadd.f32 %v8085_v9, %v2846_v48  ;;  %v8817_v9 = vld [vmem:[#allocation16_spill] sm:$0xff]  ;;  %v8299_v48 = vld [vmem:[%s8551_s6] ss:$0 sm:$0xff] }
 0x319   : > { %v772_v33 = vadd.f32 %v8817_v9, %v8122_v0 }
 0x31a   : > { %v2971_v26 = vpop.f32.mrf.mxu2  ;;  %3425 = vmatmul.f32.gmra.mxu1 %v8783_v59  ;;  %4734 = vmatmul.msk.f32.vlgmr.msrb.gmra.mxu3 %vm2077_vm2, %v8717_v28  ;;  %vm8803_vm2 = vcmp.lt.s32.totalorder %v5270_v32, 7  ;;  %v3777_v32 = vld [vmem:[%s8556_s11 + $0x50] sm:$0xff]  ;;  %v8186_v43 = vpop.f32.mrf.mxu1 }
 0x31b   : > { %v8132_v47 = vadd.f32 %v2971_v26, %v2919_v10  ;;  %3491 = vmatmul.f32.gmra.mxu0 %v8783_v59  ;;  %3788 = vmatpush.msra.mxu2 %v3777_v32  ;;  %v3773_v26 = vld [vmem:[%s8556_s11 + $0x30] sm:$0xff] }
 0x31d   : > { %v8144_v28 = vpop.f32.mrf.mxu3  ;;  %3789 = vmatpush.msra.mxu2 %v3776_v58 }
 0x31f   : > { %4713 = vmatmul.msk.f32.gmra.mxu2 %vm8803_vm2, %v8802_v2  ;;  %v877_v2 = vmax.f32 %v772_v33, 0.0  ;;  %v8831_v33 = vld [vmem:[#allocation24_spill] sm:$0xff]  ;;  %vm8844_vm2 = vmmov %vm8843_vm1 }
 0x320   : > { %3790 = vmatpush.msra.mxu2 %v3775_v18 }
 0x322   : > { %v2974_v7 = vpop.f32.mrf.mxu2  ;;  %4735 = vmatmul.msk.f32.gmra.mxu3 %vm8804_vm3, %v8719_v56  ;;  %3701 = vmatmul.f32.vlgmr.msrb.gmra.mxu1 %v868_v8  ;;  %v8177_v56 = vpop.f32.mrf.mxu0  ;;  %v3770_v8 = vld [vmem:[%s8556_s11 + $0x18] sm:$0xff]  ;;  %vm8845_vm3 = vmmov %vm8843_vm1 }
 0x323   : > { %v8164_v27 = vadd.f32 %v2974_v7, %v2920_v49  ;;  %4740 = vmatmul.msk.f32.vlgmr.msrb.gmra.mxu0 %vm8806_vm4, %v8805_v38  ;;  %3791 = vmatpush.msra.mxu2 %v3774_v50  ;;  %v8222_v45 = vpop.f32.mrf.mxu1  ;;  %v8819_v7 = vld [vmem:[#allocation5_spill] sm:$0xff]  ;;  %v2848_v38 = vadd.f32 %v8112_v12, %v8079_v21  ;;  %v2850_v50 = vadd.f32 %v8186_v43, %v8114_v19  ;;  %v8829_v43 = vld [vmem:[#allocation8_spill] sm:$0xff] }
 0x325   : > { %v8172_v20 = vpop.f32.mrf.mxu3  ;;  %3792 = vmatpush.msra.mxu2 %v3773_v26  ;;  %v2924_v21 = vadd.f32 %v8140_v6, %v2848_v38 }
 0x327   : > { %4714 = vmatmul.msk.f32.gmra.mxu2 %vm8809_vm9, %v8808_v4  ;;  %v8822_v4 = vld [vmem:[#allocation6_spill] sm:$0xff]  ;;  %vm8846_vm9 = vmmov %vm8843_vm1 }
 0x328   : > { %3793 = vmatpush.msra.mxu2 %v3772_v29 }
 0x32a   : > { %v2977_v15 = vpop.f32.mrf.mxu2  ;;  %4736 = vmatmul.msk.f32.gmra.mxu3 %vm2079_vm8, %v6704_v31  ;;  %3704 = vmatmul.f32.gmra.mxu1 %v871_v36  ;;  %v8813_v31 = vld [vmem:[#allocation43_spill] sm:$0xff]  ;;  %v8210_v10 = vpop.f32.mrf.mxu0  ;;  %vm8814_vm8 = vcmp.lt.s32.totalorder %v5368_v13, 6  ;;  %v2847_v13 = vadd.f32 %v8094_v1, %v8042_v51 }
 0x32b   : > { %v8194_v3 = vadd.f32 %v2977_v15, %v2921_v17  ;;  %4741 = vmatmul.msk.f32.gmra.mxu0 %vm8811_vm5, %v8810_v60  ;;  %3794 = vmatpush.msra.mxu2 %v3771_v46  ;;  %v8260_v42 = vpop.f32.mrf.mxu1  ;;  %v2849_v17 = vadd.f32 %v8149_v25, %v8099_v34  ;;  %v8827_v34 = vld [vmem:[#allocation23_spill] sm:$0xff]  ;;  %v2926_v29 = vadd.f32 %v8210_v10, %v2850_v50  ;;  %v8837_v50 = vld [vmem:[#allocation36_spill] sm:$0xff]  ;;  %vm8847_vm5 = vmmov %vm8843_vm1 }
 0x32c   : > { %v2923_v52 = vadd.f32 %v8103_v57, %v2847_v13  ;;  %v8821_v57 = vld [vmem:[#allocation21_spill] sm:$0xff]  ;;  %v781_v25 = vadd.f32 %v8827_v34, %v8122_v0  ;;  %v784_v13 = vadd.f32 %v8831_v33, %v8122_v0 }
 0x32d   : > { %v8202_v11 = vpop.f32.mrf.mxu3  ;;  %3795 = vmatpush.msra.mxu2 %v3770_v8  ;;  %v775_v40 = vadd.f32 %v8821_v57, %v8122_v0  ;;  %v8833_v57 = vld [vmem:[#allocation9_spill] sm:$0xff] }
 0x32e   : > { %v886_v26 = vmax.f32 %v781_v25, 0.0  ;;  %v3839_v33 = vld [vmem:[%s8557_s12 + $0x38] sm:$0xff] }
 0x32f   : > { %4715 = vmatmul.msk.f32.gmra.mxu2 %vm1119_vm12, %v8813_v31  ;;  %vm8816_vm12 = vmmov %vm8806_vm4  ;;  %v880_v23 = vmax.f32 %v775_v40, 0.0 }
 0x332   : > { %v2980_v30 = vpop.f32.mrf.mxu2  ;;  %4737 = vmatmul.msk.f32.gmra.mxu3 %vm8814_vm8, %v6755_v55  ;;  %3707 = vmatmul.f32.gmra.mxu1 %v874_v54  ;;  %v8244_v51 = vpop.f32.mrf.mxu0  ;;  %vm8848_vm8 = vmmov %vm8843_vm1 }
 0x333   : > { %v8224_v53 = vadd.f32 %v2980_v30, %v2922_v35  ;;  %4742 = vmatmul.msk.f32.gmra.mxu0 %vm8816_vm12, %v8815_v22  ;;  %v8287_v18 = vpop.f32.mrf.mxu1  ;;  %v8828_v35 = vld [vmem:[#allocation45_spill] sm:$0xff]  ;;  %vm8849_vm12 = vmmov %vm8843_vm1 }
 0x334   : > { %v1660_v30 = vadd.f32 %v8299_v48, %v8828_v35 }
 0x335   : > { %v8232_v55 = vpop.f32.mrf.mxu3 }
 0x336   : > { %v1668_v46 = vmax.f32 %v1660_v30, 0.0  ;;  %v3841_v30 = vld [vmem:[%s8557_s12 + $0x48] sm:$0xff] }
 0x337   : > { %4716 = vmatmul.msk.f32.gmra.mxu2 %vm1120_vm14, %v7131_v63  ;;  %v3769_v63 = vld [vmem:[%s8556_s11 + $0x10] sm:$0xff]  ;;  %vm8820_vm14 = vmmov %vm8806_vm4 }
 0x338   : > { %3796 = vmatpush.msra.mxu2 %v3769_v63 }
 0x33a   : > { %v2983_v1 = vpop.f32.mrf.mxu2  ;;  %4738 = vmatmul.msk.f32.gmra.mxu3 %vm8818_vm10, %v8792_v24  ;;  %3710 = vmatmul.f32.gmra.mxu1 %v877_v2  ;;  %v3768_v24 = vld [vmem:[%s8556_s11 + $0x8] sm:$0xff]  ;;  %v8281_v58 = vpop.f32.mrf.mxu0  ;;  %vm8850_vm10 = vmmov %vm8843_vm1 }
 0x33b   : > { %v8252_v49 = vadd.f32 %v2983_v1, %v2923_v52  ;;  %4743 = vmatmul.msk.f32.gmra.mxu0 %vm8820_vm14, %v8819_v7  ;;  %3797 = vmatpush.msra.mxu2 %v3768_v24  ;;  %v8311_v22 = vpop.f32.mrf.mxu1  ;;  %v889_v52 = vmax.f32 %v784_v13, 0.0  ;;  %v8832_v1 = vld [vmem:[#allocation35_spill] sm:$0xff]  ;;  %v8835_v24 = vld [vmem:[#allocation28_spill] sm:$0xff] }
 0x33c   : > { %v1661_v63 = vadd.f32 %v8299_v48, %v8832_v1  ;;  %v8838_v13 = vld [vmem:[#allocation39_spill] sm:$0xff] }
 0x33d   : > { %v8262_v41 = vpop.f32.mrf.mxu3  ;;  %3798 = vmatpush.msra.mxu2 %v3767_v16 }
 0x33e   : > { %v1669_v38 = vmax.f32 %v1661_v63, 0.0  ;;  %v3837_v63 = vld [vmem:[%s8557_s12 + $0x28] sm:$0xff] }
 0x33f   : > { %4717 = vmatmul.msk.f32.gmra.mxu2 %vm1121_vm0, %v7523_v44  ;;  %v8824_v44 = vld [vmem:[#allocation22_spill] sm:$0xff]  ;;  %vm8826_vm0 = vmmov %vm8806_vm4  ;;  %vm3933_vm4 = vcmask 253952  }
 0x340   : > { %v778_v36 = vadd.f32 %v8824_v44, %v8122_v0  ;;  %vm8830_vm11 = vmmov %vm8826_vm0  ;;  %v3847_v0 = vld [vmem:[%s8557_s12 + $0x78] sm:$0xff] }
 0x341   : > { %vm8834_vm6 = vmmov %vm8826_vm0  ;;  %4753 = vmatpush.msra.mxu3 %v3847_v0  ;;  %3848 = vmatpush.msra.mxu1 %v3847_v0 }
 0x342   : > { %v2986_v12 = vpop.f32.mrf.mxu2  ;;  %4739 = vmatmul.msk.f32.gmra.mxu3 %vm8793_vm15, %v8795_v5  ;;  %3713 = vmatmul.f32.gmra.mxu1 %v880_v23  ;;  %v883_v14 = vmax.f32 %v778_v36, 0.0  ;;  %v2925_v5 = vadd.f32 %v8177_v56, %v2849_v17  ;;  %v8303_v31 = vpop.f32.mrf.mxu0  ;;  %v1662_v23 = vadd.f32 %v8299_v48, %v8835_v24  ;;  %v8836_v17 = vld [vmem:[#allocation25_spill] sm:$0xff]  ;;  %vm8842_vm13 = vmmov %vm8826_vm0 }
 0x343   : > { %v3000_v32 = vadd.f32 %v2986_v12, %v2924_v21  ;;  %4744 = vmatmul.msk.f32.gmra.mxu0 %vm8823_vm7, %v8822_v4  ;;  %v8326_v7 = vpop.f32.mrf.mxu1  ;;  %v3846_v12 = vld [vmem:[%s8557_s12 + $0x70] sm:$0xff]  ;;  %v3835_v24 = vld [vmem:[%s8557_s12 + $0x18] sm:$0xff] }
 0x344   : > { %4754 = vmatpush.msra.mxu3 %v3846_v12  ;;  %3849 = vmatpush.msra.mxu1 %v3846_v12  ;;  %v1670_v36 = vmax.f32 %v1662_v23, 0.0  ;;  %v8839_v12 = vld [vmem:[#allocation41_spill] sm:$0xff] }
 0x345   : > { %v3062_v6 = vpop.f32.mrf.mxu3 }
 0x346   : > { %v8285_v15 = vadd.f32 %v3062_v6, %v3000_v32  ;;  %v3845_v32 = vld [vmem:[%s8557_s12 + $0x68] sm:$0xff]  ;;  %v1663_v6 = vadd.f32 %v8299_v48, %v8836_v17 }
 0x347   : > { %3560 = vmatmul.f32.gmra.mxu2 %v8783_v59  ;;  %4755 = vmatpush.msra.mxu3 %v3845_v32 }
 0x348   : > { %3850 = vmatpush.msra.mxu1 %v3845_v32  ;;  %v1671_v34 = vmax.f32 %v1663_v6, 0.0  ;;  %v1666_v32 = vadd.f32 %v8299_v48, %v8839_v12  ;;  %v3833_v6 = vld [vmem:[%s8557_s12 + $0x8] sm:$0xff] }
 0x34a   : > { %v2989_v60 = vpop.f32.mrf.mxu2  ;;  %3632 = vmatmul.f32.gmra.mxu3 %v8783_v59  ;;  %3716 = vmatmul.f32.gmra.mxu1 %v883_v14  ;;  %v8320_v10 = vpop.f32.mrf.mxu0 }
 0x34b   : > { %v3001_v62 = vadd.f32 %v2989_v60, %v2925_v5  ;;  %4745 = vmatmul.msk.f32.gmra.mxu0 %vm8826_vm0, %v8825_v39  ;;  %v8347_v4 = vpop.f32.mrf.mxu1  ;;  %v3844_v5 = vld [vmem:[%s8557_s12 + $0x60] sm:$0xff]  ;;  %v3843_v60 = vld [vmem:[%s8557_s12 + $0x58] sm:$0xff] }
 0x34c   : > { %4756 = vmatpush.msra.mxu3 %v3844_v5  ;;  %3851 = vmatpush.msra.mxu1 %v3844_v5  ;;  %v3071_v5 = vadd.f32 %v8144_v28, %v8132_v47 }
 0x34d   : > { %v3065_v56 = vpop.f32.mrf.mxu3 }
 0x34e   : > { %v8305_v54 = vadd.f32 %v3065_v56, %v3001_v62  ;;  %4757 = vmatpush.msra.mxu3 %v3843_v60  ;;  %3852 = vmatpush.msra.mxu1 %v3843_v60  ;;  %v1664_v56 = vadd.f32 %v8299_v48, %v8837_v50 }
 0x34f   : > { %3563 = vmatmul.f32.gmra.mxu2 %v8783_v59 }
 0x352   : > { %v2992_v9 = vpop.f32.mrf.mxu2  ;;  %3635 = vmatmul.f32.gmra.mxu3 %v8783_v59  ;;  %3719 = vmatmul.f32.gmra.mxu1 %v886_v26  ;;  %v8337_v16 = vpop.f32.mrf.mxu0  ;;  %v3842_v26 = vld [vmem:[%s8557_s12 + $0x50] sm:$0xff] }
 0x353   : > { %v3002_v19 = vadd.f32 %v2992_v9, %v2926_v29  ;;  %4746 = vmatmul.msk.f32.gmra.mxu0 %vm8830_vm11, %v8829_v43  ;;  %v8365_v25 = vpop.f32.mrf.mxu1  ;;  %3853 = vmatpush.msra.mxu1 %v3842_v26  ;;  %v3840_v29 = vld [vmem:[%s8557_s12 + $0x40] sm:$0xff] }
 0x354   : > { %4758 = vmatpush.msra.mxu3 %v3842_v26  ;;  %v3137_v26 = vadd.f32 %v8222_v45, %v3071_v5 }
 0x355   : > { %v3068_v2 = vpop.f32.mrf.mxu3  ;;  %3854 = vmatpush.msra.mxu1 %v3841_v30 }
 0x356   : > { %v8318_v8 = vadd.f32 %v3068_v2, %v3002_v19  ;;  %4759 = vmatpush.msra.mxu3 %v3841_v30  ;;  %v1672_v19 = vmax.f32 %v1664_v56, 0.0  ;;  %v1674_v56 = vmax.f32 %v1666_v32, 0.0  ;;  %v8840_v30 = vld [vmem:[#allocation15_spill] sm:$0xff] }
 0x357   : > { %3799 = vmatmul.f32.vlgmr.msra.gmra.mxu2 %v1668_v46  ;;  %3855 = vmatpush.msra.mxu1 %v3840_v29  ;;  %v1665_v46 = vadd.f32 %v8299_v48, %v8838_v13  ;;  %v1667_v47 = vadd.f32 %v8299_v48, %v8840_v30  ;;  %v3075_v30 = vadd.f32 %v8262_v41, %v8252_v49 }
 0x358   : > { %4760 = vmatpush.msra.mxu3 %v3840_v29 }
 0x359   : > { %3856 = vmatpush.msra.mxu1 %v3839_v33 }
 0x35a   : > { %v8324_v59 = vpop.f32.mrf.mxu2  ;;  %3722 = vmatmul.f32.gmra.mxu1 %v889_v52  ;;  %v8361_v62 = vpop.f32.mrf.mxu0  ;;  %4761 = vmatpush.msra.mxu3 %v3839_v33  ;;  %v3838_v52 = vld [vmem:[%s8557_s12 + $0x30] sm:$0xff]  ;;  %v3072_v33 = vadd.f32 %v8172_v20, %v8164_v27 }
 0x35b   : > { %4747 = vmatmul.msk.f32.gmra.mxu0 %vm8834_vm6, %v8833_v57  ;;  %v8389_v2 = vpop.f32.mrf.mxu1  ;;  %3857 = vmatpush.msra.mxu1 %v3838_v52  ;;  %v3836_v57 = vld [vmem:[%s8557_s12 + $0x20] sm:$0xff] }
 0x35c   : > { %4762 = vmatpush.msra.mxu3 %v3838_v52  ;;  %v1675_v52 = vmax.f32 %v1667_v47, 0.0 }
 0x35d   : > { %v8333_v40 = vpop.f32.mrf.mxu3  ;;  %3858 = vmatpush.msra.mxu1 %v3837_v63 }
 0x35e   : > { %4763 = vmatpush.msra.mxu3 %v3837_v63 }
 0x35f   : > { %3802 = vmatmul.f32.gmra.mxu2 %v1669_v38  ;;  %v1673_v38 = vmax.f32 %v1665_v46, 0.0  ;;  %3859 = vmatpush.msra.mxu1 %v3836_v57 }
 0x360   : > { %4764 = vmatpush.msra.mxu3 %v3836_v57 }
 0x361   : > { %3860 = vmatpush.msra.mxu1 %v3835_v24 }
 0x362   : > { %v8339_v21 = vpop.f32.mrf.mxu2  ;;  %v8382_v43 = vpop.f32.mrf.mxu0  ;;  %4765 = vmatpush.msra.mxu3 %v3835_v24 }
 0x363   : > { %v3405_v60 = vpop.f32.mrf.mxu1 }
 0x365   : > { %v8349_v44 = vpop.f32.mrf.mxu3 }
 0x367   : > { %3805 = vmatmul.f32.gmra.mxu2 %v1670_v36  ;;  %v3834_v36 = vld [vmem:[%s8557_s12 + $0x10] sm:$0xff] }
 0x368   : > { %3861 = vmatpush.msra.mxu1 %v3834_v36  ;;  %4766 = vmatpush.msra.mxu3 %v3834_v36 }
 0x36a   : > { %v8353_v14 = vpop.f32.mrf.mxu2  ;;  %v8407_v23 = vpop.f32.mrf.mxu0  ;;  %3862 = vmatpush.msra.mxu1 %v3833_v6  ;;  %4767 = vmatpush.msra.mxu3 %v3833_v6 }
 0x36b   : > { %v3408_v46 = vpop.f32.mrf.mxu1 }
 0x36d   : > { %v8363_v39 = vpop.f32.mrf.mxu3 }
 0x36f   : > { %3808 = vmatmul.f32.gmra.mxu2 %v1671_v34  ;;  %v3832_v34 = vld [vmem:[%s8557_s12] sm:$0xff] }
 0x370   : > { %3863 = vmatpush.msra.mxu1 %v3832_v34  ;;  %4768 = vmatpush.msra.mxu3 %v3832_v34 }
 0x372   : > { %v8372_v35 = vpop.f32.mrf.mxu2  ;;  %3927 = vmatpush.msrb.mxu1 %v8059_v37  ;;  %v3471_v28 = vpop.f32.mrf.mxu0  ;;  %v3138_v37 = vadd.f32 %v8260_v42, %v3072_v33  ;;  %v3141_v33 = vadd.f32 %v8326_v7, %v3075_v30  ;;  %v586_v7 = vld [vmem:[%s8547_s2] sm:$0x1] }
 0x373   : > { %v3411_v24 = vpop.f32.mrf.mxu1 }
 0x374   : > { %3928 = vmatpush.msrb.mxu1 %v8074_v61  ;;  %v3211_v63 = vadd.f32 %v8281_v58, %v3138_v37  ;;  %v3074_v58 = vadd.f32 %v8232_v55, %v8224_v53 }
 0x375   : > { %v8380_v9 = vpop.f32.mrf.mxu3 }
 0x376   : > { %v3284_v20 = vadd.f32 %v8339_v21, %v3211_v63 }
 0x377   : > { %3811 = vmatmul.f32.gmra.mxu2 %v1672_v19  ;;  %v3210_v19 = vadd.f32 %v8244_v51, %v3137_v26  ;;  %v3073_v51 = vadd.f32 %v8202_v11, %v8194_v3  ;;  %v8457_v3 = vld [vmem:[%s8553_s8] ss:$0 sm:$0xff] }
 0x378   : > { %v3357_v12 = vadd.f32 %v8349_v44, %v3284_v20  ;;  %v3140_v44 = vadd.f32 %v8311_v22, %v3074_v58 }
 0x379   : > { %v3283_v13 = vadd.f32 %v8324_v59, %v3210_v19 }
 0x37a   : > { %v8394_v1 = vpop.f32.mrf.mxu2  ;;  %v3474_v57 = vpop.f32.mrf.mxu0  ;;  %v3430_v11 = vadd.f32 %v3408_v46, %v3357_v12  ;;  %v3213_v26 = vadd.f32 %v8320_v10, %v3140_v44 }
 0x37b   : > { %v3356_v48 = vadd.f32 %v8333_v40, %v3283_v13  ;;  %v3414_v53 = vpop.f32.mrf.mxu1 }
 0x37d   : > { %v8402_v0 = vpop.f32.mrf.mxu3  ;;  %v3429_v27 = vadd.f32 %v3405_v60, %v3356_v48  ;;  %v3214_v48 = vadd.f32 %v8337_v16, %v3141_v33 }
 0x37f   : > { %3814 = vmatmul.f32.gmra.mxu2 %v1673_v38  ;;  %v3139_v38 = vadd.f32 %v8287_v18, %v3073_v51  ;;  %v3495_v42 = vadd.f32 %v3471_v28, %v3429_v27  ;;  %v3286_v28 = vadd.f32 %v8372_v35, %v3213_v26  ;;  %v3287_v35 = vadd.f32 %v8394_v1, %v3214_v48 }
 0x380   : > { %v3142_v27 = vadd.f32 %v8347_v4, %v8285_v15 }
 0x381   : > { %v3212_v32 = vadd.f32 %v8303_v31, %v3139_v38  ;;  %v3496_v31 = vadd.f32 %v3474_v57, %v3430_v11  ;;  %v3360_v16 = vadd.f32 %v8402_v0, %v3287_v35  ;;  %v8841_v38 = vld [vmem:[#allocation10_spill] sm:$0xff] }
 0x382   : > { %v8414_v17 = vpop.f32.mrf.mxu2  ;;  %v3477_v6 = vpop.f32.mrf.mxu0  ;;  %v3215_v1 = vadd.f32 %v8361_v62, %v3142_v27 }
 0x383   : > { %v3285_v21 = vadd.f32 %v8353_v14, %v3212_v32  ;;  %v3417_v49 = vpop.f32.mrf.mxu1 }
 0x384   : > { %v3433_v58 = vadd.f32 %v3417_v49, %v3360_v16 }
 0x385   : > { %v8424_v50 = vpop.f32.mrf.mxu3  ;;  %v3358_v34 = vadd.f32 %v8363_v39, %v3285_v21 }
 0x387   : > { %3817 = vmatmul.f32.gmra.mxu2 %v1674_v56  ;;  %v3431_v14 = vadd.f32 %v3411_v24, %v3358_v34  ;;  %v609_v24 = vadd.f32 %v8841_v38, %v586_v7 }
 0x389   : > { %v3497_v46 = vadd.f32 %v3477_v6, %v3431_v14  ;;  %v611_v15 = vmax.f32 %v609_v24, 0.0 }
 0x38a   : > { %v8431_v29 = vpop.f32.mrf.mxu2  ;;  %v3480_v13 = vpop.f32.mrf.mxu0 }
 0x38b   : > { %v3420_v11 = vpop.f32.mrf.mxu1  ;;  %v3909_v44 = vmul.f32 2.0, %v611_v15 }
 0x38d   : > { %v8437_v45 = vpop.f32.mrf.mxu3 }
 0x38f   : > { %3820 = vmatmul.f32.gmra.mxu2 %v1675_v52  ;;  %v3359_v52 = vadd.f32 %v8380_v9, %v3286_v28 }
 0x391   : > { %v3432_v63 = vadd.f32 %v3414_v53, %v3359_v52 }
 0x392   : > { %v8441_v61 = vpop.f32.mrf.mxu2 }
 0x393   : > { %v3498_v20 = vadd.f32 %v3480_v13, %v3432_v63  ;;  %v3423_v26 = vpop.f32.mrf.mxu1 }
 0x395   : > { %v8447_v59 = vpop.f32.mrf.mxu3 }
 0x39a   : > { %v3543_v40 = vpop.f32.mrf.mxu2 }
 0x39b   : > { %v3567_v36 = vadd.f32 %v3543_v40, %v3495_v42  ;;  %v3483_v42 = vpop.f32.mrf.mxu0  ;;  %v3426_v52 = vpop.f32.mrf.mxu1 }
 0x39c   : > { %v3499_v6 = vadd.f32 %v3483_v42, %v3433_v58 }
 0x39d   : > { %v3615_v18 = vpop.f32.mrf.mxu3 }
 0x39e   : > { %v3639_v5 = vadd.f32 %v3615_v18, %v3567_v36  ;;  %v3288_v36 = vadd.f32 %v8414_v17, %v3215_v1  ;;  %v3143_v18 = vadd.f32 %v8365_v25, %v8305_v54  ;;  %v3144_v25 = vadd.f32 %v8389_v2, %v8318_v8 }
 0x3a0   : > { %v3651_v60 = vadd.f32 %v8457_v3, %v3639_v5  ;;  %v3361_v5 = vadd.f32 %v8424_v50, %v3288_v36  ;;  %v3217_v28 = vadd.f32 %v8407_v23, %v3144_v25 }
 0x3a2   : > { %v3659_v55 = vmax.f32 %v3651_v60, 0.0  ;;  %v3546_v56 = vpop.f32.mrf.mxu2  ;;  %v3434_v17 = vadd.f32 %v3420_v11, %v3361_v5 }
 0x3a3   : > { %v3568_v47 = vadd.f32 %v3546_v56, %v3496_v31  ;;  %v3216_v31 = vadd.f32 %v8382_v43, %v3143_v18  ;;  %v3486_v53 = vpop.f32.mrf.mxu0 }
 0x3a4   : > { %3864 = vmatmul.f32.vlgmr.msra.gmra.mxu1 %v3659_v55  ;;  %v3500_v30 = vadd.f32 %v3486_v53, %v3434_v17 }
 0x3a5   : > { %v3618_v19 = vpop.f32.mrf.mxu3  ;;  %v3289_v55 = vadd.f32 %v8431_v29, %v3216_v31  ;;  %v3290_v29 = vadd.f32 %v8441_v61, %v3217_v28 }
 0x3a6   : > { %v3640_v22 = vadd.f32 %v3618_v19, %v3568_v47 }
 0x3a7   : > { %v3362_v47 = vadd.f32 %v8437_v45, %v3289_v55 }
 0x3a8   : > { %v3652_v39 = vadd.f32 %v8457_v3, %v3640_v22 }
 0x3a9   : > { %v3435_v22 = vadd.f32 %v3423_v26, %v3362_v47 }
 0x3aa   : > { %v3660_v37 = vmax.f32 %v3652_v39, 0.0  ;;  %v3549_v10 = vpop.f32.mrf.mxu2 }
 0x3ab   : > { %v3569_v41 = vadd.f32 %v3549_v10, %v3497_v46  ;;  %v3489_v13 = vpop.f32.mrf.mxu0  ;;  %v3363_v46 = vadd.f32 %v8447_v59, %v3290_v29 }
 0x3ac   : > { %3867 = vmatmul.f32.gmra.mxu1 %v3660_v37  ;;  %v3501_v2 = vadd.f32 %v3489_v13, %v3435_v22 }
 0x3ad   : > { %v3621_v51 = vpop.f32.mrf.mxu3  ;;  %v3436_v48 = vadd.f32 %v3426_v52, %v3363_v46 }
 0x3ae   : > { %v3641_v57 = vadd.f32 %v3621_v51, %v3569_v41 }
 0x3b0   : > { %v3653_v9 = vadd.f32 %v8457_v3, %v3641_v57  ;;  %v3702_v57 = vpop.f32.mrf.mxu1 }
 0x3b2   : > { %v3661_v12 = vmax.f32 %v3653_v9, 0.0  ;;  %v3552_v40 = vpop.f32.mrf.mxu2 }
 0x3b3   : > { %v3570_v32 = vadd.f32 %v3552_v40, %v3498_v20  ;;  %v3492_v41 = vpop.f32.mrf.mxu0 }
 0x3b4   : > { %3870 = vmatmul.f32.gmra.mxu1 %v3661_v12  ;;  %v3502_v61 = vadd.f32 %v3492_v41, %v3436_v48 }
 0x3b5   : > { %v3624_v21 = vpop.f32.mrf.mxu3 }
 0x3b6   : > { %v3642_v4 = vadd.f32 %v3624_v21, %v3570_v32 }
 0x3b8   : > { %v3654_v0 = vadd.f32 %v8457_v3, %v3642_v4  ;;  %v3705_v16 = vpop.f32.mrf.mxu1 }
 0x3ba   : > { %v3662_v60 = vmax.f32 %v3654_v0, 0.0  ;;  %v3555_v62 = vpop.f32.mrf.mxu2 }
 0x3bb   : > { %v3571_v34 = vadd.f32 %v3555_v62, %v3499_v6  ;;  %v3743_v1 = vpop.f32.mrf.mxu0 }
 0x3bc   : > { %3873 = vmatmul.f32.vlgmr.msra.gmra.mxu3 %v3662_v60  ;;  %4748 = vmatmul.msk.f32.vlgmr.msrb.gmra.mxu1 %vm8842_vm13, %v3909_v44  ;;  %v3744_v11 = vadd.f32 %v3743_v1, %v3702_v57 }
 0x3bd   : > { %v3627_v56 = vpop.f32.mrf.mxu3 }
 0x3be   : > { %v3643_v54 = vadd.f32 %v3627_v56, %v3571_v34 }
 0x3c0   : > { %v3655_v50 = vadd.f32 %v8457_v3, %v3643_v54  ;;  %v3708_v38 = vpop.f32.mrf.mxu1 }
 0x3c2   : > { %v3663_v43 = vmax.f32 %v3655_v50, 0.0  ;;  %v3558_v14 = vpop.f32.mrf.mxu2  ;;  %v3897_v50 = vld [vmem:[%s8558_s13] sm:$0x1] }
 0x3c3   : > { %v3572_v19 = vadd.f32 %v3558_v14, %v3500_v30  ;;  %v3746_v36 = vpop.f32.mrf.mxu0 }
 0x3c4   : > { %3876 = vmatmul.f32.gmra.mxu3 %v3663_v43  ;;  %v3747_v6 = vadd.f32 %v3746_v36, %v3705_v16 }
 0x3c5   : > { %v3630_v33 = vpop.f32.mrf.mxu3 }
 0x3c6   : > { %v3644_v39 = vadd.f32 %v3630_v33, %v3572_v19 }
 0x3c8   : > { %v3656_v8 = vadd.f32 %v8457_v3, %v3644_v39  ;;  %v3711_v24 = vpop.f32.mrf.mxu1 }
 0x3ca   : > { %v3664_v37 = vmax.f32 %v3656_v8, 0.0  ;;  %v3561_v45 = vpop.f32.mrf.mxu2 }
 0x3cb   : > { %v3573_v10 = vadd.f32 %v3561_v45, %v3501_v2  ;;  %v3749_v5 = vpop.f32.mrf.mxu0 }
 0x3cc   : > { %3879 = vmatmul.f32.gmra.mxu3 %v3664_v37  ;;  %v3750_v53 = vadd.f32 %v3749_v5, %v3708_v38 }
 0x3cd   : > { %v3633_v23 = vpop.f32.mrf.mxu3 }
 0x3ce   : > { %v3645_v49 = vadd.f32 %v3633_v23, %v3573_v10 }
 0x3d0   : > { %v3657_v63 = vadd.f32 %v8457_v3, %v3645_v49  ;;  %v3714_v42 = vpop.f32.mrf.mxu1 }
 0x3d2   : > { %v3665_v35 = vmax.f32 %v3657_v63, 0.0  ;;  %v3564_v51 = vpop.f32.mrf.mxu2 }
 0x3d3   : > { %v3574_v7 = vadd.f32 %v3564_v51, %v3502_v61  ;;  %v3752_v55 = vpop.f32.mrf.mxu0 }
 0x3d4   : > { %3882 = vmatmul.f32.gmra.mxu3 %v3665_v35  ;;  %v3753_v14 = vadd.f32 %v3752_v55, %v3711_v24 }
 0x3d5   : > { %v3636_v27 = vpop.f32.mrf.mxu3 }
 0x3d6   : > { %v3646_v9 = vadd.f32 %v3636_v27, %v3574_v7 }
 0x3d8   : > { %v3658_v59 = vadd.f32 %v8457_v3, %v3646_v9  ;;  %v3717_v12 = vpop.f32.mrf.mxu1  ;;  %v8504_v3 = vld [vmem:[%s8558_s13] ss:$0 sm:$0xff] }
 0x3da   : > { %v3666_v20 = vmax.f32 %v3658_v59, 0.0  ;;  %v3800_v32 = vpop.f32.mrf.mxu2 }
 0x3db   : > { %v3824_v15 = vadd.f32 %v3800_v32, %v3744_v11  ;;  %v3755_v43 = vpop.f32.mrf.mxu0 }
 0x3dc   : > { %3885 = vmatmul.f32.gmra.mxu3 %v3666_v20  ;;  %v3756_v13 = vadd.f32 %v3755_v43, %v3714_v42 }
 0x3e0   : > { %v3720_v40 = vpop.f32.mrf.mxu1 }
 0x3e2   : > { %v3803_v21 = vpop.f32.mrf.mxu2 }
 0x3e3   : > { %v3825_v44 = vadd.f32 %v3803_v21, %v3747_v6  ;;  %v3758_v39 = vpop.f32.mrf.mxu0 }
 0x3e4   : > { %v3759_v45 = vadd.f32 %v3758_v39, %v3717_v12 }
 0x3e8   : > { %v8499_v58 = vpop.f32.mrf.mxu1 }
 0x3ea   : > { %v3806_v60 = vpop.f32.mrf.mxu2 }
 0x3eb   : > { %v3826_v17 = vadd.f32 %v3806_v60, %v3750_v53  ;;  %v3761_v48 = vpop.f32.mrf.mxu0 }
 0x3ec   : > { %v3762_v61 = vadd.f32 %v3761_v48, %v3720_v40 }
 0x3f2   : > { %v3809_v25 = vpop.f32.mrf.mxu2 }
 0x3f3   : > { %v3827_v19 = vadd.f32 %v3809_v25, %v3753_v14  ;;  %v3764_v7 = vpop.f32.mrf.mxu0 }
 0x3f4   : > { %v3765_v59 = vadd.f32 %v3764_v7, %v8499_v58 }
 0x3fa   : > { %v3812_v28 = vpop.f32.mrf.mxu2 }
 0x3fb   : > { %v3828_v8 = vadd.f32 %v3812_v28, %v3756_v13 }
 0x402   : > { %v3815_v2 = vpop.f32.mrf.mxu2 }
 0x403   : > { %v3829_v10 = vadd.f32 %v3815_v2, %v3759_v45 }
 0x40a   : > { %v3818_v41 = vpop.f32.mrf.mxu2 }
 0x40b   : > { %v3830_v35 = vadd.f32 %v3818_v41, %v3762_v61 }
 0x412   : > { %v3821_v9 = vpop.f32.mrf.mxu2 }
 0x413   : > { %v3831_v20 = vadd.f32 %v3821_v9, %v3765_v59 }
 0x421   : > { %v3865_v4 = vpop.f32.mrf.mxu1 }
 0x422   : > { %v3889_v18 = vadd.f32 %v3865_v4, %v3824_v15 }
 0x424   : > { %v3901_v0 = vadd.f32 %v8504_v3, %v3889_v18 }
 0x426   : > { %3935 = vst.msk [vmem:[%s8511_s20 + $0x1] sm:$0xff] %vm8843_vm1, %v3901_v0 }
 0x429   : > { %v3868_v62 = vpop.f32.mrf.mxu1 }
 0x42a   : > { %v3890_v31 = vadd.f32 %v3868_v62, %v3825_v44 }
 0x42c   : > { %v3902_v34 = vadd.f32 %v8504_v3, %v3890_v31 }
 0x42e   : > { %3936 = vst.msk [vmem:[%s8511_s20 + $0x9] sm:$0xff] %vm8844_vm2, %v3902_v34 }
 0x431   : > { %v3871_v56 = vpop.f32.mrf.mxu1 }
 0x432   : > { %v3891_v54 = vadd.f32 %v3871_v56, %v3826_v17 }
 0x434   : > { %v3903_v26 = vadd.f32 %v8504_v3, %v3891_v54 }
 0x436   : > { %3937 = vst.msk [vmem:[%s8511_s20 + $0x11] sm:$0xff] %vm8845_vm3, %v3903_v26 }
 0x439   : > { %v3930_v30 = vpop.f32.mrf.mxu1 }
 0x43a   : > { %v3931_v47 = vadd.f32 %v3930_v30, %v3897_v50 }
 0x43c   : > { %3934 = vst.msk [vmem:[%s8511_s20] sm:$0x1] %vm3933_vm4, %v3931_v47 }
 0x43f   : > { %v3874_v22 = vpop.f32.mrf.mxu3 }
 0x440   : > { %v3892_v29 = vadd.f32 %v3874_v22, %v3827_v19 }
 0x442   : > { %v3904_v33 = vadd.f32 %v8504_v3, %v3892_v29 }
 0x444   : > { %3938 = vst.msk [vmem:[%s8511_s20 + $0x19] sm:$0xff] %vm8846_vm9, %v3904_v33 }
 0x447   : > { %v3877_v46 = vpop.f32.mrf.mxu3 }
 0x448   : > { %v3893_v52 = vadd.f32 %v3877_v46, %v3828_v8 }
 0x44a   : > { %v3905_v37 = vadd.f32 %v8504_v3, %v3893_v52 }
 0x44c   : > { %3939 = vst.msk [vmem:[%s8511_s20 + $0x21] sm:$0xff] %vm8847_vm5, %v3905_v37 }
 0x44f   : > { %v3880_v23 = vpop.f32.mrf.mxu3 }
 0x450   : > { %v3894_v49 = vadd.f32 %v3880_v23, %v3829_v10 }
 0x452   : > { %v3906_v63 = vadd.f32 %v8504_v3, %v3894_v49 }
 0x454   : > { %3940 = vst.msk [vmem:[%s8511_s20 + $0x29] sm:$0xff] %vm8848_vm8, %v3906_v63 }
 0x457   : > { %v3883_v51 = vpop.f32.mrf.mxu3 }
 0x458   : > { %v3895_v57 = vadd.f32 %v3883_v51, %v3830_v35 }
 0x45a   : > { %v3907_v27 = vadd.f32 %v8504_v3, %v3895_v57 }
 0x45c   : > { %3941 = vst.msk [vmem:[%s8511_s20 + $0x31] sm:$0xff] %vm8849_vm12, %v3907_v27 }
 0x45f   : > { %v3886_v16 = vpop.f32.mrf.mxu3 }
 0x460   : > { %v3896_v38 = vadd.f32 %v3886_v16, %v3831_v20 }
 0x462   : > { %v3908_v24 = vadd.f32 %v8504_v3, %v3896_v38 }
 0x464   : > { %3942 = vst.msk [vmem:[%s8511_s20 + $0x39] sm:$0xff] %vm8850_vm10, %v3908_v24 }
 0x465 PF: > { %s24_s29 = sadd.s32 1, %s4790_s29  }
 0x466   : > { %p21_p4 = scmp.ge.s32.totalorder %s24_s29, 4  }
 0x468   :  { %23 = sbr.rel (!%p21_p4) target bundleno = 1 (0x1), region = 138 }

// kernel: mul_conv_adapter.1
= control target key start
LH: loop header
LB: loop body
LE: loop exit
PB: predicated region body
PF: predicated region fallthrough
CT: control target
= control target key end

     0   :  { %s4868_s29 = smov 0   ;;  %s8545_s0 = inlined_call_operand.vmem [shape: f32[2,65,32], index: 0, kind: input, shape index: {}]   ;;  %s8546_s1 = inlined_call_operand.vmem [shape: f32[32,16], index: 1, kind: input, shape index: {}]   ;;  %s8547_s2 = inlined_call_operand.vmem [shape: f32[1,16], index: 2, kind: input, shape index: {}]   ;;  %s8548_s3 = inlined_call_operand.vmem [shape: f32[16,384], index: 3, kind: input, shape index: {}]   ;;  %s8549_s4 = inlined_call_operand.vmem [shape: f32[1,384], index: 4, kind: input, shape index: {}]   ;;  %s8550_s5 = inlined_call_operand.vmem [shape: f32[9,128,128], index: 5, kind: input, shape index: {}]   ;;  %s8551_s6 = inlined_call_operand.vmem [shape: f32[1,128], index: 6, kind: input, shape index: {}]   ;;  %s8552_s7 = inlined_call_operand.vmem [shape: f32[25,128,128], index: 7, kind: input, shape index: {}]   ;;  %s8553_s8 = inlined_call_operand.vmem [shape: f32[1,128], index: 8, kind: input, shape index: {}]   ;;  %s8554_s9 = inlined_call_operand.vmem [shape: f32[16,32], index: 9, kind: input, shape index: {}]   ;;  %s8555_s10 = inlined_call_operand.vmem [shape: f32[128,32], index: 10, kind: input, shape index: {}]   ;;  %s8556_s11 = inlined_call_operand.vmem [shape: f32[128,32], index: 11, kind: input, shape index: {}]   ;;  %s8557_s12 = inlined_call_operand.vmem [shape: f32[128,32], index: 12, kind: input, shape index: {}]   ;;  %s8558_s13 = inlined_call_operand.vmem [shape: f32[1,32], index: 13, kind: input, shape index: {}]   ;;  %s8559_s14 = inlined_call_operand.vmem [shape: f32[2,65,32], index: 14, kind: output, shape index: {}]  }
   0x1 LB: > { %s3998_s30 = sadd.s32 4294967295, %s4790_s29   ;;  %p4002_p0 = scmp.ge.s32.totalorder %s4790_s29, 1  ;;  %s4790_s29 = sphi %s4868_s29, %s24_s29  }
   0x2   : > { %p412_p1 = scmp.lt.s32.totalorder %s4790_s29, 3 }
   0x4   : > { %p413_p2 = pnand %p4002_p0, %p412_p1 }
   0x6   : > { %416 = sbr.rel (%p413_p2) target bundleno = 1125 (0x465), region = 76 }
   0xb   : > { %v585_v0 = vld [vmem:[%s8546_s1 + $0x18] sm:$0xff]  ;;  %v584_v1 = vld [vmem:[%s8546_s1 + $0x10] sm:$0xff]  ;;  %p458_p3 = scmp.lt.s32.totalorder %s3998_s30, 1  ;;  %v583_v2 = vld [vmem:[%s8546_s1 + $0x8] sm:$0xff]  ;;  %vm8560_vm0 = vcmask 261120   ;;  %vm623_vm1 = vcmask 1046528  }
   0xc   : > { %669 = vmatpush.msra.mxu1 %v585_v0  ;;  %603 = vmatpush.msra.mxu0 %v585_v0  ;;  %v582_v3 = vld [vmem:[%s8546_s1] sm:$0xff]  ;;  %v709_v30 = vld [vmem:[%s8548_s3 + $0x18] sm:$0xff]  ;;  %v707_v33 = vld [vmem:[%s8548_s3 + $0x8] sm:$0xff]  ;;  %vm8561_vm2 = vcmask 130048   ;;  %vm8587_vm3 = vcmask 1040384  }
   0xd   : > { %s8852_s30 = smov (!%p458_p3, %s3998_s30), 1  ;;  %v710_v31 = vld [vmem:[%s8548_s3 + $0x20] sm:$0xff]  ;;  %4751 = vmatpush.msra.mxu2 %v709_v30  ;;  %v711_v34 = vld [vmem:[%s8548_s3 + $0x28] sm:$0xff]  ;;  %v708_v35 = vld [vmem:[%s8548_s3 + $0x10] sm:$0xff] }
   0xe   : > { %670 = vmatpush.msra.mxu1 %v584_v1  ;;  %604 = vmatpush.msra.mxu0 %v584_v1  ;;  %s4769_s23 = smul.u32 72, %s8852_s30  ;;  %v706_v32 = vld [vmem:[%s8548_s3] sm:$0xff]  ;;  %v983_v52 = vld [vmem:[%s8550_s5 + $0x78] sm:$0xff]  ;;  %v982_v53 = vld [vmem:[%s8550_s5 + $0x70] sm:$0xff] }
   0xf   : > { %800 = vmatpush.msra.mxu3 %v710_v31  ;;  %4752 = vmatpush.msra.mxu2 %v706_v32  ;;  %v4779_v36 = vld [vmem:[%s8547_s2] ss:$0 sm:$0xff]  ;;  %v981_v57 = vld [vmem:[%s8550_s5 + $0x68] sm:$0xff]  ;;  %v979_v62 = vld [vmem:[%s8550_s5 + $0x58] sm:$0xff] }
  0x10   : > { %671 = vmatpush.msra.mxu1 %v583_v2  ;;  %605 = vmatpush.msra.mxu0 %v583_v2  ;;  %s4896_s26 = scalar_lea.vmem %s8545_s0, %s4769_s23  ;;  %v980_v58 = vld [vmem:[%s8550_s5 + $0x60] sm:$0xff]  ;;  %v978_v63 = vld [vmem:[%s8550_s5 + $0x50] sm:$0xff]  ;;  %v4053_v0 = vld [vmem:[%s8550_s5 + $0xf8] sm:$0xff]  ;;  %s8511_s20 = scalar_lea.vmem %s8559_s14, %s4769_s23 }
  0x11   : > { %v573_v4 = vld [vmem:[%s4896_s26] sm:$0xff]  ;;  %v574_v5 = vld [vmem:[%s4896_s26 + $0x8] sm:$0xff]  ;;  %v575_v8 = vld [vmem:[%s4896_s26 + $0x10] sm:$0xff]  ;;  %801 = vmatpush.msra.mxu3 %v707_v33  ;;  %1001 = vmatpush.msrb.mxu2 %v4053_v0 }
  0x12   : > { %672 = vmatpush.msra.mxu1 %v582_v3  ;;  %606 = vmatpush.msra.mxu0 %v582_v3  ;;  %v624_v6 = vrot.slane %v573_v4, 1  ;;  %v625_v7 = vrot.slane %v574_v5, 1  ;;  %v627_v10 = vrot.slane %v575_v8, 1  ;;  %v576_v12 = vld [vmem:[%s4896_s26 + $0x18] sm:$0xff]  ;;  %v577_v15 = vld [vmem:[%s4896_s26 + $0x20] sm:$0xff]  ;;  %v578_v18 = vld [vmem:[%s4896_s26 + $0x28] sm:$0xff] }
  0x13   : > { %4005 = vmatmul.msk.f32.vlgmr.msra.gmra.mxu0 %vm8560_vm0, %v573_v4  ;;  %v629_v13 = vrot.slane %v576_v12, 1  ;;  %v631_v16 = vrot.slane %v577_v15, 1  ;;  %v633_v19 = vrot.slane %v578_v18, 1  ;;  %v579_v21 = vld [vmem:[%s4896_s26 + $0x30] sm:$0xff]  ;;  %v580_v24 = vld [vmem:[%s4896_s26 + $0x38] sm:$0xff]  ;;  %1042 = vmatpush.msrb.mxu3 %v983_v52  ;;  %v977_v3 = vld [vmem:[%s8550_s5 + $0x48] sm:$0xff] }
  0x14   : > { %v626_v9 = vsel %vm623_vm1, %v624_v6, %v625_v7  ;;  %v628_v11 = vsel %vm623_vm1, %v625_v7, %v627_v10  ;;  %v635_v22 = vrot.slane %v579_v21, 1  ;;  %v637_v25 = vrot.slane %v580_v24, 1  ;;  %v581_v27 = vld [vmem:[%s4896_s26 + $0x40] sm:$0x1]  ;;  %759 = vmatpush.msrb.mxu0 %v709_v30  ;;  %v4052_v1 = vld [vmem:[%s8550_s5 + $0xf0] sm:$0xff]  ;;  %v4051_v4 = vld [vmem:[%s8550_s5 + $0xe8] sm:$0xff] }
  0x15   : > { %4006 = vmatmul.msk.f32.vlgmr.msra.gmra.mxu1 %vm8560_vm0, %v626_v9  ;;  %v630_v14 = vsel %vm623_vm1, %v627_v10, %v629_v13  ;;  %v632_v17 = vsel %vm623_vm1, %v629_v13, %v631_v16  ;;  %v634_v20 = vsel %vm623_vm1, %v631_v16, %v633_v19  ;;  %v639_v28 = vrot.slane %v581_v27, 1  ;;  %1043 = vmatpush.msrb.mxu3 %v982_v53  ;;  %v4050_v6 = vld [vmem:[%s8550_s5 + $0xe0] sm:$0xff]  ;;  %v4076_v9 = vld [vmem:[%s8550_s5 + $0x178] sm:$0xff]  ;;  %v4075_v12 = vld [vmem:[%s8550_s5 + $0x170] sm:$0xff] }
  0x16   : > { %v636_v23 = vsel %vm623_vm1, %v633_v19, %v635_v22  ;;  %v638_v26 = vsel %vm623_vm1, %v635_v22, %v637_v25  ;;  %760 = vmatpush.msrb.mxu0 %v706_v32  ;;  %1002 = vmatpush.msrb.mxu2 %v4052_v1  ;;  %v976_v8 = vld [vmem:[%s8550_s5 + $0x40] sm:$0xff]  ;;  %v4100_v10 = vld [vmem:[%s8550_s5 + $0x1f8] sm:$0xff]  ;;  %v4099_v15 = vld [vmem:[%s8550_s5 + $0x1f0] sm:$0xff] }
  0x17   : > { %v640_v29 = vsel %vm623_vm1, %v637_v25, %v639_v28  ;;  %1044 = vmatpush.msrb.mxu3 %v981_v57  ;;  %1173 = vmatpush.msrb.mxu1 %v4076_v9  ;;  %v975_v13 = vld [vmem:[%s8550_s5 + $0x38] sm:$0xff]  ;;  %v974_v16 = vld [vmem:[%s8550_s5 + $0x30] sm:$0xff]  ;;  %v4047_v18 = vld [vmem:[%s8550_s5 + $0xc8] sm:$0xff]  ;;  %v8569_v57 = vmov 0.0  }
  0x18   : > { %841 = vmatpush.msra.mxu0 %v711_v34  ;;  %1003 = vmatpush.msrb.mxu2 %v4051_v4  ;;  %v4098_v19 = vld [vmem:[%s8550_s5 + $0x1e8] sm:$0xff]  ;;  %v4073_v21 = vld [vmem:[%s8550_s5 + $0x160] sm:$0xff]  ;;  %v4045_v25 = vld [vmem:[%s8550_s5 + $0xb8] sm:$0xff] }
  0x19   : > { %1045 = vmatpush.msrb.mxu3 %v980_v58  ;;  %1174 = vmatpush.msrb.mxu1 %v4075_v12  ;;  %v4046_v22 = vld [vmem:[%s8550_s5 + $0xc0] sm:$0xff]  ;;  %v971_v27 = vld [vmem:[%s8550_s5 + $0x18] sm:$0xff]  ;;  %v4071_v30 = vld [vmem:[%s8550_s5 + $0x150] sm:$0xff] }
  0x1a   : > { %842 = vmatpush.msra.mxu0 %v708_v35  ;;  %1004 = vmatpush.msrb.mxu2 %v4050_v6  ;;  %v972_v24 = vld [vmem:[%s8550_s5 + $0x20] sm:$0xff]  ;;  %v4096_v28 = vld [vmem:[%s8550_s5 + $0x1d8] sm:$0xff]  ;;  %v4095_v31 = vld [vmem:[%s8550_s5 + $0x1d0] sm:$0xff] }
  0x1b   : > { %1046 = vmatpush.msrb.mxu3 %v979_v62  ;;  %v970_v32 = vld [vmem:[%s8550_s5 + $0x10] sm:$0xff]  ;;  %v4043_v33 = vld [vmem:[%s8550_s5 + $0xa8] sm:$0xff]  ;;  %v4038_v52 = vld [vmem:[%s8550_s5 + $0x80] sm:$0xff] }
  0x1c   : > { %v4070_v34 = vld [vmem:[%s8550_s5 + $0x148] sm:$0xff]  ;;  %v968_v53 = vld [vmem:[%s8550_s5] sm:$0xff]  ;;  %v4124_v58 = vld [vmem:[%s8550_s5 + $0x278] sm:$0xff] }
  0x1d   : > { %4007 = vmatmul.msk.f32.gmra.mxu1 %vm8560_vm0, %v628_v11  ;;  %1047 = vmatpush.msrb.mxu3 %v978_v63  ;;  %v4049_v11 = vld [vmem:[%s8550_s5 + $0xd8] sm:$0xff]  ;;  %v4094_v35 = vld [vmem:[%s8550_s5 + $0x1c8] sm:$0xff]  ;;  %v4063_v1 = vld [vmem:[%s8550_s5 + $0x110] sm:$0xff] }
  0x1e   : > { %1005 = vmatpush.msrb.mxu2 %v4049_v11  ;;  %v4064_v62 = vld [vmem:[%s8550_s5 + $0x118] sm:$0xff]  ;;  %v4139_v4 = vld [vmem:[%s8550_s5 + $0x2f0] sm:$0xff]  ;;  %v4086_v6 = vld [vmem:[%s8550_s5 + $0x188] sm:$0xff] }
  0x1f   : > { %1048 = vmatpush.msrb.mxu3 %v977_v3  ;;  %v4088_v63 = vld [vmem:[%s8550_s5 + $0x198] sm:$0xff]  ;;  %v4123_v3 = vld [vmem:[%s8550_s5 + $0x270] sm:$0xff]  ;;  %v4061_v9 = vld [vmem:[%s8550_s5 + $0x100] sm:$0xff] }
  0x20   : > { %v4140_v0 = vld [vmem:[%s8550_s5 + $0x2f8] sm:$0xff]  ;;  %v4138_v11 = vld [vmem:[%s8550_s5 + $0x2e8] sm:$0xff]  ;;  %v4121_v12 = vld [vmem:[%s8550_s5 + $0x260] sm:$0xff] }
  0x21   : > { %1049 = vmatpush.msrb.mxu3 %v976_v8  ;;  %v4122_v8 = vld [vmem:[%s8550_s5 + $0x268] sm:$0xff] }
  0x23   : > { %1050 = vmatpush.msrb.mxu3 %v975_v13  ;;  %v4137_v13 = vld [vmem:[%s8550_s5 + $0x2e0] sm:$0xff] }
  0x25   : > { %4008 = vmatmul.msk.f32.gmra.mxu1 %vm8560_vm0, %v630_v14  ;;  %v4048_v14 = vld [vmem:[%s8550_s5 + $0xd0] sm:$0xff]  ;;  %1051 = vmatpush.msrb.mxu3 %v974_v16  ;;  %v4136_v16 = vld [vmem:[%s8550_s5 + $0x2d8] sm:$0xff] }
  0x26   : > { %1006 = vmatpush.msrb.mxu2 %v4048_v14  ;;  %v4120_v14 = vld [vmem:[%s8550_s5 + $0x258] sm:$0xff] }
  0x28   : > { %1007 = vmatpush.msrb.mxu2 %v4047_v18  ;;  %v4119_v18 = vld [vmem:[%s8550_s5 + $0x250] sm:$0xff] }
  0x2a   : > { %1008 = vmatpush.msrb.mxu2 %v4046_v22 }
  0x2c   : > { %1009 = vmatpush.msrb.mxu2 %v4045_v25 }
  0x2d   : > { %4009 = vmatmul.msk.f32.gmra.mxu1 %vm8560_vm0, %v632_v17  ;;  %v4074_v17 = vld [vmem:[%s8550_s5 + $0x168] sm:$0xff] }
  0x2e   : > { %1175 = vmatpush.msrb.mxu1 %v4074_v17  ;;  %v468_v17 = vlaneseq }
  0x30   : > { %1176 = vmatpush.msrb.mxu1 %v4073_v21  ;;  %v5244_v21 = vshrl.u32 %v468_v17, 7 }
  0x35   : > { %4010 = vmatmul.msk.f32.gmra.mxu1 %vm8560_vm0, %v634_v20  ;;  %v973_v20 = vld [vmem:[%s8550_s5 + $0x28] sm:$0xff] }
  0x36   : > { %1052 = vmatpush.msrb.mxu3 %v973_v20  ;;  %v4118_v20 = vld [vmem:[%s8550_s5 + $0x248] sm:$0xff] }
  0x38   : > { %1053 = vmatpush.msrb.mxu3 %v972_v24  ;;  %v5254_v24 = vld [vmem:[%s8549_s4] sm:$0x7] }
  0x39   : > { %v5257_v25 = vperm.slane %v5254_v24, 1 }
  0x3a   : > { %1054 = vmatpush.msrb.mxu3 %v971_v27  ;;  %v4117_v27 = vld [vmem:[%s8550_s5 + $0x240] sm:$0xff] }
  0x3c   : > { %1055 = vmatpush.msrb.mxu3 %v970_v32 }
  0x3d   : > { %4011 = vmatmul.msk.f32.gmra.mxu1 %vm8560_vm0, %v636_v23  ;;  %v4097_v23 = vld [vmem:[%s8550_s5 + $0x1e0] sm:$0xff] }
  0x45   : > { %4012 = vmatmul.msk.f32.gmra.mxu1 %vm8560_vm0, %v638_v26  ;;  %v4072_v26 = vld [vmem:[%s8550_s5 + $0x158] sm:$0xff] }
  0x46   : > { %1177 = vmatpush.msrb.mxu1 %v4072_v26  ;;  %v470_v26 = vadd.s32 8, %v5244_v21 }
  0x48   : > { %1178 = vmatpush.msrb.mxu1 %v4071_v30  ;;  %v5270_v32 = vand.u32 7, %v470_v26  ;;  %v4159_v26 = vld [vmem:[%s8550_s5 + $0x350] sm:$0xff] }
  0x4a   : > { %1179 = vmatpush.msrb.mxu1 %v4070_v34  ;;  %vm8567_vm4 = vcmp.ge.s32.totalorder %v5270_v32, 1  ;;  %vm8564_vm8 = vcmp.lt.s32.totalorder %v5270_v32, 7 }
  0x4d   : > { %4013 = vmatmul.msk.f32.gmra.mxu1 %vm8560_vm0, %v640_v29  ;;  %v4044_v29 = vld [vmem:[%s8550_s5 + $0xb0] sm:$0xff] }
  0x4e   : > { %1010 = vmatpush.msrb.mxu2 %v4044_v29  ;;  %v4116_v29 = vld [vmem:[%s8550_s5 + $0x238] sm:$0xff] }
  0x50   : > { %1011 = vmatpush.msrb.mxu2 %v4043_v33  ;;  %v5273_v33 = vand.u32 7, %v5244_v21 }
  0x52   : > { %vm8574_vm5 = vcmp.lt.s32.totalorder %v5273_v33, 7  ;;  %vm8565_vm6 = vcmp.ge.s32.totalorder %v5273_v33, 1 }
  0x92   : > { %v674_v37 = vpop.f32.mrf.mxu1 }
  0x93   : > { %v675_v38 = vadd.f32 %v4779_v36, %v674_v37  ;;  %v4042_v37 = vld [vmem:[%s8550_s5 + $0xa0] sm:$0xff] }
  0x94   : > { %1012 = vmatpush.msrb.mxu2 %v4042_v37  ;;  %v471_v37 = vadd.s32 16, %v5244_v21 }
  0x95   : > { %v4945_v39 = vmax.f32 %v675_v38, 0.0  ;;  %v4069_v38 = vld [vmem:[%s8550_s5 + $0x140] sm:$0xff] }
  0x96   : > { %1180 = vmatpush.msrb.mxu1 %v4069_v38 }
  0x97   : > { %8642 = vst [vmem:[#allocation2_spill] sm:$0xff] %v4945_v39  ;;  %4014 = vmatmul.msk.f32.vlgmr.msrb.gmra.mxu0 %vm8561_vm2, %v4945_v39  ;;  %4022 = vmatmul.msk.f32.vlgmr.msra.gmra.mxu3 %vm8561_vm2, %v4945_v39 }
  0x98   : > { %1250 = vmatpush.msrb.mxu0 %v4100_v10  ;;  %v4085_v10 = vld [vmem:[%s8550_s5 + $0x180] sm:$0xff] }
  0x9a   : > { %v677_v40 = vpop.f32.mrf.mxu1  ;;  %1251 = vmatpush.msrb.mxu0 %v4099_v15  ;;  %v5230_v15 = vpop.f32.mrf.mxu0 }
  0x9b   : > { %v678_v41 = vadd.f32 %v4779_v36, %v677_v40  ;;  %v4041_v40 = vld [vmem:[%s8550_s5 + $0x98] sm:$0xff]  ;;  %8650 = vst [vmem:[#allocation10_spill] sm:$0xff] %v5230_v15 }
  0x9c   : > { %1252 = vmatpush.msrb.mxu0 %v4098_v19  ;;  %1013 = vmatpush.msrb.mxu2 %v4041_v40  ;;  %v4135_v19 = vld [vmem:[%s8550_s5 + $0x2d0] sm:$0xff] }
  0x9d   : > { %v4951_v42 = vmax.f32 %v678_v41, 0.0  ;;  %v4093_v41 = vld [vmem:[%s8550_s5 + $0x1c0] sm:$0xff] }
  0x9e   : > { %1253 = vmatpush.msrb.mxu0 %v4097_v23  ;;  %v4134_v23 = vld [vmem:[%s8550_s5 + $0x2c8] sm:$0xff] }
  0x9f   : > { %8643 = vst [vmem:[#allocation3_spill] sm:$0xff] %v4951_v42  ;;  %4015 = vmatmul.msk.f32.gmra.mxu0 %vm8561_vm2, %v4951_v42  ;;  %4023 = vmatmul.msk.f32.gmra.mxu3 %vm8561_vm2, %v4951_v42 }
  0xa0   : > { %1254 = vmatpush.msrb.mxu0 %v4096_v28  ;;  %v4133_v28 = vld [vmem:[%s8550_s5 + $0x2c0] sm:$0xff] }
  0xa2   : > { %v680_v43 = vpop.f32.mrf.mxu1  ;;  %1255 = vmatpush.msrb.mxu0 %v4095_v31 }
  0xa3   : > { %v681_v44 = vadd.f32 %v4779_v36, %v680_v43  ;;  %v4068_v43 = vld [vmem:[%s8550_s5 + $0x138] sm:$0xff] }
  0xa4   : > { %1256 = vmatpush.msrb.mxu0 %v4094_v35  ;;  %1181 = vmatpush.msrb.mxu1 %v4068_v43  ;;  %v4131_v43 = vld [vmem:[%s8550_s5 + $0x2b0] sm:$0xff] }
  0xa5   : > { %v4957_v45 = vmax.f32 %v681_v44, 0.0  ;;  %v4040_v44 = vld [vmem:[%s8550_s5 + $0x90] sm:$0xff] }
  0xa6   : > { %1257 = vmatpush.msrb.mxu0 %v4093_v41  ;;  %1014 = vmatpush.msrb.mxu2 %v4040_v44  ;;  %v4115_v41 = vld [vmem:[%s8550_s5 + $0x230] sm:$0xff]  ;;  %v4114_v44 = vld [vmem:[%s8550_s5 + $0x228] sm:$0xff] }
  0xa7   : > { %8644 = vst [vmem:[#allocation4_spill] sm:$0xff] %v4957_v45  ;;  %4016 = vmatmul.msk.f32.gmra.mxu0 %vm8561_vm2, %v4957_v45  ;;  %4024 = vmatmul.msk.f32.gmra.mxu3 %vm8561_vm2, %v4957_v45 }
  0xaa   : > { %v683_v46 = vpop.f32.mrf.mxu1 }
  0xab   : > { %v684_v47 = vadd.f32 %v4779_v36, %v683_v46  ;;  %v4092_v46 = vld [vmem:[%s8550_s5 + $0x1b8] sm:$0xff] }
  0xac   : > { %1258 = vmatpush.msrb.mxu0 %v4092_v46 }
  0xad   : > { %v4963_v48 = vmax.f32 %v684_v47, 0.0  ;;  %v4039_v47 = vld [vmem:[%s8550_s5 + $0x88] sm:$0xff] }
  0xae   : > { %1015 = vmatpush.msrb.mxu2 %v4039_v47 }
  0xaf   : > { %8645 = vst [vmem:[#allocation5_spill] sm:$0xff] %v4963_v48  ;;  %4017 = vmatmul.msk.f32.vlgmr.msra.gmra.mxu2 %vm8561_vm2, %v4963_v48  ;;  %4025 = vmatmul.msk.f32.gmra.mxu3 %vm8561_vm2, %v4963_v48 }
  0xb0   : > { %4030 = vmatmul.msk.f32.vlgmr.msra.gmra.mxu0 %vm8561_vm2, %v4945_v39  ;;  %1016 = vmatpush.msrb.mxu2 %v4038_v52 }
  0xb2   : > { %v686_v49 = vpop.f32.mrf.mxu1  ;;  %1316 = vmatpush.msra.mxu2 %v4124_v58 }
  0xb3   : > { %v687_v50 = vadd.f32 %v4779_v36, %v686_v49  ;;  %v4067_v49 = vld [vmem:[%s8550_s5 + $0x130] sm:$0xff] }
  0xb4   : > { %1182 = vmatpush.msrb.mxu1 %v4067_v49  ;;  %1317 = vmatpush.msra.mxu2 %v4123_v3  ;;  %v4113_v3 = vld [vmem:[%s8550_s5 + $0x220] sm:$0xff] }
  0xb5   : > { %v4971_v51 = vmax.f32 %v687_v50, 0.0  ;;  %v4091_v50 = vld [vmem:[%s8550_s5 + $0x1b0] sm:$0xff] }
  0xb6   : > { %1259 = vmatpush.msrb.mxu0 %v4091_v50  ;;  %1318 = vmatpush.msra.mxu2 %v4122_v8  ;;  %v5304_v50 = vand.u32 7, %v471_v37  ;;  %v4183_v37 = vld [vmem:[%s8550_s5 + $0x3d0] sm:$0xff] }
  0xb7   : > { %8646 = vst [vmem:[#allocation6_spill] sm:$0xff] %v4971_v51  ;;  %4018 = vmatmul.msk.f32.gmra.mxu2 %vm8561_vm2, %v4971_v51  ;;  %4026 = vmatmul.msk.f32.gmra.mxu3 %vm8561_vm2, %v4971_v51 }
  0xb8   : > { %4031 = vmatmul.msk.f32.gmra.mxu0 %vm8561_vm2, %v4951_v42  ;;  %1319 = vmatpush.msra.mxu2 %v4121_v12  ;;  %vm8605_vm7 = vcmp.ge.s32.totalorder %v5304_v50, 1  ;;  %vm8596_vm10 = vcmp.lt.s32.totalorder %v5304_v50, 7 }
  0xba   : > { %v689_v54 = vpop.f32.mrf.mxu1  ;;  %1320 = vmatpush.msra.mxu2 %v4120_v14  ;;  %v4185_v14 = vld [vmem:[%s8550_s5 + $0x3e0] sm:$0xff] }
  0xbb   : > { %v690_v55 = vadd.f32 %v4779_v36, %v689_v54  ;;  %v4066_v54 = vld [vmem:[%s8550_s5 + $0x128] sm:$0xff] }
  0xbc   : > { %1183 = vmatpush.msrb.mxu1 %v4066_v54  ;;  %1321 = vmatpush.msra.mxu2 %v4119_v18  ;;  %v4188_v54 = vld [vmem:[%s8550_s5 + $0x3f8] sm:$0xff] }
  0xbd   : > { %v4985_v56 = vmax.f32 %v690_v55, 0.0  ;;  %v4090_v55 = vld [vmem:[%s8550_s5 + $0x1a8] sm:$0xff] }
  0xbe   : > { %1260 = vmatpush.msrb.mxu0 %v4090_v55  ;;  %1322 = vmatpush.msra.mxu2 %v4118_v20  ;;  %v4184_v20 = vld [vmem:[%s8550_s5 + $0x3d8] sm:$0xff] }
  0xbf   : > { %8647 = vst [vmem:[#allocation7_spill] sm:$0xff] %v4985_v56  ;;  %4019 = vmatmul.msk.f32.gmra.mxu2 %vm8561_vm2, %v4985_v56  ;;  %4027 = vmatmul.msk.f32.gmra.mxu3 %vm8561_vm2, %v4985_v56 }
  0xc0   : > { %4032 = vmatmul.msk.f32.gmra.mxu0 %vm8561_vm2, %v4957_v45  ;;  %1323 = vmatpush.msra.mxu2 %v4117_v27  ;;  %v4326_v45 = vld [vmem:[%s8552_s7 + $0x308] sm:$0xff] }
  0xc2   : > { %v692_v59 = vpop.f32.mrf.mxu1  ;;  %1324 = vmatpush.msra.mxu2 %v4116_v29  ;;  %v4111_v29 = vld [vmem:[%s8550_s5 + $0x210] sm:$0xff] }
  0xc3   : > { %v693_v60 = vadd.f32 %v4779_v36, %v692_v59  ;;  %v4065_v59 = vld [vmem:[%s8550_s5 + $0x120] sm:$0xff] }
  0xc4   : > { %1184 = vmatpush.msrb.mxu1 %v4065_v59  ;;  %1325 = vmatpush.msra.mxu2 %v4115_v41  ;;  %v4130_v59 = vld [vmem:[%s8550_s5 + $0x2a8] sm:$0xff] }
  0xc5   : > { %v4999_v61 = vmax.f32 %v693_v60, 0.0  ;;  %v4089_v60 = vld [vmem:[%s8550_s5 + $0x1a0] sm:$0xff] }
  0xc6   : > { %1261 = vmatpush.msrb.mxu0 %v4089_v60  ;;  %1185 = vmatpush.msrb.mxu1 %v4064_v62  ;;  %v4163_v60 = vld [vmem:[%s8550_s5 + $0x370] sm:$0xff] }
  0xc7   : > { %8648 = vst [vmem:[#allocation8_spill] sm:$0xff] %v4999_v61  ;;  %4020 = vmatmul.msk.f32.gmra.mxu2 %vm8561_vm2, %v4999_v61  ;;  %4028 = vmatmul.msk.f32.gmra.mxu3 %vm8561_vm2, %v4999_v61  ;;  %v4187_v62 = vld [vmem:[%s8550_s5 + $0x3f0] sm:$0xff] }
  0xc8   : > { %4033 = vmatmul.msk.f32.gmra.mxu0 %vm8561_vm2, %v4963_v48  ;;  %1186 = vmatpush.msrb.mxu1 %v4063_v1  ;;  %v472_v1 = vadd.s32 24, %v5244_v21  ;;  %v4304_v48 = vld [vmem:[%s8552_s7 + $0x290] sm:$0xff] }
  0xc9   : > { %1262 = vmatpush.msrb.mxu0 %v4088_v63  ;;  %1326 = vmatpush.msra.mxu2 %v4114_v44 }
  0xca   : > { %v695_v2 = vpop.f32.mrf.mxu1 }
  0xcb   : > { %v696_v5 = vadd.f32 %v4779_v36, %v695_v2  ;;  %v969_v36 = vld [vmem:[%s8550_s5 + $0x8] sm:$0xff]  ;;  %v4087_v2 = vld [vmem:[%s8550_s5 + $0x190] sm:$0xff]  ;;  %1327 = vmatpush.msra.mxu2 %v4113_v3 }
  0xcc   : > { %1056 = vmatpush.msrb.mxu3 %v969_v36  ;;  %1263 = vmatpush.msrb.mxu0 %v4087_v2  ;;  %v4132_v36 = vld [vmem:[%s8550_s5 + $0x2b8] sm:$0xff]  ;;  %v4162_v2 = vld [vmem:[%s8550_s5 + $0x368] sm:$0xff] }
  0xcd   : > { %v5028_v7 = vmax.f32 %v696_v5, 0.0  ;;  %v4062_v5 = vld [vmem:[%s8550_s5 + $0x108] sm:$0xff] }
  0xce   : > { %1057 = vmatpush.msrb.mxu3 %v968_v53  ;;  %1187 = vmatpush.msrb.mxu1 %v4062_v5  ;;  %v4164_v53 = vld [vmem:[%s8550_s5 + $0x378] sm:$0xff] }
  0xcf   : > { %8649 = vst [vmem:[#allocation9_spill] sm:$0xff] %v5028_v7  ;;  %4029 = vmatmul.msk.f32.gmra.mxu3 %vm8561_vm2, %v5028_v7  ;;  %4021 = vmatmul.msk.f32.gmra.mxu2 %vm8561_vm2, %v5028_v7  ;;  %v4112_v5 = vld [vmem:[%s8550_s5 + $0x218] sm:$0xff] }
  0xd0   : > { %4034 = vmatmul.msk.f32.gmra.mxu0 %vm8561_vm2, %v4971_v51  ;;  %1392 = vmatpush.msra.mxu3 %v4140_v0 }
  0xd1   : > { %1264 = vmatpush.msrb.mxu0 %v4086_v6  ;;  %1188 = vmatpush.msrb.mxu1 %v4061_v9  ;;  %v4186_v9 = vld [vmem:[%s8550_s5 + $0x3e8] sm:$0xff] }
  0xd2   : > { %1393 = vmatpush.msra.mxu3 %v4139_v4  ;;  %v4129_v4 = vld [vmem:[%s8550_s5 + $0x2a0] sm:$0xff]  ;;  %1328 = vmatpush.msra.mxu2 %v4112_v5  ;;  %v4180_v5 = vld [vmem:[%s8550_s5 + $0x3b8] sm:$0xff] }
  0xd3   : > { %1265 = vmatpush.msrb.mxu0 %v4085_v10  ;;  %1468 = vmatpush.msra.mxu1 %v4164_v53  ;;  %v4161_v10 = vld [vmem:[%s8550_s5 + $0x360] sm:$0xff] }
  0xd4   : > { %1394 = vmatpush.msra.mxu3 %v4138_v11  ;;  %1329 = vmatpush.msra.mxu2 %v4111_v29  ;;  %v4181_v53 = vld [vmem:[%s8550_s5 + $0x3c0] sm:$0xff]  ;;  %v4152_v29 = vld [vmem:[%s8550_s5 + $0x318] sm:$0xff] }
  0xd5   : > { %1534 = vmatpush.msra.mxu0 %v4188_v54  ;;  %1469 = vmatpush.msra.mxu1 %v4163_v60  ;;  %v4126_v54 = vld [vmem:[%s8550_s5 + $0x288] sm:$0xff]  ;;  %v4109_v60 = vld [vmem:[%s8550_s5 + $0x200] sm:$0xff] }
  0xd6   : > { %1395 = vmatpush.msra.mxu3 %v4137_v13  ;;  %v5368_v13 = vand.u32 7, %v472_v1  ;;  %v4155_v1 = vld [vmem:[%s8550_s5 + $0x330] sm:$0xff] }
  0xd7   : > { %1017 = vmatmul.f32.vlgmr.msrb.gmra.mxu2 %v8569_v57  ;;  %1058 = vmatmul.f32.vlgmr.msrb.gmra.mxu3 %v8569_v57 }
  0xd8   : > { %4035 = vmatmul.msk.f32.gmra.mxu0 %vm8561_vm2, %v4985_v56  ;;  %1396 = vmatpush.msra.mxu3 %v4136_v16  ;;  %v4160_v16 = vld [vmem:[%s8550_s5 + $0x358] sm:$0xff]  ;;  %vm8610_vm9 = vcmp.ge.s32.totalorder %v5368_v13, 1  ;;  %vm1119_vm12 = vcmp.lt.s32.totalorder %v5368_v13, 7  ;;  %v4308_v56 = vld [vmem:[%s8552_s7 + $0x2b0] sm:$0xff] }
  0xd9   : > { %1535 = vmatpush.msra.mxu0 %v4187_v62  ;;  %1470 = vmatpush.msra.mxu1 %v4162_v2  ;;  %v4125_v2 = vld [vmem:[%s8550_s5 + $0x280] sm:$0xff] }
  0xda   : > { %1397 = vmatpush.msra.mxu3 %v4135_v19  ;;  %v4128_v19 = vld [vmem:[%s8550_s5 + $0x298] sm:$0xff] }
  0xdb   : > { %1536 = vmatpush.msra.mxu0 %v4186_v9  ;;  %1471 = vmatpush.msra.mxu1 %v4161_v10  ;;  %v4204_v9 = vld [vmem:[%s8550_s5 + $0x478] sm:$0xff] }
  0xdc   : > { %1398 = vmatpush.msra.mxu3 %v4134_v23  ;;  %v473_v23 = vadd.s32 32, %v5244_v21 }
  0xdd   : > { %1537 = vmatpush.msra.mxu0 %v4185_v14  ;;  %1472 = vmatpush.msra.mxu1 %v4160_v16  ;;  %v4179_v16 = vld [vmem:[%s8550_s5 + $0x3b0] sm:$0xff] }
  0xde   : > { %1399 = vmatpush.msra.mxu3 %v4133_v28  ;;  %v5419_v41 = vand.u32 7, %v473_v23 }
  0xdf   : > { %1538 = vmatpush.msra.mxu0 %v4184_v20  ;;  %1473 = vmatpush.msra.mxu1 %v4159_v26  ;;  %v4153_v20 = vld [vmem:[%s8550_s5 + $0x320] sm:$0xff] }
  0xe0   : > { %4036 = vmatmul.msk.f32.gmra.mxu0 %vm8561_vm2, %v4999_v61  ;;  %1400 = vmatpush.msra.mxu3 %v4132_v36  ;;  %vm8578_vm11 = vcmp.ge.s32.totalorder %v5419_v41, 1  ;;  %vm1120_vm14 = vcmp.lt.s32.totalorder %v5419_v41, 7 }
  0xe1   : > { %1539 = vmatpush.msra.mxu0 %v4183_v37 }
  0xe2   : > { %1401 = vmatpush.msra.mxu3 %v4131_v43  ;;  %v4110_v43 = vld [vmem:[%s8550_s5 + $0x208] sm:$0xff] }
  0xe3   : > { %1330 = vmatpush.msra.mxu2 %v4110_v43 }
  0xe4   : > { %1402 = vmatpush.msra.mxu3 %v4130_v59  ;;  %v4156_v59 = vld [vmem:[%s8550_s5 + $0x338] sm:$0xff] }
  0xe5   : > { %1331 = vmatpush.msra.mxu2 %v4109_v60  ;;  %v4202_v60 = vld [vmem:[%s8550_s5 + $0x468] sm:$0xff] }
  0xe6   : > { %1403 = vmatpush.msra.mxu3 %v4129_v4 }
  0xe7   : > { %1607 = vmatpush.msrb.mxu2 %v4204_v9  ;;  %v4175_v9 = vld [vmem:[%s8550_s5 + $0x390] sm:$0xff] }
  0xe8   : > { %4037 = vmatmul.msk.f32.gmra.mxu0 %vm8561_vm2, %v5028_v7  ;;  %1404 = vmatpush.msra.mxu3 %v4128_v19  ;;  %v4227_v19 = vld [vmem:[%s8552_s7 + $0xf8] sm:$0xff]  ;;  %v4256_v7 = vld [vmem:[%s8552_s7 + $0x180] sm:$0xff] }
 0x114   : > { %v5246_v22 = vpop.f32.mrf.mxu0 }
 0x115   : > { %8651 = vst [vmem:[#allocation11_spill] sm:$0xff] %v5246_v22 }
 0x11a   : > { %v803_v30 = vpop.f32.mrf.mxu3 }
 0x11b   : > { %v804_v31 = vadd.f32 %v803_v30, %v5257_v25  ;;  %v4127_v30 = vld [vmem:[%s8550_s5 + $0x290] sm:$0xff] }
 0x11c   : > { %v5275_v34 = vpop.f32.mrf.mxu0  ;;  %1405 = vmatpush.msra.mxu3 %v4127_v30 }
 0x11d   : > { %8652 = vst [vmem:[#allocation12_spill] sm:$0xff] %v5275_v34  ;;  %v5277_v35 = vmax.f32 %v804_v31, 0.0  ;;  %v8678_v34 = vmov 0.0  }
 0x11e   : > { %1406 = vmatpush.msra.mxu3 %v4126_v54 }
 0x11f   : > { %1020 = vmatmul.f32.gmra.mxu2 %v5277_v35  ;;  %v900_v38 = vrot.slane %v5277_v35, 7  ;;  %v1084_v40 = vrot.slane %v5277_v35, 1 }
 0x120   : > { %1407 = vmatpush.msra.mxu3 %v4125_v2 }
 0x121   : > { %v920_v46 = vsel %vm8587_vm3, 0.0, %v900_v38  ;;  %v1107_v47 = vsel %vm623_vm1, 0.0, %v1084_v40 }
 0x122   : > { %v806_v49 = vpop.f32.mrf.mxu3  ;;  %4054 = vmatmul.msk.f32.gmra.mxu3 %vm8567_vm4, %v920_v46  ;;  %4077 = vmatmul.msk.f32.vlgmr.msrb.gmra.mxu1 %vm8574_vm5, %v1107_v47  ;;  %v4157_v47 = vld [vmem:[%s8550_s5 + $0x340] sm:$0xff] }
 0x123   : > { %v807_v52 = vadd.f32 %v806_v49, %v5257_v25  ;;  %4101 = vmatmul.msk.f32.vlgmr.msrb.gmra.mxu0 %vm8565_vm6, %v920_v46  ;;  %v4182_v46 = vld [vmem:[%s8550_s5 + $0x3c8] sm:$0xff]  ;;  %1804 = vmatpush.msrb.mxu3 %v4227_v19  ;;  %v4224_v19 = vld [vmem:[%s8552_s7 + $0xe0] sm:$0xff] }
 0x124   : > { %v5315_v55 = vpop.f32.mrf.mxu0  ;;  %1540 = vmatpush.msra.mxu0 %v4182_v46  ;;  %v4177_v46 = vld [vmem:[%s8550_s5 + $0x3a0] sm:$0xff] }
 0x125   : > { %8653 = vst [vmem:[#allocation13_spill] sm:$0xff] %v5315_v55  ;;  %v5317_v58 = vmax.f32 %v807_v52, 0.0 }
 0x126   : > { %1541 = vmatpush.msra.mxu0 %v4181_v53 }
 0x127   : > { %1023 = vmatmul.f32.gmra.mxu2 %v5317_v58  ;;  %v901_v63 = vrot.slane %v5317_v58, 7  ;;  %v1085_v0 = vrot.slane %v5317_v58, 1 }
 0x128   : > { %1542 = vmatpush.msra.mxu0 %v4180_v5 }
 0x129   : > { %v5347_v6 = vsel %vm8587_vm3, %v900_v38, %v901_v63  ;;  %v5350_v8 = vsel %vm623_vm1, %v1084_v40, %v1085_v0  ;;  %v4158_v38 = vld [vmem:[%s8550_s5 + $0x348] sm:$0xff] }
 0x12a   : > { %v809_v11 = vpop.f32.mrf.mxu3  ;;  %4055 = vmatmul.msk.f32.gmra.mxu3 %vm8605_vm7, %v5347_v6  ;;  %4078 = vmatmul.msk.f32.gmra.mxu1 %vm8564_vm8, %v5350_v8 }
 0x12b   : > { %v810_v12 = vadd.f32 %v809_v11, %v5257_v25  ;;  %4102 = vmatmul.msk.f32.gmra.mxu0 %vm8567_vm4, %v5347_v6  ;;  %1474 = vmatpush.msra.mxu1 %v4158_v38  ;;  %v4154_v11 = vld [vmem:[%s8550_s5 + $0x328] sm:$0xff]  ;;  %v4203_v38 = vld [vmem:[%s8550_s5 + $0x470] sm:$0xff] }
 0x12c   : > { %1543 = vmatpush.msra.mxu0 %v4179_v16  ;;  %1608 = vmatpush.msrb.mxu2 %v4203_v38  ;;  %v4201_v16 = vld [vmem:[%s8550_s5 + $0x460] sm:$0xff] }
 0x12d   : > { %v5376_v17 = vmax.f32 %v810_v12, 0.0  ;;  %v5378_v18 = vpop.f32.mrf.mxu0  ;;  %1475 = vmatpush.msra.mxu1 %v4157_v47  ;;  %v4226_v47 = vld [vmem:[%s8552_s7 + $0xf0] sm:$0xff] }
 0x12e   : > { %1805 = vmatpush.msrb.mxu3 %v4226_v47  ;;  %1609 = vmatpush.msrb.mxu2 %v4202_v60  ;;  %v4222_v47 = vld [vmem:[%s8552_s7 + $0xd0] sm:$0xff] }
 0x12f   : > { %1026 = vmatmul.f32.gmra.mxu2 %v5376_v17  ;;  %v903_v27 = vrot.slane %v5376_v17, 7  ;;  %v1087_v28 = vrot.slane %v5376_v17, 1  ;;  %1476 = vmatpush.msra.mxu1 %v4156_v59  ;;  %v4150_v59 = vld [vmem:[%s8550_s5 + $0x308] sm:$0xff] }
 0x130   : > { %1610 = vmatpush.msrb.mxu2 %v4201_v16  ;;  %v4220_v16 = vld [vmem:[%s8552_s7 + $0xc0] sm:$0xff] }
 0x131   : > { %v5402_v31 = vsel %vm8587_vm3, %v901_v63, %v903_v27  ;;  %v5405_v36 = vsel %vm623_vm1, %v1085_v0, %v1087_v28  ;;  %v474_v0 = vadd.s32 40, %v5244_v21  ;;  %1477 = vmatpush.msra.mxu1 %v4155_v1  ;;  %v4149_v1 = vld [vmem:[%s8550_s5 + $0x300] sm:$0xff] }
 0x132   : > { %v812_v40 = vpop.f32.mrf.mxu3  ;;  %4056 = vmatmul.msk.f32.gmra.mxu3 %vm8610_vm9, %v5402_v31  ;;  %4079 = vmatmul.msk.f32.gmra.mxu1 %vm8596_vm10, %v5405_v36 }
 0x133   : > { %v813_v44 = vadd.f32 %v812_v40, %v5257_v25  ;;  %4103 = vmatmul.msk.f32.gmra.mxu0 %vm8605_vm7, %v5402_v31  ;;  %v5487_v14 = vand.u32 7, %v474_v0  ;;  %1478 = vmatpush.msra.mxu1 %v4154_v11  ;;  %v4151_v40 = vld [vmem:[%s8550_s5 + $0x310] sm:$0xff]  ;;  %v4225_v0 = vld [vmem:[%s8552_s7 + $0xe8] sm:$0xff] }
 0x134   : > { %1806 = vmatpush.msrb.mxu3 %v4225_v0 }
 0x135   : > { %v5434_v49 = vmax.f32 %v813_v44, 0.0  ;;  %v5436_v52 = vpop.f32.mrf.mxu0  ;;  %vm8562_vm13 = vcmp.ge.s32.totalorder %v5487_v14, 1  ;;  %1479 = vmatpush.msra.mxu1 %v4153_v20  ;;  %vm1121_vm0 = vcmp.lt.s32.totalorder %v5487_v14, 7  ;;  %v4200_v20 = vld [vmem:[%s8550_s5 + $0x458] sm:$0xff] }
 0x136   : > { %1807 = vmatpush.msrb.mxu3 %v4224_v19  ;;  %1611 = vmatpush.msrb.mxu2 %v4200_v20 }
 0x137   : > { %1029 = vmatmul.f32.gmra.mxu2 %v5434_v49  ;;  %v905_v62 = vrot.slane %v5434_v49, 7  ;;  %v1089_v63 = vrot.slane %v5434_v49, 1  ;;  %1480 = vmatpush.msra.mxu1 %v4152_v29 }
 0x139   : > { %v5463_v3 = vsel %vm8587_vm3, %v903_v27, %v905_v62  ;;  %v5466_v4 = vsel %vm623_vm1, %v1087_v28, %v1089_v63  ;;  %v4178_v27 = vld [vmem:[%s8550_s5 + $0x3a8] sm:$0xff]  ;;  %v475_v28 = vadd.s32 48, %v5244_v21  ;;  %1481 = vmatpush.msra.mxu1 %v4151_v40  ;;  %v4223_v40 = vld [vmem:[%s8552_s7 + $0xd8] sm:$0xff] }
 0x13a   : > { %v815_v10 = vpop.f32.mrf.mxu3  ;;  %4057 = vmatmul.msk.f32.gmra.mxu3 %vm8578_vm11, %v5463_v3  ;;  %4080 = vmatmul.msk.f32.gmra.mxu1 %vm1119_vm12, %v5466_v4 }
 0x13b   : > { %v816_v12 = vadd.f32 %v815_v10, %v5257_v25  ;;  %4104 = vmatmul.msk.f32.gmra.mxu0 %vm8610_vm9, %v5463_v3  ;;  %v5538_v54 = vand.u32 7, %v475_v28  ;;  %1482 = vmatpush.msra.mxu1 %v4150_v59 }
 0x13c   : > { %1544 = vmatpush.msra.mxu0 %v4178_v27  ;;  %1808 = vmatpush.msrb.mxu3 %v4223_v40 }
 0x13d   : > { %v5498_v23 = vmax.f32 %v816_v12, 0.0  ;;  %v5500_v26 = vpop.f32.mrf.mxu0  ;;  %vm8563_vm15 = vcmp.ge.s32.totalorder %v5538_v54, 1  ;;  %v476_v12 = vadd.s32 56, %v5244_v21  ;;  %1483 = vmatpush.msra.mxu1 %v4149_v1  ;;  %v4174_v21 = vld [vmem:[%s8550_s5 + $0x388] sm:$0xff] }
 0x13e   : > { %1545 = vmatpush.msra.mxu0 %v4177_v46  ;;  %v4199_v46 = vld [vmem:[%s8550_s5 + $0x450] sm:$0xff]  ;;  %1809 = vmatpush.msrb.mxu3 %v4222_v47 }
 0x13f   : > { %1032 = vmatmul.f32.gmra.mxu2 %v5498_v23  ;;  %v907_v30 = vrot.slane %v5498_v23, 7  ;;  %v1091_v37 = vrot.slane %v5498_v23, 1  ;;  %v5603_v38 = vand.u32 7, %v476_v12  ;;  %v4218_v47 = vld [vmem:[%s8552_s7 + $0xb0] sm:$0xff] }
 0x140   : > { %1612 = vmatpush.msrb.mxu2 %v4199_v46  ;;  %v4195_v46 = vld [vmem:[%s8550_s5 + $0x430] sm:$0xff] }
 0x141   : > { %v5521_v43 = vsel %vm8587_vm3, %v905_v62, %v907_v30  ;;  %v5524_v44 = vsel %vm623_vm1, %v1089_v63, %v1091_v37  ;;  %v4176_v63 = vld [vmem:[%s8550_s5 + $0x398] sm:$0xff]  ;;  %vm8584_vm2 = vcmp.ge.s32.totalorder %v5603_v38, 1 }
 0x142   : > { %v818_v53 = vpop.f32.mrf.mxu3  ;;  %4058 = vmatmul.msk.f32.gmra.mxu3 %vm8562_vm13, %v5521_v43  ;;  %4081 = vmatmul.msk.f32.gmra.mxu1 %vm1120_vm14, %v5524_v44 }
 0x143   : > { %v819_v62 = vadd.f32 %v818_v53, %v5257_v25  ;;  %4105 = vmatmul.msk.f32.gmra.mxu0 %vm8578_vm11, %v5521_v43 }
 0x144   : > { %1546 = vmatpush.msra.mxu0 %v4176_v63  ;;  %v4198_v63 = vld [vmem:[%s8550_s5 + $0x448] sm:$0xff] }
 0x145   : > { %v5559_v2 = vmax.f32 %v819_v62, 0.0  ;;  %v5561_v5 = vpop.f32.mrf.mxu0  ;;  %1613 = vmatpush.msrb.mxu2 %v4198_v63  ;;  %v4194_v63 = vld [vmem:[%s8550_s5 + $0x428] sm:$0xff] }
 0x146   : > { %1547 = vmatpush.msra.mxu0 %v4175_v9 }
 0x147   : > { %1035 = vmatmul.f32.gmra.mxu2 %v5559_v2  ;;  %v909_v10 = vrot.slane %v5559_v2, 7  ;;  %v1093_v11 = vrot.slane %v5559_v2, 1 }
 0x148   : > { %1548 = vmatpush.msra.mxu0 %v4174_v21 }
 0x149   : > { %v5582_v27 = vsel %vm8587_vm3, %v907_v30, %v909_v10  ;;  %v5585_v28 = vsel %vm623_vm1, %v1091_v37, %v1093_v11  ;;  %v4173_v30 = vld [vmem:[%s8550_s5 + $0x380] sm:$0xff] }
 0x14a   : > { %v821_v29 = vpop.f32.mrf.mxu3  ;;  %4059 = vmatmul.msk.f32.gmra.mxu3 %vm8563_vm15, %v5582_v27  ;;  %4082 = vmatmul.msk.f32.gmra.mxu1 %vm1121_vm0, %v5585_v28 }
 0x14b   : > { %v822_v37 = vadd.f32 %v821_v29, %v5257_v25  ;;  %4106 = vmatmul.msk.f32.gmra.mxu0 %vm8562_vm13, %v5582_v27  ;;  %vm8580_vm13 = vcmp.lt.s32.totalorder %v5538_v54, 7  ;;  %v4196_v29 = vld [vmem:[%s8550_s5 + $0x438] sm:$0xff] }
 0x14c   : > { %1549 = vmatpush.msra.mxu0 %v4173_v30  ;;  %v5661_v30 = vperm.slane %v5254_v24, 2  ;;  %v4219_v24 = vld [vmem:[%s8552_s7 + $0xb8] sm:$0xff] }
 0x14d   : > { %v5614_v53 = vmax.f32 %v822_v37, 0.0  ;;  %v5616_v59 = vpop.f32.mrf.mxu0 }
 0x14f   : > { %1038 = vmatmul.f32.gmra.mxu2 %v5614_v53  ;;  %v911_v60 = vrot.slane %v5614_v53, 7  ;;  %v1095_v62 = vrot.slane %v5614_v53, 1 }
 0x151   : > { %v5627_v0 = vsel %vm8587_vm3, %v909_v10, %v911_v60  ;;  %v5630_v1 = vsel %vm623_vm1, %v1093_v11, %v1095_v62  ;;  %v4221_v10 = vld [vmem:[%s8552_s7 + $0xc8] sm:$0xff]  ;;  %v4197_v11 = vld [vmem:[%s8550_s5 + $0x440] sm:$0xff] }
 0x152   : > { %v824_v9 = vpop.f32.mrf.mxu3  ;;  %4060 = vmatmul.msk.f32.gmra.mxu3 %vm8584_vm2, %v5627_v0  ;;  %4083 = vmatmul.msk.f32.gmra.mxu1 %vm8580_vm13, %v5630_v1 }
 0x153   : > { %v825_v12 = vadd.f32 %v824_v9, %v5257_v25  ;;  %4107 = vmatmul.msk.f32.gmra.mxu0 %vm8563_vm15, %v5627_v0  ;;  %1810 = vmatpush.msrb.mxu3 %v4221_v10  ;;  %vm8577_vm15 = vcmp.lt.s32.totalorder %v5603_v38, 7 }
 0x154   : > { %1614 = vmatpush.msrb.mxu2 %v4197_v11  ;;  %v4217_v11 = vld [vmem:[%s8552_s7 + $0xa8] sm:$0xff] }
 0x155   : > { %v5651_v19 = vmax.f32 %v825_v12, 0.0  ;;  %v859_v25 = vpop.f32.mrf.mxu0  ;;  %1811 = vmatpush.msrb.mxu3 %v4220_v16  ;;  %v1762_v16 = vld [vmem:[%s8552_s7 + $0x78] sm:$0xff] }
 0x156   : > { %1615 = vmatpush.msrb.mxu2 %v4196_v29  ;;  %v860_v40 = vadd.f32 %v859_v25, %v5661_v30  ;;  %v4255_v25 = vld [vmem:[%s8552_s7 + $0x178] sm:$0xff]  ;;  %1845 = vmatpush.msrb.mxu1 %v1762_v16  ;;  %v4254_v29 = vld [vmem:[%s8552_s7 + $0x170] sm:$0xff]  ;;  %v1759_v16 = vld [vmem:[%s8552_s7 + $0x60] sm:$0xff] }
 0x157   : > { %1332 = vmatmul.f32.vlgmr.msra.gmra.mxu2 %v5277_v35  ;;  %v1097_v20 = vrot.slane %v5651_v19, 1  ;;  %v1222_v21 = vrot.slane %v5651_v19, 7  ;;  %1812 = vmatpush.msrb.mxu3 %v4219_v24 }
 0x158   : > { %1616 = vmatpush.msrb.mxu2 %v4195_v46  ;;  %1903 = vmatpush.msrb.mxu0 %v4255_v25  ;;  %v4216_v46 = vld [vmem:[%s8552_s7 + $0xa0] sm:$0xff] }
 0x159   : > { %v5666_v37 = vsel %vm623_vm1, %v1095_v62, %v1097_v20  ;;  %v5671_v35 = vsel %vm8587_vm3, %v911_v60, %v1222_v21  ;;  %1813 = vmatpush.msrb.mxu3 %v4218_v47  ;;  %v4252_v25 = vld [vmem:[%s8552_s7 + $0x160] sm:$0xff] }
 0x15a   : > { %4084 = vmatmul.msk.f32.gmra.mxu1 %vm8577_vm15, %v5666_v37  ;;  %4141 = vmatmul.msk.f32.vlgmr.msra.gmra.mxu3 %vm8574_vm5, %v5350_v8  ;;  %v5692_v8 = vmax.f32 %v860_v40, 0.0 }
 0x15b   : > { %4108 = vmatmul.msk.f32.gmra.mxu0 %vm8584_vm2, %v5671_v35  ;;  %1617 = vmatpush.msrb.mxu2 %v4194_v63  ;;  %v4192_v63 = vld [vmem:[%s8550_s5 + $0x418] sm:$0xff] }
 0x15c   : > { %v8566_v12 = vrot.slane %v5692_v8, 6  ;;  %1814 = vmatpush.msrb.mxu3 %v4217_v11  ;;  %1904 = vmatpush.msrb.mxu0 %v4254_v29 }
 0x15d   : > { %v862_v60 = vpop.f32.mrf.mxu0 }
 0x15e   : > { %v863_v62 = vadd.f32 %v862_v60, %v5661_v30  ;;  %1815 = vmatpush.msrb.mxu3 %v4216_v46  ;;  %v1760_v60 = vld [vmem:[%s8552_s7 + $0x68] sm:$0xff]  ;;  %v1758_v46 = vld [vmem:[%s8552_s7 + $0x58] sm:$0xff] }
 0x15f   : > { %1335 = vmatmul.f32.gmra.mxu2 %v5317_v58 }
 0x160   : > { %v5699_v9 = vmax.f32 %v863_v62, 0.0  ;;  %v4253_v62 = vld [vmem:[%s8552_s7 + $0x168] sm:$0xff] }
 0x161   : > { %1905 = vmatpush.msrb.mxu0 %v4253_v62 }
 0x162   : > { %4142 = vmatmul.msk.f32.gmra.mxu3 %vm8564_vm8, %v5405_v36  ;;  %4165 = vmatmul.msk.f32.vlgmr.msra.gmra.mxu1 %vm8565_vm6, %v5347_v6  ;;  %v2182_v10 = vrot.slane %v5699_v9, 6  ;;  %vm1682_vm8 = vcmask 1041408   ;;  %v4193_v6 = vld [vmem:[%s8550_s5 + $0x420] sm:$0xff]  ;;  %vm2047_vm6 = vcmask 1045504  }
 0x163   : > { %1550 = vmatmul.f32.vlgmr.msra.gmra.mxu0 %v5317_v58  ;;  %v1761_v58 = vld [vmem:[%s8552_s7 + $0x70] sm:$0xff]  ;;  %1618 = vmatpush.msrb.mxu2 %v4193_v6  ;;  %v5755_v6 = vpop.f32.mrf.mxu2 }
 0x164   : > { %v5731_v40 = vsel %vm1682_vm8, %v8566_v12, %v2182_v10  ;;  %1846 = vmatpush.msrb.mxu1 %v1761_v58  ;;  %8656 = vst [vmem:[#allocation16_spill] sm:$0xff] %v5755_v6  ;;  %v8568_v58 = vrot.slane %v5699_v9, 2  ;;  %1906 = vmatpush.msrb.mxu0 %v4252_v25  ;;  %v4214_v25 = vld [vmem:[%s8552_s7 + $0x90] sm:$0xff] }
 0x165   : > { %8654 = vst [vmem:[#allocation14_spill] sm:$0xff] %v5731_v40  ;;  %v865_v24 = vpop.f32.mrf.mxu0  ;;  %1619 = vmatpush.msrb.mxu2 %v4192_v63 }
 0x166   : > { %v866_v47 = vadd.f32 %v865_v24, %v5661_v30  ;;  %1847 = vmatpush.msrb.mxu1 %v1760_v60  ;;  %v4215_v24 = vld [vmem:[%s8552_s7 + $0x98] sm:$0xff]  ;;  %v1757_v60 = vld [vmem:[%s8552_s7 + $0x50] sm:$0xff] }
 0x167   : > { %1338 = vmatmul.f32.gmra.mxu2 %v5376_v17  ;;  %1816 = vmatpush.msrb.mxu3 %v4215_v24 }
 0x168   : > { %v5747_v11 = vmax.f32 %v866_v47, 0.0  ;;  %1848 = vmatpush.msrb.mxu1 %v1759_v16  ;;  %v4251_v47 = vld [vmem:[%s8552_s7 + $0x158] sm:$0xff]  ;;  %v4250_v16 = vld [vmem:[%s8552_s7 + $0x150] sm:$0xff] }
 0x169   : > { %1907 = vmatpush.msrb.mxu0 %v4251_v47  ;;  %1817 = vmatpush.msrb.mxu3 %v4214_v25  ;;  %v4249_v47 = vld [vmem:[%s8552_s7 + $0x148] sm:$0xff]  ;;  %v4247_v25 = vld [vmem:[%s8552_s7 + $0x138] sm:$0xff] }
 0x16a   : > { %8655 = vst [vmem:[#allocation15_spill] sm:$0xff] %v5747_v11  ;;  %4143 = vmatmul.msk.f32.gmra.mxu3 %vm8596_vm10, %v5466_v4  ;;  %4166 = vmatmul.msk.f32.gmra.mxu1 %vm8567_vm4, %v5402_v31  ;;  %v2478_v29 = vrot.slane %v5747_v11, 2  ;;  %v2555_v31 = vrot.slane %v5747_v11, 6  ;;  %vm8664_vm4 = vcmp.ge.s32.totalorder %v5487_v14, 1 }
 0x16b   : > { %1553 = vmatmul.f32.gmra.mxu0 %v5376_v17  ;;  %v4191_v17 = vld [vmem:[%s8550_s5 + $0x410] sm:$0xff]  ;;  %1849 = vmatpush.msrb.mxu1 %v1758_v46  ;;  %v4190_v46 = vld [vmem:[%s8550_s5 + $0x408] sm:$0xff] }
 0x16c   : > { %v5785_v62 = vsel %vm2047_vm6, %v8568_v58, %v2478_v29  ;;  %v5788_v63 = vsel %vm2047_vm6, %v2478_v29, 0.0  ;;  %1620 = vmatpush.msrb.mxu2 %v4191_v17  ;;  %v5797_v24 = vsel %vm1682_vm8, %v2182_v10, %v2555_v31  ;;  %v5800_v12 = vsel %vm1682_vm8, %v2555_v31, 0.0  ;;  %v1756_v29 = vld [vmem:[%s8552_s7 + $0x48] sm:$0xff]  ;;  %1908 = vmatpush.msrb.mxu0 %v4250_v16  ;;  %v1755_v10 = vld [vmem:[%s8552_s7 + $0x40] sm:$0xff]  ;;  %v5831_v16 = vpop.f32.mrf.mxu2 }
 0x16d   : > { %8657 = vst [vmem:[#allocation17_spill] sm:$0xff] %v5785_v62  ;;  %1850 = vmatpush.msrb.mxu1 %v1757_v60  ;;  %v4248_v31 = vld [vmem:[%s8552_s7 + $0x140] sm:$0xff]  ;;  %v4213_v17 = vld [vmem:[%s8552_s7 + $0x88] sm:$0xff]  ;;  %v1754_v60 = vld [vmem:[%s8552_s7 + $0x38] sm:$0xff] }
 0x16e   : > { %8658 = vst [vmem:[#allocation18_spill] sm:$0xff] %v5788_v63  ;;  %1621 = vmatpush.msrb.mxu2 %v4190_v46  ;;  %1909 = vmatpush.msrb.mxu0 %v4249_v47  ;;  %v1752_v46 = vld [vmem:[%s8552_s7 + $0x28] sm:$0xff]  ;;  %v1751_v47 = vld [vmem:[%s8552_s7 + $0x20] sm:$0xff] }
 0x16f   : > { %8659 = vst [vmem:[#allocation19_spill] sm:$0xff] %v5797_v24  ;;  %1341 = vmatmul.f32.gmra.mxu2 %v5434_v49  ;;  %1851 = vmatpush.msrb.mxu1 %v1756_v29  ;;  %v4212_v29 = vld [vmem:[%s8552_s7 + $0x80] sm:$0xff]  ;;  %v4427_v24 = vld [vmem:[%s8552_s7 + $0x578] sm:$0xff] }
 0x170   : > { %8660 = vst [vmem:[#allocation20_spill] sm:$0xff] %v5800_v12  ;;  %1818 = vmatpush.msrb.mxu3 %v4213_v17  ;;  %1910 = vmatpush.msrb.mxu0 %v4248_v31  ;;  %v4246_v31 = vld [vmem:[%s8552_s7 + $0x130] sm:$0xff]  ;;  %v4245_v17 = vld [vmem:[%s8552_s7 + $0x128] sm:$0xff] }
 0x171   : > { %1852 = vmatpush.msrb.mxu1 %v1755_v10  ;;  %8661 = vst [vmem:[#allocation21_spill] sm:$0xff] %v5831_v16  ;;  %v4271_v10 = vld [vmem:[%s8552_s7 + $0x1f8] sm:$0xff] }
 0x172   : > { %4144 = vmatmul.msk.f32.gmra.mxu3 %vm1119_vm12, %v5524_v44  ;;  %4167 = vmatmul.msk.f32.gmra.mxu1 %vm8605_vm7, %v5463_v3  ;;  %v1753_v3 = vld [vmem:[%s8552_s7 + $0x30] sm:$0xff] }
 0x173   : > { %1556 = vmatmul.f32.gmra.mxu0 %v5434_v49  ;;  %v4189_v49 = vld [vmem:[%s8550_s5 + $0x400] sm:$0xff]  ;;  %1853 = vmatpush.msrb.mxu1 %v1754_v60  ;;  %v4294_v60 = vld [vmem:[%s8552_s7 + $0x278] sm:$0xff] }
 0x174   : > { %1622 = vmatpush.msrb.mxu2 %v4189_v49  ;;  %1819 = vmatpush.msrb.mxu3 %v4212_v29  ;;  %v1750_v49 = vld [vmem:[%s8552_s7 + $0x18] sm:$0xff]  ;;  %v5886_v29 = vpop.f32.mrf.mxu2 }
 0x175   : > { %1854 = vmatpush.msrb.mxu1 %v1753_v3  ;;  %1911 = vmatpush.msrb.mxu0 %v4247_v25  ;;  %v4244_v3 = vld [vmem:[%s8552_s7 + $0x120] sm:$0xff]  ;;  %v4293_v25 = vld [vmem:[%s8552_s7 + $0x270] sm:$0xff]  ;;  %8662 = vst [vmem:[#allocation22_spill] sm:$0xff] %v5886_v29 }
 0x176   : > { %1998 = vmatpush.msra.mxu2 %v4271_v10  ;;  %2133 = vmatpush.msra.mxu3 %v4294_v60  ;;  %v4243_v10 = vld [vmem:[%s8552_s7 + $0x118] sm:$0xff]  ;;  %v4292_v60 = vld [vmem:[%s8552_s7 + $0x268] sm:$0xff] }
 0x177   : > { %1344 = vmatmul.f32.gmra.mxu2 %v5498_v23  ;;  %1855 = vmatpush.msrb.mxu1 %v1752_v46  ;;  %v1748_v46 = vld [vmem:[%s8552_s7 + $0x8] sm:$0xff] }
 0x178   : > { %1912 = vmatpush.msrb.mxu0 %v4246_v31  ;;  %2134 = vmatpush.msra.mxu3 %v4293_v25  ;;  %v4269_v31 = vld [vmem:[%s8552_s7 + $0x1e8] sm:$0xff]  ;;  %v4290_v25 = vld [vmem:[%s8552_s7 + $0x258] sm:$0xff] }
 0x179   : > { %1856 = vmatpush.msrb.mxu1 %v1751_v47  ;;  %v1747_v47 = vld [vmem:[%s8552_s7] sm:$0xff] }
 0x17a   : > { %4145 = vmatmul.msk.f32.gmra.mxu3 %vm1120_vm14, %v5585_v28  ;;  %4168 = vmatmul.msk.f32.gmra.mxu1 %vm8610_vm9, %v5521_v43  ;;  %v4270_v43 = vld [vmem:[%s8552_s7 + $0x1f0] sm:$0xff] }
 0x17b   : > { %1559 = vmatmul.f32.gmra.mxu0 %v5498_v23  ;;  %v1749_v23 = vld [vmem:[%s8552_s7 + $0x10] sm:$0xff]  ;;  %1857 = vmatpush.msrb.mxu1 %v1750_v49  ;;  %v4268_v49 = vld [vmem:[%s8552_s7 + $0x1e0] sm:$0xff] }
 0x17c   : > { %1999 = vmatpush.msra.mxu2 %v4270_v43  ;;  %1913 = vmatpush.msrb.mxu0 %v4245_v17  ;;  %v4242_v17 = vld [vmem:[%s8552_s7 + $0x110] sm:$0xff]  ;;  %v5924_v43 = vpop.f32.mrf.mxu2 }
 0x17d   : > { %1858 = vmatpush.msrb.mxu1 %v1749_v23  ;;  %2135 = vmatpush.msra.mxu3 %v4292_v60  ;;  %8663 = vst [vmem:[#allocation23_spill] sm:$0xff] %v5924_v43  ;;  %v4240_v23 = vld [vmem:[%s8552_s7 + $0x100] sm:$0xff]  ;;  %v1442_v60 = vsel %vm8587_vm3, %v1222_v21, 0.0  ;;  %v845_v21 = vadd.f32 %v5378_v18, %v5661_v30  ;;  %v4261_v18 = vld [vmem:[%s8552_s7 + $0x1a8] sm:$0xff] }
 0x17e   : > { %1914 = vmatpush.msrb.mxu0 %v4244_v3  ;;  %2000 = vmatpush.msra.mxu2 %v4269_v31  ;;  %v4267_v3 = vld [vmem:[%s8552_s7 + $0x1d8] sm:$0xff]  ;;  %v4264_v31 = vld [vmem:[%s8552_s7 + $0x1c0] sm:$0xff] }
 0x17f   : > { %1347 = vmatmul.f32.gmra.mxu2 %v5559_v2  ;;  %1859 = vmatpush.msrb.mxu1 %v1748_v46  ;;  %v4266_v46 = vld [vmem:[%s8552_s7 + $0x1d0] sm:$0xff] }
 0x180   : > { %1915 = vmatpush.msrb.mxu0 %v4243_v10  ;;  %2001 = vmatpush.msra.mxu2 %v4268_v49  ;;  %v5954_v10 = vsel %vm623_vm1, %v1097_v20, 0.0  ;;  %v4288_v20 = vld [vmem:[%s8552_s7 + $0x248] sm:$0xff]  ;;  %v4263_v49 = vld [vmem:[%s8552_s7 + $0x1b8] sm:$0xff] }
 0x181   : > { %1860 = vmatpush.msrb.mxu1 %v1747_v47  ;;  %v4265_v47 = vld [vmem:[%s8552_s7 + $0x1c8] sm:$0xff] }
 0x182   : > { %4146 = vmatmul.msk.f32.gmra.mxu3 %vm1121_vm0, %v5630_v1  ;;  %4169 = vmatmul.msk.f32.gmra.mxu1 %vm8578_vm11, %v5582_v27  ;;  %v4241_v27 = vld [vmem:[%s8552_s7 + $0x108] sm:$0xff] }
 0x183   : > { %1562 = vmatmul.f32.gmra.mxu0 %v5559_v2  ;;  %v4291_v2 = vld [vmem:[%s8552_s7 + $0x260] sm:$0xff]  ;;  %2002 = vmatpush.msra.mxu2 %v4267_v3 }
 0x184   : > { %1916 = vmatpush.msrb.mxu0 %v4242_v17  ;;  %2136 = vmatpush.msra.mxu3 %v4291_v2  ;;  %v4285_v2 = vld [vmem:[%s8552_s7 + $0x230] sm:$0xff] }
 0x185   : > { %2003 = vmatpush.msra.mxu2 %v4266_v46 }
 0x186   : > { %1917 = vmatpush.msrb.mxu0 %v4241_v27  ;;  %2137 = vmatpush.msra.mxu3 %v4290_v25  ;;  %v5998_v27 = vpop.f32.mrf.mxu3  ;;  %v6010_v25 = vmax.f32 %v845_v21, 0.0 }
 0x187   : > { %1350 = vmatmul.f32.gmra.mxu2 %v5614_v53 }
 0x188   : > { %1918 = vmatpush.msrb.mxu0 %v4240_v23  ;;  %2004 = vmatpush.msra.mxu2 %v4265_v47  ;;  %v4340_v47 = vld [vmem:[%s8552_s7 + $0x378] sm:$0xff]  ;;  %v1683_v58 = vrot.slane %v6010_v25, 6  ;;  %v2048_v12 = vrot.slane %v6010_v25, 2 }
 0x18a   : > { %4147 = vmatmul.msk.f32.gmra.mxu3 %vm8580_vm13, %v5666_v37  ;;  %4170 = vmatmul.msk.f32.gmra.mxu1 %vm8664_vm4, %v5627_v0  ;;  %v4289_v0 = vld [vmem:[%s8552_s7 + $0x250] sm:$0xff]  ;;  %vm8666_vm4 = vcmp.ge.s32.totalorder %v5538_v54, 1 }
 0x18b   : > { %1565 = vmatmul.f32.gmra.mxu0 %v5614_v53  ;;  %2138 = vmatpush.msra.mxu3 %v4289_v0  ;;  %v5949_v53 = vpop.f32.mrf.mxu2  ;;  %v4317_v0 = vld [vmem:[%s8552_s7 + $0x2f8] sm:$0xff] }
 0x18c   : > { %8665 = vst [vmem:[#allocation24_spill] sm:$0xff] %v5949_v53  ;;  %2005 = vmatpush.msra.mxu2 %v4264_v31  ;;  %2209 = vmatpush.msra.mxu1 %v4317_v0  ;;  %v848_v31 = vadd.f32 %v5436_v52, %v5661_v30  ;;  %v4283_v52 = vld [vmem:[%s8552_s7 + $0x220] sm:$0xff] }
 0x18d   : > { %2139 = vmatpush.msra.mxu3 %v4288_v20  ;;  %v4260_v20 = vld [vmem:[%s8552_s7 + $0x1a0] sm:$0xff]  ;;  %2285 = vmatpush.msra.mxu0 %v4340_v47 }
 0x18e   : > { %2006 = vmatpush.msra.mxu2 %v4263_v49  ;;  %v4316_v49 = vld [vmem:[%s8552_s7 + $0x2f0] sm:$0xff]  ;;  %v4337_v47 = vld [vmem:[%s8552_s7 + $0x360] sm:$0xff] }
 0x18f   : > { %1353 = vmatmul.f32.gmra.mxu2 %v5651_v19  ;;  %2210 = vmatpush.msra.mxu1 %v4316_v49  ;;  %v4313_v49 = vld [vmem:[%s8552_s7 + $0x2d8] sm:$0xff] }
 0x192   : > { %4148 = vmatmul.msk.f32.gmra.mxu3 %vm8577_vm15, %v5954_v10  ;;  %4171 = vmatmul.msk.f32.gmra.mxu1 %vm8666_vm4, %v5671_v35  ;;  %v4287_v35 = vld [vmem:[%s8552_s7 + $0x240] sm:$0xff]  ;;  %vm8667_vm4 = vcmp.lt.s32.totalorder %v5270_v32, 7  ;;  %vm1705_vm15 = vcmp.ge.s32.totalorder %v5419_v41, 2 }
 0x193   : > { %1568 = vmatmul.f32.gmra.mxu0 %v5651_v19  ;;  %2140 = vmatpush.msra.mxu3 %v4287_v35  ;;  %v5978_v17 = vpop.f32.mrf.mxu2  ;;  %v4262_v19 = vld [vmem:[%s8552_s7 + $0x1b0] sm:$0xff] }
 0x194   : > { %2007 = vmatpush.msra.mxu2 %v4262_v19 }
 0x196   : > { %2008 = vmatpush.msra.mxu2 %v4261_v18 }
 0x197   : > { %4205 = vmatmul.msk.f32.vlgmr.msrb.gmra.mxu2 %vm8574_vm5, %v5405_v36  ;;  %v4286_v36 = vld [vmem:[%s8552_s7 + $0x238] sm:$0xff]  ;;  %vm1704_vm5 = vcmp.ge.s32.totalorder %v5368_v13, 2 }
 0x198   : > { %2141 = vmatpush.msra.mxu3 %v4286_v36  ;;  %2009 = vmatpush.msra.mxu2 %v4260_v20  ;;  %v4339_v36 = vld [vmem:[%s8552_s7 + $0x370] sm:$0xff] }
 0x199   : > { %2286 = vmatpush.msra.mxu0 %v4339_v36  ;;  %v4336_v36 = vld [vmem:[%s8552_s7 + $0x358] sm:$0xff] }
 0x19a   : > { %4172 = vmatmul.msk.f32.gmra.mxu1 %vm8584_vm2, %v1442_v60  ;;  %1820 = vmatmul.f32.vlgmr.msrb.gmra.mxu3 %v8569_v57  ;;  %v1763_v60 = vrot.slane %v6010_v25, 7 }
 0x19b   : > { %1571 = vmatmul.f32.gmra.mxu0 %v8569_v57  ;;  %2142 = vmatpush.msra.mxu3 %v4285_v2  ;;  %v4315_v2 = vld [vmem:[%s8552_s7 + $0x2e8] sm:$0xff] }
 0x19c   : > { %2211 = vmatpush.msra.mxu1 %v4315_v2  ;;  %v6060_v0 = vsel %vm8587_vm3, 0.0, %v1763_v60  ;;  %v851_v2 = vadd.f32 %v5500_v26, %v5661_v30  ;;  %v4281_v26 = vld [vmem:[%s8552_s7 + $0x210] sm:$0xff] }
 0x19d   : > { %8669 = vst [vmem:[#allocation26_spill] sm:$0xff] %v6060_v0 }
 0x19f   : > { %v6003_v23 = vpop.f32.mrf.mxu1  ;;  %4206 = vmatmul.msk.f32.gmra.mxu2 %vm8667_vm4, %v5466_v4  ;;  %v4284_v4 = vld [vmem:[%s8552_s7 + $0x228] sm:$0xff]  ;;  %vm1703_vm4 = vcmp.ge.s32.totalorder %v5304_v50, 2 }
 0x1a0   : > { %v6008_v3 = vpop.f32.mrf.mxu0  ;;  %2143 = vmatpush.msra.mxu3 %v4284_v4  ;;  %v6057_v4 = vmax.f32 %v848_v31, 0.0  ;;  %v4259_v31 = vld [vmem:[%s8552_s7 + $0x198] sm:$0xff] }
 0x1a1   : > { %2010 = vmatpush.msra.mxu2 %v4259_v31 }
 0x1a2   : > { %v1021_v46 = vpop.f32.mrf.mxu2  ;;  %1823 = vmatmul.f32.gmra.mxu3 %v8569_v57  ;;  %1861 = vmatmul.f32.vlgmr.msrb.gmra.mxu1 %v8569_v57  ;;  %8668 = vst [vmem:[#allocation25_spill] sm:$0xff] %v6057_v4  ;;  %v1764_v31 = vrot.slane %v6057_v4, 7  ;;  %v1684_v43 = vrot.slane %v6057_v4, 6  ;;  %v2049_v62 = vrot.slane %v6057_v4, 2 }
 0x1a3   : > { %1919 = vmatmul.f32.vlgmr.msrb.gmra.mxu0 %v8569_v57  ;;  %2144 = vmatpush.msra.mxu3 %v4283_v52  ;;  %v4258_v52 = vld [vmem:[%s8552_s7 + $0x190] sm:$0xff] }
 0x1a4   : > { %2011 = vmatpush.msra.mxu2 %v4258_v52  ;;  %v6120_v52 = vsel %vm1682_vm8, 0.0, %v1683_v58 }
 0x1a5   : > { %v1062_v35 = vpop.f32.mrf.mxu3  ;;  %8671 = vst [vmem:[#allocation28_spill] sm:$0xff] %v6120_v52 }
 0x1a6   : > { %v6039_v19 = vadd.f32 %v1062_v35, %v1021_v46  ;;  %v4338_v46 = vld [vmem:[%s8552_s7 + $0x368] sm:$0xff]  ;;  %v4282_v35 = vld [vmem:[%s8552_s7 + $0x218] sm:$0xff] }
 0x1a7   : > { %v6044_v21 = vpop.f32.mrf.mxu1  ;;  %4207 = vmatmul.msk.f32.gmra.mxu2 %vm8596_vm10, %v5524_v44  ;;  %2287 = vmatpush.msra.mxu0 %v4338_v46  ;;  %v4314_v44 = vld [vmem:[%s8552_s7 + $0x2e0] sm:$0xff] }
 0x1a8   : > { %v6055_v18 = vpop.f32.mrf.mxu0  ;;  %2212 = vmatpush.msra.mxu1 %v4314_v44  ;;  %2145 = vmatpush.msra.mxu3 %v4282_v35  ;;  %v4335_v44 = vld [vmem:[%s8552_s7 + $0x350] sm:$0xff] }
 0x1a9   : > { %2288 = vmatpush.msra.mxu0 %v4337_v47 }
 0x1aa   : > { %v1024_v20 = vpop.f32.mrf.mxu2  ;;  %4228 = vmatmul.msk.f32.gmra.mxu3 %vm8605_vm7, %v6060_v0  ;;  %1864 = vmatmul.f32.gmra.mxu1 %v8569_v57 }
 0x1ab   : > { %1922 = vmatmul.f32.gmra.mxu0 %v8569_v57  ;;  %v4312_v57 = vld [vmem:[%s8552_s7 + $0x2d0] sm:$0xff]  ;;  %2213 = vmatpush.msra.mxu1 %v4313_v49  ;;  %v6114_v49 = vmax.f32 %v851_v2, 0.0  ;;  %v4333_v2 = vld [vmem:[%s8552_s7 + $0x340] sm:$0xff] }
 0x1ac   : > { %2289 = vmatpush.msra.mxu0 %v4336_v36  ;;  %2146 = vmatpush.msra.mxu3 %v4281_v26  ;;  %v6117_v36 = vsel %vm8587_vm3, %v1763_v60, %v1764_v31  ;;  %v4310_v60 = vld [vmem:[%s8552_s7 + $0x2c0] sm:$0xff]  ;;  %v4309_v26 = vld [vmem:[%s8552_s7 + $0x2b8] sm:$0xff] }
 0x1ad   : > { %v1065_v46 = vpop.f32.mrf.mxu3  ;;  %2214 = vmatpush.msra.mxu1 %v4312_v57  ;;  %8670 = vst [vmem:[#allocation27_spill] sm:$0xff] %v6117_v36  ;;  %v4257_v57 = vld [vmem:[%s8552_s7 + $0x188] sm:$0xff]  ;;  %v1766_v61 = vrot.slane %v6114_v49, 7  ;;  %v1686_v16 = vrot.slane %v6114_v49, 6 }
 0x1ae   : > { %v6098_v47 = vadd.f32 %v1065_v46, %v1024_v20  ;;  %2290 = vmatpush.msra.mxu0 %v4335_v44  ;;  %v4311_v20 = vld [vmem:[%s8552_s7 + $0x2c8] sm:$0xff]  ;;  %2012 = vmatpush.msra.mxu2 %v4257_v57 }
 0x1af   : > { %v6103_v15 = vpop.f32.mrf.mxu1  ;;  %4208 = vmatmul.msk.f32.gmra.mxu2 %vm1119_vm12, %v5585_v28  ;;  %v4334_v28 = vld [vmem:[%s8552_s7 + $0x348] sm:$0xff]  ;;  %2215 = vmatpush.msra.mxu1 %v4311_v20  ;;  %v854_v20 = vadd.f32 %v5561_v5, %v5661_v30  ;;  %v4279_v5 = vld [vmem:[%s8552_s7 + $0x200] sm:$0xff] }
 0x1b0   : > { %v6109_v35 = vpop.f32.mrf.mxu0  ;;  %v4280_v44 = vld [vmem:[%s8552_s7 + $0x208] sm:$0xff]  ;;  %2291 = vmatpush.msra.mxu0 %v4334_v28  ;;  %v4332_v28 = vld [vmem:[%s8552_s7 + $0x338] sm:$0xff]  ;;  %2013 = vmatpush.msra.mxu2 %v4256_v7 }
 0x1b1   : > { %2216 = vmatpush.msra.mxu1 %v4310_v60  ;;  %2147 = vmatpush.msra.mxu3 %v4280_v44  ;;  %v4307_v7 = vld [vmem:[%s8552_s7 + $0x2a8] sm:$0xff]  ;;  %v6179_v60 = vsel %vm8587_vm3, %v1764_v31, %v1766_v61  ;;  %v4363_v31 = vld [vmem:[%s8552_s7 + $0x3f8] sm:$0xff] }
 0x1b2   : > { %v1027_v46 = vpop.f32.mrf.mxu2  ;;  %4229 = vmatmul.msk.f32.gmra.mxu3 %vm8610_vm9, %v6117_v36  ;;  %4234 = vmatmul.msk.f32.gmra.mxu1 %vm1703_vm4, %v6120_v52  ;;  %8672 = vst [vmem:[#allocation29_spill] sm:$0xff] %v6179_v60 }
 0x1b3   : > { %1925 = vmatmul.f32.gmra.mxu0 %v6010_v25  ;;  %2217 = vmatpush.msra.mxu1 %v4309_v26  ;;  %v4379_v26 = vld [vmem:[%s8552_s7 + $0x478] sm:$0xff] }
 0x1b4   : > { %2292 = vmatpush.msra.mxu0 %v4333_v2  ;;  %2148 = vmatpush.msra.mxu3 %v4279_v5  ;;  %v6182_v2 = vsel %vm1682_vm8, %v1683_v58, %v1684_v43  ;;  %v4330_v58 = vld [vmem:[%s8552_s7 + $0x328] sm:$0xff]  ;;  %v857_v5 = vadd.f32 %v5616_v59, %v5661_v30  ;;  %v4378_v59 = vld [vmem:[%s8552_s7 + $0x470] sm:$0xff] }
 0x1b5   : > { %v1068_v53 = vpop.f32.mrf.mxu3  ;;  %8673 = vst [vmem:[#allocation30_spill] sm:$0xff] %v6182_v2  ;;  %2218 = vmatpush.msra.mxu1 %v4308_v56  ;;  %v4306_v56 = vld [vmem:[%s8552_s7 + $0x2a0] sm:$0xff]  ;;  %2351 = vmatpush.msrb.mxu2 %v4363_v31 }
 0x1b6   : > { %v6157_v57 = vadd.f32 %v1068_v53, %v1027_v46  ;;  %2293 = vmatpush.msra.mxu0 %v4332_v28  ;;  %v6176_v46 = vmax.f32 %v854_v20, 0.0  ;;  %v4305_v20 = vld [vmem:[%s8552_s7 + $0x298] sm:$0xff]  ;;  %v4362_v28 = vld [vmem:[%s8552_s7 + $0x3f0] sm:$0xff]  ;;  %2429 = vmatpush.msrb.mxu3 %v4379_v26 }
 0x1b7   : > { %v6165_v29 = vpop.f32.mrf.mxu1  ;;  %4209 = vmatmul.msk.f32.gmra.mxu2 %vm1120_vm14, %v5630_v1  ;;  %v4331_v1 = vld [vmem:[%s8552_s7 + $0x330] sm:$0xff]  ;;  %2219 = vmatpush.msra.mxu1 %v4307_v7 }
 0x1b8   : > { %v6171_v53 = vpop.f32.mrf.mxu0  ;;  %2294 = vmatpush.msra.mxu0 %v4331_v1  ;;  %v1768_v51 = vrot.slane %v6176_v46, 7  ;;  %v4329_v1 = vld [vmem:[%s8552_s7 + $0x320] sm:$0xff]  ;;  %2352 = vmatpush.msrb.mxu2 %v4362_v28  ;;  %v6244_v28 = vsel %vm1682_vm8, %v1684_v43, %v1686_v16  ;;  %v1688_v6 = vrot.slane %v6176_v46, 6 }
 0x1b9   : > { %2220 = vmatpush.msra.mxu1 %v4306_v56  ;;  %2430 = vmatpush.msrb.mxu3 %v4378_v59  ;;  %v4303_v56 = vld [vmem:[%s8552_s7 + $0x288] sm:$0xff]  ;;  %8674 = vst [vmem:[#allocation31_spill] sm:$0xff] %v6244_v28  ;;  %v4302_v43 = vld [vmem:[%s8552_s7 + $0x280] sm:$0xff] }
 0x1ba   : > { %v1030_v44 = vpop.f32.mrf.mxu2  ;;  %4230 = vmatmul.msk.f32.gmra.mxu3 %vm8578_vm11, %v6179_v60  ;;  %4235 = vmatmul.msk.f32.gmra.mxu1 %vm1704_vm5, %v6182_v2  ;;  %v6241_v26 = vsel %vm8587_vm3, %v1766_v61, %v1768_v51  ;;  %vm8675_vm11 = vcmp.ge.s32.totalorder %v5487_v14, 1  ;;  %v4361_v61 = vld [vmem:[%s8552_s7 + $0x3e8] sm:$0xff] }
 0x1bb   : > { %1928 = vmatmul.f32.gmra.mxu0 %v6057_v4  ;;  %2221 = vmatpush.msra.mxu1 %v4305_v20 }
 0x1bc   : > { %2295 = vmatpush.msra.mxu0 %v4330_v58  ;;  %v6238_v58 = vmax.f32 %v857_v5, 0.0  ;;  %v4377_v5 = vld [vmem:[%s8552_s7 + $0x468] sm:$0xff]  ;;  %2353 = vmatpush.msrb.mxu2 %v4361_v61 }
 0x1bd   : > { %v1071_v7 = vpop.f32.mrf.mxu3  ;;  %2222 = vmatpush.msra.mxu1 %v4304_v48  ;;  %v4327_v48 = vld [vmem:[%s8552_s7 + $0x310] sm:$0xff]  ;;  %2431 = vmatpush.msrb.mxu3 %v4377_v5 }
 0x1be   : > { %v6219_v31 = vadd.f32 %v1071_v7, %v1030_v44  ;;  %2296 = vmatpush.msra.mxu0 %v4329_v1  ;;  %v4360_v7 = vld [vmem:[%s8552_s7 + $0x3e0] sm:$0xff]  ;;  %v1770_v59 = vrot.slane %v6238_v58, 7 }
 0x1bf   : > { %v6227_v30 = vpop.f32.mrf.mxu1  ;;  %4210 = vmatmul.msk.f32.gmra.mxu2 %vm1121_vm0, %v5666_v37  ;;  %v4328_v37 = vld [vmem:[%s8552_s7 + $0x318] sm:$0xff]  ;;  %2223 = vmatpush.msra.mxu1 %v4303_v56 }
 0x1c0   : > { %v6233_v44 = vpop.f32.mrf.mxu0  ;;  %2297 = vmatpush.msra.mxu0 %v4328_v37  ;;  %2354 = vmatpush.msrb.mxu2 %v4360_v7  ;;  %v4376_v37 = vld [vmem:[%s8552_s7 + $0x460] sm:$0xff]  ;;  %v8582_v7 = vrot.slane %v5692_v8, 7 }
 0x1c1   : > { %2224 = vmatpush.msra.mxu1 %v4302_v43  ;;  %2432 = vmatpush.msrb.mxu3 %v4376_v37  ;;  %v6293_v43 = vsel %vm1682_vm8, %v1686_v16, %v1688_v6  ;;  %v4358_v16 = vld [vmem:[%s8552_s7 + $0x3d0] sm:$0xff] }
 0x1c2   : > { %v1033_v20 = vpop.f32.mrf.mxu2  ;;  %4231 = vmatmul.msk.f32.gmra.mxu3 %vm8675_vm11, %v6241_v26  ;;  %4236 = vmatmul.msk.f32.gmra.mxu1 %vm1705_vm15, %v6244_v28  ;;  %vm1706_vm11 = vcmp.ge.s32.totalorder %v5487_v14, 2  ;;  %8676 = vst [vmem:[#allocation32_spill] sm:$0xff] %v6293_v43 }
 0x1c3   : > { %1931 = vmatmul.f32.gmra.mxu0 %v6114_v49 }
 0x1c4   : > { %2298 = vmatpush.msra.mxu0 %v4327_v48  ;;  %v4325_v48 = vld [vmem:[%s8552_s7 + $0x300] sm:$0xff] }
 0x1c5   : > { %v1074_v1 = vpop.f32.mrf.mxu3 }
 0x1c6   : > { %v6276_v56 = vadd.f32 %v1074_v1, %v1033_v20  ;;  %2299 = vmatpush.msra.mxu0 %v4326_v45  ;;  %v6290_v20 = vsel %vm8587_vm3, %v1768_v51, %v1770_v59  ;;  %v4359_v45 = vld [vmem:[%s8552_s7 + $0x3d8] sm:$0xff]  ;;  %v1690_v1 = vrot.slane %v6238_v58, 6 }
 0x1c7   : > { %v6281_v61 = vpop.f32.mrf.mxu1  ;;  %4211 = vmatmul.msk.f32.gmra.mxu2 %vm8580_vm13, %v5954_v10  ;;  %vm8677_vm13 = vcmp.ge.s32.totalorder %v5538_v54, 1  ;;  %v4375_v51 = vld [vmem:[%s8552_s7 + $0x458] sm:$0xff] }
 0x1c8   : > { %v6287_v55 = vpop.f32.mrf.mxu0  ;;  %2355 = vmatpush.msrb.mxu2 %v4359_v45  ;;  %2300 = vmatpush.msra.mxu0 %v4325_v48  ;;  %v4374_v45 = vld [vmem:[%s8552_s7 + $0x450] sm:$0xff] }
 0x1c9   : > { %2433 = vmatpush.msrb.mxu3 %v4375_v51  ;;  %v6330_v51 = vsel %vm8587_vm3, %v1770_v59, %v8582_v7  ;;  %v1060_v59 = vadd.f32 %v5998_v27, %v5978_v17  ;;  %v4372_v17 = vld [vmem:[%s8552_s7 + $0x440] sm:$0xff]  ;;  %vm8593_vm3 = vcmp.lt.s32.totalorder %v5270_v32, 6 }
 0x1ca   : > { %v1036_v5 = vpop.f32.mrf.mxu2  ;;  %4232 = vmatmul.msk.f32.gmra.mxu3 %vm8677_vm13, %v6290_v20  ;;  %4237 = vmatmul.msk.f32.gmra.mxu1 %vm1706_vm11, %v6293_v43  ;;  %vm1707_vm13 = vcmp.ge.s32.totalorder %v5538_v54, 2 }
 0x1cb   : > { %1934 = vmatmul.f32.gmra.mxu0 %v6176_v46  ;;  %2356 = vmatpush.msrb.mxu2 %v4358_v16  ;;  %v1214_v7 = vadd.f32 %v6003_v23, %v1060_v59  ;;  %v8680_v23 = vrot.slane %v5692_v8, 6  ;;  %v1953_v59 = vrot.slane %v6010_v25, 1 }
 0x1cc   : > { %2434 = vmatpush.msrb.mxu3 %v4374_v45  ;;  %v4356_v45 = vld [vmem:[%s8552_s7 + $0x3c0] sm:$0xff]  ;;  %2583 = vmatpush.msrb.mxu0 %v4427_v24 }
 0x1cd   : > { %v1077_v10 = vpop.f32.mrf.mxu3 }
 0x1ce   : > { %v6316_v37 = vadd.f32 %v1077_v10, %v1036_v5  ;;  %v6333_v5 = vsel %vm1682_vm8, %v1688_v6, %v1690_v1  ;;  %v4357_v10 = vld [vmem:[%s8552_s7 + $0x3c8] sm:$0xff] }
 0x1cf   : > { %v6321_v42 = vpop.f32.mrf.mxu1  ;;  %1644 = vmatmul.f32.gmra.mxu2 %v8678_v34  ;;  %8679 = vst [vmem:[#allocation33_spill] sm:$0xff] %v6333_v5  ;;  %v4373_v6 = vld [vmem:[%s8552_s7 + $0x448] sm:$0xff] }
 0x1d0   : > { %v6325_v48 = vpop.f32.mrf.mxu0  ;;  %2357 = vmatpush.msrb.mxu2 %v4357_v10  ;;  %2435 = vmatpush.msrb.mxu3 %v4373_v6  ;;  %v1291_v6 = vadd.f32 %v6008_v3, %v1214_v7  ;;  %v4371_v3 = vld [vmem:[%s8552_s7 + $0x438] sm:$0xff]  ;;  %v4354_v7 = vld [vmem:[%s8552_s7 + $0x3b0] sm:$0xff] }
 0x1d2   : > { %v1039_v16 = vpop.f32.mrf.mxu2  ;;  %4233 = vmatmul.msk.f32.gmra.mxu3 %vm8584_vm2, %v6330_v51  ;;  %4238 = vmatmul.msk.f32.gmra.mxu1 %vm1707_vm13, %v6333_v5  ;;  %vm8616_vm2 = vcmp.ge.s32.totalorder %v5603_v38, 2 }
 0x1d3   : > { %1937 = vmatmul.f32.gmra.mxu0 %v6238_v58  ;;  %2358 = vmatpush.msrb.mxu2 %v4356_v45  ;;  %v4355_v45 = vld [vmem:[%s8552_s7 + $0x3b8] sm:$0xff] }
 0x1d4   : > { %2436 = vmatpush.msrb.mxu3 %v4372_v17 }
 0x1d5   : > { %v1080_v39 = vpop.f32.mrf.mxu3  ;;  %2359 = vmatpush.msrb.mxu2 %v4355_v45  ;;  %v4370_v45 = vld [vmem:[%s8552_s7 + $0x430] sm:$0xff] }
 0x1d6   : > { %v6354_v22 = vadd.f32 %v1080_v39, %v1039_v16  ;;  %v6369_v39 = vsel %vm1682_vm8, %v1690_v1, %v8680_v23  ;;  %2437 = vmatpush.msrb.mxu3 %v4371_v3  ;;  %v1215_v1 = vadd.f32 %v6044_v21, %v6039_v19  ;;  %vm8682_vm8 = vcmp.lt.s32.totalorder %v5270_v32, 7 }
 0x1d7   : > { %v6359_v27 = vpop.f32.mrf.mxu1  ;;  %2014 = vmatmul.f32.vlgmr.msra.gmra.mxu2 %v8678_v34  ;;  %8681 = vst [vmem:[#allocation34_spill] sm:$0xff] %v6369_v39 }
 0x1d8   : > { %v6363_v10 = vpop.f32.mrf.mxu0  ;;  %2360 = vmatpush.msrb.mxu2 %v4354_v7  ;;  %2438 = vmatpush.msrb.mxu3 %v4370_v45  ;;  %v1292_v21 = vadd.f32 %v6055_v18, %v1215_v1  ;;  %v1954_v7 = vrot.slane %v6057_v4, 1  ;;  %v4369_v18 = vld [vmem:[%s8552_s7 + $0x428] sm:$0xff]  ;;  %v4403_v1 = vld [vmem:[%s8552_s7 + $0x4f8] sm:$0xff] }
 0x1d9   : > { %2506 = vmatpush.msrb.mxu1 %v4403_v1  ;;  %v4426_v1 = vld [vmem:[%s8552_s7 + $0x570] sm:$0xff] }
 0x1da   : > { %v1333_v16 = vpop.f32.mrf.mxu2  ;;  %4239 = vmatmul.msk.f32.gmra.mxu1 %vm8616_vm2, %v6369_v39  ;;  %2149 = vmatmul.f32.vlgmr.msra.gmra.mxu3 %v8678_v34 }
 0x1db   : > { %v1357_v17 = vadd.f32 %v1333_v16, %v1291_v6  ;;  %1940 = vmatmul.f32.gmra.mxu0 %v5692_v8  ;;  %v6392_v16 = vsel %vm623_vm1, 0.0, %v1953_v59  ;;  %2439 = vmatpush.msrb.mxu3 %v4369_v18  ;;  %v4402_v18 = vld [vmem:[%s8552_s7 + $0x4f0] sm:$0xff] }
 0x1dc   : > { %2507 = vmatpush.msrb.mxu1 %v4402_v18  ;;  %2584 = vmatpush.msrb.mxu0 %v4426_v1  ;;  %v4424_v1 = vld [vmem:[%s8552_s7 + $0x560] sm:$0xff] }
 0x1dd   : > { %v1409_v23 = vpop.f32.mrf.mxu3 }
 0x1de   : > { %v6389_v6 = vadd.f32 %v1409_v23, %v1357_v17  ;;  %v6407_v17 = vsel %vm2047_vm6, 0.0, %v2048_v12  ;;  %v4353_v23 = vld [vmem:[%s8552_s7 + $0x3a8] sm:$0xff] }
 0x1df   : > { %v6397_v63 = vpop.f32.mrf.mxu1  ;;  %4272 = vmatmul.msk.f32.gmra.mxu2 %vm8682_vm8, %v6392_v16  ;;  %8683 = vst [vmem:[#allocation35_spill] sm:$0xff] %v6407_v17  ;;  %vm2079_vm8 = vcmp.lt.s32.totalorder %v5304_v50, 6 }
 0x1e0   : > { %v6403_v19 = vpop.f32.mrf.mxu0  ;;  %2361 = vmatpush.msrb.mxu2 %v4353_v23 }
 0x1e2   : > { %v1336_v3 = vpop.f32.mrf.mxu2  ;;  %4295 = vmatmul.msk.f32.gmra.mxu3 %vm8593_vm3, %v6407_v17  ;;  %2225 = vmatmul.f32.vlgmr.msra.gmra.mxu1 %v8678_v34  ;;  %v6436_v17 = vsel %vm623_vm1, %v1953_v59, %v1954_v7  ;;  %vm1702_vm3 = vcmp.ge.s32.totalorder %v5270_v32, 2 }
 0x1e3   : > { %v1358_v45 = vadd.f32 %v1336_v3, %v1292_v21  ;;  %2301 = vmatmul.f32.vlgmr.msra.gmra.mxu0 %v8678_v34  ;;  %v4352_v21 = vld [vmem:[%s8552_s7 + $0x3a0] sm:$0xff]  ;;  %v1216_v3 = vadd.f32 %v6103_v15, %v6098_v47 }
 0x1e4   : > { %2362 = vmatpush.msrb.mxu2 %v4352_v21  ;;  %v4368_v15 = vld [vmem:[%s8552_s7 + $0x420] sm:$0xff]  ;;  %v4401_v21 = vld [vmem:[%s8552_s7 + $0x4e8] sm:$0xff] }
 0x1e5   : > { %v1412_v23 = vpop.f32.mrf.mxu3  ;;  %2440 = vmatpush.msrb.mxu3 %v4368_v15  ;;  %v1293_v59 = vadd.f32 %v6109_v35, %v1216_v3  ;;  %v4351_v35 = vld [vmem:[%s8552_s7 + $0x398] sm:$0xff]  ;;  %v4400_v3 = vld [vmem:[%s8552_s7 + $0x4e0] sm:$0xff]  ;;  %2508 = vmatpush.msrb.mxu1 %v4401_v21 }
 0x1e6   : > { %v6433_v11 = vadd.f32 %v1412_v23, %v1358_v45  ;;  %v6458_v45 = vsel %vm2047_vm6, %v2048_v12, %v2049_v62  ;;  %v4425_v23 = vld [vmem:[%s8552_s7 + $0x568] sm:$0xff]  ;;  %v1956_v12 = vrot.slane %v6114_v49, 1  ;;  %v4367_v15 = vld [vmem:[%s8552_s7 + $0x418] sm:$0xff]  ;;  %2363 = vmatpush.msrb.mxu2 %v4351_v35 }
 0x1e7   : > { %v6447_v47 = vpop.f32.mrf.mxu1  ;;  %4273 = vmatmul.msk.f32.gmra.mxu2 %vm8596_vm10, %v6436_v17  ;;  %8684 = vst [vmem:[#allocation36_spill] sm:$0xff] %v6458_v45  ;;  %vm8685_vm10 = vcmp.ge.s32.totalorder %v5270_v32, 1  ;;  %2585 = vmatpush.msrb.mxu0 %v4425_v23  ;;  %v4423_v23 = vld [vmem:[%s8552_s7 + $0x558] sm:$0xff] }
 0x1e8   : > { %v6454_v24 = vpop.f32.mrf.mxu0  ;;  %2509 = vmatpush.msrb.mxu1 %v4400_v3  ;;  %2441 = vmatpush.msrb.mxu3 %v4367_v15  ;;  %v4422_v15 = vld [vmem:[%s8552_s7 + $0x550] sm:$0xff] }
 0x1e9   : > { %2586 = vmatpush.msrb.mxu0 %v4424_v1 }
 0x1ea   : > { %v1339_v4 = vpop.f32.mrf.mxu2  ;;  %4296 = vmatmul.msk.f32.gmra.mxu3 %vm2079_vm8, %v6458_v45  ;;  %4318 = vmatmul.msk.f32.gmra.mxu1 %vm1702_vm3, %v6120_v52  ;;  %v4399_v45 = vld [vmem:[%s8552_s7 + $0x4d8] sm:$0xff]  ;;  %v6503_v52 = vsel %vm623_vm1, %v1954_v7, %v1956_v12 }
 0x1eb   : > { %v1359_v18 = vadd.f32 %v1339_v4, %v1293_v59  ;;  %4341 = vmatmul.msk.f32.gmra.mxu0 %vm8685_vm10, %v6060_v0  ;;  %v4350_v4 = vld [vmem:[%s8552_s7 + $0x390] sm:$0xff]  ;;  %v1217_v59 = vadd.f32 %v6165_v29, %v6157_v57  ;;  %v2051_v0 = vrot.slane %v6114_v49, 2  ;;  %vm8636_vm10 = vcmp.lt.s32.totalorder %v5368_v13, 6  ;;  %2510 = vmatpush.msrb.mxu1 %v4399_v45  ;;  %v4396_v45 = vld [vmem:[%s8552_s7 + $0x4c0] sm:$0xff] }
 0x1ec   : > { %2364 = vmatpush.msrb.mxu2 %v4350_v4  ;;  %v4398_v29 = vld [vmem:[%s8552_s7 + $0x4d0] sm:$0xff]  ;;  %2587 = vmatpush.msrb.mxu0 %v4423_v23  ;;  %v4397_v4 = vld [vmem:[%s8552_s7 + $0x4c8] sm:$0xff] }
 0x1ed   : > { %v1415_v21 = vpop.f32.mrf.mxu3  ;;  %v4366_v57 = vld [vmem:[%s8552_s7 + $0x410] sm:$0xff]  ;;  %v6521_v1 = vsel %vm2047_vm6, %v2049_v62, %v2051_v0  ;;  %2511 = vmatpush.msrb.mxu1 %v4398_v29  ;;  %v1958_v62 = vrot.slane %v6176_v46, 1  ;;  %v4421_v23 = vld [vmem:[%s8552_s7 + $0x548] sm:$0xff] }
 0x1ee   : > { %v6500_v35 = vadd.f32 %v1415_v21, %v1359_v18  ;;  %2442 = vmatpush.msrb.mxu3 %v4366_v57  ;;  %v1294_v18 = vadd.f32 %v6171_v53, %v1217_v59  ;;  %8686 = vst [vmem:[#allocation37_spill] sm:$0xff] %v6521_v1  ;;  %v4349_v53 = vld [vmem:[%s8552_s7 + $0x388] sm:$0xff]  ;;  %2588 = vmatpush.msrb.mxu0 %v4422_v15  ;;  %v4395_v57 = vld [vmem:[%s8552_s7 + $0x4b8] sm:$0xff]  ;;  %v4420_v15 = vld [vmem:[%s8552_s7 + $0x540] sm:$0xff] }
 0x1ef   : > { %v6511_v3 = vpop.f32.mrf.mxu1  ;;  %4274 = vmatmul.msk.f32.gmra.mxu2 %vm1119_vm12, %v6503_v52  ;;  %2512 = vmatpush.msrb.mxu1 %v4397_v4  ;;  %v4365_v29 = vld [vmem:[%s8552_s7 + $0x408] sm:$0xff]  ;;  %v1218_v4 = vadd.f32 %v6227_v30, %v6219_v31  ;;  %v4394_v31 = vld [vmem:[%s8552_s7 + $0x4b0] sm:$0xff]  ;;  %v4364_v30 = vld [vmem:[%s8552_s7 + $0x400] sm:$0xff] }
 0x1f0   : > { %v6517_v7 = vpop.f32.mrf.mxu0  ;;  %2365 = vmatpush.msrb.mxu2 %v4349_v53  ;;  %2443 = vmatpush.msrb.mxu3 %v4365_v29  ;;  %v4419_v29 = vld [vmem:[%s8552_s7 + $0x538] sm:$0xff] }
 0x1f1   : > { %2513 = vmatpush.msrb.mxu1 %v4396_v45  ;;  %2589 = vmatpush.msrb.mxu0 %v4421_v23 }
 0x1f2   : > { %v1342_v21 = vpop.f32.mrf.mxu2  ;;  %4297 = vmatmul.msk.f32.gmra.mxu3 %vm8636_vm10, %v6521_v1  ;;  %4319 = vmatmul.msk.f32.gmra.mxu1 %vm1703_vm4, %v6182_v2  ;;  %v6566_v1 = vsel %vm623_vm1, %v1956_v12, %v1958_v62 }
 0x1f3   : > { %v1360_v59 = vadd.f32 %v1342_v21, %v1294_v18  ;;  %4342 = vmatmul.msk.f32.gmra.mxu0 %vm8605_vm7, %v6117_v36  ;;  %v4348_v18 = vld [vmem:[%s8552_s7 + $0x380] sm:$0xff]  ;;  %v2053_v36 = vrot.slane %v6176_v46, 2  ;;  %8687 = vst [vmem:[#allocation38_spill] sm:$0xff] %v6566_v1  ;;  %vm8611_vm7 = vcmp.lt.s32.totalorder %v5419_v41, 6  ;;  %2514 = vmatpush.msrb.mxu1 %v4395_v57 }
 0x1f4   : > { %2366 = vmatpush.msrb.mxu2 %v4348_v18  ;;  %2590 = vmatpush.msrb.mxu0 %v4420_v15  ;;  %v4393_v18 = vld [vmem:[%s8552_s7 + $0x4a8] sm:$0xff]  ;;  %v4392_v57 = vld [vmem:[%s8552_s7 + $0x4a0] sm:$0xff]  ;;  %v4418_v15 = vld [vmem:[%s8552_s7 + $0x530] sm:$0xff] }
 0x1f5   : > { %v1418_v21 = vpop.f32.mrf.mxu3  ;;  %2444 = vmatpush.msrb.mxu3 %v4364_v30  ;;  %v6584_v23 = vsel %vm2047_vm6, %v2051_v0, %v2053_v36  ;;  %2515 = vmatpush.msrb.mxu1 %v4394_v31  ;;  %v1960_v0 = vrot.slane %v6238_v58, 1  ;;  %v1219_v31 = vadd.f32 %v6281_v61, %v6276_v56  ;;  %v4475_v56 = vld [vmem:[%s8552_s7 + $0x678] sm:$0xff]  ;;  %v4450_v61 = vld [vmem:[%s8552_s7 + $0x5f0] sm:$0xff] }
 0x1f6   : > { %v6563_v53 = vadd.f32 %v1418_v21, %v1360_v59  ;;  %v1295_v59 = vadd.f32 %v6233_v44, %v1218_v4  ;;  %8688 = vst [vmem:[#allocation39_spill] sm:$0xff] %v6584_v23  ;;  %v4451_v44 = vld [vmem:[%s8552_s7 + $0x5f8] sm:$0xff]  ;;  %2591 = vmatpush.msrb.mxu0 %v4419_v29 }
 0x1f7   : > { %v6574_v45 = vpop.f32.mrf.mxu1  ;;  %4275 = vmatmul.msk.f32.gmra.mxu2 %vm1120_vm14, %v6566_v1  ;;  %2516 = vmatpush.msrb.mxu1 %v4393_v18  ;;  %v6623_v29 = vsel %vm623_vm1, %v1958_v62, %v1960_v0  ;;  %v4390_v62 = vld [vmem:[%s8552_s7 + $0x490] sm:$0xff] }
 0x1f8   : > { %v6580_v12 = vpop.f32.mrf.mxu0  ;;  %2660 = vmatpush.msra.mxu2 %v4451_v44  ;;  %8689 = vst [vmem:[#allocation40_spill] sm:$0xff] %v6623_v29  ;;  %2592 = vmatpush.msrb.mxu0 %v4418_v15 }
 0x1f9   : > { %2517 = vmatpush.msrb.mxu1 %v4392_v57  ;;  %2726 = vmatpush.msra.mxu3 %v4475_v56  ;;  %v4474_v57 = vld [vmem:[%s8552_s7 + $0x670] sm:$0xff]  ;;  %v4415_v56 = vld [vmem:[%s8552_s7 + $0x518] sm:$0xff] }
 0x1fa   : > { %v1345_v21 = vpop.f32.mrf.mxu2  ;;  %4298 = vmatmul.msk.f32.gmra.mxu3 %vm8611_vm7, %v6584_v23  ;;  %4320 = vmatmul.msk.f32.gmra.mxu1 %vm1704_vm5, %v6244_v28  ;;  %v2055_v23 = vrot.slane %v6238_v58, 2  ;;  %vm8691_vm7 = vcmp.ge.s32.totalorder %v5419_v41, 1 }
 0x1fb   : > { %v1361_v4 = vadd.f32 %v1345_v21, %v1295_v59  ;;  %4343 = vmatmul.msk.f32.gmra.mxu0 %vm8610_vm9, %v6179_v60  ;;  %v4417_v59 = vld [vmem:[%s8552_s7 + $0x528] sm:$0xff]  ;;  %v4391_v21 = vld [vmem:[%s8552_s7 + $0x498] sm:$0xff]  ;;  %vm8614_vm9 = vcmp.lt.s32.totalorder %v5487_v14, 6  ;;  %2661 = vmatpush.msra.mxu2 %v4450_v61  ;;  %v4388_v61 = vld [vmem:[%s8552_s7 + $0x480] sm:$0xff] }
 0x1fc   : > { %2518 = vmatpush.msrb.mxu1 %v4391_v21  ;;  %2593 = vmatpush.msrb.mxu0 %v4417_v59  ;;  %v6647_v15 = vsel %vm2047_vm6, %v2053_v36, %v2055_v23  ;;  %v4389_v59 = vld [vmem:[%s8552_s7 + $0x488] sm:$0xff] }
 0x1fd   : > { %v1421_v30 = vpop.f32.mrf.mxu3  ;;  %8690 = vst [vmem:[#allocation41_spill] sm:$0xff] %v6647_v15  ;;  %v4449_v36 = vld [vmem:[%s8552_s7 + $0x5e8] sm:$0xff]  ;;  %2727 = vmatpush.msra.mxu3 %v4474_v57 }
 0x1fe   : > { %v6620_v60 = vadd.f32 %v1421_v30, %v1361_v4  ;;  %v1296_v4 = vadd.f32 %v6287_v55, %v1219_v31  ;;  %v4416_v30 = vld [vmem:[%s8552_s7 + $0x520] sm:$0xff]  ;;  %2519 = vmatpush.msrb.mxu1 %v4390_v62  ;;  %v1962_v55 = vrot.slane %v5692_v8, 1  ;;  %v1220_v62 = vadd.f32 %v6321_v42, %v6316_v37  ;;  %2662 = vmatpush.msra.mxu2 %v4449_v36  ;;  %v4473_v57 = vld [vmem:[%s8552_s7 + $0x668] sm:$0xff] }
 0x1ff   : > { %v6625_v18 = vpop.f32.mrf.mxu1  ;;  %4276 = vmatmul.msk.f32.gmra.mxu2 %vm1121_vm0, %v6623_v29  ;;  %2594 = vmatpush.msrb.mxu0 %v4416_v30  ;;  %v4448_v30 = vld [vmem:[%s8552_s7 + $0x5e0] sm:$0xff] }
 0x200   : > { %v6640_v44 = vpop.f32.mrf.mxu0  ;;  %2520 = vmatpush.msrb.mxu1 %v4389_v59  ;;  %v6689_v42 = vsel %vm623_vm1, %v1960_v0, %v1962_v55  ;;  %v4472_v37 = vld [vmem:[%s8552_s7 + $0x660] sm:$0xff]  ;;  %2728 = vmatpush.msra.mxu3 %v4473_v57  ;;  %v1297_v0 = vadd.f32 %v6325_v48, %v1220_v62  ;;  %v4447_v48 = vld [vmem:[%s8552_s7 + $0x5d8] sm:$0xff]  ;;  %v1221_v57 = vadd.f32 %v6359_v27, %v6354_v22 }
 0x201   : > { %8692 = vst [vmem:[#allocation42_spill] sm:$0xff] %v6689_v42  ;;  %2595 = vmatpush.msrb.mxu0 %v4415_v56  ;;  %2663 = vmatpush.msra.mxu2 %v4448_v30  ;;  %v4413_v56 = vld [vmem:[%s8552_s7 + $0x508] sm:$0xff]  ;;  %v4412_v62 = vld [vmem:[%s8552_s7 + $0x500] sm:$0xff] }
 0x202   : > { %v1348_v21 = vpop.f32.mrf.mxu2  ;;  %4299 = vmatmul.msk.f32.gmra.mxu3 %vm8614_vm9, %v6647_v15  ;;  %4321 = vmatmul.msk.f32.gmra.mxu1 %vm1705_vm15, %v6293_v43  ;;  %vm8615_vm9 = vcmp.lt.s32.totalorder %v5538_v54, 6 }
 0x203   : > { %v1362_v31 = vadd.f32 %v1348_v21, %v1296_v4  ;;  %4344 = vmatmul.msk.f32.gmra.mxu0 %vm8691_vm7, %v6241_v26  ;;  %v2057_v4 = vrot.slane %v5692_v8, 2  ;;  %v4414_v21 = vld [vmem:[%s8552_s7 + $0x510] sm:$0xff]  ;;  %2521 = vmatpush.msrb.mxu1 %v4388_v61  ;;  %vm8693_vm7 = vcmp.lt.s32.totalorder %v5538_v54, 7 }
 0x204   : > { %2596 = vmatpush.msrb.mxu0 %v4414_v21  ;;  %2729 = vmatpush.msra.mxu3 %v4472_v37  ;;  %v4471_v37 = vld [vmem:[%s8552_s7 + $0x658] sm:$0xff] }
 0x205   : > { %v1424_v15 = vpop.f32.mrf.mxu3  ;;  %2664 = vmatpush.msra.mxu2 %v4447_v48 }
 0x206   : > { %v6686_v59 = vadd.f32 %v1424_v15, %v1362_v31  ;;  %v6704_v31 = vsel %vm2047_vm6, %v2055_v23, %v2057_v4  ;;  %2597 = vmatpush.msrb.mxu0 %v4413_v56  ;;  %v8695_v56 = vrot.slane %v5699_v9, 1  ;;  %2730 = vmatpush.msra.mxu3 %v4471_v37  ;;  %v4445_v37 = vld [vmem:[%s8552_s7 + $0x5c8] sm:$0xff] }
 0x207   : > { %v6694_v36 = vpop.f32.mrf.mxu1  ;;  %4277 = vmatmul.msk.f32.gmra.mxu2 %vm8693_vm7, %v6689_v42  ;;  %vm8694_vm7 = vcmp.ge.s32.totalorder %v5487_v14, 1 }
 0x208   : > { %v6700_v15 = vpop.f32.mrf.mxu0  ;;  %v6741_v48 = vsel %vm623_vm1, %v1962_v55, %v8695_v56  ;;  %2598 = vmatpush.msrb.mxu0 %v4412_v62  ;;  %v4468_v56 = vld [vmem:[%s8552_s7 + $0x640] sm:$0xff] }
 0x209   : > { %8696 = vst [vmem:[#allocation43_spill] sm:$0xff] %v6741_v48 }
 0x20a   : > { %v1351_v61 = vpop.f32.mrf.mxu2  ;;  %4300 = vmatmul.msk.f32.gmra.mxu3 %vm8615_vm9, %v6704_v31  ;;  %4322 = vmatmul.msk.f32.gmra.mxu1 %vm1706_vm11, %v6333_v5  ;;  %vm2084_vm9 = vcmp.lt.s32.totalorder %v5603_v38, 6 }
 0x20b   : > { %v1363_v23 = vadd.f32 %v1351_v61, %v1297_v0  ;;  %4345 = vmatmul.msk.f32.gmra.mxu0 %vm8694_vm7, %v6290_v20  ;;  %v4446_v0 = vld [vmem:[%s8552_s7 + $0x5d0] sm:$0xff]  ;;  %vm8697_vm7 = vcmp.lt.s32.totalorder %v5603_v38, 7 }
 0x20c   : > { %v4470_v61 = vld [vmem:[%s8552_s7 + $0x650] sm:$0xff]  ;;  %2665 = vmatpush.msra.mxu2 %v4446_v0 }
 0x20d   : > { %v1427_v30 = vpop.f32.mrf.mxu3  ;;  %2731 = vmatpush.msra.mxu3 %v4470_v61  ;;  %v4444_v61 = vld [vmem:[%s8552_s7 + $0x5c0] sm:$0xff] }
 0x20e   : > { %v6736_v21 = vadd.f32 %v1427_v30, %v1363_v23  ;;  %v1298_v23 = vadd.f32 %v6363_v10, %v1221_v57  ;;  %v8698_v30 = vrot.slane %v5699_v9, 2  ;;  %2666 = vmatpush.msra.mxu2 %v4445_v37  ;;  %v1509_v10 = vadd.f32 %v6397_v63, %v6389_v6  ;;  %v4469_v57 = vld [vmem:[%s8552_s7 + $0x648] sm:$0xff] }
 0x20f   : > { %v6743_v22 = vpop.f32.mrf.mxu1  ;;  %4278 = vmatmul.msk.f32.gmra.mxu2 %vm8697_vm7, %v6741_v48  ;;  %vm8699_vm7 = vcmp.ge.s32.totalorder %v5538_v54, 1  ;;  %2732 = vmatpush.msra.mxu3 %v4469_v57  ;;  %v1510_v57 = vadd.f32 %v6447_v47, %v6433_v11 }
 0x210   : > { %v6749_v27 = vpop.f32.mrf.mxu0  ;;  %v6755_v55 = vsel %vm2047_vm6, %v2057_v4, %v8698_v30  ;;  %v8617_v30 = vrot.slane %v5699_v9, 7  ;;  %2667 = vmatpush.msra.mxu2 %v4444_v61  ;;  %vm8701_vm6 = vcmask 1040384  }
 0x211   : > { %2733 = vmatpush.msra.mxu3 %v4468_v56  ;;  %v4442_v56 = vld [vmem:[%s8552_s7 + $0x5b0] sm:$0xff]  ;;  %v1576_v47 = vadd.f32 %v6454_v24, %v1510_v57  ;;  %v1511_v24 = vadd.f32 %v6511_v3, %v6500_v35  ;;  %v4440_v35 = vld [vmem:[%s8552_s7 + $0x5a0] sm:$0xff] }
 0x212   : > { %v1354_v62 = vpop.f32.mrf.mxu2  ;;  %4301 = vmatmul.msk.f32.gmra.mxu3 %vm2084_vm9, %v6755_v55  ;;  %4323 = vmatmul.msk.f32.gmra.mxu1 %vm1707_vm13, %v6369_v39  ;;  %v4490_v3 = vld [vmem:[%s8552_s7 + $0x6f0] sm:$0xff] }
 0x213   : > { %v1364_v0 = vadd.f32 %v1354_v62, %v1298_v23  ;;  %4346 = vmatmul.msk.f32.gmra.mxu0 %vm8699_vm7, %v6330_v51  ;;  %v1575_v62 = vadd.f32 %v6403_v19, %v1509_v10  ;;  %vm8703_vm7 = vcmp.lt.s32.totalorder %v5273_v33, 7  ;;  %v4443_v19 = vld [vmem:[%s8552_s7 + $0x5b8] sm:$0xff] }
 0x214   : > { %2668 = vmatpush.msra.mxu2 %v4443_v19  ;;  %v8707_v19 = vld [vmem:[#allocation35_spill] sm:$0xff] }
 0x215   : > { %v1430_v4 = vpop.f32.mrf.mxu3 }
 0x216   : > { %v6780_v23 = vadd.f32 %v1430_v4, %v1364_v0  ;;  %v8700_v0 = vrot.slane %v5692_v8, 7  ;;  %2669 = vmatpush.msra.mxu2 %v4442_v56 }
 0x217   : > { %v6783_v63 = vpop.f32.mrf.mxu1  ;;  %2367 = vmatmul.f32.vlgmr.msrb.gmra.mxu2 %v8678_v34 }
 0x218   : > { %v6786_v6 = vpop.f32.mrf.mxu0  ;;  %v6797_v4 = vsel %vm8701_vm6, %v8700_v0, %v8617_v30  ;;  %vm8621_vm6 = vcmp.ge.s32.totalorder %v5273_v33, 2  ;;  %v8709_v30 = vld [vmem:[#allocation28_spill] sm:$0xff] }
 0x219   : > { %8702 = vst [vmem:[#allocation44_spill] sm:$0xff] %v6797_v4 }
 0x21a   : > { %v1624_v37 = vpop.f32.mrf.mxu2  ;;  %4324 = vmatmul.msk.f32.gmra.mxu1 %vm8616_vm2, %v5731_v40  ;;  %4380 = vmatmul.msk.f32.vlgmr.msrb.gmra.mxu3 %vm8703_vm7, %v6392_v16  ;;  %vm8705_vm2 = vcmp.ge.s32.totalorder %v5603_v38, 1  ;;  %v4467_v16 = vld [vmem:[%s8552_s7 + $0x638] sm:$0xff]  ;;  %vm8706_vm7 = vcmp.lt.s32.totalorder %v5270_v32, 7 }
 0x21b   : > { %v6805_v10 = vadd.f32 %v1624_v37, %v1575_v62  ;;  %4347 = vmatmul.msk.f32.gmra.mxu0 %vm8705_vm2, %v6797_v4  ;;  %v4466_v62 = vld [vmem:[%s8552_s7 + $0x630] sm:$0xff]  ;;  %2734 = vmatpush.msra.mxu3 %v4467_v16  ;;  %vm2077_vm2 = vcmp.lt.s32.totalorder %v5273_v33, 6  ;;  %v4441_v16 = vld [vmem:[%s8552_s7 + $0x5a8] sm:$0xff] }
 0x21c   : > { %2670 = vmatpush.msra.mxu2 %v4441_v16  ;;  %v8710_v16 = vld [vmem:[#allocation25_spill] sm:$0xff]  ;;  %v8712_v4 = vld [vmem:[#allocation36_spill] sm:$0xff] }
 0x21d   : > { %8704 = vst [vmem:[#allocation45_spill] sm:$0xff] %v6805_v10  ;;  %v6812_v61 = vpop.f32.mrf.mxu3  ;;  %2735 = vmatpush.msra.mxu3 %v4466_v62  ;;  %v4465_v62 = vld [vmem:[%s8552_s7 + $0x628] sm:$0xff] }
 0x21e   : > { %2671 = vmatpush.msra.mxu2 %v4440_v35  ;;  %v4489_v10 = vld [vmem:[%s8552_s7 + $0x6e8] sm:$0xff] }
 0x21f   : > { %v6823_v37 = vpop.f32.mrf.mxu1  ;;  %2370 = vmatmul.f32.gmra.mxu2 %v6010_v25  ;;  %2736 = vmatpush.msra.mxu3 %v4465_v62  ;;  %v4464_v62 = vld [vmem:[%s8552_s7 + $0x620] sm:$0xff] }
 0x220   : > { %v6827_v11 = vpop.f32.mrf.mxu0 }
 0x221   : > { %2737 = vmatpush.msra.mxu3 %v4464_v62 }
 0x222   : > { %v1627_v0 = vpop.f32.mrf.mxu2  ;;  %4381 = vmatmul.msk.f32.gmra.mxu3 %vm8706_vm7, %v6436_v17  ;;  %4404 = vmatmul.msk.f32.vlgmr.msrb.gmra.mxu1 %vm2077_vm2, %v8707_v19  ;;  %v4491_v19 = vld [vmem:[%s8552_s7 + $0x6f8] sm:$0xff]  ;;  %vm8711_vm7 = vcmp.lt.s32.totalorder %v5304_v50, 7 }
 0x223   : > { %v6840_v56 = vadd.f32 %v1627_v0, %v1576_v47  ;;  %4428 = vmatmul.msk.f32.vlgmr.msrb.gmra.mxu0 %vm8621_vm6, %v8709_v30  ;;  %v4515_v47 = vld [vmem:[%s8552_s7 + $0x778] sm:$0xff]  ;;  %2802 = vmatpush.msra.mxu1 %v4491_v19  ;;  %v4514_v30 = vld [vmem:[%s8552_s7 + $0x770] sm:$0xff]  ;;  %vm8713_vm6 = vcmp.lt.s32.totalorder %v5270_v32, 6 }
 0x224   : > { %2878 = vmatpush.msra.mxu0 %v4515_v47  ;;  %v4513_v47 = vld [vmem:[%s8552_s7 + $0x768] sm:$0xff] }
 0x225   : > { %8708 = vst [vmem:[#allocation35_spill] sm:$0xff] %v6840_v56  ;;  %v6847_v57 = vpop.f32.mrf.mxu3  ;;  %2803 = vmatpush.msra.mxu1 %v4490_v3  ;;  %v1577_v56 = vadd.f32 %v6517_v7, %v1511_v24  ;;  %v4439_v7 = vld [vmem:[%s8552_s7 + $0x598] sm:$0xff]  ;;  %v4488_v24 = vld [vmem:[%s8552_s7 + $0x6e0] sm:$0xff] }
 0x226   : > { %2879 = vmatpush.msra.mxu0 %v4514_v30  ;;  %v4512_v3 = vld [vmem:[%s8552_s7 + $0x760] sm:$0xff]  ;;  %2672 = vmatpush.msra.mxu2 %v4439_v7  ;;  %v1512_v30 = vadd.f32 %v6574_v45, %v6563_v53  ;;  %v4438_v53 = vld [vmem:[%s8552_s7 + $0x590] sm:$0xff] }
 0x227   : > { %v6867_v0 = vpop.f32.mrf.mxu1  ;;  %2373 = vmatmul.f32.gmra.mxu2 %v8710_v16  ;;  %2804 = vmatpush.msra.mxu1 %v4489_v10  ;;  %v4487_v10 = vld [vmem:[%s8552_s7 + $0x6d8] sm:$0xff]  ;;  %v4486_v45 = vld [vmem:[%s8552_s7 + $0x6d0] sm:$0xff] }
 0x228   : > { %v6873_v19 = vpop.f32.mrf.mxu0  ;;  %2880 = vmatpush.msra.mxu0 %v4513_v47  ;;  %v4462_v7 = vld [vmem:[%s8552_s7 + $0x610] sm:$0xff]  ;;  %2673 = vmatpush.msra.mxu2 %v4438_v53  ;;  %v4509_v53 = vld [vmem:[%s8552_s7 + $0x748] sm:$0xff] }
 0x229   : > { %2805 = vmatpush.msra.mxu1 %v4488_v24 }
 0x22a   : > { %v1630_v34 = vpop.f32.mrf.mxu2  ;;  %4382 = vmatmul.msk.f32.gmra.mxu3 %vm8711_vm7, %v6503_v52  ;;  %4405 = vmatmul.msk.f32.gmra.mxu1 %vm8713_vm6, %v8712_v4  ;;  %vm8720_vm6 = vcmp.lt.s32.totalorder %v5419_v41, 6  ;;  %vm8722_vm7 = vcmp.lt.s32.totalorder %v5538_v54, 7 }
 0x22b   : > { %v6894_v35 = vadd.f32 %v1630_v34, %v1577_v56  ;;  %4429 = vmatmul.msk.f32.gmra.mxu0 %vm1702_vm3, %v6182_v2  ;;  %v4463_v34 = vld [vmem:[%s8552_s7 + $0x618] sm:$0xff]  ;;  %2806 = vmatpush.msra.mxu1 %v4487_v10  ;;  %v4485_v10 = vld [vmem:[%s8552_s7 + $0x6c8] sm:$0xff] }
 0x22c   : > { %v4511_v56 = vld [vmem:[%s8552_s7 + $0x758] sm:$0xff]  ;;  %2881 = vmatpush.msra.mxu0 %v4512_v3  ;;  %2738 = vmatpush.msra.mxu3 %v4463_v34  ;;  %v1578_v3 = vadd.f32 %v6580_v12, %v1512_v30  ;;  %v4510_v34 = vld [vmem:[%s8552_s7 + $0x750] sm:$0xff]  ;;  %v4437_v12 = vld [vmem:[%s8552_s7 + $0x588] sm:$0xff] }
 0x22d   : > { %8714 = vst [vmem:[#allocation28_spill] sm:$0xff] %v6894_v35  ;;  %v6904_v62 = vpop.f32.mrf.mxu3  ;;  %2807 = vmatpush.msra.mxu1 %v4486_v45  ;;  %v8715_v2 = vld [vmem:[#allocation37_spill] sm:$0xff]  ;;  %v4484_v30 = vld [vmem:[%s8552_s7 + $0x6c0] sm:$0xff]  ;;  %2674 = vmatpush.msra.mxu2 %v4437_v12  ;;  %v1513_v45 = vadd.f32 %v6625_v18, %v6620_v60  ;;  %v4482_v18 = vld [vmem:[%s8552_s7 + $0x6b0] sm:$0xff] }
 0x22e   : > { %2882 = vmatpush.msra.mxu0 %v4511_v56  ;;  %2739 = vmatpush.msra.mxu3 %v4462_v7  ;;  %v4436_v60 = vld [vmem:[%s8552_s7 + $0x580] sm:$0xff] }
 0x22f   : > { %v6921_v47 = vpop.f32.mrf.mxu1  ;;  %2376 = vmatmul.f32.gmra.mxu2 %v6114_v49  ;;  %2808 = vmatpush.msra.mxu1 %v4485_v10  ;;  %v4483_v10 = vld [vmem:[%s8552_s7 + $0x6b8] sm:$0xff]  ;;  %v4460_v12 = vld [vmem:[%s8552_s7 + $0x600] sm:$0xff] }
 0x230   : > { %v6927_v24 = vpop.f32.mrf.mxu0  ;;  %2883 = vmatpush.msra.mxu0 %v4510_v34  ;;  %2675 = vmatpush.msra.mxu2 %v4436_v60  ;;  %v4506_v60 = vld [vmem:[%s8552_s7 + $0x730] sm:$0xff] }
 0x231   : > { %2809 = vmatpush.msra.mxu1 %v4484_v30 }
 0x232   : > { %v1633_v35 = vpop.f32.mrf.mxu2  ;;  %4383 = vmatmul.msk.f32.gmra.mxu3 %vm1119_vm12, %v6566_v1  ;;  %4406 = vmatmul.msk.f32.gmra.mxu1 %vm2079_vm8, %v8715_v2 }
 0x233   : > { %v6948_v56 = vadd.f32 %v1633_v35, %v1578_v3  ;;  %4430 = vmatmul.msk.f32.gmra.mxu0 %vm1703_vm4, %v6244_v28  ;;  %v4508_v35 = vld [vmem:[%s8552_s7 + $0x740] sm:$0xff]  ;;  %v4461_v3 = vld [vmem:[%s8552_s7 + $0x608] sm:$0xff]  ;;  %2810 = vmatpush.msra.mxu1 %v4483_v10 }
 0x234   : > { %2884 = vmatpush.msra.mxu0 %v4509_v53  ;;  %2740 = vmatpush.msra.mxu3 %v4461_v3  ;;  %v1579_v53 = vadd.f32 %v6640_v44, %v1513_v45  ;;  %v4507_v3 = vld [vmem:[%s8552_s7 + $0x738] sm:$0xff]  ;;  %v4481_v10 = vld [vmem:[%s8552_s7 + $0x6a8] sm:$0xff]  ;;  %v4480_v45 = vld [vmem:[%s8552_s7 + $0x6a0] sm:$0xff] }
 0x235   : > { %8716 = vst [vmem:[#allocation25_spill] sm:$0xff] %v6948_v56  ;;  %v6958_v7 = vpop.f32.mrf.mxu3  ;;  %2811 = vmatpush.msra.mxu1 %v4482_v18  ;;  %v8717_v28 = vld [vmem:[#allocation39_spill] sm:$0xff]  ;;  %v4539_v44 = vld [vmem:[%s8552_s7 + $0x7f8] sm:$0xff] }
 0x236   : > { %2885 = vmatpush.msra.mxu0 %v4508_v35  ;;  %2741 = vmatpush.msra.mxu3 %v4460_v12  ;;  %v4563_v18 = vld [vmem:[%s8552_s7 + $0x878] sm:$0xff]  ;;  %v4538_v12 = vld [vmem:[%s8552_s7 + $0x7f0] sm:$0xff] }
 0x237   : > { %v6975_v34 = vpop.f32.mrf.mxu1  ;;  %2379 = vmatmul.f32.gmra.mxu2 %v6176_v46  ;;  %2812 = vmatpush.msra.mxu1 %v4481_v10  ;;  %v4505_v10 = vld [vmem:[%s8552_s7 + $0x728] sm:$0xff] }
 0x238   : > { %v6981_v30 = vpop.f32.mrf.mxu0  ;;  %2886 = vmatpush.msra.mxu0 %v4507_v3  ;;  %2954 = vmatpush.msrb.mxu2 %v4539_v44  ;;  %v4478_v3 = vld [vmem:[%s8552_s7 + $0x690] sm:$0xff] }
 0x239   : > { %2813 = vmatpush.msra.mxu1 %v4480_v45  ;;  %3030 = vmatpush.msrb.mxu3 %v4563_v18  ;;  %v4562_v44 = vld [vmem:[%s8552_s7 + $0x870] sm:$0xff]  ;;  %v4504_v45 = vld [vmem:[%s8552_s7 + $0x720] sm:$0xff] }
 0x23a   : > { %v1636_v56 = vpop.f32.mrf.mxu2  ;;  %4384 = vmatmul.msk.f32.gmra.mxu3 %vm1120_vm14, %v6623_v29  ;;  %4407 = vmatmul.msk.f32.gmra.mxu1 %vm8636_vm10, %v8717_v28 }
 0x23b   : > { %v7002_v35 = vadd.f32 %v1636_v56, %v1579_v53  ;;  %4431 = vmatmul.msk.f32.gmra.mxu0 %vm1704_vm5, %v6293_v43  ;;  %v4479_v56 = vld [vmem:[%s8552_s7 + $0x698] sm:$0xff]  ;;  %v1514_v53 = vadd.f32 %v6694_v36, %v6686_v59  ;;  %2955 = vmatpush.msrb.mxu2 %v4538_v12  ;;  %v4476_v12 = vld [vmem:[%s8552_s7 + $0x680] sm:$0xff] }
 0x23c   : > { %2887 = vmatpush.msra.mxu0 %v4506_v60  ;;  %2814 = vmatpush.msra.mxu1 %v4479_v56  ;;  %v4477_v60 = vld [vmem:[%s8552_s7 + $0x688] sm:$0xff]  ;;  %v8719_v56 = vld [vmem:[#allocation41_spill] sm:$0xff] }
 0x23d   : > { %8718 = vst [vmem:[#allocation36_spill] sm:$0xff] %v7002_v35  ;;  %v7021_v35 = vpop.f32.mrf.mxu3  ;;  %3031 = vmatpush.msrb.mxu3 %v4562_v44  ;;  %v1580_v36 = vadd.f32 %v6700_v15, %v1514_v53  ;;  %v4537_v15 = vld [vmem:[%s8552_s7 + $0x7e8] sm:$0xff]  ;;  %v4536_v44 = vld [vmem:[%s8552_s7 + $0x7e0] sm:$0xff] }
 0x23e   : > { %2888 = vmatpush.msra.mxu0 %v4505_v10  ;;  %2815 = vmatpush.msra.mxu1 %v4478_v3  ;;  %v4503_v10 = vld [vmem:[%s8552_s7 + $0x718] sm:$0xff]  ;;  %v4561_v3 = vld [vmem:[%s8552_s7 + $0x868] sm:$0xff] }
 0x23f   : > { %v7032_v43 = vpop.f32.mrf.mxu1  ;;  %2382 = vmatmul.f32.gmra.mxu2 %v6238_v58  ;;  %3032 = vmatpush.msrb.mxu3 %v4561_v3  ;;  %v4534_v3 = vld [vmem:[%s8552_s7 + $0x7d0] sm:$0xff] }
 0x240   : > { %v7035_v59 = vpop.f32.mrf.mxu0  ;;  %2816 = vmatpush.msra.mxu1 %v4477_v60  ;;  %2889 = vmatpush.msra.mxu0 %v4504_v45  ;;  %v4560_v60 = vld [vmem:[%s8552_s7 + $0x860] sm:$0xff]  ;;  %v4501_v45 = vld [vmem:[%s8552_s7 + $0x708] sm:$0xff] }
 0x241   : > { %2956 = vmatpush.msrb.mxu2 %v4537_v15  ;;  %3033 = vmatpush.msrb.mxu3 %v4560_v60  ;;  %v8725_v60 = vld [vmem:[#allocation15_spill] sm:$0xff] }
 0x242   : > { %v1639_v18 = vpop.f32.mrf.mxu2  ;;  %4385 = vmatmul.msk.f32.gmra.mxu3 %vm1121_vm0, %v6689_v42  ;;  %4408 = vmatmul.msk.f32.gmra.mxu1 %vm8720_vm6, %v8719_v56  ;;  %vm8723_vm6 = vcmp.lt.s32.totalorder %v5487_v14, 6 }
 0x243   : > { %v7056_v53 = vadd.f32 %v1639_v18, %v1580_v36  ;;  %4432 = vmatmul.msk.f32.gmra.mxu0 %vm1705_vm15, %v6333_v5  ;;  %v1515_v36 = vadd.f32 %v6743_v22, %v6736_v21  ;;  %2817 = vmatpush.msra.mxu1 %v4476_v12  ;;  %v4535_v12 = vld [vmem:[%s8552_s7 + $0x7d8] sm:$0xff] }
 0x244   : > { %2890 = vmatpush.msra.mxu0 %v4503_v10  ;;  %2957 = vmatpush.msrb.mxu2 %v4536_v44  ;;  %v4559_v10 = vld [vmem:[%s8552_s7 + $0x858] sm:$0xff]  ;;  %v1516_v44 = vadd.f32 %v6783_v63, %v6780_v23  ;;  %v8726_v23 = vrot.slane %v5699_v9, 1 }
 0x245   : > { %8721 = vst [vmem:[#allocation39_spill] sm:$0xff] %v7056_v53  ;;  %v7072_v18 = vpop.f32.mrf.mxu3  ;;  %v4502_v53 = vld [vmem:[%s8552_s7 + $0x710] sm:$0xff]  ;;  %v1581_v22 = vadd.f32 %v6749_v27, %v1515_v36  ;;  %v4500_v27 = vld [vmem:[%s8552_s7 + $0x700] sm:$0xff]  ;;  %3034 = vmatpush.msrb.mxu3 %v4559_v10 }
 0x246   : > { %2891 = vmatpush.msra.mxu0 %v4502_v53  ;;  %2958 = vmatpush.msrb.mxu2 %v4535_v12  ;;  %v1582_v10 = vadd.f32 %v6786_v6, %v1516_v44  ;;  %v4533_v6 = vld [vmem:[%s8552_s7 + $0x7c8] sm:$0xff] }
 0x247   : > { %v7080_v5 = vpop.f32.mrf.mxu1  ;;  %2385 = vmatmul.f32.gmra.mxu2 %v5692_v8  ;;  %v4557_v44 = vld [vmem:[%s8552_s7 + $0x848] sm:$0xff] }
 0x248   : > { %v7083_v21 = vpop.f32.mrf.mxu0  ;;  %2892 = vmatpush.msra.mxu0 %v4501_v45  ;;  %2959 = vmatpush.msrb.mxu2 %v4534_v3 }
 0x24a   : > { %v1642_v15 = vpop.f32.mrf.mxu2  ;;  %4386 = vmatmul.msk.f32.gmra.mxu3 %vm8722_vm7, %v6741_v48  ;;  %4409 = vmatmul.msk.f32.gmra.mxu1 %vm8723_vm6, %v6704_v31  ;;  %vm8727_vm7 = vcmp.lt.s32.totalorder %v5603_v38, 7  ;;  %vm8728_vm6 = vcmp.lt.s32.totalorder %v5538_v54, 6 }
 0x24b   : > { %v7098_v53 = vadd.f32 %v1642_v15, %v1581_v22  ;;  %4433 = vmatmul.msk.f32.gmra.mxu0 %vm1706_vm11, %v6369_v39  ;;  %v8629_v22 = vrot.slane %v8725_v60, 1  ;;  %v4558_v15 = vld [vmem:[%s8552_s7 + $0x850] sm:$0xff]  ;;  %2960 = vmatpush.msrb.mxu2 %v4533_v6  ;;  %v8730_v6 = vld [vmem:[#allocation26_spill] sm:$0xff] }
 0x24c   : > { %2893 = vmatpush.msra.mxu0 %v4500_v27  ;;  %3035 = vmatpush.msrb.mxu3 %v4558_v15  ;;  %v4532_v15 = vld [vmem:[%s8552_s7 + $0x7c0] sm:$0xff]  ;;  %v4550_v39 = vld [vmem:[%s8552_s7 + $0x810] sm:$0xff] }
 0x24d   : > { %8724 = vst [vmem:[#allocation41_spill] sm:$0xff] %v7098_v53  ;;  %v7114_v36 = vpop.f32.mrf.mxu3  ;;  %v7131_v63 = vsel %vm623_vm1, %v8726_v23, %v8629_v22  ;;  %v1863_v23 = vadd.f32 %v6823_v37, %v6812_v61  ;;  %2961 = vmatpush.msrb.mxu2 %v4532_v15  ;;  %v8732_v61 = vld [vmem:[#allocation17_spill] sm:$0xff] }
 0x24e   : > { %3036 = vmatpush.msrb.mxu3 %v4557_v44  ;;  %v4531_v37 = vld [vmem:[%s8552_s7 + $0x7b8] sm:$0xff] }
 0x24f   : > { %v7120_v12 = vpop.f32.mrf.mxu1  ;;  %2388 = vmatmul.f32.gmra.mxu2 %v5699_v9  ;;  %v1944_v44 = vadd.f32 %v6827_v11, %v1863_v23  ;;  %v4555_v11 = vld [vmem:[%s8552_s7 + $0x838] sm:$0xff]  ;;  %v4530_v23 = vld [vmem:[%s8552_s7 + $0x7b0] sm:$0xff] }
 0x250   : > { %v7123_v45 = vpop.f32.mrf.mxu0  ;;  %2962 = vmatpush.msrb.mxu2 %v4531_v37  ;;  %v8735_v37 = vld [vmem:[#allocation27_spill] sm:$0xff] }
 0x252   : > { %v1645_v27 = vpop.f32.mrf.mxu2  ;;  %4387 = vmatmul.msk.f32.gmra.mxu3 %vm8727_vm7, %v7131_v63  ;;  %4410 = vmatmul.msk.f32.gmra.mxu1 %vm8728_vm6, %v6755_v55  ;;  %vm8731_vm7 = vcmp.ge.s32.totalorder %v5273_v33, 1  ;;  %vm8734_vm6 = vcmp.ge.s32.totalorder %v5603_v38, 2 }
 0x253   : > { %v7142_v3 = vadd.f32 %v1645_v27, %v1582_v10  ;;  %4434 = vmatmul.msk.f32.gmra.mxu0 %vm1707_vm13, %v5731_v40  ;;  %v4556_v10 = vld [vmem:[%s8552_s7 + $0x840] sm:$0xff]  ;;  %v8733_v40 = vld [vmem:[#allocation19_spill] sm:$0xff]  ;;  %2963 = vmatpush.msrb.mxu2 %v4530_v23  ;;  %v4587_v23 = vld [vmem:[%s8552_s7 + $0x8f8] sm:$0xff] }
 0x254   : > { %3037 = vmatpush.msrb.mxu3 %v4556_v10  ;;  %3096 = vmatpush.msrb.mxu1 %v4587_v23  ;;  %v4585_v23 = vld [vmem:[%s8552_s7 + $0x8e8] sm:$0xff] }
 0x255   : > { %8729 = vst [vmem:[#allocation15_spill] sm:$0xff] %v7142_v3  ;;  %v7155_v22 = vpop.f32.mrf.mxu3 }
 0x256   : > { %3038 = vmatpush.msrb.mxu3 %v4555_v11 }
 0x257   : > { %v7160_v27 = vpop.f32.mrf.mxu1  ;;  %4452 = vmatmul.msk.f32.vlgmr.msra.gmra.mxu2 %vm8731_vm7, %v8730_v6  ;;  %v4554_v6 = vld [vmem:[%s8552_s7 + $0x830] sm:$0xff]  ;;  %vm8736_vm7 = vcmp.ge.s32.totalorder %v5270_v32, 1 }
 0x258   : > { %v7165_v3 = vpop.f32.mrf.mxu0  ;;  %3039 = vmatpush.msrb.mxu3 %v4554_v6 }
 0x25a   : > { %v2015_v53 = vpop.f32.mrf.mxu2  ;;  %4411 = vmatmul.msk.f32.gmra.mxu1 %vm2084_vm9, %v8732_v61  ;;  %2742 = vmatmul.f32.vlgmr.msra.gmra.mxu3 %v6010_v25  ;;  %v1866_v25 = vadd.f32 %v6867_v0, %v6847_v57  ;;  %v4529_v0 = vld [vmem:[%s8552_s7 + $0x7a8] sm:$0xff] }
 0x25b   : > { %v2039_v15 = vadd.f32 %v2015_v53, %v1944_v44  ;;  %4435 = vmatmul.msk.f32.gmra.mxu0 %vm8734_vm6, %v8733_v40  ;;  %vm8737_vm6 = vcmp.lt.s32.totalorder %v5273_v33, 7  ;;  %2964 = vmatpush.msrb.mxu2 %v4529_v0  ;;  %v4552_v0 = vld [vmem:[%s8552_s7 + $0x820] sm:$0xff] }
 0x25c   : > { %v1945_v11 = vadd.f32 %v6873_v19, %v1866_v25  ;;  %v4553_v19 = vld [vmem:[%s8552_s7 + $0x828] sm:$0xff]  ;;  %v4528_v25 = vld [vmem:[%s8552_s7 + $0x7a0] sm:$0xff] }
 0x25d   : > { %v2150_v10 = vpop.f32.mrf.mxu3  ;;  %3040 = vmatpush.msrb.mxu3 %v4553_v19  ;;  %2965 = vmatpush.msrb.mxu2 %v4528_v25 }
 0x25e   : > { %v7186_v53 = vadd.f32 %v2150_v10, %v2039_v15 }
 0x25f   : > { %v7191_v44 = vpop.f32.mrf.mxu1  ;;  %4453 = vmatmul.msk.f32.gmra.mxu2 %vm8736_vm7, %v8735_v37  ;;  %vm8739_vm7 = vcmp.ge.s32.totalorder %v5304_v50, 1  ;;  %3041 = vmatpush.msrb.mxu3 %v4552_v0  ;;  %v4583_v0 = vld [vmem:[%s8552_s7 + $0x8d8] sm:$0xff] }
 0x260   : > { %v7196_v40 = vpop.f32.mrf.mxu0 }
 0x262   : > { %v2018_v57 = vpop.f32.mrf.mxu2  ;;  %2745 = vmatmul.f32.gmra.mxu3 %v8710_v16  ;;  %4492 = vmatmul.msk.f32.vlgmr.msra.gmra.mxu1 %vm8737_vm6, %v6436_v17  ;;  %v4603_v17 = vld [vmem:[%s8552_s7 + $0x978] sm:$0xff]  ;;  %vm8740_vm6 = vcmp.lt.s32.totalorder %v5270_v32, 7 }
 0x263   : > { %v2040_v15 = vadd.f32 %v2018_v57, %v1945_v11  ;;  %4516 = vmatmul.msk.f32.vlgmr.msra.gmra.mxu0 %vm2077_vm2, %v8712_v4  ;;  %v1869_v4 = vadd.f32 %v6921_v47, %v6904_v62  ;;  %v4586_v11 = vld [vmem:[%s8552_s7 + $0x8f0] sm:$0xff]  ;;  %v8738_v62 = vld [vmem:[#allocation29_spill] sm:$0xff] }
 0x264   : > { %3169 = vmatpush.msrb.mxu0 %v4603_v17  ;;  %v4602_v57 = vld [vmem:[%s8552_s7 + $0x970] sm:$0xff]  ;;  %3097 = vmatpush.msrb.mxu1 %v4586_v11  ;;  %v4601_v17 = vld [vmem:[%s8552_s7 + $0x968] sm:$0xff]  ;;  %v4600_v11 = vld [vmem:[%s8552_s7 + $0x960] sm:$0xff] }
 0x265   : > { %v2153_v10 = vpop.f32.mrf.mxu3 }
 0x266   : > { %v7223_v6 = vadd.f32 %v2153_v10, %v2040_v15  ;;  %3170 = vmatpush.msrb.mxu0 %v4602_v57  ;;  %v1946_v15 = vadd.f32 %v6927_v24, %v1869_v4  ;;  %v4527_v10 = vld [vmem:[%s8552_s7 + $0x798] sm:$0xff]  ;;  %v4584_v24 = vld [vmem:[%s8552_s7 + $0x8e0] sm:$0xff]  ;;  %3098 = vmatpush.msrb.mxu1 %v4585_v23  ;;  %v1872_v23 = vadd.f32 %v6975_v34, %v6958_v7 }
 0x267   : > { %v7234_v19 = vpop.f32.mrf.mxu1  ;;  %4454 = vmatmul.msk.f32.gmra.mxu2 %vm8739_vm7, %v8738_v62  ;;  %vm8741_vm7 = vcmp.lt.s32.totalorder %v5270_v32, 6  ;;  %v4551_v57 = vld [vmem:[%s8552_s7 + $0x818] sm:$0xff] }
 0x268   : > { %v7239_v47 = vpop.f32.mrf.mxu0  ;;  %3171 = vmatpush.msrb.mxu0 %v4601_v17  ;;  %2966 = vmatpush.msrb.mxu2 %v4527_v10  ;;  %v4582_v10 = vld [vmem:[%s8552_s7 + $0x8d0] sm:$0xff] }
 0x269   : > { %3099 = vmatpush.msrb.mxu1 %v4584_v24  ;;  %3042 = vmatpush.msrb.mxu3 %v4551_v57  ;;  %v1947_v24 = vadd.f32 %v6981_v30, %v1872_v23  ;;  %v4579_v23 = vld [vmem:[%s8552_s7 + $0x8b8] sm:$0xff] }
 0x26a   : > { %v2021_v25 = vpop.f32.mrf.mxu2  ;;  %2748 = vmatmul.f32.gmra.mxu3 %v6114_v49  ;;  %4493 = vmatmul.msk.f32.gmra.mxu1 %vm8740_vm6, %v6503_v52  ;;  %vm8742_vm6 = vcmp.ge.s32.totalorder %v5368_v13, 1 }
 0x26b   : > { %v2041_v4 = vadd.f32 %v2021_v25, %v1946_v15  ;;  %4517 = vmatmul.msk.f32.gmra.mxu0 %vm8741_vm7, %v8715_v2  ;;  %v4526_v15 = vld [vmem:[%s8552_s7 + $0x790] sm:$0xff]  ;;  %v4599_v2 = vld [vmem:[%s8552_s7 + $0x958] sm:$0xff]  ;;  %3100 = vmatpush.msrb.mxu1 %v4583_v0  ;;  %vm8743_vm7 = vcmp.lt.s32.totalorder %v5304_v50, 7  ;;  %v4597_v0 = vld [vmem:[%s8552_s7 + $0x948] sm:$0xff] }
 0x26c   : > { %3172 = vmatpush.msrb.mxu0 %v4600_v11  ;;  %2967 = vmatpush.msrb.mxu2 %v4526_v15  ;;  %v4581_v11 = vld [vmem:[%s8552_s7 + $0x8c8] sm:$0xff] }
 0x26d   : > { %v2156_v25 = vpop.f32.mrf.mxu3  ;;  %3043 = vmatpush.msrb.mxu3 %v4550_v39  ;;  %3101 = vmatpush.msrb.mxu1 %v4582_v10  ;;  %v4580_v39 = vld [vmem:[%s8552_s7 + $0x8c0] sm:$0xff]  ;;  %v4549_v15 = vld [vmem:[%s8552_s7 + $0x808] sm:$0xff]  ;;  %v1875_v10 = vadd.f32 %v7032_v43, %v7021_v35 }
 0x26e   : > { %v7278_v17 = vadd.f32 %v2156_v25, %v2041_v4  ;;  %3173 = vmatpush.msrb.mxu0 %v4599_v2  ;;  %v4598_v4 = vld [vmem:[%s8552_s7 + $0x950] sm:$0xff]  ;;  %v4525_v2 = vld [vmem:[%s8552_s7 + $0x788] sm:$0xff]  ;;  %v4524_v25 = vld [vmem:[%s8552_s7 + $0x780] sm:$0xff] }
 0x26f   : > { %v7286_v7 = vpop.f32.mrf.mxu1  ;;  %4455 = vmatmul.msk.f32.gmra.mxu2 %vm8742_vm6, %v6241_v26  ;;  %3102 = vmatpush.msrb.mxu1 %v4581_v11  ;;  %v4596_v11 = vld [vmem:[%s8552_s7 + $0x940] sm:$0xff]  ;;  %vm8744_vm6 = vcmp.ge.s32.totalorder %v5419_v41, 1 }
 0x270   : > { %v7291_v34 = vpop.f32.mrf.mxu0  ;;  %3174 = vmatpush.msrb.mxu0 %v4598_v4  ;;  %2968 = vmatpush.msrb.mxu2 %v4525_v2  ;;  %v4548_v2 = vld [vmem:[%s8552_s7 + $0x800] sm:$0xff] }
 0x271   : > { %3103 = vmatpush.msrb.mxu1 %v4580_v39  ;;  %3044 = vmatpush.msrb.mxu3 %v4549_v15  ;;  %v1948_v39 = vadd.f32 %v7035_v59, %v1875_v10  ;;  %v4626_v59 = vld [vmem:[%s8552_s7 + $0x9f8] sm:$0xff]  ;;  %v4594_v10 = vld [vmem:[%s8552_s7 + $0x930] sm:$0xff] }
 0x272   : > { %v2024_v57 = vpop.f32.mrf.mxu2  ;;  %2751 = vmatmul.f32.gmra.mxu3 %v6176_v46  ;;  %4494 = vmatmul.msk.f32.gmra.mxu1 %vm8743_vm7, %v6566_v1  ;;  %vm8745_vm7 = vcmp.ge.s32.totalorder %v5487_v14, 1 }
 0x273   : > { %v2042_v30 = vadd.f32 %v2024_v57, %v1947_v24  ;;  %4518 = vmatmul.msk.f32.gmra.mxu0 %vm2079_vm8, %v8717_v28  ;;  %2969 = vmatpush.msrb.mxu2 %v4524_v25  ;;  %v4578_v57 = vld [vmem:[%s8552_s7 + $0x8b0] sm:$0xff] }
 0x274   : > { %3175 = vmatpush.msrb.mxu0 %v4597_v0  ;;  %3104 = vmatpush.msrb.mxu1 %v4579_v23  ;;  %v4577_v0 = vld [vmem:[%s8552_s7 + $0x8a8] sm:$0xff]  ;;  %v4576_v23 = vld [vmem:[%s8552_s7 + $0x8a0] sm:$0xff] }
 0x275   : > { %v2159_v24 = vpop.f32.mrf.mxu3  ;;  %3045 = vmatpush.msrb.mxu3 %v4548_v2  ;;  %3242 = vmatpush.msra.mxu2 %v4626_v59  ;;  %v1878_v2 = vadd.f32 %v7080_v5, %v7072_v18  ;;  %v4648_v59 = vld [vmem:[%s8552_s7 + $0xa70] sm:$0xff] }
 0x276   : > { %v7330_v4 = vadd.f32 %v2159_v24, %v2042_v30  ;;  %3176 = vmatpush.msrb.mxu0 %v4596_v11  ;;  %v4595_v30 = vld [vmem:[%s8552_s7 + $0x938] sm:$0xff]  ;;  %3105 = vmatpush.msrb.mxu1 %v4578_v57  ;;  %v4625_v57 = vld [vmem:[%s8552_s7 + $0x9f0] sm:$0xff] }
 0x277   : > { %v7338_v43 = vpop.f32.mrf.mxu1  ;;  %4456 = vmatmul.msk.f32.gmra.mxu2 %vm8744_vm6, %v6290_v20  ;;  %v4649_v24 = vld [vmem:[%s8552_s7 + $0xa78] sm:$0xff]  ;;  %vm8746_vm6 = vcmp.lt.s32.totalorder %v5419_v41, 6 }
 0x278   : > { %v7343_v35 = vpop.f32.mrf.mxu0  ;;  %3106 = vmatpush.msrb.mxu1 %v4577_v0  ;;  %3177 = vmatpush.msrb.mxu0 %v4595_v30  ;;  %v4575_v11 = vld [vmem:[%s8552_s7 + $0x898] sm:$0xff]  ;;  %v4593_v0 = vld [vmem:[%s8552_s7 + $0x928] sm:$0xff] }
 0x279   : > { %3315 = vmatpush.msra.mxu3 %v4649_v24  ;;  %3243 = vmatpush.msra.mxu2 %v4625_v57 }
 0x27a   : > { %v2027_v15 = vpop.f32.mrf.mxu2  ;;  %2754 = vmatmul.f32.gmra.mxu3 %v6238_v58  ;;  %4495 = vmatmul.msk.f32.gmra.mxu1 %vm1119_vm12, %v6623_v29 }
 0x27b   : > { %v2043_v25 = vadd.f32 %v2027_v15, %v1948_v39  ;;  %4519 = vmatmul.msk.f32.gmra.mxu0 %vm8636_vm10, %v8719_v56  ;;  %3107 = vmatpush.msrb.mxu1 %v4576_v23  ;;  %v4574_v15 = vld [vmem:[%s8552_s7 + $0x890] sm:$0xff]  ;;  %v1949_v23 = vadd.f32 %v7083_v21, %v1878_v2  ;;  %v4624_v21 = vld [vmem:[%s8552_s7 + $0x9e8] sm:$0xff]  ;;  %v4591_v2 = vld [vmem:[%s8552_s7 + $0x918] sm:$0xff]  ;;  %vm8759_vm10 = vcmp.ge.s32.totalorder %v5273_v33, 1 }
 0x27c   : > { %3178 = vmatpush.msrb.mxu0 %v4594_v10  ;;  %3316 = vmatpush.msra.mxu3 %v4648_v59  ;;  %v4573_v10 = vld [vmem:[%s8552_s7 + $0x888] sm:$0xff] }
 0x27d   : > { %v2162_v39 = vpop.f32.mrf.mxu3  ;;  %3108 = vmatpush.msrb.mxu1 %v4575_v11  ;;  %v4572_v11 = vld [vmem:[%s8552_s7 + $0x880] sm:$0xff]  ;;  %3244 = vmatpush.msra.mxu2 %v4624_v21  ;;  %v8747_v21 = vld [vmem:[#allocation44_spill] sm:$0xff] }
 0x27e   : > { %v7382_v30 = vadd.f32 %v2162_v39, %v2043_v25  ;;  %3179 = vmatpush.msrb.mxu0 %v4593_v0  ;;  %v4592_v25 = vld [vmem:[%s8552_s7 + $0x920] sm:$0xff]  ;;  %v4647_v39 = vld [vmem:[%s8552_s7 + $0xa68] sm:$0xff] }
 0x27f   : > { %v7390_v5 = vpop.f32.mrf.mxu1  ;;  %4457 = vmatmul.msk.f32.gmra.mxu2 %vm8745_vm7, %v6330_v51  ;;  %3109 = vmatpush.msrb.mxu1 %v4574_v15  ;;  %v4623_v0 = vld [vmem:[%s8552_s7 + $0x9e0] sm:$0xff]  ;;  %v1881_v15 = vadd.f32 %v7120_v12, %v7114_v36  ;;  %vm8748_vm7 = vcmp.ge.s32.totalorder %v5538_v54, 1 }
 0x280   : > { %v7395_v18 = vpop.f32.mrf.mxu0  ;;  %3180 = vmatpush.msrb.mxu0 %v4592_v25  ;;  %3317 = vmatpush.msra.mxu3 %v4647_v39  ;;  %v4622_v39 = vld [vmem:[%s8552_s7 + $0x9d8] sm:$0xff] }
 0x281   : > { %3110 = vmatpush.msrb.mxu1 %v4573_v10  ;;  %3245 = vmatpush.msra.mxu2 %v4623_v0  ;;  %v1950_v12 = vadd.f32 %v7123_v45, %v1881_v15  ;;  %v4588_v45 = vld [vmem:[%s8552_s7 + $0x900] sm:$0xff]  ;;  %v4645_v15 = vld [vmem:[%s8552_s7 + $0xa58] sm:$0xff] }
 0x282   : > { %v2030_v24 = vpop.f32.mrf.mxu2  ;;  %2757 = vmatmul.f32.gmra.mxu3 %v5692_v8  ;;  %4496 = vmatmul.msk.f32.gmra.mxu1 %vm1120_vm14, %v6689_v42 }
 0x283   : > { %v2044_v57 = vadd.f32 %v2030_v24, %v1949_v23  ;;  %4520 = vmatmul.msk.f32.gmra.mxu0 %vm8746_vm6, %v6704_v31  ;;  %v4590_v23 = vld [vmem:[%s8552_s7 + $0x910] sm:$0xff]  ;;  %3111 = vmatpush.msrb.mxu1 %v4572_v11  ;;  %v4646_v24 = vld [vmem:[%s8552_s7 + $0xa60] sm:$0xff]  ;;  %v4589_v11 = vld [vmem:[%s8552_s7 + $0x908] sm:$0xff]  ;;  %vm8749_vm6 = vcmp.lt.s32.totalorder %v5487_v14, 6 }
 0x284   : > { %3181 = vmatpush.msrb.mxu0 %v4591_v2  ;;  %3318 = vmatpush.msra.mxu3 %v4646_v24  ;;  %v8635_v2 = vrot.slane %v8725_v60, 7 }
 0x285   : > { %v2165_v59 = vpop.f32.mrf.mxu3  ;;  %3246 = vmatpush.msra.mxu2 %v4622_v39 }
 0x286   : > { %v7431_v10 = vadd.f32 %v2165_v59, %v2044_v57  ;;  %3182 = vmatpush.msrb.mxu0 %v4590_v23  ;;  %v4621_v59 = vld [vmem:[%s8552_s7 + $0x9d0] sm:$0xff]  ;;  %3319 = vmatpush.msra.mxu3 %v4645_v15  ;;  %v1884_v23 = vadd.f32 %v7160_v27, %v7155_v22 }
 0x287   : > { %v7436_v25 = vpop.f32.mrf.mxu1  ;;  %4458 = vmatmul.msk.f32.gmra.mxu2 %vm8748_vm7, %v8747_v21  ;;  %vm8751_vm7 = vcmask 1040384  }
 0x288   : > { %v7441_v36 = vpop.f32.mrf.mxu0  ;;  %3183 = vmatpush.msrb.mxu0 %v4589_v11  ;;  %3247 = vmatpush.msra.mxu2 %v4621_v59  ;;  %v4644_v11 = vld [vmem:[%s8552_s7 + $0xa50] sm:$0xff]  ;;  %v1951_v27 = vadd.f32 %v7165_v3, %v1884_v23  ;;  %v4643_v3 = vld [vmem:[%s8552_s7 + $0xa48] sm:$0xff]  ;;  %v4619_v23 = vld [vmem:[%s8552_s7 + $0x9c0] sm:$0xff] }
 0x289   : > { %3320 = vmatpush.msra.mxu3 %v4644_v11 }
 0x28a   : > { %v2033_v57 = vpop.f32.mrf.mxu2  ;;  %2760 = vmatmul.f32.gmra.mxu3 %v5699_v9  ;;  %4497 = vmatmul.msk.f32.gmra.mxu1 %vm1121_vm0, %v6741_v48 }
 0x28b   : > { %v2045_v0 = vadd.f32 %v2033_v57, %v1950_v12  ;;  %4521 = vmatmul.msk.f32.gmra.mxu0 %vm8749_vm6, %v6755_v55  ;;  %v8750_v57 = vrot.slane %v5699_v9, 7  ;;  %vm8752_vm6 = vcmp.ge.s32.totalorder %v5603_v38, 1  ;;  %3321 = vmatpush.msra.mxu3 %v4643_v3 }
 0x28c   : > { %3184 = vmatpush.msrb.mxu0 %v4588_v45  ;;  %v4620_v45 = vld [vmem:[%s8552_s7 + $0x9c8] sm:$0xff] }
 0x28d   : > { %v2168_v24 = vpop.f32.mrf.mxu3  ;;  %v7476_v39 = vsel %vm8751_vm7, %v8750_v57, %v8635_v2  ;;  %vm8753_vm7 = vcmp.lt.s32.totalorder %v5538_v54, 7  ;;  %3248 = vmatpush.msra.mxu2 %v4620_v45  ;;  %v8755_v45 = vld [vmem:[#allocation30_spill] sm:$0xff] }
 0x28e   : > { %v7469_v12 = vadd.f32 %v2168_v24, %v2045_v0  ;;  %v2250_v24 = vadd.f32 %v7191_v44, %v7186_v53  ;;  %v8757_v53 = vrot.slane %v8725_v60, 1 }
 0x28f   : > { %v7481_v15 = vpop.f32.mrf.mxu1  ;;  %4459 = vmatmul.msk.f32.gmra.mxu2 %vm8752_vm6, %v7476_v39  ;;  %vm8754_vm6 = vcmp.lt.s32.totalorder %v5538_v54, 6 }
 0x290   : > { %v7486_v22 = vpop.f32.mrf.mxu0  ;;  %3249 = vmatpush.msra.mxu2 %v4619_v23  ;;  %v2326_v3 = vadd.f32 %v7196_v40, %v2250_v24  ;;  %v7523_v44 = vsel %vm623_vm1, %v8757_v53, 0.0  ;;  %v4618_v23 = vld [vmem:[%s8552_s7 + $0x9b8] sm:$0xff]  ;;  %v8760_v40 = vld [vmem:[#allocation18_spill] sm:$0xff]  ;;  %v4640_v53 = vld [vmem:[%s8552_s7 + $0xa30] sm:$0xff]  ;;  %vm8762_vm1 = vcmp.ge.s32.totalorder %v5270_v32, 1 }
 0x291   : > { %v4641_v24 = vld [vmem:[%s8552_s7 + $0xa38] sm:$0xff] }
 0x292   : > { %v2036_v0 = vpop.f32.mrf.mxu2  ;;  %2763 = vmatmul.f32.gmra.mxu3 %v8725_v60  ;;  %4498 = vmatmul.msk.f32.gmra.mxu1 %vm8753_vm7, %v7131_v63  ;;  %vm8756_vm7 = vcmp.ge.s32.totalorder %v5273_v33, 2 }
 0x293   : > { %v2046_v59 = vadd.f32 %v2036_v0, %v1951_v27  ;;  %4522 = vmatmul.msk.f32.gmra.mxu0 %vm8754_vm6, %v8732_v61  ;;  %v4642_v27 = vld [vmem:[%s8552_s7 + $0xa40] sm:$0xff]  ;;  %vm8758_vm6 = vcmp.lt.s32.totalorder %v5603_v38, 7  ;;  %3250 = vmatpush.msra.mxu2 %v4618_v23  ;;  %v8761_v23 = vld [vmem:[#allocation31_spill] sm:$0xff]  ;;  %v4636_v61 = vld [vmem:[%s8552_s7 + $0xa10] sm:$0xff] }
 0x294   : > { %3322 = vmatpush.msra.mxu3 %v4642_v27  ;;  %v4617_v27 = vld [vmem:[%s8552_s7 + $0x9b0] sm:$0xff] }
 0x295   : > { %v2171_v57 = vpop.f32.mrf.mxu3  ;;  %3251 = vmatpush.msra.mxu2 %v4617_v27  ;;  %v4672_v27 = vld [vmem:[%s8552_s7 + $0xaf8] sm:$0xff] }
 0x296   : > { %v7507_v11 = vadd.f32 %v2171_v57, %v2046_v59  ;;  %3323 = vmatpush.msra.mxu3 %v4641_v24  ;;  %3388 = vmatpush.msra.mxu1 %v4672_v27  ;;  %v4670_v27 = vld [vmem:[%s8552_s7 + $0xae8] sm:$0xff] }
 0x297   : > { %v7512_v0 = vpop.f32.mrf.mxu1  ;;  %4540 = vmatmul.msk.f32.vlgmr.msrb.gmra.mxu2 %vm8756_vm7, %v8755_v45  ;;  %vm8766_vm7 = vcmp.lt.s32.totalorder %v5270_v32, 7 }
 0x298   : > { %v7517_v2 = vpop.f32.mrf.mxu0  ;;  %3324 = vmatpush.msra.mxu3 %v4640_v53 }
 0x29a   : > { %v2368_v59 = vpop.f32.mrf.mxu2  ;;  %4499 = vmatmul.msk.f32.gmra.mxu1 %vm8758_vm6, %v7523_v44  ;;  %4564 = vmatmul.msk.f32.vlgmr.msrb.gmra.mxu3 %vm8759_vm10, %v8735_v37  ;;  %v2251_v37 = vadd.f32 %v7234_v19, %v7223_v6  ;;  %v4616_v19 = vld [vmem:[%s8552_s7 + $0x9a8] sm:$0xff]  ;;  %vm8765_vm10 = vcmp.ge.s32.totalorder %v5304_v50, 1  ;;  %vm8768_vm6 = vcmp.ge.s32.totalorder %v5368_v13, 1 }
 0x29b   : > { %v2392_v57 = vadd.f32 %v2368_v59, %v2326_v3  ;;  %4523 = vmatmul.msk.f32.gmra.mxu0 %vm2084_vm9, %v8760_v40  ;;  %vm8763_vm9 = vcmp.lt.s32.totalorder %v5273_v33, 7  ;;  %3252 = vmatpush.msra.mxu2 %v4616_v19  ;;  %v4638_v19 = vld [vmem:[%s8552_s7 + $0xa20] sm:$0xff] }
 0x29c   : > { %v2327_v24 = vadd.f32 %v7239_v47, %v2251_v37  ;;  %v4639_v47 = vld [vmem:[%s8552_s7 + $0xa28] sm:$0xff]  ;;  %v4615_v37 = vld [vmem:[%s8552_s7 + $0x9a0] sm:$0xff] }
 0x29d   : > { %v2446_v45 = vpop.f32.mrf.mxu3  ;;  %3325 = vmatpush.msra.mxu3 %v4639_v47  ;;  %3253 = vmatpush.msra.mxu2 %v4615_v37 }
 0x29e   : > { %v7545_v3 = vadd.f32 %v2446_v45, %v2392_v57 }
 0x29f   : > { %v7550_v59 = vpop.f32.mrf.mxu1  ;;  %4541 = vmatmul.msk.f32.gmra.mxu2 %vm1702_vm3, %v8761_v23  ;;  %3326 = vmatpush.msra.mxu3 %v4638_v19  ;;  %v4668_v19 = vld [vmem:[%s8552_s7 + $0xad8] sm:$0xff] }
 0x2a0   : > { %v7555_v40 = vpop.f32.mrf.mxu0 }
 0x2a2   : > { %v2371_v6 = vpop.f32.mrf.mxu2  ;;  %4565 = vmatmul.msk.f32.gmra.mxu3 %vm8762_vm1, %v8738_v62  ;;  %3112 = vmatmul.f32.vlgmr.msrb.gmra.mxu1 %v8710_v16  ;;  %v4695_v16 = vld [vmem:[%s8552_s7 + $0xb78] sm:$0xff]  ;;  %vm8769_vm1 = vcmp.lt.s32.totalorder %v5304_v50, 7 }
 0x2a3   : > { %v2393_v57 = vadd.f32 %v2371_v6, %v2327_v24  ;;  %4604 = vmatmul.msk.f32.vlgmr.msrb.gmra.mxu0 %vm8763_vm9, %v6503_v52  ;;  %v2252_v52 = vadd.f32 %v7286_v7, %v7278_v17  ;;  %v4671_v24 = vld [vmem:[%s8552_s7 + $0xaf0] sm:$0xff]  ;;  %vm8771_vm9 = vcmp.ge.s32.totalorder %v5419_v41, 1 }
 0x2a4   : > { %3454 = vmatpush.msra.mxu0 %v4695_v16  ;;  %v4694_v6 = vld [vmem:[%s8552_s7 + $0xb70] sm:$0xff]  ;;  %3389 = vmatpush.msra.mxu1 %v4671_v24  ;;  %v4693_v16 = vld [vmem:[%s8552_s7 + $0xb68] sm:$0xff]  ;;  %v4692_v24 = vld [vmem:[%s8552_s7 + $0xb60] sm:$0xff] }
 0x2a5   : > { %v2449_v45 = vpop.f32.mrf.mxu3  ;;  %v8764_v17 = vld [vmem:[#allocation32_spill] sm:$0xff] }
 0x2a6   : > { %v7582_v53 = vadd.f32 %v2449_v45, %v2393_v57  ;;  %3455 = vmatpush.msra.mxu0 %v4694_v6  ;;  %v2328_v57 = vadd.f32 %v7291_v34, %v2252_v52  ;;  %v4614_v45 = vld [vmem:[%s8552_s7 + $0x998] sm:$0xff]  ;;  %v4669_v34 = vld [vmem:[%s8552_s7 + $0xae0] sm:$0xff]  ;;  %3390 = vmatpush.msra.mxu1 %v4670_v27  ;;  %v2253_v27 = vadd.f32 %v7338_v43, %v7330_v4 }
 0x2a7   : > { %v7593_v47 = vpop.f32.mrf.mxu1  ;;  %4542 = vmatmul.msk.f32.gmra.mxu2 %vm1703_vm4, %v8764_v17  ;;  %v4637_v6 = vld [vmem:[%s8552_s7 + $0xa18] sm:$0xff] }
 0x2a8   : > { %v7598_v7 = vpop.f32.mrf.mxu0  ;;  %3456 = vmatpush.msra.mxu0 %v4693_v16  ;;  %3254 = vmatpush.msra.mxu2 %v4614_v45  ;;  %v4667_v45 = vld [vmem:[%s8552_s7 + $0xad0] sm:$0xff]  ;;  %v8767_v43 = vld [vmem:[#allocation33_spill] sm:$0xff] }
 0x2a9   : > { %3391 = vmatpush.msra.mxu1 %v4669_v34  ;;  %3327 = vmatpush.msra.mxu3 %v4637_v6  ;;  %v4666_v6 = vld [vmem:[%s8552_s7 + $0xac8] sm:$0xff] }
 0x2aa   : > { %v2374_v37 = vpop.f32.mrf.mxu2  ;;  %4566 = vmatmul.msk.f32.gmra.mxu3 %vm8765_vm10, %v6241_v26  ;;  %3115 = vmatmul.f32.gmra.mxu1 %v6114_v49  ;;  %vm8773_vm10 = vcmp.ge.s32.totalorder %v5487_v14, 1 }
 0x2ab   : > { %v2394_v52 = vadd.f32 %v2374_v37, %v2328_v57  ;;  %4605 = vmatmul.msk.f32.gmra.mxu0 %vm8766_vm7, %v6566_v1  ;;  %v4613_v57 = vld [vmem:[%s8552_s7 + $0x990] sm:$0xff]  ;;  %v4691_v1 = vld [vmem:[%s8552_s7 + $0xb58] sm:$0xff]  ;;  %3392 = vmatpush.msra.mxu1 %v4668_v19  ;;  %v4689_v19 = vld [vmem:[%s8552_s7 + $0xb48] sm:$0xff]  ;;  %vm8775_vm7 = vcmp.ge.s32.totalorder %v5538_v54, 1 }
 0x2ac   : > { %3457 = vmatpush.msra.mxu0 %v4692_v24  ;;  %3255 = vmatpush.msra.mxu2 %v4613_v57  ;;  %v4690_v24 = vld [vmem:[%s8552_s7 + $0xb50] sm:$0xff] }
 0x2ad   : > { %v2452_v37 = vpop.f32.mrf.mxu3  ;;  %3328 = vmatpush.msra.mxu3 %v4636_v61  ;;  %3393 = vmatpush.msra.mxu1 %v4667_v45  ;;  %v4665_v61 = vld [vmem:[%s8552_s7 + $0xac0] sm:$0xff] }
 0x2ae   : > { %v7637_v16 = vadd.f32 %v2452_v37, %v2394_v52  ;;  %3458 = vmatpush.msra.mxu0 %v4691_v1  ;;  %v2329_v52 = vadd.f32 %v7343_v35, %v2253_v27  ;;  %v4612_v1 = vld [vmem:[%s8552_s7 + $0x988] sm:$0xff]  ;;  %v4664_v37 = vld [vmem:[%s8552_s7 + $0xab8] sm:$0xff]  ;;  %v4611_v45 = vld [vmem:[%s8552_s7 + $0x980] sm:$0xff] }
 0x2af   : > { %v7645_v4 = vpop.f32.mrf.mxu1  ;;  %4543 = vmatmul.msk.f32.gmra.mxu2 %vm1704_vm5, %v8767_v43  ;;  %3394 = vmatpush.msra.mxu1 %v4666_v6  ;;  %v4635_v27 = vld [vmem:[%s8552_s7 + $0xa08] sm:$0xff] }
 0x2b0   : > { %v7650_v34 = vpop.f32.mrf.mxu0  ;;  %3459 = vmatpush.msra.mxu0 %v4690_v24  ;;  %3256 = vmatpush.msra.mxu2 %v4612_v1  ;;  %v4663_v1 = vld [vmem:[%s8552_s7 + $0xab0] sm:$0xff] }
 0x2b1   : > { %3395 = vmatpush.msra.mxu1 %v4665_v61  ;;  %3329 = vmatpush.msra.mxu3 %v4635_v27  ;;  %v4662_v27 = vld [vmem:[%s8552_s7 + $0xaa8] sm:$0xff] }
 0x2b2   : > { %v2377_v57 = vpop.f32.mrf.mxu2  ;;  %4567 = vmatmul.msk.f32.gmra.mxu3 %vm8768_vm6, %v6290_v20  ;;  %3118 = vmatmul.f32.gmra.mxu1 %v6176_v46  ;;  %vm8777_vm6 = vcmp.ge.s32.totalorder %v5603_v38, 2 }
 0x2b3   : > { %v2395_v35 = vadd.f32 %v2377_v57, %v2329_v52  ;;  %4606 = vmatmul.msk.f32.gmra.mxu0 %vm8769_vm1, %v6623_v29  ;;  %v2254_v52 = vadd.f32 %v7390_v5, %v7382_v30  ;;  %v4688_v57 = vld [vmem:[%s8552_s7 + $0xb40] sm:$0xff]  ;;  %3257 = vmatpush.msra.mxu2 %v4611_v45  ;;  %vm8779_vm1 = vcmask 1040384  }
 0x2b4   : > { %3460 = vmatpush.msra.mxu0 %v4689_v19  ;;  %v4634_v29 = vld [vmem:[%s8552_s7 + $0xa00] sm:$0xff]  ;;  %3396 = vmatpush.msra.mxu1 %v4664_v37  ;;  %v4687_v19 = vld [vmem:[%s8552_s7 + $0xb38] sm:$0xff] }
 0x2b5   : > { %v2455_v6 = vpop.f32.mrf.mxu3  ;;  %v8770_v5 = vld [vmem:[#allocation34_spill] sm:$0xff]  ;;  %3330 = vmatpush.msra.mxu3 %v4634_v29  ;;  %v4711_v29 = vld [vmem:[%s8552_s7 + $0xbf8] sm:$0xff] }
 0x2b6   : > { %v7689_v24 = vadd.f32 %v2455_v6, %v2395_v35  ;;  %3461 = vmatpush.msra.mxu0 %v4688_v57  ;;  %v2330_v35 = vadd.f32 %v7395_v18, %v2254_v52  ;;  %3397 = vmatpush.msra.mxu1 %v4663_v1  ;;  %v4661_v18 = vld [vmem:[%s8552_s7 + $0xaa0] sm:$0xff]  ;;  %v4686_v52 = vld [vmem:[%s8552_s7 + $0xb30] sm:$0xff]  ;;  %v4733_v6 = vld [vmem:[%s8552_s7 + $0xc78] sm:$0xff] }
 0x2b7   : > { %v7697_v30 = vpop.f32.mrf.mxu1  ;;  %4544 = vmatmul.msk.f32.gmra.mxu2 %vm1705_vm15, %v8770_v5  ;;  %v4660_v57 = vld [vmem:[%s8552_s7 + $0xa98] sm:$0xff]  ;;  %v4710_v1 = vld [vmem:[%s8552_s7 + $0xbf0] sm:$0xff]  ;;  %3598 = vmatpush.msrb.mxu3 %v4733_v6 }
 0x2b8   : > { %v7702_v61 = vpop.f32.mrf.mxu0  ;;  %3398 = vmatpush.msra.mxu1 %v4662_v27  ;;  %3462 = vmatpush.msra.mxu0 %v4687_v19  ;;  %v4685_v27 = vld [vmem:[%s8552_s7 + $0xb28] sm:$0xff] }
 0x2b9   : > { %3526 = vmatpush.msrb.mxu2 %v4711_v29  ;;  %v4659_v29 = vld [vmem:[%s8552_s7 + $0xa90] sm:$0xff] }
 0x2ba   : > { %v2380_v45 = vpop.f32.mrf.mxu2  ;;  %4568 = vmatmul.msk.f32.gmra.mxu3 %vm8771_vm9, %v6330_v51  ;;  %3121 = vmatmul.f32.gmra.mxu1 %v6238_v58  ;;  %vm8780_vm9 = vcmp.ge.s32.totalorder %v5603_v38, 1  ;;  %v4704_v38 = vld [vmem:[%s8552_s7 + $0xbc0] sm:$0xff] }
 0x2bb   : > { %v2396_v37 = vadd.f32 %v2380_v45, %v2330_v35  ;;  %4607 = vmatmul.msk.f32.gmra.mxu0 %vm1119_vm12, %v6689_v42  ;;  %v2255_v35 = vadd.f32 %v7436_v25, %v7431_v10  ;;  %3399 = vmatpush.msra.mxu1 %v4661_v18  ;;  %v4732_v42 = vld [vmem:[%s8552_s7 + $0xc70] sm:$0xff]  ;;  %v8772_v25 = vld [vmem:[#allocation14_spill] sm:$0xff] }
 0x2bc   : > { %3463 = vmatpush.msra.mxu0 %v4686_v52  ;;  %3527 = vmatpush.msrb.mxu2 %v4710_v1  ;;  %v4658_v52 = vld [vmem:[%s8552_s7 + $0xa88] sm:$0xff] }
 0x2bd   : > { %v2458_v45 = vpop.f32.mrf.mxu3  ;;  %3400 = vmatpush.msra.mxu1 %v4660_v57  ;;  %3599 = vmatpush.msrb.mxu3 %v4732_v42  ;;  %v2331_v18 = vadd.f32 %v7441_v36, %v2255_v35  ;;  %v4709_v42 = vld [vmem:[%s8552_s7 + $0xbe8] sm:$0xff]  ;;  %v4657_v36 = vld [vmem:[%s8552_s7 + $0xa80] sm:$0xff]  ;;  %v4683_v35 = vld [vmem:[%s8552_s7 + $0xb18] sm:$0xff] }
 0x2be   : > { %v7741_v19 = vadd.f32 %v2458_v45, %v2396_v37  ;;  %3464 = vmatpush.msra.mxu0 %v4685_v27  ;;  %v4684_v37 = vld [vmem:[%s8552_s7 + $0xb20] sm:$0xff]  ;;  %v4731_v45 = vld [vmem:[%s8552_s7 + $0xc68] sm:$0xff]  ;;  %3528 = vmatpush.msrb.mxu2 %v4709_v42 }
 0x2bf   : > { %v7749_v10 = vpop.f32.mrf.mxu1  ;;  %4545 = vmatmul.msk.f32.gmra.mxu2 %vm1706_vm11, %v8772_v25  ;;  %3401 = vmatpush.msra.mxu1 %v4659_v29  ;;  %v4708_v27 = vld [vmem:[%s8552_s7 + $0xbe0] sm:$0xff]  ;;  %v2256_v29 = vadd.f32 %v7481_v15, %v7469_v12  ;;  %v8774_v42 = vld [vmem:[#allocation19_spill] sm:$0xff] }
 0x2c0   : > { %v7761_v6 = vpop.f32.mrf.mxu0  ;;  %3465 = vmatpush.msra.mxu0 %v4684_v37  ;;  %3600 = vmatpush.msrb.mxu3 %v4731_v45  ;;  %v4681_v15 = vld [vmem:[%s8552_s7 + $0xb08] sm:$0xff]  ;;  %v4706_v45 = vld [vmem:[%s8552_s7 + $0xbd0] sm:$0xff] }
 0x2c1   : > { %3402 = vmatpush.msra.mxu1 %v4658_v52  ;;  %3529 = vmatpush.msrb.mxu2 %v4708_v27  ;;  %v2332_v12 = vadd.f32 %v7486_v22, %v2256_v29  ;;  %v4729_v22 = vld [vmem:[%s8552_s7 + $0xc58] sm:$0xff]  ;;  %v2257_v29 = vadd.f32 %v7512_v0, %v7507_v11  ;;  %v8778_v11 = vrot.slane %v8725_v60, 7 }
 0x2c2   : > { %v2383_v1 = vpop.f32.mrf.mxu2  ;;  %4569 = vmatmul.msk.f32.gmra.mxu3 %vm8773_vm10, %v8747_v21  ;;  %3124 = vmatmul.f32.gmra.mxu1 %v5692_v8  ;;  %vm8781_vm10 = vcmp.lt.s32.totalorder %v5538_v54, 7 }
 0x2c3   : > { %v2397_v57 = vadd.f32 %v2383_v1, %v2331_v18  ;;  %4608 = vmatmul.msk.f32.gmra.mxu0 %vm1120_vm14, %v6741_v48  ;;  %v4682_v1 = vld [vmem:[%s8552_s7 + $0xb10] sm:$0xff]  ;;  %3403 = vmatpush.msra.mxu1 %v4657_v36  ;;  %v4730_v48 = vld [vmem:[%s8552_s7 + $0xc60] sm:$0xff]  ;;  %v7841_v0 = vsel %vm8779_vm1, %v8778_v11, 0.0  ;;  %v8782_v11 = vld [vmem:[#allocation37_spill] sm:$0xff]  ;;  %vm8786_vm1 = vcmp.ge.s32.totalorder %v5273_v33, 1 }
 0x2c4   : > { %3466 = vmatpush.msra.mxu0 %v4683_v35  ;;  %3601 = vmatpush.msrb.mxu3 %v4730_v48  ;;  %v4680_v48 = vld [vmem:[%s8552_s7 + $0xb00] sm:$0xff] }
 0x2c5   : > { %v2461_v18 = vpop.f32.mrf.mxu3 }
 0x2c6   : > { %v7790_v52 = vadd.f32 %v2461_v18, %v2397_v57  ;;  %3467 = vmatpush.msra.mxu0 %v4682_v1  ;;  %v4707_v57 = vld [vmem:[%s8552_s7 + $0xbd8] sm:$0xff]  ;;  %3602 = vmatpush.msrb.mxu3 %v4729_v22 }
 0x2c7   : > { %v7795_v37 = vpop.f32.mrf.mxu1  ;;  %4546 = vmatmul.msk.f32.gmra.mxu2 %vm1707_vm13, %v8774_v42 }
 0x2c8   : > { %3530 = vmatpush.msrb.mxu2 %v4707_v57  ;;  %v7823_v27 = vpop.f32.mrf.mxu0  ;;  %3468 = vmatpush.msra.mxu0 %v4681_v15  ;;  %v8776_v57 = vld [vmem:[#allocation20_spill] sm:$0xff]  ;;  %v2333_v15 = vadd.f32 %v7517_v2, %v2257_v29  ;;  %v4727_v2 = vld [vmem:[%s8552_s7 + $0xc48] sm:$0xff] }
 0x2ca   : > { %v2386_v36 = vpop.f32.mrf.mxu2  ;;  %4570 = vmatmul.msk.f32.gmra.mxu3 %vm8775_vm7, %v7476_v39  ;;  %3127 = vmatmul.f32.gmra.mxu1 %v5699_v9  ;;  %vm8784_vm7 = vcmp.ge.s32.totalorder %v5273_v33, 2 }
 0x2cb   : > { %v2398_v35 = vadd.f32 %v2386_v36, %v2332_v12  ;;  %4609 = vmatmul.msk.f32.gmra.mxu0 %vm1121_vm0, %v7131_v63  ;;  %3531 = vmatpush.msrb.mxu2 %v4706_v45  ;;  %v4728_v12 = vld [vmem:[%s8552_s7 + $0xc50] sm:$0xff]  ;;  %v2547_v45 = vadd.f32 %v7550_v59, %v7545_v3  ;;  %v8783_v59 = vmov 0.0  }
 0x2cc   : > { %3469 = vmatpush.msra.mxu0 %v4680_v48  ;;  %3603 = vmatpush.msrb.mxu3 %v4728_v12  ;;  %v4705_v48 = vld [vmem:[%s8552_s7 + $0xbc8] sm:$0xff] }
 0x2cd   : > { %v2464_v18 = vpop.f32.mrf.mxu3  ;;  %3532 = vmatpush.msrb.mxu2 %v4705_v48 }
 0x2ce   : > { %v7827_v1 = vadd.f32 %v2464_v18, %v2398_v35  ;;  %3604 = vmatpush.msrb.mxu3 %v4727_v2 }
 0x2cf   : > { %v7832_v36 = vpop.f32.mrf.mxu1  ;;  %4547 = vmatmul.msk.f32.gmra.mxu2 %vm8777_vm6, %v8776_v57  ;;  %vm8785_vm6 = vcmp.lt.s32.totalorder %v5270_v32, 6 }
 0x2d0   : > { %3533 = vmatpush.msrb.mxu2 %v4704_v38  ;;  %v7861_v18 = vpop.f32.mrf.mxu0  ;;  %v4702_v38 = vld [vmem:[%s8552_s7 + $0xbb0] sm:$0xff] }
 0x2d2   : > { %v2389_v35 = vpop.f32.mrf.mxu2  ;;  %4571 = vmatmul.msk.f32.gmra.mxu3 %vm8780_vm9, %v7841_v0  ;;  %3130 = vmatmul.f32.gmra.mxu1 %v8725_v60  ;;  %vm8789_vm9 = vcmp.ge.s32.totalorder %v5304_v50, 1 }
 0x2d3   : > { %v2399_v22 = vadd.f32 %v2389_v35, %v2333_v15  ;;  %4610 = vmatmul.msk.f32.gmra.mxu0 %vm8781_vm10, %v7523_v44  ;;  %v4726_v15 = vld [vmem:[%s8552_s7 + $0xc40] sm:$0xff]  ;;  %v2624_v35 = vadd.f32 %v7555_v40, %v2547_v45  ;;  %v4725_v40 = vld [vmem:[%s8552_s7 + $0xc38] sm:$0xff]  ;;  %vm8791_vm10 = vcmp.ge.s32.totalorder %v5368_v13, 1 }
 0x2d4   : > { %3605 = vmatpush.msrb.mxu3 %v4726_v15  ;;  %v4724_v15 = vld [vmem:[%s8552_s7 + $0xc30] sm:$0xff] }
 0x2d5   : > { %v2467_v29 = vpop.f32.mrf.mxu3 }
 0x2d6   : > { %v7863_v12 = vadd.f32 %v2467_v29, %v2399_v22  ;;  %v4703_v22 = vld [vmem:[%s8552_s7 + $0xbb8] sm:$0xff]  ;;  %3606 = vmatpush.msrb.mxu3 %v4725_v40 }
 0x2d7   : > { %4627 = vmatmul.msk.f32.vlgmr.msra.gmra.mxu2 %vm2077_vm2, %v8782_v11  ;;  %v7872_v48 = vpop.f32.mrf.mxu1 }
 0x2d8   : > { %3534 = vmatpush.msrb.mxu2 %v4703_v22  ;;  %3607 = vmatpush.msrb.mxu3 %v4724_v15  ;;  %v7898_v11 = vpop.f32.mrf.mxu0 }
 0x2da   : > { %v2677_v3 = vpop.f32.mrf.mxu2  ;;  %3133 = vmatmul.f32.gmra.mxu1 %v8783_v59  ;;  %4650 = vmatmul.msk.f32.vlgmr.msra.gmra.mxu3 %vm8784_vm7, %v8761_v23  ;;  %v2548_v23 = vadd.f32 %v7593_v47, %v7582_v53  ;;  %v4701_v53 = vld [vmem:[%s8552_s7 + $0xba8] sm:$0xff]  ;;  %vm8794_vm7 = vcmp.ge.s32.totalorder %v5419_v41, 1 }
 0x2db   : > { %v2701_v2 = vadd.f32 %v2677_v3, %v2624_v35  ;;  %3206 = vmatmul.f32.gmra.mxu0 %v8783_v59  ;;  %3535 = vmatpush.msrb.mxu2 %v4702_v38  ;;  %v3683_v38 = vld [vmem:[%s8555_s10 + $0x70] sm:$0xff] }
 0x2dc   : > { %v2625_v35 = vadd.f32 %v7598_v7, %v2548_v23  ;;  %v4723_v7 = vld [vmem:[%s8552_s7 + $0xc28] sm:$0xff]  ;;  %v4722_v23 = vld [vmem:[%s8552_s7 + $0xc20] sm:$0xff] }
 0x2dd   : > { %v2743_v45 = vpop.f32.mrf.mxu3  ;;  %3536 = vmatpush.msrb.mxu2 %v4701_v53  ;;  %3608 = vmatpush.msrb.mxu3 %v4723_v7  ;;  %v3680_v53 = vld [vmem:[%s8555_s10 + $0x58] sm:$0xff] }
 0x2de   : > { %v7890_v29 = vadd.f32 %v2743_v45, %v2701_v2  ;;  %v2549_v2 = vadd.f32 %v7645_v4, %v7637_v16  ;;  %v3682_v4 = vld [vmem:[%s8555_s10 + $0x68] sm:$0xff] }
 0x2df   : > { %4628 = vmatmul.msk.f32.gmra.mxu2 %vm8785_vm6, %v8717_v28  ;;  %v7910_v47 = vpop.f32.mrf.mxu1  ;;  %3609 = vmatpush.msrb.mxu3 %v4722_v23  ;;  %vm8797_vm6 = vcmp.ge.s32.totalorder %v5487_v14, 1 }
 0x2e0   : > { %v2626_v16 = vadd.f32 %v7650_v34, %v2549_v2  ;;  %v7939_v45 = vpop.f32.mrf.mxu0  ;;  %v3681_v34 = vld [vmem:[%s8555_s10 + $0x60] sm:$0xff]  ;;  %v4720_v2 = vld [vmem:[%s8552_s7 + $0xc10] sm:$0xff] }
 0x2e2   : > { %v2680_v3 = vpop.f32.mrf.mxu2  ;;  %4651 = vmatmul.msk.f32.gmra.mxu3 %vm1702_vm3, %v8764_v17  ;;  %4673 = vmatmul.msk.f32.vlgmr.msra.gmra.mxu1 %vm8786_vm1, %v8738_v62  ;;  %v3684_v17 = vld [vmem:[%s8555_s10 + $0x78] sm:$0xff]  ;;  %v4700_v62 = vld [vmem:[%s8552_s7 + $0xba0] sm:$0xff]  ;;  %vm8787_vm3 = vcmp.ge.s32.totalorder %v5270_v32, 1  ;;  %vm8800_vm1 = vcmp.lt.s32.totalorder %v5273_v33, 7 }
 0x2e3   : > { %v2702_v22 = vadd.f32 %v2680_v3, %v2625_v35  ;;  %3470 = vmatmul.f32.vlgmr.msra.gmra.mxu0 %v6114_v49  ;;  %3685 = vmatpush.msrb.mxu1 %v3684_v17  ;;  %v4699_v35 = vld [vmem:[%s8552_s7 + $0xb98] sm:$0xff] }
 0x2e4   : > { %3537 = vmatpush.msrb.mxu2 %v4700_v62  ;;  %v3679_v62 = vld [vmem:[%s8555_s10 + $0x50] sm:$0xff] }
 0x2e5   : > { %v2746_v40 = vpop.f32.mrf.mxu3  ;;  %3686 = vmatpush.msrb.mxu1 %v3683_v38  ;;  %v4697_v38 = vld [vmem:[%s8552_s7 + $0xb88] sm:$0xff] }
 0x2e6   : > { %v7924_v49 = vadd.f32 %v2746_v40, %v2702_v22  ;;  %3538 = vmatpush.msrb.mxu2 %v4699_v35  ;;  %v2550_v22 = vadd.f32 %v7697_v30, %v7689_v24  ;;  %v3678_v30 = vld [vmem:[%s8555_s10 + $0x48] sm:$0xff] }
 0x2e7   : > { %4629 = vmatmul.msk.f32.gmra.mxu2 %vm2079_vm8, %v8719_v56  ;;  %3687 = vmatpush.msrb.mxu1 %v3682_v4  ;;  %v7965_v7 = vpop.f32.mrf.mxu1  ;;  %v3676_v4 = vld [vmem:[%s8555_s10 + $0x38] sm:$0xff] }
 0x2e8   : > { %v2627_v24 = vadd.f32 %v7702_v61, %v2550_v22  ;;  %v3677_v61 = vld [vmem:[%s8555_s10 + $0x40] sm:$0xff]  ;;  %v2844_v33 = vadd.f32 %v7965_v7, %v7924_v49 }
 0x2e9   : > { %3688 = vmatpush.msrb.mxu1 %v3681_v34  ;;  %v3675_v34 = vld [vmem:[%s8555_s10 + $0x30] sm:$0xff] }
 0x2ea   : > { %v2683_v15 = vpop.f32.mrf.mxu2  ;;  %4652 = vmatmul.msk.f32.gmra.mxu3 %vm1703_vm4, %v8767_v43  ;;  %4674 = vmatmul.msk.f32.gmra.mxu1 %vm8787_vm3, %v6241_v26  ;;  %v4721_v43 = vld [vmem:[%s8552_s7 + $0xc18] sm:$0xff]  ;;  %v4698_v26 = vld [vmem:[%s8552_s7 + $0xb90] sm:$0xff]  ;;  %vm8788_vm4 = vcmp.lt.s32.totalorder %v5368_v13, 6  ;;  %vm8804_vm3 = vcmp.lt.s32.totalorder %v5270_v32, 6 }
 0x2eb   : > { %v2703_v3 = vadd.f32 %v2683_v15, %v2626_v16  ;;  %3473 = vmatmul.f32.gmra.mxu0 %v6176_v46  ;;  %3610 = vmatpush.msrb.mxu3 %v4721_v43  ;;  %v8001_v16 = vpop.f32.mrf.mxu0 }
 0x2ec   : > { %3539 = vmatpush.msrb.mxu2 %v4698_v26  ;;  %3689 = vmatpush.msrb.mxu1 %v3680_v53  ;;  %v3673_v53 = vld [vmem:[%s8555_s10 + $0x20] sm:$0xff]  ;;  %v2920_v49 = vadd.f32 %v8001_v16, %v2844_v33 }
 0x2ed   : > { %v2749_v46 = vpop.f32.mrf.mxu3  ;;  %3611 = vmatpush.msrb.mxu3 %v4720_v2  ;;  %v3671_v2 = vld [vmem:[%s8555_s10 + $0x10] sm:$0xff] }
 0x2ee   : > { %v7967_v17 = vadd.f32 %v2749_v46, %v2703_v3  ;;  %3690 = vmatpush.msrb.mxu1 %v3679_v62  ;;  %3540 = vmatpush.msrb.mxu2 %v4697_v38  ;;  %v4718_v3 = vld [vmem:[%s8552_s7 + $0xc00] sm:$0xff]  ;;  %v2552_v46 = vadd.f32 %v7795_v37, %v7790_v52  ;;  %v3670_v52 = vld [vmem:[%s8555_s10 + $0x8] sm:$0xff] }
 0x2ef   : > { %4630 = vmatmul.msk.f32.gmra.mxu2 %vm8788_vm4, %v6704_v31  ;;  %v8016_v43 = vpop.f32.mrf.mxu1  ;;  %v8059_v37 = vld [vmem:[%s8554_s9 + $0x8] sm:$0xff]  ;;  %vm8806_vm4 = vcmask 130048  }
 0x2f0   : > { %3691 = vmatpush.msrb.mxu1 %v3678_v30  ;;  %3740 = vmatpush.msrb.mxu0 %v8059_v37  ;;  %v2845_v16 = vadd.f32 %v8016_v43, %v7967_v17 }
 0x2f2   : > { %v2686_v40 = vpop.f32.mrf.mxu2  ;;  %4653 = vmatmul.msk.f32.gmra.mxu3 %vm1704_vm5, %v8770_v5  ;;  %4675 = vmatmul.msk.f32.gmra.mxu1 %vm8789_vm9, %v6290_v20  ;;  %v4719_v5 = vld [vmem:[%s8552_s7 + $0xc08] sm:$0xff]  ;;  %v4696_v20 = vld [vmem:[%s8552_s7 + $0xb80] sm:$0xff]  ;;  %vm8790_vm5 = vcmp.lt.s32.totalorder %v5419_v41, 6  ;;  %vm8809_vm9 = vcmp.lt.s32.totalorder %v5304_v50, 7  ;;  %v3774_v50 = vld [vmem:[%s8556_s11 + $0x38] sm:$0xff] }
 0x2f3   : > { %v2704_v23 = vadd.f32 %v2686_v40, %v2627_v24  ;;  %3476 = vmatmul.f32.gmra.mxu0 %v6238_v58  ;;  %3612 = vmatpush.msrb.mxu3 %v4719_v5  ;;  %v2551_v58 = vadd.f32 %v7749_v10, %v7741_v19  ;;  %v3674_v10 = vld [vmem:[%s8555_s10 + $0x28] sm:$0xff]  ;;  %v8040_v62 = vpop.f32.mrf.mxu0  ;;  %v8792_v24 = vld [vmem:[#allocation17_spill] sm:$0xff]  ;;  %v8795_v5 = vld [vmem:[#allocation18_spill] sm:$0xff] }
 0x2f4   : > { %3692 = vmatpush.msrb.mxu1 %v3677_v61  ;;  %3541 = vmatpush.msrb.mxu2 %v4696_v20  ;;  %v8074_v61 = vld [vmem:[%s8554_s9] sm:$0xff]  ;;  %v2921_v17 = vadd.f32 %v8040_v62, %v2845_v16  ;;  %v8812_v62 = vld [vmem:[#allocation13_spill] sm:$0xff] }
 0x2f5   : > { %v2752_v15 = vpop.f32.mrf.mxu3  ;;  %3613 = vmatpush.msrb.mxu3 %v4718_v3  ;;  %v2628_v19 = vadd.f32 %v7761_v6, %v2551_v58  ;;  %v3672_v6 = vld [vmem:[%s8555_s10 + $0x18] sm:$0xff]  ;;  %3741 = vmatpush.msrb.mxu0 %v8074_v61  ;;  %v2554_v58 = vadd.f32 %v7872_v48, %v7863_v12  ;;  %v3767_v16 = vld [vmem:[%s8556_s11] sm:$0xff] }
 0x2f6   : > { %v8008_v35 = vadd.f32 %v2752_v15, %v2704_v23  ;;  %3693 = vmatpush.msrb.mxu1 %v3676_v4 }
 0x2f7   : > { %4631 = vmatmul.msk.f32.gmra.mxu2 %vm8790_vm5, %v6755_v55  ;;  %v8051_v30 = vpop.f32.mrf.mxu1  ;;  %vm8811_vm5 = vmmov %vm8806_vm4 }
 0x2f8   : > { %3694 = vmatpush.msrb.mxu1 %v3675_v34 }
 0x2fa   : > { %v2689_v26 = vpop.f32.mrf.mxu2  ;;  %4654 = vmatmul.msk.f32.gmra.mxu3 %vm1705_vm15, %v8772_v25  ;;  %4676 = vmatmul.msk.f32.gmra.mxu1 %vm8791_vm10, %v6330_v51  ;;  %vm8793_vm15 = vcmp.lt.s32.totalorder %v5487_v14, 6  ;;  %vm8818_vm10 = vcmp.lt.s32.totalorder %v5419_v41, 6 }
 0x2fb   : > { %v2705_v22 = vadd.f32 %v2689_v26, %v2628_v19  ;;  %3479 = vmatmul.f32.gmra.mxu0 %v5692_v8  ;;  %3695 = vmatpush.msrb.mxu1 %v3674_v10  ;;  %v2629_v8 = vadd.f32 %v7823_v27, %v2552_v46  ;;  %v3669_v27 = vld [vmem:[%s8555_s10] sm:$0xff]  ;;  %v3780_v46 = vld [vmem:[%s8556_s11 + $0x68] sm:$0xff] }
 0x2fd   : > { %v2755_v25 = vpop.f32.mrf.mxu3  ;;  %3696 = vmatpush.msrb.mxu1 %v3673_v53  ;;  %v8801_v53 = vld [vmem:[#allocation11_spill] sm:$0xff] }
 0x2fe   : > { %v8042_v51 = vadd.f32 %v2755_v25, %v2705_v22 }
 0x2ff   : > { %4632 = vmatmul.msk.f32.gmra.mxu2 %vm8793_vm15, %v8792_v24  ;;  %3697 = vmatpush.msrb.mxu1 %v3672_v6 }
 0x301   : > { %3698 = vmatpush.msrb.mxu1 %v3671_v2  ;;  %v8802_v2 = vld [vmem:[#allocation40_spill] sm:$0xff] }
 0x302   : > { %v2692_v40 = vpop.f32.mrf.mxu2  ;;  %4655 = vmatmul.msk.f32.gmra.mxu3 %vm1706_vm11, %v8774_v42  ;;  %4677 = vmatmul.msk.f32.gmra.mxu1 %vm8794_vm7, %v8747_v21  ;;  %v2553_v42 = vadd.f32 %v7832_v36, %v7827_v1  ;;  %vm8796_vm11 = vcmp.lt.s32.totalorder %v5538_v54, 6  ;;  %v8094_v1 = vpop.f32.mrf.mxu1  ;;  %vm8823_vm7 = vmmov %vm8806_vm4 }
 0x303   : > { %v2706_v38 = vadd.f32 %v2692_v40, %v2629_v8  ;;  %3482 = vmatmul.f32.gmra.mxu0 %v5699_v9  ;;  %3699 = vmatpush.msrb.mxu1 %v3670_v52  ;;  %v8085_v9 = vpop.f32.mrf.mxu0  ;;  %v3779_v52 = vld [vmem:[%s8556_s11 + $0x60] sm:$0xff]  ;;  %v3778_v40 = vld [vmem:[%s8556_s11 + $0x58] sm:$0xff] }
 0x304   : > { %v2630_v20 = vadd.f32 %v7861_v18, %v2553_v42  ;;  %v2631_v18 = vadd.f32 %v7898_v11, %v2554_v58  ;;  %v8799_v11 = vld [vmem:[#allocation38_spill] sm:$0xff]  ;;  %v8807_v42 = vld [vmem:[#allocation12_spill] sm:$0xff]  ;;  %v3776_v58 = vld [vmem:[%s8556_s11 + $0x48] sm:$0xff] }
 0x305   : > { %v2758_v23 = vpop.f32.mrf.mxu3  ;;  %3700 = vmatpush.msrb.mxu1 %v3669_v27 }
 0x306   : > { %v8079_v21 = vadd.f32 %v2758_v23, %v2706_v38  ;;  %v8805_v38 = vld [vmem:[#allocation2_spill] sm:$0xff] }
 0x307   : > { %4633 = vmatmul.msk.f32.gmra.mxu2 %vm8796_vm11, %v8795_v5 }
 0x30a   : > { %v2695_v4 = vpop.f32.mrf.mxu2  ;;  %4656 = vmatmul.msk.f32.gmra.mxu3 %vm1707_vm13, %v8776_v57  ;;  %4678 = vmatmul.msk.f32.gmra.mxu1 %vm8797_vm6, %v7476_v39  ;;  %vm8798_vm13 = vcmp.ge.s32.totalorder %v5538_v54, 1  ;;  %v2843_v39 = vadd.f32 %v7910_v47, %v7890_v29  ;;  %v8112_v12 = vpop.f32.mrf.mxu1  ;;  %v4783_v54 = vld [vmem:[%s8549_s4] sm:$0x7]  ;;  %v3782_v29 = vld [vmem:[%s8556_s11 + $0x78] sm:$0xff] }
 0x30b   : > { %v2707_v36 = vadd.f32 %v2695_v4, %v2630_v20  ;;  %3485 = vmatmul.f32.gmra.mxu0 %v8725_v60  ;;  %v8103_v57 = vpop.f32.mrf.mxu0  ;;  %3783 = vmatpush.msra.mxu2 %v3782_v29  ;;  %v8808_v4 = vld [vmem:[#allocation42_spill] sm:$0xff]  ;;  %v3772_v29 = vld [vmem:[%s8556_s11 + $0x28] sm:$0xff] }
 0x30c   : > { %v2919_v10 = vadd.f32 %v7939_v45, %v2843_v39  ;;  %v3781_v45 = vld [vmem:[%s8556_s11 + $0x70] sm:$0xff] }
 0x30d   : > { %v2761_v15 = vpop.f32.mrf.mxu3  ;;  %3784 = vmatpush.msra.mxu2 %v3781_v45 }
 0x30e   : > { %v8099_v34 = vadd.f32 %v2761_v15, %v2707_v36 }
 0x30f   : > { %3279 = vmatmul.f32.gmra.mxu2 %v8783_v59 }
 0x310   : > { %3785 = vmatpush.msra.mxu2 %v3780_v46  ;;  %v3771_v46 = vld [vmem:[%s8556_s11 + $0x20] sm:$0xff] }
 0x312   : > { %v2698_v3 = vpop.f32.mrf.mxu2  ;;  %3352 = vmatmul.f32.gmra.mxu3 %v8783_v59  ;;  %4679 = vmatmul.msk.f32.gmra.mxu1 %vm8798_vm13, %v7841_v0  ;;  %v8122_v0 = vperm.slane %v4783_v54, 0  ;;  %v8149_v25 = vpop.f32.mrf.mxu1 }
 0x313   : > { %v2708_v60 = vadd.f32 %v2698_v3, %v2631_v18  ;;  %3488 = vmatmul.f32.gmra.mxu0 %v8783_v59  ;;  %v8140_v6 = vpop.f32.mrf.mxu0  ;;  %3786 = vmatpush.msra.mxu2 %v3779_v52  ;;  %v3775_v18 = vld [vmem:[%s8556_s11 + $0x40] sm:$0xff] }
 0x314   : > { %v763_v22 = vadd.f32 %v8801_v53, %v8122_v0  ;;  %v766_v23 = vadd.f32 %v8807_v42, %v8122_v0  ;;  %v769_v39 = vadd.f32 %v8812_v62, %v8122_v0 }
 0x315   : > { %v2764_v48 = vpop.f32.mrf.mxu3  ;;  %3787 = vmatpush.msra.mxu2 %v3778_v40 }
 0x316   : > { %v8114_v19 = vadd.f32 %v2764_v48, %v2708_v60  ;;  %v868_v8 = vmax.f32 %v763_v22, 0.0  ;;  %v871_v36 = vmax.f32 %v766_v23, 0.0  ;;  %v8810_v60 = vld [vmem:[#allocation3_spill] sm:$0xff]  ;;  %v2846_v48 = vadd.f32 %v8051_v30, %v8008_v35  ;;  %v8815_v22 = vld [vmem:[#allocation4_spill] sm:$0xff] }
 0x317   : > { %4712 = vmatmul.msk.f32.vlgmr.msrb.gmra.mxu2 %vm8800_vm1, %v8799_v11  ;;  %v874_v54 = vmax.f32 %v769_v39, 0.0  ;;  %v8825_v39 = vld [vmem:[#allocation7_spill] sm:$0xff]  ;;  %vm8843_vm1 = vcmask 261120  }
 0x318   : > { %v2922_v35 = vadd.f32 %v8085_v9, %v2846_v48  ;;  %v8817_v9 = vld [vmem:[#allocation16_spill] sm:$0xff]  ;;  %v8299_v48 = vld [vmem:[%s8551_s6] ss:$0 sm:$0xff] }
 0x319   : > { %v772_v33 = vadd.f32 %v8817_v9, %v8122_v0 }
 0x31a   : > { %v2971_v26 = vpop.f32.mrf.mxu2  ;;  %3425 = vmatmul.f32.gmra.mxu1 %v8783_v59  ;;  %4734 = vmatmul.msk.f32.vlgmr.msrb.gmra.mxu3 %vm2077_vm2, %v8717_v28  ;;  %vm8803_vm2 = vcmp.lt.s32.totalorder %v5270_v32, 7  ;;  %v3777_v32 = vld [vmem:[%s8556_s11 + $0x50] sm:$0xff]  ;;  %v8186_v43 = vpop.f32.mrf.mxu1 }
 0x31b   : > { %v8132_v47 = vadd.f32 %v2971_v26, %v2919_v10  ;;  %3491 = vmatmul.f32.gmra.mxu0 %v8783_v59  ;;  %3788 = vmatpush.msra.mxu2 %v3777_v32  ;;  %v3773_v26 = vld [vmem:[%s8556_s11 + $0x30] sm:$0xff] }
 0x31d   : > { %v8144_v28 = vpop.f32.mrf.mxu3  ;;  %3789 = vmatpush.msra.mxu2 %v3776_v58 }
 0x31f   : > { %4713 = vmatmul.msk.f32.gmra.mxu2 %vm8803_vm2, %v8802_v2  ;;  %v877_v2 = vmax.f32 %v772_v33, 0.0  ;;  %v8831_v33 = vld [vmem:[#allocation24_spill] sm:$0xff]  ;;  %vm8844_vm2 = vmmov %vm8843_vm1 }
 0x320   : > { %3790 = vmatpush.msra.mxu2 %v3775_v18 }
 0x322   : > { %v2974_v7 = vpop.f32.mrf.mxu2  ;;  %4735 = vmatmul.msk.f32.gmra.mxu3 %vm8804_vm3, %v8719_v56  ;;  %3701 = vmatmul.f32.vlgmr.msrb.gmra.mxu1 %v868_v8  ;;  %v8177_v56 = vpop.f32.mrf.mxu0  ;;  %v3770_v8 = vld [vmem:[%s8556_s11 + $0x18] sm:$0xff]  ;;  %vm8845_vm3 = vmmov %vm8843_vm1 }
 0x323   : > { %v8164_v27 = vadd.f32 %v2974_v7, %v2920_v49  ;;  %4740 = vmatmul.msk.f32.vlgmr.msrb.gmra.mxu0 %vm8806_vm4, %v8805_v38  ;;  %3791 = vmatpush.msra.mxu2 %v3774_v50  ;;  %v8222_v45 = vpop.f32.mrf.mxu1  ;;  %v8819_v7 = vld [vmem:[#allocation5_spill] sm:$0xff]  ;;  %v2848_v38 = vadd.f32 %v8112_v12, %v8079_v21  ;;  %v2850_v50 = vadd.f32 %v8186_v43, %v8114_v19  ;;  %v8829_v43 = vld [vmem:[#allocation8_spill] sm:$0xff] }
 0x325   : > { %v8172_v20 = vpop.f32.mrf.mxu3  ;;  %3792 = vmatpush.msra.mxu2 %v3773_v26  ;;  %v2924_v21 = vadd.f32 %v8140_v6, %v2848_v38 }
 0x327   : > { %4714 = vmatmul.msk.f32.gmra.mxu2 %vm8809_vm9, %v8808_v4  ;;  %v8822_v4 = vld [vmem:[#allocation6_spill] sm:$0xff]  ;;  %vm8846_vm9 = vmmov %vm8843_vm1 }
 0x328   : > { %3793 = vmatpush.msra.mxu2 %v3772_v29 }
 0x32a   : > { %v2977_v15 = vpop.f32.mrf.mxu2  ;;  %4736 = vmatmul.msk.f32.gmra.mxu3 %vm2079_vm8, %v6704_v31  ;;  %3704 = vmatmul.f32.gmra.mxu1 %v871_v36  ;;  %v8813_v31 = vld [vmem:[#allocation43_spill] sm:$0xff]  ;;  %v8210_v10 = vpop.f32.mrf.mxu0  ;;  %vm8814_vm8 = vcmp.lt.s32.totalorder %v5368_v13, 6  ;;  %v2847_v13 = vadd.f32 %v8094_v1, %v8042_v51 }
 0x32b   : > { %v8194_v3 = vadd.f32 %v2977_v15, %v2921_v17  ;;  %4741 = vmatmul.msk.f32.gmra.mxu0 %vm8811_vm5, %v8810_v60  ;;  %3794 = vmatpush.msra.mxu2 %v3771_v46  ;;  %v8260_v42 = vpop.f32.mrf.mxu1  ;;  %v2849_v17 = vadd.f32 %v8149_v25, %v8099_v34  ;;  %v8827_v34 = vld [vmem:[#allocation23_spill] sm:$0xff]  ;;  %v2926_v29 = vadd.f32 %v8210_v10, %v2850_v50  ;;  %v8837_v50 = vld [vmem:[#allocation36_spill] sm:$0xff]  ;;  %vm8847_vm5 = vmmov %vm8843_vm1 }
 0x32c   : > { %v2923_v52 = vadd.f32 %v8103_v57, %v2847_v13  ;;  %v8821_v57 = vld [vmem:[#allocation21_spill] sm:$0xff]  ;;  %v781_v25 = vadd.f32 %v8827_v34, %v8122_v0  ;;  %v784_v13 = vadd.f32 %v8831_v33, %v8122_v0 }
 0x32d   : > { %v8202_v11 = vpop.f32.mrf.mxu3  ;;  %3795 = vmatpush.msra.mxu2 %v3770_v8  ;;  %v775_v40 = vadd.f32 %v8821_v57, %v8122_v0  ;;  %v8833_v57 = vld [vmem:[#allocation9_spill] sm:$0xff] }
 0x32e   : > { %v886_v26 = vmax.f32 %v781_v25, 0.0  ;;  %v3839_v33 = vld [vmem:[%s8557_s12 + $0x38] sm:$0xff] }
 0x32f   : > { %4715 = vmatmul.msk.f32.gmra.mxu2 %vm1119_vm12, %v8813_v31  ;;  %vm8816_vm12 = vmmov %vm8806_vm4  ;;  %v880_v23 = vmax.f32 %v775_v40, 0.0 }
 0x332   : > { %v2980_v30 = vpop.f32.mrf.mxu2  ;;  %4737 = vmatmul.msk.f32.gmra.mxu3 %vm8814_vm8, %v6755_v55  ;;  %3707 = vmatmul.f32.gmra.mxu1 %v874_v54  ;;  %v8244_v51 = vpop.f32.mrf.mxu0  ;;  %vm8848_vm8 = vmmov %vm8843_vm1 }
 0x333   : > { %v8224_v53 = vadd.f32 %v2980_v30, %v2922_v35  ;;  %4742 = vmatmul.msk.f32.gmra.mxu0 %vm8816_vm12, %v8815_v22  ;;  %v8287_v18 = vpop.f32.mrf.mxu1  ;;  %v8828_v35 = vld [vmem:[#allocation45_spill] sm:$0xff]  ;;  %vm8849_vm12 = vmmov %vm8843_vm1 }
 0x334   : > { %v1660_v30 = vadd.f32 %v8299_v48, %v8828_v35 }
 0x335   : > { %v8232_v55 = vpop.f32.mrf.mxu3 }
 0x336   : > { %v1668_v46 = vmax.f32 %v1660_v30, 0.0  ;;  %v3841_v30 = vld [vmem:[%s8557_s12 + $0x48] sm:$0xff] }
 0x337   : > { %4716 = vmatmul.msk.f32.gmra.mxu2 %vm1120_vm14, %v7131_v63  ;;  %v3769_v63 = vld [vmem:[%s8556_s11 + $0x10] sm:$0xff]  ;;  %vm8820_vm14 = vmmov %vm8806_vm4 }
 0x338   : > { %3796 = vmatpush.msra.mxu2 %v3769_v63 }
 0x33a   : > { %v2983_v1 = vpop.f32.mrf.mxu2  ;;  %4738 = vmatmul.msk.f32.gmra.mxu3 %vm8818_vm10, %v8792_v24  ;;  %3710 = vmatmul.f32.gmra.mxu1 %v877_v2  ;;  %v3768_v24 = vld [vmem:[%s8556_s11 + $0x8] sm:$0xff]  ;;  %v8281_v58 = vpop.f32.mrf.mxu0  ;;  %vm8850_vm10 = vmmov %vm8843_vm1 }
 0x33b   : > { %v8252_v49 = vadd.f32 %v2983_v1, %v2923_v52  ;;  %4743 = vmatmul.msk.f32.gmra.mxu0 %vm8820_vm14, %v8819_v7  ;;  %3797 = vmatpush.msra.mxu2 %v3768_v24  ;;  %v8311_v22 = vpop.f32.mrf.mxu1  ;;  %v889_v52 = vmax.f32 %v784_v13, 0.0  ;;  %v8832_v1 = vld [vmem:[#allocation35_spill] sm:$0xff]  ;;  %v8835_v24 = vld [vmem:[#allocation28_spill] sm:$0xff] }
 0x33c   : > { %v1661_v63 = vadd.f32 %v8299_v48, %v8832_v1  ;;  %v8838_v13 = vld [vmem:[#allocation39_spill] sm:$0xff] }
 0x33d   : > { %v8262_v41 = vpop.f32.mrf.mxu3  ;;  %3798 = vmatpush.msra.mxu2 %v3767_v16 }
 0x33e   : > { %v1669_v38 = vmax.f32 %v1661_v63, 0.0  ;;  %v3837_v63 = vld [vmem:[%s8557_s12 + $0x28] sm:$0xff] }
 0x33f   : > { %4717 = vmatmul.msk.f32.gmra.mxu2 %vm1121_vm0, %v7523_v44  ;;  %v8824_v44 = vld [vmem:[#allocation22_spill] sm:$0xff]  ;;  %vm8826_vm0 = vmmov %vm8806_vm4  ;;  %vm3933_vm4 = vcmask 253952  }
 0x340   : > { %v778_v36 = vadd.f32 %v8824_v44, %v8122_v0  ;;  %vm8830_vm11 = vmmov %vm8826_vm0  ;;  %v3847_v0 = vld [vmem:[%s8557_s12 + $0x78] sm:$0xff] }
 0x341   : > { %vm8834_vm6 = vmmov %vm8826_vm0  ;;  %4753 = vmatpush.msra.mxu3 %v3847_v0  ;;  %3848 = vmatpush.msra.mxu1 %v3847_v0 }
 0x342   : > { %v2986_v12 = vpop.f32.mrf.mxu2  ;;  %4739 = vmatmul.msk.f32.gmra.mxu3 %vm8793_vm15, %v8795_v5  ;;  %3713 = vmatmul.f32.gmra.mxu1 %v880_v23  ;;  %v883_v14 = vmax.f32 %v778_v36, 0.0  ;;  %v2925_v5 = vadd.f32 %v8177_v56, %v2849_v17  ;;  %v8303_v31 = vpop.f32.mrf.mxu0  ;;  %v1662_v23 = vadd.f32 %v8299_v48, %v8835_v24  ;;  %v8836_v17 = vld [vmem:[#allocation25_spill] sm:$0xff]  ;;  %vm8842_vm13 = vmmov %vm8826_vm0 }
 0x343   : > { %v3000_v32 = vadd.f32 %v2986_v12, %v2924_v21  ;;  %4744 = vmatmul.msk.f32.gmra.mxu0 %vm8823_vm7, %v8822_v4  ;;  %v8326_v7 = vpop.f32.mrf.mxu1  ;;  %v3846_v12 = vld [vmem:[%s8557_s12 + $0x70] sm:$0xff]  ;;  %v3835_v24 = vld [vmem:[%s8557_s12 + $0x18] sm:$0xff] }
 0x344   : > { %4754 = vmatpush.msra.mxu3 %v3846_v12  ;;  %3849 = vmatpush.msra.mxu1 %v3846_v12  ;;  %v1670_v36 = vmax.f32 %v1662_v23, 0.0  ;;  %v8839_v12 = vld [vmem:[#allocation41_spill] sm:$0xff] }
 0x345   : > { %v3062_v6 = vpop.f32.mrf.mxu3 }
 0x346   : > { %v8285_v15 = vadd.f32 %v3062_v6, %v3000_v32  ;;  %v3845_v32 = vld [vmem:[%s8557_s12 + $0x68] sm:$0xff]  ;;  %v1663_v6 = vadd.f32 %v8299_v48, %v8836_v17 }
 0x347   : > { %3560 = vmatmul.f32.gmra.mxu2 %v8783_v59  ;;  %4755 = vmatpush.msra.mxu3 %v3845_v32 }
 0x348   : > { %3850 = vmatpush.msra.mxu1 %v3845_v32  ;;  %v1671_v34 = vmax.f32 %v1663_v6, 0.0  ;;  %v1666_v32 = vadd.f32 %v8299_v48, %v8839_v12  ;;  %v3833_v6 = vld [vmem:[%s8557_s12 + $0x8] sm:$0xff] }
 0x34a   : > { %v2989_v60 = vpop.f32.mrf.mxu2  ;;  %3632 = vmatmul.f32.gmra.mxu3 %v8783_v59  ;;  %3716 = vmatmul.f32.gmra.mxu1 %v883_v14  ;;  %v8320_v10 = vpop.f32.mrf.mxu0 }
 0x34b   : > { %v3001_v62 = vadd.f32 %v2989_v60, %v2925_v5  ;;  %4745 = vmatmul.msk.f32.gmra.mxu0 %vm8826_vm0, %v8825_v39  ;;  %v8347_v4 = vpop.f32.mrf.mxu1  ;;  %v3844_v5 = vld [vmem:[%s8557_s12 + $0x60] sm:$0xff]  ;;  %v3843_v60 = vld [vmem:[%s8557_s12 + $0x58] sm:$0xff] }
 0x34c   : > { %4756 = vmatpush.msra.mxu3 %v3844_v5  ;;  %3851 = vmatpush.msra.mxu1 %v3844_v5  ;;  %v3071_v5 = vadd.f32 %v8144_v28, %v8132_v47 }
 0x34d   : > { %v3065_v56 = vpop.f32.mrf.mxu3 }
 0x34e   : > { %v8305_v54 = vadd.f32 %v3065_v56, %v3001_v62  ;;  %4757 = vmatpush.msra.mxu3 %v3843_v60  ;;  %3852 = vmatpush.msra.mxu1 %v3843_v60  ;;  %v1664_v56 = vadd.f32 %v8299_v48, %v8837_v50 }
 0x34f   : > { %3563 = vmatmul.f32.gmra.mxu2 %v8783_v59 }
 0x352   : > { %v2992_v9 = vpop.f32.mrf.mxu2  ;;  %3635 = vmatmul.f32.gmra.mxu3 %v8783_v59  ;;  %3719 = vmatmul.f32.gmra.mxu1 %v886_v26  ;;  %v8337_v16 = vpop.f32.mrf.mxu0  ;;  %v3842_v26 = vld [vmem:[%s8557_s12 + $0x50] sm:$0xff] }
 0x353   : > { %v3002_v19 = vadd.f32 %v2992_v9, %v2926_v29  ;;  %4746 = vmatmul.msk.f32.gmra.mxu0 %vm8830_vm11, %v8829_v43  ;;  %v8365_v25 = vpop.f32.mrf.mxu1  ;;  %3853 = vmatpush.msra.mxu1 %v3842_v26  ;;  %v3840_v29 = vld [vmem:[%s8557_s12 + $0x40] sm:$0xff] }
 0x354   : > { %4758 = vmatpush.msra.mxu3 %v3842_v26  ;;  %v3137_v26 = vadd.f32 %v8222_v45, %v3071_v5 }
 0x355   : > { %v3068_v2 = vpop.f32.mrf.mxu3  ;;  %3854 = vmatpush.msra.mxu1 %v3841_v30 }
 0x356   : > { %v8318_v8 = vadd.f32 %v3068_v2, %v3002_v19  ;;  %4759 = vmatpush.msra.mxu3 %v3841_v30  ;;  %v1672_v19 = vmax.f32 %v1664_v56, 0.0  ;;  %v1674_v56 = vmax.f32 %v1666_v32, 0.0  ;;  %v8840_v30 = vld [vmem:[#allocation15_spill] sm:$0xff] }
 0x357   : > { %3799 = vmatmul.f32.vlgmr.msra.gmra.mxu2 %v1668_v46  ;;  %3855 = vmatpush.msra.mxu1 %v3840_v29  ;;  %v1665_v46 = vadd.f32 %v8299_v48, %v8838_v13  ;;  %v1667_v47 = vadd.f32 %v8299_v48, %v8840_v30  ;;  %v3075_v30 = vadd.f32 %v8262_v41, %v8252_v49 }
 0x358   : > { %4760 = vmatpush.msra.mxu3 %v3840_v29 }
 0x359   : > { %3856 = vmatpush.msra.mxu1 %v3839_v33 }
 0x35a   : > { %v8324_v59 = vpop.f32.mrf.mxu2  ;;  %3722 = vmatmul.f32.gmra.mxu1 %v889_v52  ;;  %v8361_v62 = vpop.f32.mrf.mxu0  ;;  %4761 = vmatpush.msra.mxu3 %v3839_v33  ;;  %v3838_v52 = vld [vmem:[%s8557_s12 + $0x30] sm:$0xff]  ;;  %v3072_v33 = vadd.f32 %v8172_v20, %v8164_v27 }
 0x35b   : > { %4747 = vmatmul.msk.f32.gmra.mxu0 %vm8834_vm6, %v8833_v57  ;;  %v8389_v2 = vpop.f32.mrf.mxu1  ;;  %3857 = vmatpush.msra.mxu1 %v3838_v52  ;;  %v3836_v57 = vld [vmem:[%s8557_s12 + $0x20] sm:$0xff] }
 0x35c   : > { %4762 = vmatpush.msra.mxu3 %v3838_v52  ;;  %v1675_v52 = vmax.f32 %v1667_v47, 0.0 }
 0x35d   : > { %v8333_v40 = vpop.f32.mrf.mxu3  ;;  %3858 = vmatpush.msra.mxu1 %v3837_v63 }
 0x35e   : > { %4763 = vmatpush.msra.mxu3 %v3837_v63 }
 0x35f   : > { %3802 = vmatmul.f32.gmra.mxu2 %v1669_v38  ;;  %v1673_v38 = vmax.f32 %v1665_v46, 0.0  ;;  %3859 = vmatpush.msra.mxu1 %v3836_v57 }
 0x360   : > { %4764 = vmatpush.msra.mxu3 %v3836_v57 }
 0x361   : > { %3860 = vmatpush.msra.mxu1 %v3835_v24 }
 0x362   : > { %v8339_v21 = vpop.f32.mrf.mxu2  ;;  %v8382_v43 = vpop.f32.mrf.mxu0  ;;  %4765 = vmatpush.msra.mxu3 %v3835_v24 }
 0x363   : > { %v3405_v60 = vpop.f32.mrf.mxu1 }
 0x365   : > { %v8349_v44 = vpop.f32.mrf.mxu3 }
 0x367   : > { %3805 = vmatmul.f32.gmra.mxu2 %v1670_v36  ;;  %v3834_v36 = vld [vmem:[%s8557_s12 + $0x10] sm:$0xff] }
 0x368   : > { %3861 = vmatpush.msra.mxu1 %v3834_v36  ;;  %4766 = vmatpush.msra.mxu3 %v3834_v36 }
 0x36a   : > { %v8353_v14 = vpop.f32.mrf.mxu2  ;;  %v8407_v23 = vpop.f32.mrf.mxu0  ;;  %3862 = vmatpush.msra.mxu1 %v3833_v6  ;;  %4767 = vmatpush.msra.mxu3 %v3833_v6 }
 0x36b   : > { %v3408_v46 = vpop.f32.mrf.mxu1 }
 0x36d   : > { %v8363_v39 = vpop.f32.mrf.mxu3 }
 0x36f   : > { %3808 = vmatmul.f32.gmra.mxu2 %v1671_v34  ;;  %v3832_v34 = vld [vmem:[%s8557_s12] sm:$0xff] }
 0x370   : > { %3863 = vmatpush.msra.mxu1 %v3832_v34  ;;  %4768 = vmatpush.msra.mxu3 %v3832_v34 }
 0x372   : > { %v8372_v35 = vpop.f32.mrf.mxu2  ;;  %3927 = vmatpush.msrb.mxu1 %v8059_v37  ;;  %v3471_v28 = vpop.f32.mrf.mxu0  ;;  %v3138_v37 = vadd.f32 %v8260_v42, %v3072_v33  ;;  %v3141_v33 = vadd.f32 %v8326_v7, %v3075_v30  ;;  %v586_v7 = vld [vmem:[%s8547_s2] sm:$0x1] }
 0x373   : > { %v3411_v24 = vpop.f32.mrf.mxu1 }
 0x374   : > { %3928 = vmatpush.msrb.mxu1 %v8074_v61  ;;  %v3211_v63 = vadd.f32 %v8281_v58, %v3138_v37  ;;  %v3074_v58 = vadd.f32 %v8232_v55, %v8224_v53 }
 0x375   : > { %v8380_v9 = vpop.f32.mrf.mxu3 }
 0x376   : > { %v3284_v20 = vadd.f32 %v8339_v21, %v3211_v63 }
 0x377   : > { %3811 = vmatmul.f32.gmra.mxu2 %v1672_v19  ;;  %v3210_v19 = vadd.f32 %v8244_v51, %v3137_v26  ;;  %v3073_v51 = vadd.f32 %v8202_v11, %v8194_v3  ;;  %v8457_v3 = vld [vmem:[%s8553_s8] ss:$0 sm:$0xff] }
 0x378   : > { %v3357_v12 = vadd.f32 %v8349_v44, %v3284_v20  ;;  %v3140_v44 = vadd.f32 %v8311_v22, %v3074_v58 }
 0x379   : > { %v3283_v13 = vadd.f32 %v8324_v59, %v3210_v19 }
 0x37a   : > { %v8394_v1 = vpop.f32.mrf.mxu2  ;;  %v3474_v57 = vpop.f32.mrf.mxu0  ;;  %v3430_v11 = vadd.f32 %v3408_v46, %v3357_v12  ;;  %v3213_v26 = vadd.f32 %v8320_v10, %v3140_v44 }
 0x37b   : > { %v3356_v48 = vadd.f32 %v8333_v40, %v3283_v13  ;;  %v3414_v53 = vpop.f32.mrf.mxu1 }
 0x37d   : > { %v8402_v0 = vpop.f32.mrf.mxu3  ;;  %v3429_v27 = vadd.f32 %v3405_v60, %v3356_v48  ;;  %v3214_v48 = vadd.f32 %v8337_v16, %v3141_v33 }
 0x37f   : > { %3814 = vmatmul.f32.gmra.mxu2 %v1673_v38  ;;  %v3139_v38 = vadd.f32 %v8287_v18, %v3073_v51  ;;  %v3495_v42 = vadd.f32 %v3471_v28, %v3429_v27  ;;  %v3286_v28 = vadd.f32 %v8372_v35, %v3213_v26  ;;  %v3287_v35 = vadd.f32 %v8394_v1, %v3214_v48 }
 0x380   : > { %v3142_v27 = vadd.f32 %v8347_v4, %v8285_v15 }
 0x381   : > { %v3212_v32 = vadd.f32 %v8303_v31, %v3139_v38  ;;  %v3496_v31 = vadd.f32 %v3474_v57, %v3430_v11  ;;  %v3360_v16 = vadd.f32 %v8402_v0, %v3287_v35  ;;  %v8841_v38 = vld [vmem:[#allocation10_spill] sm:$0xff] }
 0x382   : > { %v8414_v17 = vpop.f32.mrf.mxu2  ;;  %v3477_v6 = vpop.f32.mrf.mxu0  ;;  %v3215_v1 = vadd.f32 %v8361_v62, %v3142_v27 }
 0x383   : > { %v3285_v21 = vadd.f32 %v8353_v14, %v3212_v32  ;;  %v3417_v49 = vpop.f32.mrf.mxu1 }
 0x384   : > { %v3433_v58 = vadd.f32 %v3417_v49, %v3360_v16 }
 0x385   : > { %v8424_v50 = vpop.f32.mrf.mxu3  ;;  %v3358_v34 = vadd.f32 %v8363_v39, %v3285_v21 }
 0x387   : > { %3817 = vmatmul.f32.gmra.mxu2 %v1674_v56  ;;  %v3431_v14 = vadd.f32 %v3411_v24, %v3358_v34  ;;  %v609_v24 = vadd.f32 %v8841_v38, %v586_v7 }
 0x389   : > { %v3497_v46 = vadd.f32 %v3477_v6, %v3431_v14  ;;  %v611_v15 = vmax.f32 %v609_v24, 0.0 }
 0x38a   : > { %v8431_v29 = vpop.f32.mrf.mxu2  ;;  %v3480_v13 = vpop.f32.mrf.mxu0 }
 0x38b   : > { %v3420_v11 = vpop.f32.mrf.mxu1  ;;  %v3909_v44 = vmul.f32 2.0, %v611_v15 }
 0x38d   : > { %v8437_v45 = vpop.f32.mrf.mxu3 }
 0x38f   : > { %3820 = vmatmul.f32.gmra.mxu2 %v1675_v52  ;;  %v3359_v52 = vadd.f32 %v8380_v9, %v3286_v28 }
 0x391   : > { %v3432_v63 = vadd.f32 %v3414_v53, %v3359_v52 }
 0x392   : > { %v8441_v61 = vpop.f32.mrf.mxu2 }
 0x393   : > { %v3498_v20 = vadd.f32 %v3480_v13, %v3432_v63  ;;  %v3423_v26 = vpop.f32.mrf.mxu1 }
 0x395   : > { %v8447_v59 = vpop.f32.mrf.mxu3 }
 0x39a   : > { %v3543_v40 = vpop.f32.mrf.mxu2 }
 0x39b   : > { %v3567_v36 = vadd.f32 %v3543_v40, %v3495_v42  ;;  %v3483_v42 = vpop.f32.mrf.mxu0  ;;  %v3426_v52 = vpop.f32.mrf.mxu1 }
 0x39c   : > { %v3499_v6 = vadd.f32 %v3483_v42, %v3433_v58 }
 0x39d   : > { %v3615_v18 = vpop.f32.mrf.mxu3 }
 0x39e   : > { %v3639_v5 = vadd.f32 %v3615_v18, %v3567_v36  ;;  %v3288_v36 = vadd.f32 %v8414_v17, %v3215_v1  ;;  %v3143_v18 = vadd.f32 %v8365_v25, %v8305_v54  ;;  %v3144_v25 = vadd.f32 %v8389_v2, %v8318_v8 }
 0x3a0   : > { %v3651_v60 = vadd.f32 %v8457_v3, %v3639_v5  ;;  %v3361_v5 = vadd.f32 %v8424_v50, %v3288_v36  ;;  %v3217_v28 = vadd.f32 %v8407_v23, %v3144_v25 }
 0x3a2   : > { %v3659_v55 = vmax.f32 %v3651_v60, 0.0  ;;  %v3546_v56 = vpop.f32.mrf.mxu2  ;;  %v3434_v17 = vadd.f32 %v3420_v11, %v3361_v5 }
 0x3a3   : > { %v3568_v47 = vadd.f32 %v3546_v56, %v3496_v31  ;;  %v3216_v31 = vadd.f32 %v8382_v43, %v3143_v18  ;;  %v3486_v53 = vpop.f32.mrf.mxu0 }
 0x3a4   : > { %3864 = vmatmul.f32.vlgmr.msra.gmra.mxu1 %v3659_v55  ;;  %v3500_v30 = vadd.f32 %v3486_v53, %v3434_v17 }
 0x3a5   : > { %v3618_v19 = vpop.f32.mrf.mxu3  ;;  %v3289_v55 = vadd.f32 %v8431_v29, %v3216_v31  ;;  %v3290_v29 = vadd.f32 %v8441_v61, %v3217_v28 }
 0x3a6   : > { %v3640_v22 = vadd.f32 %v3618_v19, %v3568_v47 }
 0x3a7   : > { %v3362_v47 = vadd.f32 %v8437_v45, %v3289_v55 }
 0x3a8   : > { %v3652_v39 = vadd.f32 %v8457_v3, %v3640_v22 }
 0x3a9   : > { %v3435_v22 = vadd.f32 %v3423_v26, %v3362_v47 }
 0x3aa   : > { %v3660_v37 = vmax.f32 %v3652_v39, 0.0  ;;  %v3549_v10 = vpop.f32.mrf.mxu2 }
 0x3ab   : > { %v3569_v41 = vadd.f32 %v3549_v10, %v3497_v46  ;;  %v3489_v13 = vpop.f32.mrf.mxu0  ;;  %v3363_v46 = vadd.f32 %v8447_v59, %v3290_v29 }
 0x3ac   : > { %3867 = vmatmul.f32.gmra.mxu1 %v3660_v37  ;;  %v3501_v2 = vadd.f32 %v3489_v13, %v3435_v22 }
 0x3ad   : > { %v3621_v51 = vpop.f32.mrf.mxu3  ;;  %v3436_v48 = vadd.f32 %v3426_v52, %v3363_v46 }
 0x3ae   : > { %v3641_v57 = vadd.f32 %v3621_v51, %v3569_v41 }
 0x3b0   : > { %v3653_v9 = vadd.f32 %v8457_v3, %v3641_v57  ;;  %v3702_v57 = vpop.f32.mrf.mxu1 }
 0x3b2   : > { %v3661_v12 = vmax.f32 %v3653_v9, 0.0  ;;  %v3552_v40 = vpop.f32.mrf.mxu2 }
 0x3b3   : > { %v3570_v32 = vadd.f32 %v3552_v40, %v3498_v20  ;;  %v3492_v41 = vpop.f32.mrf.mxu0 }
 0x3b4   : > { %3870 = vmatmul.f32.gmra.mxu1 %v3661_v12  ;;  %v3502_v61 = vadd.f32 %v3492_v41, %v3436_v48 }
 0x3b5   : > { %v3624_v21 = vpop.f32.mrf.mxu3 }
 0x3b6   : > { %v3642_v4 = vadd.f32 %v3624_v21, %v3570_v32 }
 0x3b8   : > { %v3654_v0 = vadd.f32 %v8457_v3, %v3642_v4  ;;  %v3705_v16 = vpop.f32.mrf.mxu1 }
 0x3ba   : > { %v3662_v60 = vmax.f32 %v3654_v0, 0.0  ;;  %v3555_v62 = vpop.f32.mrf.mxu2 }
 0x3bb   : > { %v3571_v34 = vadd.f32 %v3555_v62, %v3499_v6  ;;  %v3743_v1 = vpop.f32.mrf.mxu0 }
 0x3bc   : > { %3873 = vmatmul.f32.vlgmr.msra.gmra.mxu3 %v3662_v60  ;;  %4748 = vmatmul.msk.f32.vlgmr.msrb.gmra.mxu1 %vm8842_vm13, %v3909_v44  ;;  %v3744_v11 = vadd.f32 %v3743_v1, %v3702_v57 }
 0x3bd   : > { %v3627_v56 = vpop.f32.mrf.mxu3 }
 0x3be   : > { %v3643_v54 = vadd.f32 %v3627_v56, %v3571_v34 }
 0x3c0   : > { %v3655_v50 = vadd.f32 %v8457_v3, %v3643_v54  ;;  %v3708_v38 = vpop.f32.mrf.mxu1 }
 0x3c2   : > { %v3663_v43 = vmax.f32 %v3655_v50, 0.0  ;;  %v3558_v14 = vpop.f32.mrf.mxu2  ;;  %v3897_v50 = vld [vmem:[%s8558_s13] sm:$0x1] }
 0x3c3   : > { %v3572_v19 = vadd.f32 %v3558_v14, %v3500_v30  ;;  %v3746_v36 = vpop.f32.mrf.mxu0 }
 0x3c4   : > { %3876 = vmatmul.f32.gmra.mxu3 %v3663_v43  ;;  %v3747_v6 = vadd.f32 %v3746_v36, %v3705_v16 }
 0x3c5   : > { %v3630_v33 = vpop.f32.mrf.mxu3 }
 0x3c6   : > { %v3644_v39 = vadd.f32 %v3630_v33, %v3572_v19 }
 0x3c8   : > { %v3656_v8 = vadd.f32 %v8457_v3, %v3644_v39  ;;  %v3711_v24 = vpop.f32.mrf.mxu1 }
 0x3ca   : > { %v3664_v37 = vmax.f32 %v3656_v8, 0.0  ;;  %v3561_v45 = vpop.f32.mrf.mxu2 }
 0x3cb   : > { %v3573_v10 = vadd.f32 %v3561_v45, %v3501_v2  ;;  %v3749_v5 = vpop.f32.mrf.mxu0 }
 0x3cc   : > { %3879 = vmatmul.f32.gmra.mxu3 %v3664_v37  ;;  %v3750_v53 = vadd.f32 %v3749_v5, %v3708_v38 }
 0x3cd   : > { %v3633_v23 = vpop.f32.mrf.mxu3 }
 0x3ce   : > { %v3645_v49 = vadd.f32 %v3633_v23, %v3573_v10 }
 0x3d0   : > { %v3657_v63 = vadd.f32 %v8457_v3, %v3645_v49  ;;  %v3714_v42 = vpop.f32.mrf.mxu1 }
 0x3d2   : > { %v3665_v35 = vmax.f32 %v3657_v63, 0.0  ;;  %v3564_v51 = vpop.f32.mrf.mxu2 }
 0x3d3   : > { %v3574_v7 = vadd.f32 %v3564_v51, %v3502_v61  ;;  %v3752_v55 = vpop.f32.mrf.mxu0 }
 0x3d4   : > { %3882 = vmatmul.f32.gmra.mxu3 %v3665_v35  ;;  %v3753_v14 = vadd.f32 %v3752_v55, %v3711_v24 }
 0x3d5   : > { %v3636_v27 = vpop.f32.mrf.mxu3 }
 0x3d6   : > { %v3646_v9 = vadd.f32 %v3636_v27, %v3574_v7 }
 0x3d8   : > { %v3658_v59 = vadd.f32 %v8457_v3, %v3646_v9  ;;  %v3717_v12 = vpop.f32.mrf.mxu1  ;;  %v8504_v3 = vld [vmem:[%s8558_s13] ss:$0 sm:$0xff] }
 0x3da   : > { %v3666_v20 = vmax.f32 %v3658_v59, 0.0  ;;  %v3800_v32 = vpop.f32.mrf.mxu2 }
 0x3db   : > { %v3824_v15 = vadd.f32 %v3800_v32, %v3744_v11  ;;  %v3755_v43 = vpop.f32.mrf.mxu0 }
 0x3dc   : > { %3885 = vmatmul.f32.gmra.mxu3 %v3666_v20  ;;  %v3756_v13 = vadd.f32 %v3755_v43, %v3714_v42 }
 0x3e0   : > { %v3720_v40 = vpop.f32.mrf.mxu1 }
 0x3e2   : > { %v3803_v21 = vpop.f32.mrf.mxu2 }
 0x3e3   : > { %v3825_v44 = vadd.f32 %v3803_v21, %v3747_v6  ;;  %v3758_v39 = vpop.f32.mrf.mxu0 }
 0x3e4   : > { %v3759_v45 = vadd.f32 %v3758_v39, %v3717_v12 }
 0x3e8   : > { %v8499_v58 = vpop.f32.mrf.mxu1 }
 0x3ea   : > { %v3806_v60 = vpop.f32.mrf.mxu2 }
 0x3eb   : > { %v3826_v17 = vadd.f32 %v3806_v60, %v3750_v53  ;;  %v3761_v48 = vpop.f32.mrf.mxu0 }
 0x3ec   : > { %v3762_v61 = vadd.f32 %v3761_v48, %v3720_v40 }
 0x3f2   : > { %v3809_v25 = vpop.f32.mrf.mxu2 }
 0x3f3   : > { %v3827_v19 = vadd.f32 %v3809_v25, %v3753_v14  ;;  %v3764_v7 = vpop.f32.mrf.mxu0 }
 0x3f4   : > { %v3765_v59 = vadd.f32 %v3764_v7, %v8499_v58 }
 0x3fa   : > { %v3812_v28 = vpop.f32.mrf.mxu2 }
 0x3fb   : > { %v3828_v8 = vadd.f32 %v3812_v28, %v3756_v13 }
 0x402   : > { %v3815_v2 = vpop.f32.mrf.mxu2 }
 0x403   : > { %v3829_v10 = vadd.f32 %v3815_v2, %v3759_v45 }
 0x40a   : > { %v3818_v41 = vpop.f32.mrf.mxu2 }
 0x40b   : > { %v3830_v35 = vadd.f32 %v3818_v41, %v3762_v61 }
 0x412   : > { %v3821_v9 = vpop.f32.mrf.mxu2 }
 0x413   : > { %v3831_v20 = vadd.f32 %v3821_v9, %v3765_v59 }
 0x421   : > { %v3865_v4 = vpop.f32.mrf.mxu1 }
 0x422   : > { %v3889_v18 = vadd.f32 %v3865_v4, %v3824_v15 }
 0x424   : > { %v3901_v0 = vadd.f32 %v8504_v3, %v3889_v18 }
 0x426   : > { %3935 = vst.msk [vmem:[%s8511_s20 + $0x1] sm:$0xff] %vm8843_vm1, %v3901_v0 }
 0x429   : > { %v3868_v62 = vpop.f32.mrf.mxu1 }
 0x42a   : > { %v3890_v31 = vadd.f32 %v3868_v62, %v3825_v44 }
 0x42c   : > { %v3902_v34 = vadd.f32 %v8504_v3, %v3890_v31 }
 0x42e   : > { %3936 = vst.msk [vmem:[%s8511_s20 + $0x9] sm:$0xff] %vm8844_vm2, %v3902_v34 }
 0x431   : > { %v3871_v56 = vpop.f32.mrf.mxu1 }
 0x432   : > { %v3891_v54 = vadd.f32 %v3871_v56, %v3826_v17 }
 0x434   : > { %v3903_v26 = vadd.f32 %v8504_v3, %v3891_v54 }
 0x436   : > { %3937 = vst.msk [vmem:[%s8511_s20 + $0x11] sm:$0xff] %vm8845_vm3, %v3903_v26 }
 0x439   : > { %v3930_v30 = vpop.f32.mrf.mxu1 }
 0x43a   : > { %v3931_v47 = vadd.f32 %v3930_v30, %v3897_v50 }
 0x43c   : > { %3934 = vst.msk [vmem:[%s8511_s20] sm:$0x1] %vm3933_vm4, %v3931_v47 }
 0x43f   : > { %v3874_v22 = vpop.f32.mrf.mxu3 }
 0x440   : > { %v3892_v29 = vadd.f32 %v3874_v22, %v3827_v19 }
 0x442   : > { %v3904_v33 = vadd.f32 %v8504_v3, %v3892_v29 }
 0x444   : > { %3938 = vst.msk [vmem:[%s8511_s20 + $0x19] sm:$0xff] %vm8846_vm9, %v3904_v33 }
 0x447   : > { %v3877_v46 = vpop.f32.mrf.mxu3 }
 0x448   : > { %v3893_v52 = vadd.f32 %v3877_v46, %v3828_v8 }
 0x44a   : > { %v3905_v37 = vadd.f32 %v8504_v3, %v3893_v52 }
 0x44c   : > { %3939 = vst.msk [vmem:[%s8511_s20 + $0x21] sm:$0xff] %vm8847_vm5, %v3905_v37 }
 0x44f   : > { %v3880_v23 = vpop.f32.mrf.mxu3 }
 0x450   : > { %v3894_v49 = vadd.f32 %v3880_v23, %v3829_v10 }
 0x452   : > { %v3906_v63 = vadd.f32 %v8504_v3, %v3894_v49 }
 0x454   : > { %3940 = vst.msk [vmem:[%s8511_s20 + $0x29] sm:$0xff] %vm8848_vm8, %v3906_v63 }
 0x457   : > { %v3883_v51 = vpop.f32.mrf.mxu3 }
 0x458   : > { %v3895_v57 = vadd.f32 %v3883_v51, %v3830_v35 }
 0x45a   : > { %v3907_v27 = vadd.f32 %v8504_v3, %v3895_v57 }
 0x45c   : > { %3941 = vst.msk [vmem:[%s8511_s20 + $0x31] sm:$0xff] %vm8849_vm12, %v3907_v27 }
 0x45f   : > { %v3886_v16 = vpop.f32.mrf.mxu3 }
 0x460   : > { %v3896_v38 = vadd.f32 %v3886_v16, %v3831_v20 }
 0x462   : > { %v3908_v24 = vadd.f32 %v8504_v3, %v3896_v38 }
 0x464   : > { %3942 = vst.msk [vmem:[%s8511_s20 + $0x39] sm:$0xff] %vm8850_vm10, %v3908_v24 }
 0x465 PF: > { %s24_s29 = sadd.s32 1, %s4790_s29  }
 0x466   : > { %p21_p4 = scmp.ge.s32.totalorder %s24_s29, 4  }
 0x468   :  { %23 = sbr.rel (!%p21_p4) target bundleno = 1 (0x1), region = 138 }

</bundles_post_ra>
